<compile_context>
chip_gen: v7x
topology: tpu7x:2x2x1
jax: 0.10.0
libtpu: 0.0.40
codegen_flags: <defaults>
</compile_context>

<pallas_src>
import functools
import math

import jax
import jax.numpy as jnp
from jax.experimental import pallas as pl
from jax.experimental.pallas import tpu as pltpu

LEAKY_SLOPE = 0.01  # nn.LeakyReLU default negative_slope


# ------------------------------ Pallas kernel ------------------------------ #

def _banded_conv_kernel(x_ref, t_ref, b_ref, o_ref, cat_ref, *, H, NB, leaky_slope):
    """One grid step: NB images x one output-column tile, one MXU matmul.

    x_ref  : (NB, H, Win*Cin)    bf16  -- unpadded rows; (W, C) folded into lanes
    t_ref  : (3*Win*Cin, Wt*Ce)  bf16  -- banded weights (W ring-pad baked in)
    b_ref  : (1, Wt*Ce)          f32
    o_ref  : (NB, H, Wt*Ce)      bf16 (layers 1/2) or f32 (layer 3)
    cat_ref: (NB*H, 3*Win*Cin)   bf16 scratch -- H-tap strip built in VMEM
    """
    WinC = x_ref.shape[2]
    zrow = jnp.zeros((1, WinC), cat_ref.dtype)
    for i in range(NB):
        r0 = i * H
        # tap a=0 needs x row (h-1): zero for h=0
        cat_ref[r0:r0 + 1, 0:WinC] = zrow
        cat_ref[r0 + 1:r0 + H, 0:WinC] = x_ref[i, 0:H - 1, :]
        # tap a=1 needs x row h
        cat_ref[r0:r0 + H, WinC:2 * WinC] = x_ref[i, :, :]
        # tap a=2 needs x row (h+1): zero for h=H-1
        cat_ref[r0:r0 + H - 1, 2 * WinC:3 * WinC] = x_ref[i, 1:H, :]
        cat_ref[r0 + H - 1:r0 + H, 2 * WinC:3 * WinC] = zrow

    acc = jnp.dot(cat_ref[...], t_ref[...], preferred_element_type=jnp.float32)
    acc = acc + b_ref[...]
    if leaky_slope is not None:
        acc = jnp.where(acc >= 0, acc, leaky_slope * acc)
    acc = acc.astype(o_ref.dtype)
    for i in range(NB):
        o_ref[i] = acc[i * H:(i + 1) * H, :]


def _banded_conv(x, T, bias_row, leaky_slope, out_dtype, batch_block, col_tile):
    """x: (N, H, Win*Cin) bf16 ; T: (3*Win*Cin, WoC) bf16 ; bias: (1, WoC) f32."""
    N, H, WinC = x.shape
    KWinC, WoC = T.shape
    assert KWinC == 3 * WinC
    assert N % batch_block == 0 and WoC % col_tile == 0

    kernel = functools.partial(_banded_conv_kernel, H=H, NB=batch_block,
                               leaky_slope=leaky_slope)
    out_isz = jnp.dtype(out_dtype).itemsize
    blk_bytes = (batch_block * H * WinC * 2          # x block (bf16)
                 + KWinC * col_tile * 2              # weight tile (bf16)
                 + col_tile * 4                      # bias tile (f32)
                 + batch_block * H * col_tile * out_isz)
    scratch_bytes = batch_block * H * KWinC * 2
    vmem_limit = int(min(max(2 * (2 * blk_bytes + scratch_bytes), 32 << 20), 64 << 20))

    return pl.pallas_call(
        kernel,
        out_shape=jax.ShapeDtypeStruct((N, H, WoC), out_dtype),
        grid=(WoC // col_tile, N // batch_block),    # weight tile outermost
        in_specs=[
            pl.BlockSpec((batch_block, H, WinC), lambda t, n: (n, 0, 0)),
            pl.BlockSpec((KWinC, col_tile), lambda t, n: (0, t)),
            pl.BlockSpec((1, col_tile), lambda t, n: (0, t)),
        ],
        out_specs=pl.BlockSpec((batch_block, H, col_tile), lambda t, n: (n, 0, t)),
        scratch_shapes=[pltpu.VMEM((batch_block * H, KWinC), jnp.bfloat16)],
        compiler_params=pltpu.CompilerParams(
            dimension_semantics=("parallel", "parallel"),
            vmem_limit_bytes=vmem_limit),
    )(x, T, bias_row)


# ----------------------- Weight lowering (prepare once) -------------------- #

def _fused_deconv_weight(w_pt):
    """(Cin, Cout, 5, 5) ConvTranspose(stride=2,pad=2,out_pad=1) weights ->
    equivalent 3x3 conv weights (3, 3, Cin, 4*Cout); phase index p*2+q grouped
    as (p, q, c) on the last axis."""
    Cin, Cout = w_pt.shape[0], w_pt.shape[1]
    w = jnp.transpose(w_pt, (2, 3, 0, 1))          # (5, 5, Cin, Cout)
    zero = jnp.zeros((Cin, Cout), w.dtype)
    phases = []
    for p in (0, 1):
        for q in (0, 1):
            rows = []
            for a in range(3):
                cols = []
                for b in range(3):
                    kh = 4 + p - 2 * a
                    kw = 4 + q - 2 * b
                    ok = (0 <= kh <= 4) and (0 <= kw <= 4)
                    cols.append(w[kh, kw] if ok else zero)
                rows.append(jnp.stack(cols, 0))     # (3, Cin, Cout)
            phases.append(jnp.stack(rows, 0))       # (3, 3, Cin, Cout)
    W_eff = jnp.stack(phases, axis=3)               # (3, 3, Cin, 4, Cout)
    return W_eff.reshape(3, 3, Cin, 4 * Cout)


def _banded_weight(taps, Wo, *, phase_split):
    """(3, 3, Cin, Ce) pad-1 conv taps -> (3*Win*Cin, ncols) banded matrix with
    the width ring pad baked into the band mask.  Column order is (w, c) for a
    plain conv, or (p, w, q, c) for a phase-fused deconv (so the pixel shuffle
    downstream is a pure reshape)."""
    K, _, Cin, Ce = taps.shape
    Win = Wo                                        # 3x3 / pad-1 keeps width
    d = jnp.arange(Win)[:, None] - jnp.arange(Wo)[None, :] + 1   # = tap index b
    valid = (d >= 0) & (d < K)
    g = taps[:, jnp.clip(d, 0, K - 1)]              # (K, Win, Wo, Cin, Ce)
    g = jnp.where(valid[None, :, :, None, None], g, 0.0)
    if not phase_split:
        g = jnp.transpose(g, (0, 1, 3, 2, 4))       # a, w_in, cin, w_out, ce
        return g.reshape(K * Win * Cin, Wo * Ce)
    Cout = Ce // 4
    g = g.reshape(K, Win, Wo, Cin, 2, 2, Cout)      # a, w_in, w_out, cin, p, q, c
    g = jnp.transpose(g, (0, 1, 3, 4, 2, 5, 6))     # a, w_in, cin, p, w_out, q, c
    return g.reshape(K * Win * Cin, 2 * Wo * 2 * Cout)


def prepare_params(params, W):
    """Lower PyTorch-layout weights once: phase fusion + banded matrices + bf16."""
    We1 = _fused_deconv_weight(params["w1"])                           # Cin  -> 4*Cout
    We2 = _fused_deconv_weight(params["w2"])                           # Cout -> 4*Cout
    We3 = jnp.transpose(params["w3"][:, :, ::-1, ::-1], (2, 3, 0, 1))  # flipped 3x3

    def brow(b, reps):
        return jnp.tile(b, reps).reshape(1, -1).astype(jnp.float32)

    return {
        "T1": _banded_weight(We1, W, phase_split=True).astype(jnp.bfloat16),
        "T2": _banded_weight(We2, 2 * W, phase_split=True).astype(jnp.bfloat16),
        "T3": _banded_weight(We3, 4 * W, phase_split=False).astype(jnp.bfloat16),
        "b1": brow(params["b1"], 4 * W),
        "b2": brow(params["b2"], 8 * W),
        "b3": brow(params["b3"], 4 * W),
    }


# ------------------------------ Forward pass ------------------------------- #

def _pick_batch_block(n, h, target_rows=256):
    nb = 1
    for cand in range(1, n + 1):
        if n % cand == 0 and cand * h <= target_rows:
            nb = cand
    return nb


def _pick_col_tile(ncols, nrows, budget_bytes):
    if nrows * ncols * 2 <= budget_bytes:
        return ncols
    max_cols = max(budget_bytes // (2 * nrows), 128)
    tile = (max_cols // 128) * 128
    while tile >= 128:
        if ncols % tile == 0:
            return tile
        tile -= 128
    # TODO(synk): pad the output-column dim to a multiple of 128 so it can
    #             always be tiled; fall back to the full width for now.
    return ncols


def prior_decoder_forward(x_nchw, prep, *, weight_tile_bytes=8 << 20, m_target=256):
    x = jnp.transpose(x_nchw, (0, 2, 3, 1))        # NCHW -> NHWC
    N, H, W, _ = x.shape
    Cout = prep["b1"].shape[1] // (4 * W)

    def layer(x_nhwc, T, b, leaky, out_dtype):
        n, h, w, c = x_nhwc.shape
        xf = x_nhwc.reshape(n, h, w * c).astype(jnp.bfloat16)   # (W,C) -> lanes
        nb = _pick_batch_block(n, h, m_target)
        ct = _pick_col_tile(int(T.shape[1]), int(T.shape[0]), weight_tile_bytes)
        return _banded_conv(xf, T, b, leaky, out_dtype, nb, ct)

    # Layer 1: 5x5/s2 deconv == phase-fused 3x3 conv; pixel shuffle is a reshape.
    y = layer(x, prep["T1"], prep["b1"], LEAKY_SLOPE, jnp.bfloat16)      # (N,H,4W*Cout)
    x = y.reshape(N, H, 2, W, 2, Cout).reshape(N, 2 * H, 2 * W, Cout)
    # Layer 2: same, at 2x resolution.
    y = layer(x, prep["T2"], prep["b2"], LEAKY_SLOPE, jnp.bfloat16)      # (N,2H,8W*Cout)
    x = y.reshape(N, 2 * H, 2, 2 * W, 2, Cout).reshape(N, 4 * H, 4 * W, Cout)
    # Layer 3: 3x3/s1 ConvTranspose (flipped-kernel conv), f32 output, no activation.
    y = layer(x, prep["T3"], prep["b3"], None, jnp.float32)              # (N,4H,4W*Cout)
    x = y.reshape(N, 4 * H, 4 * W, Cout)
    # TODO(synk): return NHWC (skip this HBM pass) if the consumer accepts channel-last.
    return jnp.transpose(x, (0, 3, 1, 2))          # back to NCHW


# --------------------------- Parameter creation ---------------------------- #

def _xavier_normal(key, shape, gain):
    # PyTorch fan computation for ConvTranspose2d weight (Cin, Cout, K, K):
    cin, cout, kh, kw = shape
    fan_in = cout * kh * kw
    fan_out = cin * kh * kw
    std = gain * math.sqrt(2.0 / (fan_in + fan_out))
    return std * jax.random.normal(key, shape, jnp.float32)


def init_params(key, in_channel, out_channel):
    k1, k2, k3 = jax.random.split(key, 3)
    g1 = math.sqrt(2 * (in_channel + out_channel) / (in_channel + in_channel))
    g2 = math.sqrt(2.0)
    g3 = math.sqrt(2 * (in_channel + out_channel) / (out_channel + out_channel))
    return {
        "w1": _xavier_normal(k1, (in_channel, out_channel, 5, 5), g1),
        "b1": jnp.full((out_channel,), 0.01, jnp.float32),
        "w2": _xavier_normal(k2, (out_channel, out_channel, 5, 5), g2),
        "b2": jnp.full((out_channel,), 0.01, jnp.float32),
        "w3": _xavier_normal(k3, (out_channel, out_channel, 3, 3), g3),
        "b3": jnp.full((out_channel,), 0.01, jnp.float32),
    }


# ------------------------------ References --------------------------------- #

def _ref_conv_transpose(x_nchw, w_pt, b, stride, pad, out_pad, op_dtype):
    K = w_pt.shape[-1]
    w_oihw = jnp.transpose(w_pt[:, :, ::-1, ::-1], (1, 0, 2, 3)).astype(op_dtype)
    lo = K - 1 - pad
    hi = K - 1 - pad + out_pad
    y = jax.lax.conv_general_dilated(
        x_nchw.astype(op_dtype), w_oihw, window_strides=(1, 1),
        padding=[(lo, hi), (lo, hi)], lhs_dilation=(stride, stride),
        dimension_numbers=("NCHW", "OIHW", "NCHW"),
        preferred_element_type=jnp.float32)
    return y + b.reshape(1, -1, 1, 1)


def _ref_forward(x, params, op_dtype):
    def lrelu(v):
        return jnp.where(v >= 0, v, LEAKY_SLOPE * v)
    x = lrelu(_ref_conv_transpose(x, params["w1"], params["b1"], 2, 2, 1, op_dtype))
    x = lrelu(_ref_conv_transpose(x, params["w2"], params["b2"], 2, 2, 1, op_dtype))
    return _ref_conv_transpose(x, params["w3"], params["b3"], 1, 1, 0, op_dtype)


# ---------------------------------- main ----------------------------------- #

if __name__ == "__main__":
    in_channel, out_channel = 8, 8
    N, H, W = 2, 16, 16

    key = jax.random.PRNGKey(0)
    kx, kp = jax.random.split(key)
    x = jax.random.normal(kx, (N, in_channel, H, W), jnp.float32)
    params = init_params(kp, in_channel, out_channel)
    prep = prepare_params(params, W)

    fwd = jax.jit(prior_decoder_forward)
    out = jax.block_until_ready(fwd(x, prep))
    assert out.shape == (N, out_channel, 4 * H, 4 * W), out.shape

    # Exercise the output-column-tiled path (tiny weight-tile budget -> >=4 tiles/layer).
    fwd_tiled = jax.jit(functools.partial(prior_decoder_forward,
                                          weight_tile_bytes=64 * 1024))
    out_tiled = jax.block_until_ready(fwd_tiled(x, prep))
    assert jnp.allclose(out, out_tiled, atol=1e-4, rtol=1e-4), \
        float(jnp.max(jnp.abs(out - out_tiled)))

    # Operand-matched reference (bf16 matmul operands, f32 accumulate) -> tight.
    ref_bf16 = _ref_forward(x, params, jnp.bfloat16)
    err = float(jnp.max(jnp.abs(out - ref_bf16)))
    assert jnp.allclose(out, ref_bf16, atol=5e-3, rtol=5e-3), err

    # Full-f32 PyTorch-semantics reference -> loose (bf16 operands are an
    # intentional performance choice; accumulation stays f32).
    ref_f32 = _ref_forward(x, params, jnp.float32)
    err32 = float(jnp.max(jnp.abs(out - ref_f32)))
    assert jnp.allclose(out, ref_f32, atol=1e-1, rtol=1e-1), err32

    print("KERNEL_OK")
</pallas_src>

<mosaic_0001>
module attributes {stable_mosaic.version = 11 : i64} {
  func.func @_banded_conv_kernel(%arg0: i32, %arg1: i32, %arg2: memref<2x16x128xbf16, #tpu.memory_space<vmem>>, %arg3: memref<384x512xbf16, #tpu.memory_space<vmem>>, %arg4: memref<1x512xf32, #tpu.memory_space<vmem>>, %arg5: memref<2x16x512xbf16, #tpu.memory_space<vmem>>, %arg6: memref<32x384xbf16, #tpu.memory_space<vmem>>) attributes {dimension_semantics = [#tpu.dimension_semantics<parallel>, #tpu.dimension_semantics<parallel>], iteration_bounds = array<i64: 1, 1>, scalar_prefetch = 0 : i64, scratch_operands = 1 : i64, tpu.core_type = #tpu.core_type<tc>, window_params = [{transform_indices = @transform_0, window_bounds = array<i64: 2, 16, 128>}, {transform_indices = @transform_1, window_bounds = array<i64: 384, 512>}, {transform_indices = @transform_2, window_bounds = array<i64: 1, 512>}, {transform_indices = @transform_3, window_bounds = array<i64: 2, 16, 512>}]} {
    %cst = arith.constant 0.000000e+00 : bf16
    %0 = vector.broadcast %cst : bf16 to vector<1x128xbf16>
    %c0 = arith.constant 0 : index
    %c0_0 = arith.constant 0 : index
    %1 = vector.load %arg6[%c0, %c0_0] : memref<32x384xbf16, #tpu.memory_space<vmem>>, vector<1x128xbf16>
    tpu.vector_store %arg6[%c0, %c0_0], %0 {strides = array<i32>} : memref<32x384xbf16, #tpu.memory_space<vmem>>, vector<1x128xbf16>,
    %c0_1 = arith.constant 0 : index
    %c0_2 = arith.constant 0 : index
    %c0_3 = arith.constant 0 : index
    %2 = vector.load %arg2[%c0_1, %c0_2, %c0_3] : memref<2x16x128xbf16, #tpu.memory_space<vmem>>, vector<1x15x128xbf16>
    %3 = vector.shape_cast %2 : vector<1x15x128xbf16> to vector<15x128xbf16>
    %c1 = arith.constant 1 : index
    %c0_4 = arith.constant 0 : index
    %4 = vector.load %arg6[%c1, %c0_4] : memref<32x384xbf16, #tpu.memory_space<vmem>>, vector<15x128xbf16>
    tpu.vector_store %arg6[%c1, %c0_4], %3 {strides = array<i32>} : memref<32x384xbf16, #tpu.memory_space<vmem>>, vector<15x128xbf16>,
    %c0_5 = arith.constant 0 : index
    %c0_6 = arith.constant 0 : index
    %c0_7 = arith.constant 0 : index
    %5 = vector.load %arg2[%c0_5, %c0_6, %c0_7] : memref<2x16x128xbf16, #tpu.memory_space<vmem>>, vector<1x16x128xbf16>
    %6 = vector.shape_cast %5 : vector<1x16x128xbf16> to vector<16x128xbf16>
    %c0_8 = arith.constant 0 : index
    %c128 = arith.constant 128 : index
    %7 = vector.load %arg6[%c0_8, %c128] : memref<32x384xbf16, #tpu.memory_space<vmem>>, vector<16x128xbf16>
    tpu.vector_store %arg6[%c0_8, %c128], %6 {strides = array<i32>} : memref<32x384xbf16, #tpu.memory_space<vmem>>, vector<16x128xbf16>,
    %c0_9 = arith.constant 0 : index
    %c1_10 = arith.constant 1 : index
    %c0_11 = arith.constant 0 : index
    %8 = vector.load %arg2[%c0_9, %c1_10, %c0_11] : memref<2x16x128xbf16, #tpu.memory_space<vmem>>, vector<1x15x128xbf16>
    %9 = vector.shape_cast %8 : vector<1x15x128xbf16> to vector<15x128xbf16>
    %c0_12 = arith.constant 0 : index
    %c256 = arith.constant 256 : index
    %10 = vector.load %arg6[%c0_12, %c256] : memref<32x384xbf16, #tpu.memory_space<vmem>>, vector<15x128xbf16>
    tpu.vector_store %arg6[%c0_12, %c256], %9 {strides = array<i32>} : memref<32x384xbf16, #tpu.memory_space<vmem>>, vector<15x128xbf16>,
    %c15 = arith.constant 15 : index
    %c256_13 = arith.constant 256 : index
    %11 = vector.load %arg6[%c15, %c256_13] : memref<32x384xbf16, #tpu.memory_space<vmem>>, vector<1x128xbf16>
    tpu.vector_store %arg6[%c15, %c256_13], %0 {strides = array<i32>} : memref<32x384xbf16, #tpu.memory_space<vmem>>, vector<1x128xbf16>,
    %c16 = arith.constant 16 : index
    %c0_14 = arith.constant 0 : index
    %12 = vector.load %arg6[%c16, %c0_14] : memref<32x384xbf16, #tpu.memory_space<vmem>>, vector<1x128xbf16>
    tpu.vector_store %arg6[%c16, %c0_14], %0 {strides = array<i32>} : memref<32x384xbf16, #tpu.memory_space<vmem>>, vector<1x128xbf16>,
    %c1_15 = arith.constant 1 : index
    %c0_16 = arith.constant 0 : index
    %c0_17 = arith.constant 0 : index
    %13 = vector.load %arg2[%c1_15, %c0_16, %c0_17] : memref<2x16x128xbf16, #tpu.memory_space<vmem>>, vector<1x15x128xbf16>
    %14 = vector.shape_cast %13 : vector<1x15x128xbf16> to vector<15x128xbf16>
    %c17 = arith.constant 17 : index
    %c0_18 = arith.constant 0 : index
    %15 = vector.load %arg6[%c17, %c0_18] : memref<32x384xbf16, #tpu.memory_space<vmem>>, vector<15x128xbf16>
    tpu.vector_store %arg6[%c17, %c0_18], %14 {strides = array<i32>} : memref<32x384xbf16, #tpu.memory_space<vmem>>, vector<15x128xbf16>,
    %c1_19 = arith.constant 1 : index
    %c0_20 = arith.constant 0 : index
    %c0_21 = arith.constant 0 : index
    %16 = vector.load %arg2[%c1_19, %c0_20, %c0_21] : memref<2x16x128xbf16, #tpu.memory_space<vmem>>, vector<1x16x128xbf16>
    %17 = vector.shape_cast %16 : vector<1x16x128xbf16> to vector<16x128xbf16>
    %c16_22 = arith.constant 16 : index
    %c128_23 = arith.constant 128 : index
    %18 = vector.load %arg6[%c16_22, %c128_23] : memref<32x384xbf16, #tpu.memory_space<vmem>>, vector<16x128xbf16>
    tpu.vector_store %arg6[%c16_22, %c128_23], %17 {strides = array<i32>} : memref<32x384xbf16, #tpu.memory_space<vmem>>, vector<16x128xbf16>,
    %c1_24 = arith.constant 1 : index
    %c1_25 = arith.constant 1 : index
    %c0_26 = arith.constant 0 : index
    %19 = vector.load %arg2[%c1_24, %c1_25, %c0_26] : memref<2x16x128xbf16, #tpu.memory_space<vmem>>, vector<1x15x128xbf16>
    %20 = vector.shape_cast %19 : vector<1x15x128xbf16> to vector<15x128xbf16>
    %c16_27 = arith.constant 16 : index
    %c256_28 = arith.constant 256 : index
    %21 = vector.load %arg6[%c16_27, %c256_28] : memref<32x384xbf16, #tpu.memory_space<vmem>>, vector<15x128xbf16>
    tpu.vector_store %arg6[%c16_27, %c256_28], %20 {strides = array<i32>} : memref<32x384xbf16, #tpu.memory_space<vmem>>, vector<15x128xbf16>,
    %c31 = arith.constant 31 : index
    %c256_29 = arith.constant 256 : index
    %22 = vector.load %arg6[%c31, %c256_29] : memref<32x384xbf16, #tpu.memory_space<vmem>>, vector<1x128xbf16>
    tpu.vector_store %arg6[%c31, %c256_29], %0 {strides = array<i32>} : memref<32x384xbf16, #tpu.memory_space<vmem>>, vector<1x128xbf16>,
    %c0_30 = arith.constant 0 : index
    %c0_31 = arith.constant 0 : index
    %23 = vector.load %arg6[%c0_30, %c0_31] : memref<32x384xbf16, #tpu.memory_space<vmem>>, vector<32x384xbf16>
    %c0_32 = arith.constant 0 : index
    %c0_33 = arith.constant 0 : index
    %24 = vector.load %arg3[%c0_32, %c0_33] : memref<384x512xbf16, #tpu.memory_space<vmem>>, vector<384x512xbf16>
    %cst_34 = arith.constant dense<0.000000e+00> : vector<32x512xf32>
    %25 = tpu.matmul %23, %24, %cst_34 {dimension_numbers = #tpu.dot_dimension_numbers<[1], [0], [0], [1], [0, 0, 1, 1], [], []>} : vector<32x384xbf16>, vector<384x512xbf16>, vector<32x512xf32> -> vector<32x512xf32>
    %c0_35 = arith.constant 0 : index
    %c0_36 = arith.constant 0 : index
    %26 = vector.load %arg4[%c0_35, %c0_36] : memref<1x512xf32, #tpu.memory_space<vmem>>, vector<1x512xf32>
    %27 = vector.broadcast %26 : vector<1x512xf32> to vector<32x512xf32>
    %28 = arith.addf %25, %27 : vector<32x512xf32>
    %cst_37 = arith.constant 0.000000e+00 : f32
    %29 = vector.broadcast %cst_37 : f32 to vector<32x512xf32>
    %30 = arith.cmpf oge, %28, %29 : vector<32x512xf32>
    %cst_38 = arith.constant 0.00999999977 : f32
    %31 = vector.broadcast %cst_38 : f32 to vector<32x512xf32>
    %32 = arith.mulf %31, %28 : vector<32x512xf32>
    %33 = arith.select %30, %28, %32 : vector<32x512xi1>, vector<32x512xf32>
    %34 = arith.truncf %33 : vector<32x512xf32> to vector<32x512xbf16>
    %35 = vector.extract_strided_slice %34 {offsets = [0, 0], sizes = [16, 512], strides = [1, 1]} : vector<32x512xbf16> to vector<16x512xbf16>
    %c0_39 = arith.constant 0 : index
    %c0_40 = arith.constant 0 : index
    %c0_41 = arith.constant 0 : index
    %36 = vector.load %arg5[%c0_39, %c0_40, %c0_41] : memref<2x16x512xbf16, #tpu.memory_space<vmem>>, vector<1x16x512xbf16>
    %37 = vector.shape_cast %36 : vector<1x16x512xbf16> to vector<16x512xbf16>
    %38 = vector.shape_cast %35 : vector<16x512xbf16> to vector<1x16x512xbf16>
    tpu.vector_store %arg5[%c0_39, %c0_40, %c0_41], %38 {strides = array<i32>} : memref<2x16x512xbf16, #tpu.memory_space<vmem>>, vector<1x16x512xbf16>,
    %39 = vector.extract_strided_slice %34 {offsets = [16, 0], sizes = [16, 512], strides = [1, 1]} : vector<32x512xbf16> to vector<16x512xbf16>
    %c1_42 = arith.constant 1 : index
    %c0_43 = arith.constant 0 : index
    %c0_44 = arith.constant 0 : index
    %40 = vector.load %arg5[%c1_42, %c0_43, %c0_44] : memref<2x16x512xbf16, #tpu.memory_space<vmem>>, vector<1x16x512xbf16>
    %41 = vector.shape_cast %40 : vector<1x16x512xbf16> to vector<16x512xbf16>
    %42 = vector.shape_cast %39 : vector<16x512xbf16> to vector<1x16x512xbf16>
    tpu.vector_store %arg5[%c1_42, %c0_43, %c0_44], %42 {strides = array<i32>} : memref<2x16x512xbf16, #tpu.memory_space<vmem>>, vector<1x16x512xbf16>,
    return
  }
  func.func @transform_0(%arg0: i32, %arg1: i32) -> (i32, i32, i32) {
    %c0_i32 = arith.constant 0 : i32
    %c0_i32_0 = arith.constant 0 : i32
    %c0_i32_1 = arith.constant 0 : i32
    return %arg1, %c0_i32, %c0_i32_0 : i32, i32, i32
  }
  func.func @transform_1(%arg0: i32, %arg1: i32) -> (i32, i32) {
    %c0_i32 = arith.constant 0 : i32
    %c0_i32_0 = arith.constant 0 : i32
    return %c0_i32, %arg0 : i32, i32
  }
  func.func @transform_2(%arg0: i32, %arg1: i32) -> (i32, i32) {
    %c0_i32 = arith.constant 0 : i32
    %c0_i32_0 = arith.constant 0 : i32
    return %c0_i32, %arg0 : i32, i32
  }
  func.func @transform_3(%arg0: i32, %arg1: i32) -> (i32, i32, i32) {
    %c0_i32 = arith.constant 0 : i32
    %c0_i32_0 = arith.constant 0 : i32
    return %arg1, %c0_i32, %arg0 : i32, i32, i32
  }
}

module attributes {stable_mosaic.version = 11 : i64} {
  func.func @_banded_conv_kernel(%arg0: i32, %arg1: i32, %arg2: memref<2x32x256xbf16, #tpu.memory_space<vmem>>, %arg3: memref<768x1024xbf16, #tpu.memory_space<vmem>>, %arg4: memref<1x1024xf32, #tpu.memory_space<vmem>>, %arg5: memref<2x32x1024xbf16, #tpu.memory_space<vmem>>, %arg6: memref<64x768xbf16, #tpu.memory_space<vmem>>) attributes {dimension_semantics = [#tpu.dimension_semantics<parallel>, #tpu.dimension_semantics<parallel>], iteration_bounds = array<i64: 1, 1>, scalar_prefetch = 0 : i64, scratch_operands = 1 : i64, tpu.core_type = #tpu.core_type<tc>, window_params = [{transform_indices = @transform_0, window_bounds = array<i64: 2, 32, 256>}, {transform_indices = @transform_1, window_bounds = array<i64: 768, 1024>}, {transform_indices = @transform_2, window_bounds = array<i64: 1, 1024>}, {transform_indices = @transform_3, window_bounds = array<i64: 2, 32, 1024>}]} {
    %cst = arith.constant 0.000000e+00 : bf16
    %0 = vector.broadcast %cst : bf16 to vector<1x256xbf16>
    %c0 = arith.constant 0 : index
    %c0_0 = arith.constant 0 : index
    %1 = vector.load %arg6[%c0, %c0_0] : memref<64x768xbf16, #tpu.memory_space<vmem>>, vector<1x256xbf16>
    tpu.vector_store %arg6[%c0, %c0_0], %0 {strides = array<i32>} : memref<64x768xbf16, #tpu.memory_space<vmem>>, vector<1x256xbf16>,
    %c0_1 = arith.constant 0 : index
    %c0_2 = arith.constant 0 : index
    %c0_3 = arith.constant 0 : index
    %2 = vector.load %arg2[%c0_1, %c0_2, %c0_3] : memref<2x32x256xbf16, #tpu.memory_space<vmem>>, vector<1x31x256xbf16>
    %3 = vector.shape_cast %2 : vector<1x31x256xbf16> to vector<31x256xbf16>
    %c1 = arith.constant 1 : index
    %c0_4 = arith.constant 0 : index
    %4 = vector.load %arg6[%c1, %c0_4] : memref<64x768xbf16, #tpu.memory_space<vmem>>, vector<31x256xbf16>
    tpu.vector_store %arg6[%c1, %c0_4], %3 {strides = array<i32>} : memref<64x768xbf16, #tpu.memory_space<vmem>>, vector<31x256xbf16>,
    %c0_5 = arith.constant 0 : index
    %c0_6 = arith.constant 0 : index
    %c0_7 = arith.constant 0 : index
    %5 = vector.load %arg2[%c0_5, %c0_6, %c0_7] : memref<2x32x256xbf16, #tpu.memory_space<vmem>>, vector<1x32x256xbf16>
    %6 = vector.shape_cast %5 : vector<1x32x256xbf16> to vector<32x256xbf16>
    %c0_8 = arith.constant 0 : index
    %c256 = arith.constant 256 : index
    %7 = vector.load %arg6[%c0_8, %c256] : memref<64x768xbf16, #tpu.memory_space<vmem>>, vector<32x256xbf16>
    tpu.vector_store %arg6[%c0_8, %c256], %6 {strides = array<i32>} : memref<64x768xbf16, #tpu.memory_space<vmem>>, vector<32x256xbf16>,
    %c0_9 = arith.constant 0 : index
    %c1_10 = arith.constant 1 : index
    %c0_11 = arith.constant 0 : index
    %8 = vector.load %arg2[%c0_9, %c1_10, %c0_11] : memref<2x32x256xbf16, #tpu.memory_space<vmem>>, vector<1x31x256xbf16>
    %9 = vector.shape_cast %8 : vector<1x31x256xbf16> to vector<31x256xbf16>
    %c0_12 = arith.constant 0 : index
    %c512 = arith.constant 512 : index
    %10 = vector.load %arg6[%c0_12, %c512] : memref<64x768xbf16, #tpu.memory_space<vmem>>, vector<31x256xbf16>
    tpu.vector_store %arg6[%c0_12, %c512], %9 {strides = array<i32>} : memref<64x768xbf16, #tpu.memory_space<vmem>>, vector<31x256xbf16>,
    %c31 = arith.constant 31 : index
    %c512_13 = arith.constant 512 : index
    %11 = vector.load %arg6[%c31, %c512_13] : memref<64x768xbf16, #tpu.memory_space<vmem>>, vector<1x256xbf16>
    tpu.vector_store %arg6[%c31, %c512_13], %0 {strides = array<i32>} : memref<64x768xbf16, #tpu.memory_space<vmem>>, vector<1x256xbf16>,
    %c32 = arith.constant 32 : index
    %c0_14 = arith.constant 0 : index
    %12 = vector.load %arg6[%c32, %c0_14] : memref<64x768xbf16, #tpu.memory_space<vmem>>, vector<1x256xbf16>
    tpu.vector_store %arg6[%c32, %c0_14], %0 {strides = array<i32>} : memref<64x768xbf16, #tpu.memory_space<vmem>>, vector<1x256xbf16>,
    %c1_15 = arith.constant 1 : index
    %c0_16 = arith.constant 0 : index
    %c0_17 = arith.constant 0 : index
    %13 = vector.load %arg2[%c1_15, %c0_16, %c0_17] : memref<2x32x256xbf16, #tpu.memory_space<vmem>>, vector<1x31x256xbf16>
    %14 = vector.shape_cast %13 : vector<1x31x256xbf16> to vector<31x256xbf16>
    %c33 = arith.constant 33 : index
    %c0_18 = arith.constant 0 : index
    %15 = vector.load %arg6[%c33, %c0_18] : memref<64x768xbf16, #tpu.memory_space<vmem>>, vector<31x256xbf16>
    tpu.vector_store %arg6[%c33, %c0_18], %14 {strides = array<i32>} : memref<64x768xbf16, #tpu.memory_space<vmem>>, vector<31x256xbf16>,
    %c1_19 = arith.constant 1 : index
    %c0_20 = arith.constant 0 : index
    %c0_21 = arith.constant 0 : index
    %16 = vector.load %arg2[%c1_19, %c0_20, %c0_21] : memref<2x32x256xbf16, #tpu.memory_space<vmem>>, vector<1x32x256xbf16>
    %17 = vector.shape_cast %16 : vector<1x32x256xbf16> to vector<32x256xbf16>
    %c32_22 = arith.constant 32 : index
    %c256_23 = arith.constant 256 : index
    %18 = vector.load %arg6[%c32_22, %c256_23] : memref<64x768xbf16, #tpu.memory_space<vmem>>, vector<32x256xbf16>
    tpu.vector_store %arg6[%c32_22, %c256_23], %17 {strides = array<i32>} : memref<64x768xbf16, #tpu.memory_space<vmem>>, vector<32x256xbf16>,
    %c1_24 = arith.constant 1 : index
    %c1_25 = arith.constant 1 : index
    %c0_26 = arith.constant 0 : index
    %19 = vector.load %arg2[%c1_24, %c1_25, %c0_26] : memref<2x32x256xbf16, #tpu.memory_space<vmem>>, vector<1x31x256xbf16>
    %20 = vector.shape_cast %19 : vector<1x31x256xbf16> to vector<31x256xbf16>
    %c32_27 = arith.constant 32 : index
    %c512_28 = arith.constant 512 : index
    %21 = vector.load %arg6[%c32_27, %c512_28] : memref<64x768xbf16, #tpu.memory_space<vmem>>, vector<31x256xbf16>
    tpu.vector_store %arg6[%c32_27, %c512_28], %20 {strides = array<i32>} : memref<64x768xbf16, #tpu.memory_space<vmem>>, vector<31x256xbf16>,
    %c63 = arith.constant 63 : index
    %c512_29 = arith.constant 512 : index
    %22 = vector.load %arg6[%c63, %c512_29] : memref<64x768xbf16, #tpu.memory_space<vmem>>, vector<1x256xbf16>
    tpu.vector_store %arg6[%c63, %c512_29], %0 {strides = array<i32>} : memref<64x768xbf16, #tpu.memory_space<vmem>>, vector<1x256xbf16>,
    %c0_30 = arith.constant 0 : index
    %c0_31 = arith.constant 0 : index
    %23 = vector.load %arg6[%c0_30, %c0_31] : memref<64x768xbf16, #tpu.memory_space<vmem>>, vector<64x768xbf16>
    %c0_32 = arith.constant 0 : index
    %c0_33 = arith.constant 0 : index
    %24 = vector.load %arg3[%c0_32, %c0_33] : memref<768x1024xbf16, #tpu.memory_space<vmem>>, vector<768x1024xbf16>
    %cst_34 = arith.constant dense<0.000000e+00> : vector<64x1024xf32>
    %25 = tpu.matmul %23, %24, %cst_34 {dimension_numbers = #tpu.dot_dimension_numbers<[1], [0], [0], [1], [0, 0, 1, 1], [], []>} : vector<64x768xbf16>, vector<768x1024xbf16>, vector<64x1024xf32> -> vector<64x1024xf32>
    %c0_35 = arith.constant 0 : index
    %c0_36 = arith.constant 0 : index
    %26 = vector.load %arg4[%c0_35, %c0_36] : memref<1x1024xf32, #tpu.memory_space<vmem>>, vector<1x1024xf32>
    %27 = vector.broadcast %26 : vector<1x1024xf32> to vector<64x1024xf32>
    %28 = arith.addf %25, %27 : vector<64x1024xf32>
    %cst_37 = arith.constant 0.000000e+00 : f32
    %29 = vector.broadcast %cst_37 : f32 to vector<64x1024xf32>
    %30 = arith.cmpf oge, %28, %29 : vector<64x1024xf32>
    %cst_38 = arith.constant 0.00999999977 : f32
    %31 = vector.broadcast %cst_38 : f32 to vector<64x1024xf32>
    %32 = arith.mulf %31, %28 : vector<64x1024xf32>
    %33 = arith.select %30, %28, %32 : vector<64x1024xi1>, vector<64x1024xf32>
    %34 = arith.truncf %33 : vector<64x1024xf32> to vector<64x1024xbf16>
    %35 = vector.extract_strided_slice %34 {offsets = [0, 0], sizes = [32, 1024], strides = [1, 1]} : vector<64x1024xbf16> to vector<32x1024xbf16>
    %c0_39 = arith.constant 0 : index
    %c0_40 = arith.constant 0 : index
    %c0_41 = arith.constant 0 : index
    %36 = vector.load %arg5[%c0_39, %c0_40, %c0_41] : memref<2x32x1024xbf16, #tpu.memory_space<vmem>>, vector<1x32x1024xbf16>
    %37 = vector.shape_cast %36 : vector<1x32x1024xbf16> to vector<32x1024xbf16>
    %38 = vector.shape_cast %35 : vector<32x1024xbf16> to vector<1x32x1024xbf16>
    tpu.vector_store %arg5[%c0_39, %c0_40, %c0_41], %38 {strides = array<i32>} : memref<2x32x1024xbf16, #tpu.memory_space<vmem>>, vector<1x32x1024xbf16>,
    %39 = vector.extract_strided_slice %34 {offsets = [32, 0], sizes = [32, 1024], strides = [1, 1]} : vector<64x1024xbf16> to vector<32x1024xbf16>
    %c1_42 = arith.constant 1 : index
    %c0_43 = arith.constant 0 : index
    %c0_44 = arith.constant 0 : index
    %40 = vector.load %arg5[%c1_42, %c0_43, %c0_44] : memref<2x32x1024xbf16, #tpu.memory_space<vmem>>, vector<1x32x1024xbf16>
    %41 = vector.shape_cast %40 : vector<1x32x1024xbf16> to vector<32x1024xbf16>
    %42 = vector.shape_cast %39 : vector<32x1024xbf16> to vector<1x32x1024xbf16>
    tpu.vector_store %arg5[%c1_42, %c0_43, %c0_44], %42 {strides = array<i32>} : memref<2x32x1024xbf16, #tpu.memory_space<vmem>>, vector<1x32x1024xbf16>,
    return
  }
  func.func @transform_0(%arg0: i32, %arg1: i32) -> (i32, i32, i32) {
    %c0_i32 = arith.constant 0 : i32
    %c0_i32_0 = arith.constant 0 : i32
    %c0_i32_1 = arith.constant 0 : i32
    return %arg1, %c0_i32, %c0_i32_0 : i32, i32, i32
  }
  func.func @transform_1(%arg0: i32, %arg1: i32) -> (i32, i32) {
    %c0_i32 = arith.constant 0 : i32
    %c0_i32_0 = arith.constant 0 : i32
    return %c0_i32, %arg0 : i32, i32
  }
  func.func @transform_2(%arg0: i32, %arg1: i32) -> (i32, i32) {
    %c0_i32 = arith.constant 0 : i32
    %c0_i32_0 = arith.constant 0 : i32
    return %c0_i32, %arg0 : i32, i32
  }
  func.func @transform_3(%arg0: i32, %arg1: i32) -> (i32, i32, i32) {
    %c0_i32 = arith.constant 0 : i32
    %c0_i32_0 = arith.constant 0 : i32
    return %arg1, %c0_i32, %arg0 : i32, i32, i32
  }
}

module attributes {stable_mosaic.version = 11 : i64} {
  func.func @_banded_conv_kernel(%arg0: i32, %arg1: i32, %arg2: memref<2x64x512xbf16, #tpu.memory_space<vmem>>, %arg3: memref<1536x512xbf16, #tpu.memory_space<vmem>>, %arg4: memref<1x512xf32, #tpu.memory_space<vmem>>, %arg5: memref<2x64x512xf32, #tpu.memory_space<vmem>>, %arg6: memref<128x1536xbf16, #tpu.memory_space<vmem>>) attributes {dimension_semantics = [#tpu.dimension_semantics<parallel>, #tpu.dimension_semantics<parallel>], iteration_bounds = array<i64: 1, 1>, scalar_prefetch = 0 : i64, scratch_operands = 1 : i64, tpu.core_type = #tpu.core_type<tc>, window_params = [{transform_indices = @transform_0, window_bounds = array<i64: 2, 64, 512>}, {transform_indices = @transform_1, window_bounds = array<i64: 1536, 512>}, {transform_indices = @transform_2, window_bounds = array<i64: 1, 512>}, {transform_indices = @transform_3, window_bounds = array<i64: 2, 64, 512>}]} {
    %cst = arith.constant 0.000000e+00 : bf16
    %0 = vector.broadcast %cst : bf16 to vector<1x512xbf16>
    %c0 = arith.constant 0 : index
    %c0_0 = arith.constant 0 : index
    %1 = vector.load %arg6[%c0, %c0_0] : memref<128x1536xbf16, #tpu.memory_space<vmem>>, vector<1x512xbf16>
    tpu.vector_store %arg6[%c0, %c0_0], %0 {strides = array<i32>} : memref<128x1536xbf16, #tpu.memory_space<vmem>>, vector<1x512xbf16>,
    %c0_1 = arith.constant 0 : index
    %c0_2 = arith.constant 0 : index
    %c0_3 = arith.constant 0 : index
    %2 = vector.load %arg2[%c0_1, %c0_2, %c0_3] : memref<2x64x512xbf16, #tpu.memory_space<vmem>>, vector<1x63x512xbf16>
    %3 = vector.shape_cast %2 : vector<1x63x512xbf16> to vector<63x512xbf16>
    %c1 = arith.constant 1 : index
    %c0_4 = arith.constant 0 : index
    %4 = vector.load %arg6[%c1, %c0_4] : memref<128x1536xbf16, #tpu.memory_space<vmem>>, vector<63x512xbf16>
    tpu.vector_store %arg6[%c1, %c0_4], %3 {strides = array<i32>} : memref<128x1536xbf16, #tpu.memory_space<vmem>>, vector<63x512xbf16>,
    %c0_5 = arith.constant 0 : index
    %c0_6 = arith.constant 0 : index
    %c0_7 = arith.constant 0 : index
    %5 = vector.load %arg2[%c0_5, %c0_6, %c0_7] : memref<2x64x512xbf16, #tpu.memory_space<vmem>>, vector<1x64x512xbf16>
    %6 = vector.shape_cast %5 : vector<1x64x512xbf16> to vector<64x512xbf16>
    %c0_8 = arith.constant 0 : index
    %c512 = arith.constant 512 : index
    %7 = vector.load %arg6[%c0_8, %c512] : memref<128x1536xbf16, #tpu.memory_space<vmem>>, vector<64x512xbf16>
    tpu.vector_store %arg6[%c0_8, %c512], %6 {strides = array<i32>} : memref<128x1536xbf16, #tpu.memory_space<vmem>>, vector<64x512xbf16>,
    %c0_9 = arith.constant 0 : index
    %c1_10 = arith.constant 1 : index
    %c0_11 = arith.constant 0 : index
    %8 = vector.load %arg2[%c0_9, %c1_10, %c0_11] : memref<2x64x512xbf16, #tpu.memory_space<vmem>>, vector<1x63x512xbf16>
    %9 = vector.shape_cast %8 : vector<1x63x512xbf16> to vector<63x512xbf16>
    %c0_12 = arith.constant 0 : index
    %c1024 = arith.constant 1024 : index
    %10 = vector.load %arg6[%c0_12, %c1024] : memref<128x1536xbf16, #tpu.memory_space<vmem>>, vector<63x512xbf16>
    tpu.vector_store %arg6[%c0_12, %c1024], %9 {strides = array<i32>} : memref<128x1536xbf16, #tpu.memory_space<vmem>>, vector<63x512xbf16>,
    %c63 = arith.constant 63 : index
    %c1024_13 = arith.constant 1024 : index
    %11 = vector.load %arg6[%c63, %c1024_13] : memref<128x1536xbf16, #tpu.memory_space<vmem>>, vector<1x512xbf16>
    tpu.vector_store %arg6[%c63, %c1024_13], %0 {strides = array<i32>} : memref<128x1536xbf16, #tpu.memory_space<vmem>>, vector<1x512xbf16>,
    %c64 = arith.constant 64 : index
    %c0_14 = arith.constant 0 : index
    %12 = vector.load %arg6[%c64, %c0_14] : memref<128x1536xbf16, #tpu.memory_space<vmem>>, vector<1x512xbf16>
    tpu.vector_store %arg6[%c64, %c0_14], %0 {strides = array<i32>} : memref<128x1536xbf16, #tpu.memory_space<vmem>>, vector<1x512xbf16>,
    %c1_15 = arith.constant 1 : index
    %c0_16 = arith.constant 0 : index
    %c0_17 = arith.constant 0 : index
    %13 = vector.load %arg2[%c1_15, %c0_16, %c0_17] : memref<2x64x512xbf16, #tpu.memory_space<vmem>>, vector<1x63x512xbf16>
    %14 = vector.shape_cast %13 : vector<1x63x512xbf16> to vector<63x512xbf16>
    %c65 = arith.constant 65 : index
    %c0_18 = arith.constant 0 : index
    %15 = vector.load %arg6[%c65, %c0_18] : memref<128x1536xbf16, #tpu.memory_space<vmem>>, vector<63x512xbf16>
    tpu.vector_store %arg6[%c65, %c0_18], %14 {strides = array<i32>} : memref<128x1536xbf16, #tpu.memory_space<vmem>>, vector<63x512xbf16>,
    %c1_19 = arith.constant 1 : index
    %c0_20 = arith.constant 0 : index
    %c0_21 = arith.constant 0 : index
    %16 = vector.load %arg2[%c1_19, %c0_20, %c0_21] : memref<2x64x512xbf16, #tpu.memory_space<vmem>>, vector<1x64x512xbf16>
    %17 = vector.shape_cast %16 : vector<1x64x512xbf16> to vector<64x512xbf16>
    %c64_22 = arith.constant 64 : index
    %c512_23 = arith.constant 512 : index
    %18 = vector.load %arg6[%c64_22, %c512_23] : memref<128x1536xbf16, #tpu.memory_space<vmem>>, vector<64x512xbf16>
    tpu.vector_store %arg6[%c64_22, %c512_23], %17 {strides = array<i32>} : memref<128x1536xbf16, #tpu.memory_space<vmem>>, vector<64x512xbf16>,
    %c1_24 = arith.constant 1 : index
    %c1_25 = arith.constant 1 : index
    %c0_26 = arith.constant 0 : index
    %19 = vector.load %arg2[%c1_24, %c1_25, %c0_26] : memref<2x64x512xbf16, #tpu.memory_space<vmem>>, vector<1x63x512xbf16>
    %20 = vector.shape_cast %19 : vector<1x63x512xbf16> to vector<63x512xbf16>
    %c64_27 = arith.constant 64 : index
    %c1024_28 = arith.constant 1024 : index
    %21 = vector.load %arg6[%c64_27, %c1024_28] : memref<128x1536xbf16, #tpu.memory_space<vmem>>, vector<63x512xbf16>
    tpu.vector_store %arg6[%c64_27, %c1024_28], %20 {strides = array<i32>} : memref<128x1536xbf16, #tpu.memory_space<vmem>>, vector<63x512xbf16>,
    %c127 = arith.constant 127 : index
    %c1024_29 = arith.constant 1024 : index
    %22 = vector.load %arg6[%c127, %c1024_29] : memref<128x1536xbf16, #tpu.memory_space<vmem>>, vector<1x512xbf16>
    tpu.vector_store %arg6[%c127, %c1024_29], %0 {strides = array<i32>} : memref<128x1536xbf16, #tpu.memory_space<vmem>>, vector<1x512xbf16>,
    %c0_30 = arith.constant 0 : index
    %c0_31 = arith.constant 0 : index
    %23 = vector.load %arg6[%c0_30, %c0_31] : memref<128x1536xbf16, #tpu.memory_space<vmem>>, vector<128x1536xbf16>
    %c0_32 = arith.constant 0 : index
    %c0_33 = arith.constant 0 : index
    %24 = vector.load %arg3[%c0_32, %c0_33] : memref<1536x512xbf16, #tpu.memory_space<vmem>>, vector<1536x512xbf16>
    %cst_34 = arith.constant dense<0.000000e+00> : vector<128x512xf32>
    %25 = tpu.matmul %23, %24, %cst_34 {dimension_numbers = #tpu.dot_dimension_numbers<[1], [0], [0], [1], [0, 0, 1, 1], [], []>} : vector<128x1536xbf16>, vector<1536x512xbf16>, vector<128x512xf32> -> vector<128x512xf32>
    %c0_35 = arith.constant 0 : index
    %c0_36 = arith.constant 0 : index
    %26 = vector.load %arg4[%c0_35, %c0_36] : memref<1x512xf32, #tpu.memory_space<vmem>>, vector<1x512xf32>
    %27 = vector.broadcast %26 : vector<1x512xf32> to vector<128x512xf32>
    %28 = arith.addf %25, %27 : vector<128x512xf32>
    %29 = vector.extract_strided_slice %28 {offsets = [0, 0], sizes = [64, 512], strides = [1, 1]} : vector<128x512xf32> to vector<64x512xf32>
    %c0_37 = arith.constant 0 : index
    %c0_38 = arith.constant 0 : index
    %c0_39 = arith.constant 0 : index
    %30 = vector.load %arg5[%c0_37, %c0_38, %c0_39] : memref<2x64x512xf32, #tpu.memory_space<vmem>>, vector<1x64x512xf32>
    %31 = vector.shape_cast %30 : vector<1x64x512xf32> to vector<64x512xf32>
    %32 = vector.shape_cast %29 : vector<64x512xf32> to vector<1x64x512xf32>
    tpu.vector_store %arg5[%c0_37, %c0_38, %c0_39], %32 {strides = array<i32>} : memref<2x64x512xf32, #tpu.memory_space<vmem>>, vector<1x64x512xf32>,
    %33 = vector.extract_strided_slice %28 {offsets = [64, 0], sizes = [64, 512], strides = [1, 1]} : vector<128x512xf32> to vector<64x512xf32>
    %c1_40 = arith.constant 1 : index
    %c0_41 = arith.constant 0 : index
    %c0_42 = arith.constant 0 : index
    %34 = vector.load %arg5[%c1_40, %c0_41, %c0_42] : memref<2x64x512xf32, #tpu.memory_space<vmem>>, vector<1x64x512xf32>
    %35 = vector.shape_cast %34 : vector<1x64x512xf32> to vector<64x512xf32>
    %36 = vector.shape_cast %33 : vector<64x512xf32> to vector<1x64x512xf32>
    tpu.vector_store %arg5[%c1_40, %c0_41, %c0_42], %36 {strides = array<i32>} : memref<2x64x512xf32, #tpu.memory_space<vmem>>, vector<1x64x512xf32>,
    return
  }
  func.func @transform_0(%arg0: i32, %arg1: i32) -> (i32, i32, i32) {
    %c0_i32 = arith.constant 0 : i32
    %c0_i32_0 = arith.constant 0 : i32
    %c0_i32_1 = arith.constant 0 : i32
    return %arg1, %c0_i32, %c0_i32_0 : i32, i32, i32
  }
  func.func @transform_1(%arg0: i32, %arg1: i32) -> (i32, i32) {
    %c0_i32 = arith.constant 0 : i32
    %c0_i32_0 = arith.constant 0 : i32
    return %c0_i32, %arg0 : i32, i32
  }
  func.func @transform_2(%arg0: i32, %arg1: i32) -> (i32, i32) {
    %c0_i32 = arith.constant 0 : i32
    %c0_i32_0 = arith.constant 0 : i32
    return %c0_i32, %arg0 : i32, i32
  }
  func.func @transform_3(%arg0: i32, %arg1: i32) -> (i32, i32, i32) {
    %c0_i32 = arith.constant 0 : i32
    %c0_i32_0 = arith.constant 0 : i32
    return %arg1, %c0_i32, %arg0 : i32, i32, i32
  }
}

</mosaic_0001>

<bundles_post_ra>
// kernel: prior_decoder_forward.3
= control target key start
LH: loop header
LB: loop body
LE: loop exit
PB: predicated region body
PF: predicated region fallthrough
CT: control target
= control target key end

     0   :  { %8 = vsyncpa [#allocation4], 0  ;;  %s1596_s0 = inlined_call_operand.vmem [shape: bf16[2,16,128], index: 0, kind: input, shape index: {}]   ;;  %s1597_s1 = inlined_call_operand.hbm [shape: bf16[384,512], index: 1, kind: input, shape index: {}]   ;;  %s1598_s2 = inlined_call_operand.hbm [shape: f32[1,512], index: 2, kind: input, shape index: {}]   ;;  %s1599_s3 = inlined_call_operand.vmem [shape: bf16[2,16,512], index: 3, kind: output, shape index: {}]  }
   0x1   :  { %9 = vsyncpa [#allocation6], 0  ;;  %s1445_s12 = smov [#allocation3]   ;;  %s1397_s16 = scalar_lea.hbm %s1597_s1, 12288 }
   0x2   :  { %s17_s13 = sshll.u32 %s1445_s12, 4  ;;  %p1398_p0 = scmp.ne.s32.totalorder %s1597_s1, %s1397_s16  ;;  %s18_s13 = int_to_ptr.vmem [resolvable:$true] %s17_s13 }
   0x3   :  { %p1401_p1 = scmp.lt.u32.totalorder %s1397_s16, %s1597_s1 }
   0x5   :  { %p1403_p2 = pnand %p1401_p1, %p1398_p0 }
   0x7   :  { %1406 = shalt.err (!%p1403_p2)
}
   0x8   :  { %s1407_s21 = scalar_lea.vmem %s18_s13, 12288  ;;  %p1412_p4 = scmp.lt.s32.totalorder %s18_s13, %s18_s13 }
   0x9   :  { %p1408_p3 = scmp.ne.s32.totalorder %s18_s13, %s1407_s21  ;;  %p1413_p5 = scmp.lt.s32.totalorder %s1407_s21, %s1407_s21 }
   0xb   :  { %p1414_p6 = por %p1413_p5, %p1412_p4 }
   0xd   :  { %p1415_p7 = pnand %p1414_p6, %p1408_p3 }
   0xf   :  { %1418 = shalt.err (!%p1415_p7)
}
  0x10   :  { %s1446_s22 = smov 256   ;;  %s1447_s23 = smov 16  }
  0x11   :  { %23 = dma.hbm_to_vmem [thread:$0]  %s1597_s1, 12288, %s18_s13, [#allocation4], %s1446_s22, %s1446_s22, %s1447_s23  }
  0x12   :  { %s1448_s26 = smov [#allocation5]   ;;  %s1419_s30 = scalar_lea.hbm %s1598_s2, 64 }
  0x13   :  { %s30_s27 = sshll.u32 %s1448_s26, 4  ;;  %p1420_p8 = scmp.ne.s32.totalorder %s1598_s2, %s1419_s30  ;;  %s31_s27 = int_to_ptr.vmem [resolvable:$true] %s30_s27 }
  0x14   :  { %p1423_p9 = scmp.lt.u32.totalorder %s1419_s30, %s1598_s2 }
  0x16   :  { %p1425_p10 = pnand %p1423_p9, %p1420_p8 }
  0x18   :  { %1428 = shalt.err (!%p1425_p10)
}
  0x19   :  { %s1429_s8 = scalar_lea.vmem %s31_s27, 64  ;;  %p1434_p12 = scmp.lt.s32.totalorder %s31_s27, %s31_s27 }
  0x1a   :  { %p1430_p11 = scmp.ne.s32.totalorder %s31_s27, %s1429_s8  ;;  %p1435_p13 = scmp.lt.s32.totalorder %s1429_s8, %s1429_s8 }
  0x1c   :  { %p1436_p0 = por %p1435_p13, %p1434_p12 }
  0x1e   :  { %p1437_p1 = pnand %p1436_p0, %p1430_p11 }
  0x20   :  { %1440 = shalt.err (!%p1437_p1)
}
  0x21   :  { %33 = dma.hbm_to_vmem [thread:$0]  %s1598_s2, 64, %s31_s27, [#allocation6]  }
  0x22   :  { %1441 = dma.done.wait [#allocation4], 12288  }
  0x23   :  { %1442 = vsyncadd [#allocation4], 4294955008 }
  0x24   :  { %1443 = dma.done.wait [#allocation6], 64  }
  0x25   :  { %1444 = vsyncadd [#allocation6], 4294967232  ;;  %v1247_v0 = vld [vmem:[#allocation3 + $0x4] ss:$16 sps:$4 sm:$0xff]   ;;  %v1249_v1 = vld [vmem:[#allocation3 + $0xc] ss:$16 sps:$4 sm:$0xff]  }
  0x26   :  { %759 = vmatprep.subr.bf16.mxu0 %v1247_v0  ;;  %v1251_v2 = vld [vmem:[#allocation3] ss:$16 sps:$4 sm:$0xff]   ;;  %v1252_v3 = vld [vmem:[#allocation3 + $0x8] ss:$16 sps:$4 sm:$0xff]   ;;  %865 = vmatprep.subr.bf16.mxu1 %v1249_v1  ;;  %v1253_v4 = vld [vmem:[#allocation3 + $0x24] ss:$16 sps:$4 sm:$0xff]  }
  0x27   :  { %760 = vmatpush1.bf16.msra.mxu0 %v1251_v2  ;;  %866 = vmatpush1.bf16.msra.mxu1 %v1252_v3  ;;  %v1255_v5 = vld [vmem:[#allocation3 + $0x2c] ss:$16 sps:$4 sm:$0xff]   ;;  %v1257_v6 = vld [vmem:[#allocation3 + $0x20] ss:$16 sps:$4 sm:$0xff]   ;;  %v1258_v7 = vld [vmem:[#allocation3 + $0x28] ss:$16 sps:$4 sm:$0xff]  }
  0x28   :  { %761 = vmatprep.subr.bf16.mxu0 %v1253_v4  ;;  %867 = vmatprep.subr.bf16.mxu1 %v1255_v5  ;;  %v1259_v8 = vld [vmem:[#allocation3 + $0x44] ss:$16 sps:$4 sm:$0xff]   ;;  %v1261_v9 = vld [vmem:[#allocation3 + $0x4c] ss:$16 sps:$4 sm:$0xff]   ;;  %v1263_v10 = vld [vmem:[#allocation3 + $0x40] ss:$16 sps:$4 sm:$0xff]  }
  0x29   :  { %v1264_v11 = vld [vmem:[#allocation3 + $0x48] ss:$16 sps:$4 sm:$0xff]   ;;  %v1265_v12 = vld [vmem:[#allocation3 + $0x64] ss:$16 sps:$4 sm:$0xff]   ;;  %v1267_v13 = vld [vmem:[#allocation3 + $0x6c] ss:$16 sps:$4 sm:$0xff]  }
  0x2a   :  { %v1269_v14 = vld [vmem:[#allocation3 + $0x60] ss:$16 sps:$4 sm:$0xff]   ;;  %v1270_v15 = vld [vmem:[#allocation3 + $0x68] ss:$16 sps:$4 sm:$0xff]   ;;  %v1271_v16 = vld [vmem:[#allocation3 + $0x84] ss:$16 sps:$4 sm:$0xff]  }
  0x2b   :  { %762 = vmatpush1.bf16.msra.mxu0 %v1257_v6  ;;  %868 = vmatpush1.bf16.msra.mxu1 %v1258_v7  ;;  %v1273_v17 = vld [vmem:[#allocation3 + $0x8c] ss:$16 sps:$4 sm:$0xff]   ;;  %v1275_v18 = vld [vmem:[#allocation3 + $0x80] ss:$16 sps:$4 sm:$0xff]   ;;  %v1276_v19 = vld [vmem:[#allocation3 + $0x88] ss:$16 sps:$4 sm:$0xff]  }
  0x2c   :  { %763 = vmatprep.subr.bf16.mxu0 %v1259_v8  ;;  %869 = vmatprep.subr.bf16.mxu1 %v1261_v9  ;;  %v1277_v20 = vld [vmem:[#allocation3 + $0xa4] ss:$16 sps:$4 sm:$0xff]   ;;  %v1279_v21 = vld [vmem:[#allocation3 + $0xac] ss:$16 sps:$4 sm:$0xff]   ;;  %v1281_v22 = vld [vmem:[#allocation3 + $0xa0] ss:$16 sps:$4 sm:$0xff]  }
  0x2d   :  { %v1282_v23 = vld [vmem:[#allocation3 + $0xa8] ss:$16 sps:$4 sm:$0xff]   ;;  %v1283_v24 = vld [vmem:[#allocation3 + $0xc4] ss:$16 sps:$4 sm:$0xff]   ;;  %v1285_v25 = vld [vmem:[#allocation3 + $0xcc] ss:$16 sps:$4 sm:$0xff]  }
  0x2e   :  { %v1287_v26 = vld [vmem:[#allocation3 + $0xc0] ss:$16 sps:$4 sm:$0xff]   ;;  %v1288_v27 = vld [vmem:[#allocation3 + $0xc8] ss:$16 sps:$4 sm:$0xff]   ;;  %v1289_v28 = vld [vmem:[#allocation3 + $0xe4] ss:$16 sps:$4 sm:$0xff]  }
  0x2f   :  { %764 = vmatpush1.bf16.msra.mxu0 %v1263_v10  ;;  %870 = vmatpush1.bf16.msra.mxu1 %v1264_v11  ;;  %v1291_v29 = vld [vmem:[#allocation3 + $0xec] ss:$16 sps:$4 sm:$0xff]   ;;  %v1293_v30 = vld [vmem:[#allocation3 + $0xe0] ss:$16 sps:$4 sm:$0xff]   ;;  %v1294_v31 = vld [vmem:[#allocation3 + $0xe8] ss:$16 sps:$4 sm:$0xff]  }
  0x30   :  { %765 = vmatprep.subr.bf16.mxu0 %v1265_v12  ;;  %871 = vmatprep.subr.bf16.mxu1 %v1267_v13  ;;  %v1295_v32 = vld [vmem:[#allocation3 + $0x104] ss:$16 sps:$4 sm:$0xff]   ;;  %v1297_v33 = vld [vmem:[#allocation3 + $0x10c] ss:$16 sps:$4 sm:$0xff]   ;;  %v1299_v34 = vld [vmem:[#allocation3 + $0x100] ss:$16 sps:$4 sm:$0xff]  }
  0x31   :  { %v1300_v35 = vld [vmem:[#allocation3 + $0x108] ss:$16 sps:$4 sm:$0xff]   ;;  %v1301_v36 = vld [vmem:[#allocation3 + $0x124] ss:$16 sps:$4 sm:$0xff]   ;;  %v1303_v37 = vld [vmem:[#allocation3 + $0x12c] ss:$16 sps:$4 sm:$0xff]  }
  0x32   :  { %v1305_v38 = vld [vmem:[#allocation3 + $0x120] ss:$16 sps:$4 sm:$0xff]   ;;  %v1306_v39 = vld [vmem:[#allocation3 + $0x128] ss:$16 sps:$4 sm:$0xff]   ;;  %v1307_v40 = vld [vmem:[#allocation3 + $0x144] ss:$16 sps:$4 sm:$0xff]  }
  0x33   :  { %766 = vmatpush1.bf16.msra.mxu0 %v1269_v14  ;;  %872 = vmatpush1.bf16.msra.mxu1 %v1270_v15  ;;  %v1309_v41 = vld [vmem:[#allocation3 + $0x14c] ss:$16 sps:$4 sm:$0xff]   ;;  %vm41_vm0 = vcmask 1040384   ;;  %v1311_v42 = vld [vmem:[#allocation3 + $0x140] ss:$16 sps:$4 sm:$0xff]   ;;  %vm62_vm4 = vcmask 1047552  }
  0x34   :  { %767 = vmatprep.subr.bf16.mxu0 %v1271_v16  ;;  %873 = vmatprep.subr.bf16.mxu1 %v1273_v17  ;;  %v1312_v43 = vld [vmem:[#allocation3 + $0x148] ss:$16 sps:$4 sm:$0xff]   ;;  %vm42_vm1 = vsmask.f32 256  ;;  %v1313_v44 = vld [vmem:[#allocation3 + $0x164] ss:$16 sps:$4 sm:$0xff]  }
  0x35   :  { %v1315_v45 = vld [vmem:[#allocation3 + $0x16c] ss:$16 sps:$4 sm:$0xff]   ;;  %v1317_v46 = vld [vmem:[#allocation3 + $0x160] ss:$16 sps:$4 sm:$0xff]   ;;  %vm1494_vm2 = vmand %vm41_vm0, %vm42_vm1  ;;  %vm63_vm3 = vsmask.f32 7938 }
  0x36   :  { %v1343_v48 = vld [vmem:[%s1596_s0] sm:$0xff]   ;;  %v1318_v49 = vld [vmem:[#allocation3 + $0x168] ss:$16 sps:$4 sm:$0xff]   ;;  %v1321_v51 = vld [vmem:[#allocation3 + $0x18c] ss:$16 sps:$4 sm:$0xff]   ;;  %vm97_vm8 = vcmask 1047559  }
  0x37   :  { %768 = vmatpush1.bf16.msra.mxu0 %v1275_v18  ;;  %874 = vmatpush1.bf16.msra.mxu1 %v1276_v19  ;;  %v1319_v50 = vld [vmem:[#allocation3 + $0x184] ss:$16 sps:$4 sm:$0xff]   ;;  %v1323_v52 = vld [vmem:[#allocation3 + $0x180] ss:$16 sps:$4 sm:$0xff]   ;;  %v1324_v56 = vld [vmem:[#allocation3 + $0x188] ss:$16 sps:$4 sm:$0xff]  }
  0x38   :  { %769 = vmatprep.subr.bf16.mxu0 %v1277_v20  ;;  %875 = vmatprep.subr.bf16.mxu1 %v1279_v21  ;;  %v44_v53 = vld [vmem:[#allocation2] sm:$0x1]  ;;  %v1325_v57 = vld [vmem:[#allocation3 + $0x1a4] ss:$16 sps:$4 sm:$0xff]   ;;  %v1327_v58 = vld [vmem:[#allocation3 + $0x1ac] ss:$16 sps:$4 sm:$0xff]  }
  0x39   :  { %791 = vmatprep.mubr.bf16.mxu0 %v1343_v48  ;;  %897 = vmatprep.mubr.bf16.mxu1 %v1343_v48  ;;  %v45_v54 = vsel %vm1494_vm2, 0, %v44_v53  ;;  %v1350_v55 = vld [vmem:[%s1596_s0] sm:$0xff]   ;;  %vm1508_vm5 = vmand %vm62_vm4, %vm63_vm3  ;;  %v1330_v0 = vld [vmem:[#allocation3 + $0x1a8] ss:$16 sps:$4 sm:$0xff]   ;;  %vm92_vm6 = vsmask.f32 7424 }
  0x3a   :  { %46 = vst [vmem:[#allocation2] sm:$0x1] %v45_v54  ;;  %v55_v59 = vshrl.u32 %v1350_v55, 16  ;;  %v58_v60 = vshll.u32 %v1350_v55, 16  ;;  %v1329_v61 = vld [vmem:[#allocation3 + $0x1a0] ss:$16 sps:$4 sm:$0xff]   ;;  %vm1532_vm7 = vmand %vm62_vm4, %vm92_vm6 }
  0x3b   :  { %770 = vmatpush1.bf16.msra.mxu0 %v1281_v22  ;;  %876 = vmatpush1.bf16.msra.mxu1 %v1282_v23  ;;  %v1331_v1 = vld [vmem:[#allocation3 + $0x1c4] ss:$16 sps:$4 sm:$0xff]   ;;  %v1333_v2 = vld [vmem:[#allocation3 + $0x1cc] ss:$16 sps:$4 sm:$0xff]   ;;  %v1335_v4 = vld [vmem:[#allocation3 + $0x1c0] ss:$16 sps:$4 sm:$0xff]  }
  0x3c   :  { %771 = vmatprep.subr.bf16.mxu0 %v1283_v24  ;;  %877 = vmatprep.subr.bf16.mxu1 %v1285_v25  ;;  %v57_v62 = vrot.slane %v55_v59, 7  ;;  %v1336_v5 = vld [vmem:[#allocation3 + $0x1c8] ss:$16 sps:$4 sm:$0xff]   ;;  %v1337_v7 = vld [vmem:[#allocation3 + $0x1e4] ss:$16 sps:$4 sm:$0xff]   ;;  %v1449_v54 = vmov 0  }
  0x3d   :  { %v1339_v9 = vld [vmem:[#allocation3 + $0x1ec] ss:$16 sps:$4 sm:$0xff]   ;;  %v1341_v10 = vld [vmem:[#allocation3 + $0x1e0] ss:$16 sps:$4 sm:$0xff]   ;;  %v1342_v11 = vld [vmem:[#allocation3 + $0x1e8] ss:$16 sps:$4 sm:$0xff]  }
  0x3e   :  { %v60_v3 = vor.u32 %v58_v60, %v57_v62  ;;  %v1346_v12 = vld [vmem:[#allocation3 + $0x204] ss:$16 sps:$4 sm:$0xff]   ;;  %v1349_v13 = vld [vmem:[#allocation3 + $0x20c] ss:$16 sps:$4 sm:$0xff]   ;;  %v1344_v14 = vld [vmem:[#allocation3 + $0x200] ss:$16 sps:$4 sm:$0xff]  }
  0x3f   :  { %772 = vmatpush1.bf16.msra.mxu0 %v1287_v26  ;;  %878 = vmatpush1.bf16.msra.mxu1 %v1288_v27  ;;  %v1381_v15 = vld [vmem:[%s1596_s0 + $0x8] sm:$0xff]   ;;  %v103_v16 = vld [vmem:[#allocation2 + $0x18] sm:$0x1]  ;;  %v1353_v20 = vld [vmem:[#allocation3 + $0x224] ss:$16 sps:$4 sm:$0xff]  }
  0x40   :  { %773 = vmatprep.subr.bf16.mxu0 %v1289_v28  ;;  %879 = vmatprep.subr.bf16.mxu1 %v1291_v29  ;;  %v104_v17 = vsel %vm1494_vm2, 0, %v103_v16  ;;  %v1382_v18 = vld [vmem:[%s1596_s0 + $0x8] sm:$0xff]   ;;  %v1351_v24 = vld [vmem:[#allocation3 + $0x220] ss:$16 sps:$4 sm:$0xff]   ;;  %v1359_v27 = vld [vmem:[#allocation3 + $0x244] ss:$16 sps:$4 sm:$0xff]  }
  0x41   :  { %v65_v6 = vld [vmem:[#allocation2] sm:$0xff]  ;;  %v1347_v19 = vld [vmem:[#allocation3 + $0x208] ss:$16 sps:$4 sm:$0xff]   ;;  %105 = vst [vmem:[#allocation2 + $0x18] sm:$0x1] %v104_v17  ;;  %v115_v22 = vshrl.u32 %v1382_v18, 16 }
  0x42   :  { %v66_v8 = vsel %vm1508_vm5, %v60_v3, %v65_v6  ;;  %v1356_v21 = vld [vmem:[#allocation3 + $0x22c] ss:$16 sps:$4 sm:$0xff]   ;;  %v118_v23 = vshll.u32 %v1382_v18, 16  ;;  %v1354_v25 = vld [vmem:[#allocation3 + $0x228] ss:$16 sps:$4 sm:$0xff]  }
  0x43   :  { %774 = vmatpush1.bf16.msra.mxu0 %v1293_v30  ;;  %880 = vmatpush1.bf16.msra.mxu1 %v1294_v31  ;;  %67 = vst [vmem:[#allocation2] sm:$0xff] %v66_v8  ;;  %v117_v26 = vrot.slane %v115_v22, 7  ;;  %v1362_v28 = vld [vmem:[#allocation3 + $0x24c] ss:$16 sps:$4 sm:$0xff]   ;;  %v1395_v30 = vld [vmem:[%s1596_s0] sm:$0xff]  }
  0x44   :  { %775 = vmatprep.subr.bf16.mxu0 %v1295_v32  ;;  %881 = vmatprep.subr.bf16.mxu1 %v1297_v33  ;;  %v85_v32 = vshrl.u32 %v1395_v30, 16  ;;  %v87_v33 = vshll.u32 %v1395_v30, 16  ;;  %v1363_v47 = vld [vmem:[#allocation3 + $0x260] ss:$16 sps:$4 sm:$0xff]   ;;  %v1366_v48 = vld [vmem:[#allocation3 + $0x268] ss:$16 sps:$4 sm:$0xff]  }
  0x45   :  { %v120_v29 = vor.u32 %v118_v23, %v117_v26  ;;  %vm98_vm9 = vsmask.f32 7966  ;;  %v1380_v59 = vld [vmem:[#allocation3 + $0x2ac] ss:$16 sps:$4 sm:$0xff]   ;;  %v1378_v62 = vld [vmem:[#allocation3 + $0x2a8] ss:$16 sps:$4 sm:$0xff]  }
  0x46   :  { %vm1540_vm10 = vmand %vm97_vm8, %vm98_vm9  ;;  %v1385_v63 = vld [vmem:[#allocation3 + $0x2c4] ss:$16 sps:$4 sm:$0xff]   ;;  %v257_v17 = vld [vmem:[#allocation5] sm:$0xf] }
  0x47   :  { %776 = vmatpush1.bf16.msra.mxu0 %v1299_v34  ;;  %882 = vmatpush1.bf16.msra.mxu1 %v1300_v35  ;;  %v1396_v34 = vld [vmem:[%s1596_s0 + $0x8] sm:$0xff]   ;;  %v1357_v35 = vld [vmem:[#allocation3 + $0x240] ss:$16 sps:$4 sm:$0xff]  }
  0x48   :  { %777 = vmatprep.subr.bf16.mxu0 %v1301_v36  ;;  %883 = vmatprep.subr.bf16.mxu1 %v1303_v37  ;;  %v122_v31 = vld [vmem:[#allocation2 + $0x18] sm:$0xff]  ;;  %v1365_v37 = vld [vmem:[#allocation3 + $0x264] ss:$16 sps:$4 sm:$0xff]  }
  0x49   :  { %v1360_v36 = vld [vmem:[#allocation3 + $0x248] ss:$16 sps:$4 sm:$0xff]  }
  0x4b   :  { %778 = vmatpush1.bf16.msra.mxu0 %v1305_v38  ;;  %884 = vmatpush1.bf16.msra.mxu1 %v1306_v39  ;;  %v123_v38 = vsel %vm1508_vm5, %v120_v29, %v122_v31  ;;  %v1368_v39 = vld [vmem:[#allocation3 + $0x26c] ss:$16 sps:$4 sm:$0xff]  }
  0x4c   :  { %779 = vmatprep.subr.bf16.mxu0 %v1307_v40  ;;  %885 = vmatprep.subr.bf16.mxu1 %v1309_v41  ;;  %124 = vst [vmem:[#allocation2 + $0x18] sm:$0xff] %v123_v38  ;;  %v89_v40 = vrot.slane %v87_v33, 1  ;;  %v142_v41 = vshrl.u32 %v1396_v34, 16 }
  0x4f   :  { %780 = vmatpush1.bf16.msra.mxu0 %v1311_v42  ;;  %886 = vmatpush1.bf16.msra.mxu1 %v1312_v43  ;;  %v144_v42 = vshll.u32 %v1396_v34, 16 }
  0x50   :  { %781 = vmatprep.subr.bf16.mxu0 %v1313_v44  ;;  %887 = vmatprep.subr.bf16.mxu1 %v1315_v45  ;;  %v94_v44 = vld [vmem:[#allocation2 + $0x10] sm:$0xff]  ;;  %v90_v45 = vor.u32 %v89_v40, %v85_v32 }
  0x53   :  { %782 = vmatpush1.bf16.msra.mxu0 %v1317_v46  ;;  %888 = vmatpush1.bf16.msra.mxu1 %v1318_v49  ;;  %v146_v46 = vrot.slane %v144_v42, 1  ;;  %v149_v49 = vld [vmem:[#allocation2 + $0x28] sm:$0xff] }
  0x54   :  { %783 = vmatprep.subr.bf16.mxu0 %v1319_v50  ;;  %889 = vmatprep.subr.bf16.mxu1 %v1321_v51  ;;  %v1371_v50 = vld [vmem:[#allocation3 + $0x284] ss:$16 sps:$4 sm:$0xff]   ;;  %v1374_v51 = vld [vmem:[#allocation3 + $0x28c] ss:$16 sps:$4 sm:$0xff]  }
  0x55   :  { %v147_v53 = vor.u32 %v146_v46, %v142_v41 }
  0x57   :  { %784 = vmatpush1.bf16.msra.mxu0 %v1323_v52  ;;  %890 = vmatpush1.bf16.msra.mxu1 %v1324_v56  ;;  %v95_v52 = vsel %vm1532_vm7, %v90_v45, %v94_v44  ;;  %v150_v55 = vsel %vm1532_vm7, %v147_v53, %v149_v49  ;;  %v1369_v56 = vld [vmem:[#allocation3 + $0x280] ss:$16 sps:$4 sm:$0xff]  }
  0x58   :  { %785 = vmatprep.subr.bf16.mxu0 %v1325_v57  ;;  %891 = vmatprep.subr.bf16.mxu1 %v1327_v58  ;;  %96 = vst [vmem:[#allocation2 + $0x10] sm:$0xff] %v95_v52  ;;  %v1372_v57 = vld [vmem:[#allocation3 + $0x288] ss:$16 sps:$4 sm:$0xff]   ;;  %151 = vst [vmem:[#allocation2 + $0x28] sm:$0xff] %v150_v55  ;;  %v1377_v58 = vld [vmem:[#allocation3 + $0x2a4] ss:$16 sps:$4 sm:$0xff]  }
  0x5b   :  { %786 = vmatpush1.bf16.msra.mxu0 %v1329_v61  ;;  %892 = vmatpush1.bf16.msra.mxu1 %v1330_v0  ;;  %v1375_v61 = vld [vmem:[#allocation3 + $0x2a0] ss:$16 sps:$4 sm:$0xff]   ;;  %v1388_v0 = vld [vmem:[#allocation3 + $0x2cc] ss:$16 sps:$4 sm:$0xff]  }
  0x5c   :  { %787 = vmatprep.subr.bf16.mxu0 %v1331_v1  ;;  %893 = vmatprep.subr.bf16.mxu1 %v1333_v2 }
  0x5f   :  { %788 = vmatpush1.bf16.msra.mxu0 %v1335_v4  ;;  %894 = vmatpush1.bf16.msra.mxu1 %v1336_v5  ;;  %v100_v1 = vld [vmem:[#allocation2 + $0x10] sm:$0x80]  ;;  %v152_v3 = vld [vmem:[#allocation2 + $0x28] sm:$0x80]  ;;  %v1383_v4 = vld [vmem:[#allocation3 + $0x2c0] ss:$16 sps:$4 sm:$0xff]  }
  0x60   :  { %789 = vmatprep.subr.bf16.mxu0 %v1337_v7  ;;  %895 = vmatprep.subr.bf16.mxu1 %v1339_v9  ;;  %v101_v2 = vsel %vm1540_vm10, 0, %v100_v1  ;;  %v1386_v5 = vld [vmem:[#allocation3 + $0x2c8] ss:$16 sps:$4 sm:$0xff]   ;;  %v153_v6 = vsel %vm1540_vm10, 0, %v152_v3  ;;  %v1391_v7 = vld [vmem:[#allocation3 + $0x2e4] ss:$16 sps:$4 sm:$0xff]  }
  0x61   :  { %102 = vst [vmem:[#allocation2 + $0x10] sm:$0x80] %v101_v2  ;;  %154 = vst [vmem:[#allocation2 + $0x28] sm:$0x80] %v153_v6  ;;  %v1389_v9 = vld [vmem:[#allocation3 + $0x2e0] ss:$16 sps:$4 sm:$0xff]  }
  0x63   :  { %790 = vmatpush1.bf16.msra.mxu0 %v1341_v10  ;;  %896 = vmatpush1.bf16.msra.mxu1 %v1342_v11  ;;  %v1392_v10 = vld [vmem:[#allocation3 + $0x2e8] ss:$16 sps:$4 sm:$0xff]  }
  0x64   :  { %812 = vmatprep.subr.bf16.mxu0 %v1346_v12  ;;  %918 = vmatprep.subr.bf16.mxu1 %v1349_v13  ;;  %v259_v13 = vlaneseq }
  0x66   :  { %792 = vmatmul.mubr.bf16.vlgmr.msra.gmra.mrb[0].mxu0 %v66_v8  ;;  %898 = vmatmul.mubr.bf16.vlgmr.msra.gmra.mrb[0].mxu1 %v66_v8  ;;  %v1394_v8 = vld [vmem:[#allocation3 + $0x2ec] ss:$16 sps:$4 sm:$0xff]  }
  0x67   :  { %813 = vmatpush1.bf16.msra.mxu0 %v1344_v14  ;;  %919 = vmatpush1.bf16.msra.mxu1 %v1347_v19  ;;  %v260_v14 = vshrl.u32 %v259_v13, 7 }
  0x68   :  { %814 = vmatprep.subr.bf16.mxu0 %v1353_v20  ;;  %920 = vmatprep.subr.bf16.mxu1 %v1356_v21  ;;  %v157_v11 = vld [vmem:[#allocation2 + $0x10] sm:$0xff]  ;;  %v160_v12 = vld [vmem:[#allocation2 + $0x28] sm:$0xff] }
  0x69   :  { %801 = vmatprep.mubr.bf16.mxu0 %v1381_v15  ;;  %907 = vmatprep.mubr.bf16.mxu1 %v1381_v15  ;;  %v261_v15 = vsub.s32 0, %v260_v14  ;;  %v269_v16 = vsub.s32 2, %v260_v14  ;;  %v265_v18 = vsub.s32 1, %v260_v14  ;;  %v273_v19 = vsub.s32 3, %v260_v14 }
  0x6b   :  { %815 = vmatpush1.bf16.msra.mxu0 %v1351_v24  ;;  %921 = vmatpush1.bf16.msra.mxu1 %v1354_v25  ;;  %v1548_v20 = vrot.slane %v257_v17, %v261_v15  ;;  %v1550_v21 = vrot.slane %v257_v17, %v269_v16  ;;  %v1552_v22 = vrot.slane %v257_v17, %v265_v18 }
  0x6c   :  { %816 = vmatprep.subr.bf16.mxu0 %v1359_v27  ;;  %922 = vmatprep.subr.bf16.mxu1 %v1362_v28  ;;  %v1554_v23 = vrot.slane %v257_v17, %v273_v19 }
  0x6e   :  { %802 = vmatmul.mubr.bf16.gmra.mrb[4].mxu0 %v123_v38  ;;  %908 = vmatmul.mubr.bf16.gmra.mrb[4].mxu1 %v123_v38 }
  0x6f   :  { %817 = vmatpush1.bf16.msra.mxu0 %v1357_v35  ;;  %923 = vmatpush1.bf16.msra.mxu1 %v1360_v36 }
  0x70   :  { %818 = vmatprep.subr.bf16.mxu0 %v1365_v37  ;;  %924 = vmatprep.subr.bf16.mxu1 %v1368_v39 }
  0x71   :  { %844 = vmatprep.mubr.bf16.mxu0 %v1449_v54  ;;  %950 = vmatprep.mubr.bf16.mxu1 %v1449_v54 }
  0x73   :  { %819 = vmatpush1.bf16.msra.mxu0 %v1363_v47  ;;  %925 = vmatpush1.bf16.msra.mxu1 %v1366_v48 }
  0x74   :  { %820 = vmatprep.subr.bf16.mxu0 %v1371_v50  ;;  %926 = vmatprep.subr.bf16.mxu1 %v1374_v51 }
  0x77   :  { %821 = vmatpush1.bf16.msra.mxu0 %v1369_v56  ;;  %927 = vmatpush1.bf16.msra.mxu1 %v1372_v57 }
  0x78   :  { %822 = vmatprep.subr.bf16.mxu0 %v1377_v58  ;;  %928 = vmatprep.subr.bf16.mxu1 %v1380_v59 }
  0x7b   :  { %823 = vmatpush1.bf16.msra.mxu0 %v1375_v61  ;;  %929 = vmatpush1.bf16.msra.mxu1 %v1378_v62 }
  0x7c   :  { %824 = vmatprep.subr.bf16.mxu0 %v1385_v63  ;;  %930 = vmatprep.subr.bf16.mxu1 %v1388_v0 }
  0x7f   :  { %825 = vmatpush1.bf16.msra.mxu0 %v1383_v4  ;;  %931 = vmatpush1.bf16.msra.mxu1 %v1386_v5 }
  0x80   :  { %826 = vmatprep.subr.bf16.mxu0 %v1391_v7  ;;  %932 = vmatprep.subr.bf16.mxu1 %v1394_v8 }
  0x83   :  { %827 = vmatpush1.bf16.msra.mxu0 %v1389_v9  ;;  %933 = vmatpush1.bf16.msra.mxu1 %v1392_v10 }
  0x86   :  { %845 = vmatmul.mubr.bf16.vlgmr.msra.gmra.mrb[0].mxu0 %v157_v11  ;;  %951 = vmatmul.mubr.bf16.vlgmr.msra.gmra.mrb[0].mxu1 %v157_v11 }
  0x87   :  { %854 = vmatprep.mubr.bf16.mxu0 %v1449_v54  ;;  %960 = vmatprep.mubr.bf16.mxu1 %v1449_v54 }
  0x8e   :  { %855 = vmatmul.mubr.bf16.gmra.mrb[4].mxu0 %v160_v12  ;;  %961 = vmatmul.mubr.bf16.gmra.mrb[4].mxu1 %v160_v12 }
 0x159   :  { %v846_v24 = vpop.f32.mrb[0].mxu0  ;;  %v952_v25 = vpop.f32.mrb[0].mxu1 }
 0x15a   :  { %v1210_v26 = vadd.f32 %v846_v24, %v1548_v20  ;;  %v1218_v27 = vadd.f32 %v952_v25, %v1550_v21  ;;  %v848_v28 = vpop.f32.mrb[1].mxu0  ;;  %v954_v29 = vpop.f32.mrb[1].mxu1 }
 0x15b   :  { %v1211_v30 = vadd.f32 %v848_v28, %v1552_v22  ;;  %v1219_v31 = vadd.f32 %v954_v29, %v1554_v23  ;;  %v850_v32 = vpop.f32.mrb[2].mxu0  ;;  %v956_v33 = vpop.f32.mrb[2].mxu1 }
 0x15c   :  { %vm971_vm11 = vcmp.ge.f32.partialorder %v1210_v26, 0.0  ;;  %v987_v34 = vmul.f32 0.01, %v1210_v26  ;;  %vm973_vm12 = vcmp.ge.f32.partialorder %v1218_v27, 0.0  ;;  %v989_v35 = vmul.f32 0.01, %v1218_v27 }
 0x15d   :  { %vm972_vm13 = vcmp.ge.f32.partialorder %v1211_v30, 0.0  ;;  %v988_v36 = vmul.f32 0.01, %v1211_v30  ;;  %vm974_vm14 = vcmp.ge.f32.partialorder %v1219_v31, 0.0  ;;  %v990_v37 = vmul.f32 0.01, %v1219_v31 }
 0x15e   :  { %v1003_v38 = vsel %vm971_vm11, %v1210_v26, %v987_v34  ;;  %v1005_v39 = vsel %vm973_vm12, %v1218_v27, %v989_v35  ;;  %v1212_v40 = vadd.f32 %v850_v32, %v1548_v20  ;;  %v1220_v41 = vadd.f32 %v956_v33, %v1550_v21  ;;  %v852_v42 = vpop.f32.mrb[3].mxu0  ;;  %v958_v43 = vpop.f32.mrb[3].mxu1 }
 0x15f   :  { %v1004_v44 = vsel %vm972_vm13, %v1211_v30, %v988_v36  ;;  %v1006_v45 = vsel %vm974_vm14, %v1219_v31, %v990_v37  ;;  %v1213_v46 = vadd.f32 %v852_v42, %v1552_v22  ;;  %v1221_v47 = vadd.f32 %v958_v43, %v1554_v23 }
 0x160   :  { %v1202_v48 = vpack.c.bf16 %v1004_v44, %v1003_v38  ;;  %v1203_v49 = vpack.c.bf16 %v1006_v45, %v1005_v39  ;;  %vm975_vm15 = vcmp.ge.f32.partialorder %v1212_v40, 0.0  ;;  %v991_v50 = vmul.f32 0.01, %v1212_v40 }
 0x161   :  { %vm977_vm0 = vcmp.ge.f32.partialorder %v1220_v41, 0.0  ;;  %v993_v51 = vmul.f32 0.01, %v1220_v41  ;;  %vm976_vm1 = vcmp.ge.f32.partialorder %v1213_v46, 0.0  ;;  %v992_v52 = vmul.f32 0.01, %v1213_v46 }
 0x162   :  { %1047 = vst [vmem:[%s1599_s3] sm:$0xff] %v1202_v48  ;;  %1048 = vst [vmem:[%s1599_s3 + $0x8] sm:$0xff] %v1203_v49  ;;  %v1007_v53 = vsel %vm975_vm15, %v1212_v40, %v991_v50  ;;  %vm978_vm2 = vcmp.ge.f32.partialorder %v1221_v47, 0.0  ;;  %v994_v54 = vmul.f32 0.01, %v1221_v47  ;;  %v856_v55 = vpop.f32.mrb[4].mxu0  ;;  %v962_v56 = vpop.f32.mrb[4].mxu1 }
 0x163   :  { %v1009_v57 = vsel %vm977_vm0, %v1220_v41, %v993_v51  ;;  %v1008_v58 = vsel %vm976_vm1, %v1213_v46, %v992_v52  ;;  %v1214_v59 = vadd.f32 %v856_v55, %v1548_v20  ;;  %v1222_v60 = vadd.f32 %v962_v56, %v1550_v21  ;;  %v858_v61 = vpop.f32.mrb[5].mxu0  ;;  %v964_v62 = vpop.f32.mrb[5].mxu1 }
 0x164   :  { %v1204_v63 = vpack.c.bf16 %v1008_v58, %v1007_v53  ;;  %v1010_v0 = vsel %vm978_vm2, %v1221_v47, %v994_v54  ;;  %v1215_v1 = vadd.f32 %v858_v61, %v1552_v22  ;;  %v1223_v2 = vadd.f32 %v964_v62, %v1554_v23  ;;  %v860_v3 = vpop.f32.mrb[6].mxu0  ;;  %v966_v4 = vpop.f32.mrb[6].mxu1 }
 0x165   :  { %v1205_v5 = vpack.c.bf16 %v1010_v0, %v1009_v57  ;;  %vm979_vm3 = vcmp.ge.f32.partialorder %v1214_v59, 0.0  ;;  %v995_v6 = vmul.f32 0.01, %v1214_v59  ;;  %vm981_vm4 = vcmp.ge.f32.partialorder %v1222_v60, 0.0  ;;  %v862_v7 = vpop.f32.mrb[7].mxu0  ;;  %v968_v8 = vpop.f32.mrb[7].mxu1 }
 0x166   :  { %1049 = vst [vmem:[%s1599_s3 + $0x10] sm:$0xff] %v1204_v63  ;;  %v997_v9 = vmul.f32 0.01, %v1222_v60  ;;  %vm980_vm5 = vcmp.ge.f32.partialorder %v1215_v1, 0.0  ;;  %v996_v10 = vmul.f32 0.01, %v1215_v1  ;;  %v1216_v13 = vadd.f32 %v860_v3, %v1548_v20 }
 0x167   :  { %vm982_vm6 = vcmp.ge.f32.partialorder %v1223_v2, 0.0  ;;  %1050 = vst [vmem:[%s1599_s3 + $0x18] sm:$0xff] %v1205_v5  ;;  %v1011_v11 = vsel %vm979_vm3, %v1214_v59, %v995_v6  ;;  %v998_v12 = vmul.f32 0.01, %v1223_v2  ;;  %v1224_v14 = vadd.f32 %v966_v4, %v1550_v21 }
 0x168   :  { %v1013_v15 = vsel %vm981_vm4, %v1222_v60, %v997_v9  ;;  %v1012_v16 = vsel %vm980_vm5, %v1215_v1, %v996_v10  ;;  %v1217_v17 = vadd.f32 %v862_v7, %v1552_v22  ;;  %v1225_v18 = vadd.f32 %v968_v8, %v1554_v23 }
 0x169   :  { %v1206_v19 = vpack.c.bf16 %v1012_v16, %v1011_v11  ;;  %v1014_v24 = vsel %vm982_vm6, %v1223_v2, %v998_v12  ;;  %vm983_vm7 = vcmp.ge.f32.partialorder %v1216_v13, 0.0  ;;  %v999_v25 = vmul.f32 0.01, %v1216_v13 }
 0x16a   :  { %v1207_v26 = vpack.c.bf16 %v1014_v24, %v1013_v15  ;;  %vm985_vm8 = vcmp.ge.f32.partialorder %v1224_v14, 0.0  ;;  %v1001_v27 = vmul.f32 0.01, %v1224_v14  ;;  %vm984_vm9 = vcmp.ge.f32.partialorder %v1217_v17, 0.0 }
 0x16b   :  { %1198 = vst [vmem:[%s1599_s3 + $0x20] sm:$0xff] %v1206_v19  ;;  %v1015_v20 = vsel %vm983_vm7, %v1216_v13, %v999_v25  ;;  %v1000_v21 = vmul.f32 0.01, %v1217_v17  ;;  %vm986_vm10 = vcmp.ge.f32.partialorder %v1225_v18, 0.0  ;;  %v1002_v28 = vmul.f32 0.01, %v1225_v18 }
 0x16c   :  { %1199 = vst [vmem:[%s1599_s3 + $0x28] sm:$0xff] %v1207_v26  ;;  %v1017_v22 = vsel %vm985_vm8, %v1224_v14, %v1001_v27 }
 0x16d   :  { %v1016_v23 = vsel %vm984_vm9, %v1217_v17, %v1000_v21  ;;  %v1018_v29 = vsel %vm986_vm10, %v1225_v18, %v1002_v28 }
 0x16e   :  { %v1208_v30 = vpack.c.bf16 %v1016_v23, %v1015_v20  ;;  %v1209_v31 = vpack.c.bf16 %v1018_v29, %v1017_v22 }
 0x170   :  { %1200 = vst [vmem:[%s1599_s3 + $0x30] sm:$0xff] %v1208_v30  ;;  %1201 = vst [vmem:[%s1599_s3 + $0x38] sm:$0xff] %v1209_v31 }
 0x171   :  { %1080 = vsyncpa [#allocation4], 1 }
 0x172   :  { %1081 = vsyncpa [#allocation6], 1 }

// kernel: prior_decoder_forward.4
= control target key start
LH: loop header
LB: loop body
LE: loop exit
PB: predicated region body
PF: predicated region fallthrough
CT: control target
= control target key end

     0   :  { %8 = vsyncpa [#allocation4], 0  ;;  %s5397_s0 = inlined_call_operand.vmem [shape: bf16[2,32,256], index: 0, kind: input, shape index: {}]   ;;  %s5398_s1 = inlined_call_operand.hbm [shape: bf16[768,1024], index: 1, kind: input, shape index: {}]   ;;  %s5399_s2 = inlined_call_operand.hbm [shape: f32[1,1024], index: 2, kind: input, shape index: {}]   ;;  %s5400_s3 = inlined_call_operand.vmem [shape: bf16[2,32,1024], index: 3, kind: output, shape index: {}]  }
   0x1   :  { %9 = vsyncpa [#allocation6], 0  ;;  %s4833_s12 = smov [#allocation3]   ;;  %s4785_s16 = scalar_lea.hbm %s5398_s1, 49152 }
   0x2   :  { %s17_s13 = sshll.u32 %s4833_s12, 4  ;;  %p4786_p0 = scmp.ne.s32.totalorder %s5398_s1, %s4785_s16  ;;  %s18_s13 = int_to_ptr.vmem [resolvable:$true] %s17_s13 }
   0x3   :  { %p4789_p1 = scmp.lt.u32.totalorder %s4785_s16, %s5398_s1 }
   0x5   :  { %p4791_p2 = pnand %p4789_p1, %p4786_p0 }
   0x7   :  { %4794 = shalt.err (!%p4791_p2)
}
   0x8   :  { %s4795_s21 = scalar_lea.vmem %s18_s13, 49152  ;;  %p4800_p4 = scmp.lt.s32.totalorder %s18_s13, %s18_s13 }
   0x9   :  { %p4796_p3 = scmp.ne.s32.totalorder %s18_s13, %s4795_s21  ;;  %p4801_p5 = scmp.lt.s32.totalorder %s4795_s21, %s4795_s21 }
   0xb   :  { %p4802_p6 = por %p4801_p5, %p4800_p4 }
   0xd   :  { %p4803_p7 = pnand %p4802_p6, %p4796_p3 }
   0xf   :  { %4806 = shalt.err (!%p4803_p7)
}
  0x10   :  { %s4834_s22 = smov 512   ;;  %s4835_s23 = smov 32  }
  0x11   :  { %23 = dma.hbm_to_vmem [thread:$0]  %s5398_s1, 49152, %s18_s13, [#allocation4], %s4834_s22, %s4834_s22, %s4835_s23  }
  0x12   :  { %s4836_s26 = smov [#allocation5]   ;;  %s4807_s30 = scalar_lea.hbm %s5399_s2, 128 }
  0x13   :  { %s30_s27 = sshll.u32 %s4836_s26, 4  ;;  %p4808_p8 = scmp.ne.s32.totalorder %s5399_s2, %s4807_s30  ;;  %s31_s27 = int_to_ptr.vmem [resolvable:$true] %s30_s27 }
  0x14   :  { %p4811_p9 = scmp.lt.u32.totalorder %s4807_s30, %s5399_s2 }
  0x16   :  { %p4813_p10 = pnand %p4811_p9, %p4808_p8 }
  0x18   :  { %4816 = shalt.err (!%p4813_p10)
}
  0x19   :  { %s4817_s8 = scalar_lea.vmem %s31_s27, 128  ;;  %p4822_p12 = scmp.lt.s32.totalorder %s31_s27, %s31_s27 }
  0x1a   :  { %p4818_p11 = scmp.ne.s32.totalorder %s31_s27, %s4817_s8  ;;  %p4823_p13 = scmp.lt.s32.totalorder %s4817_s8, %s4817_s8 }
  0x1c   :  { %p4824_p0 = por %p4823_p13, %p4822_p12 }
  0x1e   :  { %p4825_p1 = pnand %p4824_p0, %p4818_p11 }
  0x20   :  { %4828 = shalt.err (!%p4825_p1)
}
  0x21   :  { %33 = dma.hbm_to_vmem [thread:$0]  %s5399_s2, 128, %s31_s27, [#allocation6]  }
  0x22   :  { %4829 = dma.done.wait [#allocation4], 49152  }
  0x23   :  { %4830 = vsyncadd [#allocation4], 4294918144 }
  0x24   :  { %4831 = dma.done.wait [#allocation6], 128  }
  0x25   :  { %4832 = vsyncadd [#allocation6], 4294967168  ;;  %v405_v0 = vld [vmem:[#allocation3] sm:$0xff]  ;;  %v406_v2 = vld [vmem:[#allocation3 + $0x8] sm:$0xff]  ;;  %vm41_vm0 = vcmask 1040384   ;;  %vm104_vm3 = vcmask 1047552  }
  0x26   :  { %v409_v1 = vld [vmem:[#allocation3 + $0x20] sm:$0xff]  ;;  %v410_v4 = vld [vmem:[#allocation3 + $0x28] sm:$0xff]  ;;  %vm42_vm1 = vsmask.f32 256  ;;  %vm105_vm4 = vsmask.f32 7938 }
  0x27   :  { %v4087_v3 = vcombine.high %v405_v0, %v409_v1  ;;  %v4086_v5 = vcombine.low %v405_v0, %v409_v1  ;;  %v413_v6 = vld [vmem:[#allocation3 + $0x40] sm:$0xff]  ;;  %v4089_v8 = vcombine.high %v406_v2, %v410_v4  ;;  %v4088_v9 = vcombine.low %v406_v2, %v410_v4  ;;  %v414_v11 = vld [vmem:[#allocation3 + $0x48] sm:$0xff]  ;;  %vm4882_vm2 = vmand %vm41_vm0, %vm42_vm1 }
  0x28   :  { %v417_v7 = vld [vmem:[#allocation3 + $0x60] sm:$0xff]  ;;  %v418_v12 = vld [vmem:[#allocation3 + $0x68] sm:$0xff]  ;;  %vm4911_vm5 = vmand %vm104_vm3, %vm105_vm4  ;;  %vm163_vm6 = vsmask.f32 7424  ;;  %vm207_vm8 = vcmask 1047559  }
  0x29   :  { %v4095_v10 = vcombine.high %v413_v6, %v417_v7  ;;  %v421_v13 = vld [vmem:[#allocation3 + $0x80] sm:$0xff]  ;;  %2751 = vmatprep.subr.bf16.mxu0 %v4087_v3  ;;  %v4097_v14 = vcombine.high %v414_v11, %v418_v12  ;;  %v422_v16 = vld [vmem:[#allocation3 + $0x88] sm:$0xff]  ;;  %2970 = vmatprep.subr.bf16.mxu1 %v4089_v8  ;;  %v4094_v18 = vcombine.low %v413_v6, %v417_v7  ;;  %vm5085_vm7 = vmand %vm104_vm3, %vm163_vm6  ;;  %vm208_vm9 = vsmask.f32 7966 }
  0x2a   :  { %v425_v15 = vld [vmem:[#allocation3 + $0xa0] sm:$0xff]  ;;  %v426_v17 = vld [vmem:[#allocation3 + $0xa8] sm:$0xff]  ;;  %2752 = vmatpush1.bf16.msra.mxu0 %v4086_v5  ;;  %2971 = vmatpush1.bf16.msra.mxu1 %v4088_v9  ;;  %v4096_v19 = vcombine.low %v414_v11, %v418_v12  ;;  %vm5154_vm10 = vmand %vm207_vm8, %vm208_vm9 }
  0x2b   :  { %2753 = vmatprep.subr.bf16.mxu0 %v4095_v10  ;;  %v4103_v20 = vcombine.high %v421_v13, %v425_v15  ;;  %2972 = vmatprep.subr.bf16.mxu1 %v4097_v14  ;;  %v4105_v21 = vcombine.high %v422_v16, %v426_v17  ;;  %v429_v22 = vld [vmem:[#allocation3 + $0xc0] sm:$0xff]  ;;  %v430_v24 = vld [vmem:[#allocation3 + $0xc8] sm:$0xff]  ;;  %v4102_v26 = vcombine.low %v421_v13, %v425_v15 }
  0x2c   :  { %v433_v23 = vld [vmem:[#allocation3 + $0xe0] sm:$0xff]  ;;  %v434_v25 = vld [vmem:[#allocation3 + $0xe8] sm:$0xff]  ;;  %v4104_v27 = vcombine.low %v422_v16, %v426_v17 }
  0x2d   :  { %v4111_v28 = vcombine.high %v429_v22, %v433_v23  ;;  %v4113_v29 = vcombine.high %v430_v24, %v434_v25  ;;  %v437_v30 = vld [vmem:[#allocation3 + $0x100] sm:$0xff]  ;;  %v438_v32 = vld [vmem:[#allocation3 + $0x108] sm:$0xff]  ;;  %v4110_v34 = vcombine.low %v429_v22, %v433_v23  ;;  %v4112_v35 = vcombine.low %v430_v24, %v434_v25 }
  0x2e   :  { %2754 = vmatpush1.bf16.msra.mxu0 %v4094_v18  ;;  %2973 = vmatpush1.bf16.msra.mxu1 %v4096_v19  ;;  %v441_v31 = vld [vmem:[#allocation3 + $0x120] sm:$0xff]  ;;  %v442_v33 = vld [vmem:[#allocation3 + $0x128] sm:$0xff] }
  0x2f   :  { %2755 = vmatprep.subr.bf16.mxu0 %v4103_v20  ;;  %2974 = vmatprep.subr.bf16.mxu1 %v4105_v21  ;;  %v4119_v36 = vcombine.high %v437_v30, %v441_v31  ;;  %v4121_v37 = vcombine.high %v438_v32, %v442_v33  ;;  %v445_v38 = vld [vmem:[#allocation3 + $0x140] sm:$0xff]  ;;  %v446_v40 = vld [vmem:[#allocation3 + $0x148] sm:$0xff]  ;;  %v4118_v42 = vcombine.low %v437_v30, %v441_v31 }
  0x30   :  { %v449_v39 = vld [vmem:[#allocation3 + $0x160] sm:$0xff]  ;;  %v450_v41 = vld [vmem:[#allocation3 + $0x168] sm:$0xff]  ;;  %v4120_v43 = vcombine.low %v438_v32, %v442_v33 }
  0x31   :  { %v4127_v44 = vcombine.high %v445_v38, %v449_v39  ;;  %v4129_v45 = vcombine.high %v446_v40, %v450_v41  ;;  %v453_v46 = vld [vmem:[#allocation3 + $0x180] sm:$0xff]  ;;  %v454_v48 = vld [vmem:[#allocation3 + $0x188] sm:$0xff]  ;;  %v4126_v51 = vcombine.low %v445_v38, %v449_v39  ;;  %v4128_v52 = vcombine.low %v446_v40, %v450_v41 }
  0x32   :  { %2756 = vmatpush1.bf16.msra.mxu0 %v4102_v26  ;;  %2975 = vmatpush1.bf16.msra.mxu1 %v4104_v27  ;;  %v457_v47 = vld [vmem:[#allocation3 + $0x1a0] sm:$0xff]  ;;  %v458_v49 = vld [vmem:[#allocation3 + $0x1a8] sm:$0xff] }
  0x33   :  { %2757 = vmatprep.subr.bf16.mxu0 %v4111_v28  ;;  %2976 = vmatprep.subr.bf16.mxu1 %v4113_v29  ;;  %v4135_v53 = vcombine.high %v453_v46, %v457_v47  ;;  %v461_v54 = vld [vmem:[#allocation3 + $0x1c0] sm:$0xff]  ;;  %v47_v55 = vld [vmem:[#allocation2 + $0x8] sm:$0x1]  ;;  %v4137_v56 = vcombine.high %v454_v48, %v458_v49  ;;  %v4134_v62 = vcombine.low %v453_v46, %v457_v47 }
  0x34   :  { %v465_v57 = vld [vmem:[#allocation3 + $0x1e0] sm:$0xff]  ;;  %v48_v58 = vsel %vm4882_vm2, 0, %v47_v55  ;;  %v462_v60 = vld [vmem:[#allocation3 + $0x1c8] sm:$0xff]  ;;  %v4136_v3 = vcombine.low %v454_v48, %v458_v49 }
  0x35   :  { %v4891_v59 = vld [vmem:[%s5397_s0 + $0x4] ss:$8 sps:$4 sm:$0xff]   ;;  %49 = vst [vmem:[#allocation2 + $0x8] sm:$0x1] %v48_v58  ;;  %v44_v1 = vld [vmem:[#allocation2] sm:$0x1]  ;;  %v4143_v4 = vcombine.high %v461_v54, %v465_v57  ;;  %v4142_v14 = vcombine.low %v461_v54, %v465_v57 }
  0x36   :  { %2758 = vmatpush1.bf16.msra.mxu0 %v4110_v34  ;;  %2977 = vmatpush1.bf16.msra.mxu1 %v4112_v35  ;;  %v466_v61 = vld [vmem:[#allocation3 + $0x1e8] sm:$0xff]  ;;  %v78_v63 = vshrl.u32 %v4891_v59, 16  ;;  %v81_v0 = vshll.u32 %v4891_v59, 16  ;;  %140 = vst [vmem:[#allocation2 + $0x18] sm:$0xff] %v4891_v59  ;;  %v45_v5 = vsel %vm4882_vm2, 0, %v44_v1  ;;  %v469_v7 = vld [vmem:[#allocation3 + $0x200] sm:$0xff] }
  0x37   :  { %2759 = vmatprep.subr.bf16.mxu0 %v4119_v36  ;;  %2978 = vmatprep.subr.bf16.mxu1 %v4121_v37  ;;  %v4898_v2 = vld [vmem:[%s5397_s0] ss:$8 sps:$4 sm:$0xff]   ;;  %v4145_v6 = vcombine.high %v462_v60, %v466_v61  ;;  %46 = vst [vmem:[#allocation2] sm:$0x1] %v45_v5  ;;  %v4144_v18 = vcombine.low %v462_v60, %v466_v61  ;;  %v4956_v1 = vld [vmem:[%s5397_s0 + $0x24] ss:$8 sps:$4 sm:$0xff]  }
  0x38   :  { %v473_v8 = vld [vmem:[#allocation3 + $0x220] sm:$0xff]  ;;  %v4903_v9 = vrot.slane %v78_v63, 7  ;;  %v71_v10 = vshrl.u32 %v4898_v2, 16  ;;  %v74_v11 = vshll.u32 %v4898_v2, 16  ;;  %139 = vst [vmem:[#allocation2 + $0x10] sm:$0xff] %v4898_v2  ;;  %v470_v12 = vld [vmem:[#allocation3 + $0x208] sm:$0xff] }
  0x39   :  { %v474_v13 = vld [vmem:[#allocation3 + $0x228] sm:$0xff]  ;;  %v4151_v19 = vcombine.high %v469_v7, %v473_v8  ;;  %v477_v21 = vld [vmem:[#allocation3 + $0x240] sm:$0xff]  ;;  %v4150_v28 = vcombine.low %v469_v7, %v473_v8  ;;  %310 = vst [vmem:[#allocation2 + $0x78] sm:$0xff] %v4956_v1 }
  0x3a   :  { %2760 = vmatpush1.bf16.msra.mxu0 %v4118_v42  ;;  %2979 = vmatpush1.bf16.msra.mxu1 %v4120_v43  ;;  %v83_v15 = vor.u32 %v81_v0, %v4903_v9  ;;  %v4915_v17 = vrot.slane %v71_v10, 7  ;;  %v4153_v20 = vcombine.high %v470_v12, %v474_v13  ;;  %v481_v22 = vld [vmem:[#allocation3 + $0x260] sm:$0xff]  ;;  %v478_v25 = vld [vmem:[#allocation3 + $0x248] sm:$0xff]  ;;  %v4152_v29 = vcombine.low %v470_v12, %v474_v13 }
  0x3b   :  { %2761 = vmatprep.subr.bf16.mxu0 %v4127_v44  ;;  %2980 = vmatprep.subr.bf16.mxu1 %v4129_v45  ;;  %v482_v26 = vld [vmem:[#allocation3 + $0x268] sm:$0xff]  ;;  %v4159_v30 = vcombine.high %v477_v21, %v481_v22  ;;  %v485_v33 = vld [vmem:[#allocation3 + $0x280] sm:$0xff]  ;;  %v4158_v38 = vcombine.low %v477_v21, %v481_v22  ;;  %v4928_v44 = vld [vmem:[%s5397_s0 + $0x14] ss:$8 sps:$4 sm:$0xff]   ;;  %v251_v13 = vshrl.u32 %v4956_v1, 16 }
  0x3c   :  { %v110_v23 = vld [vmem:[#allocation2 + $0x8] sm:$0xff]  ;;  %v76_v24 = vor.u32 %v74_v11, %v4915_v17  ;;  %v4161_v32 = vcombine.high %v478_v25, %v482_v26  ;;  %v489_v34 = vld [vmem:[#allocation3 + $0x2a0] sm:$0xff]  ;;  %v4160_v39 = vcombine.low %v478_v25, %v482_v26  ;;  %v93_v49 = vshrl.u32 %v4928_v44, 16  ;;  %142 = vst [vmem:[#allocation2 + $0x48] sm:$0xff] %v4928_v44  ;;  %v4993_v25 = vld [vmem:[%s5397_s0 + $0x34] ss:$8 sps:$4 sm:$0xff]  }
  0x3d   :  { %v111_v27 = vsel %vm4911_vm5, %v83_v15, %v110_v23  ;;  %v486_v36 = vld [vmem:[#allocation3 + $0x288] sm:$0xff]  ;;  %v4167_v40 = vcombine.high %v485_v33, %v489_v34  ;;  %v493_v41 = vld [vmem:[#allocation3 + $0x2c0] sm:$0xff]  ;;  %v4166_v47 = vcombine.low %v485_v33, %v489_v34  ;;  %312 = vst [vmem:[#allocation2 + $0xa8] sm:$0xff] %v4993_v25 }
  0x3e   :  { %2762 = vmatpush1.bf16.msra.mxu0 %v4126_v51  ;;  %2981 = vmatpush1.bf16.msra.mxu1 %v4128_v52  ;;  %112 = vst [vmem:[#allocation2 + $0x8] sm:$0xff] %v111_v27  ;;  %v107_v31 = vld [vmem:[#allocation2] sm:$0xff]  ;;  %v490_v37 = vld [vmem:[#allocation3 + $0x2a8] sm:$0xff]  ;;  %v96_v51 = vshll.u32 %v4928_v44, 16  ;;  %v4937_v52 = vld [vmem:[%s5397_s0 + $0x10] ss:$8 sps:$4 sm:$0xff]  }
  0x3f   :  { %2763 = vmatprep.subr.bf16.mxu0 %v4135_v53  ;;  %2982 = vmatprep.subr.bf16.mxu1 %v4137_v56  ;;  %v4922_v35 = vsel %vm4911_vm5, %v76_v24, %v107_v31  ;;  %v4169_v42 = vcombine.high %v486_v36, %v490_v37  ;;  %v497_v43 = vld [vmem:[#allocation3 + $0x2e0] sm:$0xff]  ;;  %v494_v45 = vld [vmem:[#allocation3 + $0x2c8] sm:$0xff]  ;;  %v4168_v53 = vcombine.low %v486_v36, %v490_v37  ;;  %v95_v61 = vrot.slane %v93_v49, 7 }
  0x40   :  { %2783 = vmatprep.mubr.bf16.mxu0 %v111_v27  ;;  %3002 = vmatprep.mubr.bf16.mxu1 %v111_v27  ;;  %109 = vst [vmem:[#allocation2] sm:$0xff] %v4922_v35  ;;  %v498_v46 = vld [vmem:[#allocation3 + $0x2e8] sm:$0xff]  ;;  %v4930_v48 = vld [vmem:[#allocation3 + $0x300] sm:$0xff]  ;;  %v4175_v54 = vcombine.high %v493_v41, %v497_v43  ;;  %v88_v63 = vshll.u32 %v4937_v52, 16  ;;  %141 = vst [vmem:[#allocation2 + $0x40] sm:$0xff] %v4937_v52  ;;  %v253_v24 = vrot.slane %v251_v13, 7 }
  0x41   :  { %v4940_v55 = vld [vmem:[#allocation3 + $0x320] sm:$0xff]  ;;  %v4942_v56 = vld [vmem:[#allocation3 + $0x308] sm:$0xff]  ;;  %v4177_v58 = vcombine.high %v494_v45, %v498_v46  ;;  %v98_v5 = vor.u32 %v96_v51, %v95_v61 }
  0x42   :  { %2764 = vmatpush1.bf16.msra.mxu0 %v4134_v62  ;;  %2983 = vmatpush1.bf16.msra.mxu1 %v4136_v3  ;;  %v219_v57 = vld [vmem:[#allocation2 + $0x68] sm:$0x1]  ;;  %v85_v62 = vshrl.u32 %v4937_v52, 16  ;;  %v4174_v3 = vcombine.low %v493_v41, %v497_v43  ;;  %v216_v7 = vld [vmem:[#allocation2 + $0x60] sm:$0x1]  ;;  %v4183_v10 = vcombine.high %v4930_v48, %v4940_v55  ;;  %v4182_v50 = vcombine.low %v4930_v48, %v4940_v55 }
  0x43   :  { %2765 = vmatprep.subr.bf16.mxu0 %v4143_v4  ;;  %2984 = vmatprep.subr.bf16.mxu1 %v4145_v6  ;;  %v4944_v60 = vld [vmem:[#allocation3 + $0x328] sm:$0xff]  ;;  %v220_v0 = vsel %vm4882_vm2, 0, %v219_v57  ;;  %v4176_v4 = vcombine.low %v494_v45, %v498_v46  ;;  %v4971_v12 = vld [vmem:[#allocation3 + $0x340] sm:$0xff] }
  0x44   :  { %v87_v6 = vrot.slane %v85_v62, 7  ;;  %221 = vst [vmem:[#allocation2 + $0x68] sm:$0x1] %v220_v0  ;;  %v4965_v8 = vld [vmem:[%s5397_s0 + $0x20] ss:$8 sps:$4 sm:$0xff]   ;;  %v4185_v11 = vcombine.high %v4942_v56, %v4944_v60  ;;  %v4184_v26 = vcombine.low %v4942_v56, %v4944_v60 }
  0x45   :  { %v513_v15 = vld [vmem:[#allocation3 + $0x360] sm:$0xff]  ;;  %v244_v21 = vshrl.u32 %v4965_v8, 16  ;;  %309 = vst [vmem:[#allocation2 + $0x70] sm:$0xff] %v4965_v8  ;;  %v510_v22 = vld [vmem:[#allocation3 + $0x348] sm:$0xff] }
  0x46   :  { %2766 = vmatpush1.bf16.msra.mxu0 %v4142_v14  ;;  %2985 = vmatpush1.bf16.msra.mxu1 %v4144_v18  ;;  %v254_v14 = vshll.u32 %v4956_v1, 16  ;;  %v4978_v18 = vsel %vm42_vm1, %v4903_v9, %v98_v5  ;;  %v514_v23 = vld [vmem:[#allocation3 + $0x368] sm:$0xff]  ;;  %v247_v9 = vshll.u32 %v4965_v8, 16  ;;  %v517_v34 = vld [vmem:[#allocation3 + $0x380] sm:$0xff]  ;;  %v4190_v45 = vcombine.low %v4971_v12, %v513_v15 }
  0x47   :  { %2767 = vmatprep.subr.bf16.mxu0 %v4151_v19  ;;  %2986 = vmatprep.subr.bf16.mxu1 %v4153_v20  ;;  %v90_v19 = vor.u32 %v88_v63, %v87_v6  ;;  %v217_v20 = vsel %vm4882_vm2, 0, %v216_v7  ;;  %114 = vst [vmem:[#allocation2 + $0x38] sm:$0xff] %v4978_v18  ;;  %v4193_v33 = vcombine.high %v510_v22, %v514_v23  ;;  %v521_v36 = vld [vmem:[#allocation3 + $0x3a0] sm:$0xff]  ;;  %v518_v37 = vld [vmem:[#allocation3 + $0x388] sm:$0xff] }
  0x48   :  { %218 = vst [vmem:[#allocation2 + $0x60] sm:$0x1] %v217_v20  ;;  %v256_v31 = vor.u32 %v254_v14, %v253_v24  ;;  %v4199_v48 = vcombine.high %v517_v34, %v521_v36  ;;  %v525_v56 = vld [vmem:[#allocation3 + $0x3c0] sm:$0xff]  ;;  %v526_v60 = vld [vmem:[#allocation3 + $0x3c8] sm:$0xff]  ;;  %v4198_v5 = vcombine.low %v517_v34, %v521_v36 }
  0x49   :  { %v5001_v27 = vsel %vm42_vm1, %v4915_v17, %v90_v19  ;;  %v266_v17 = vshrl.u32 %v4993_v25, 16  ;;  %v529_v57 = vld [vmem:[#allocation3 + $0x3e0] sm:$0xff]  ;;  %v530_v61 = vld [vmem:[#allocation3 + $0x3e8] sm:$0xff] }
  0x4a   :  { %2768 = vmatpush1.bf16.msra.mxu0 %v4150_v28  ;;  %2987 = vmatpush1.bf16.msra.mxu1 %v4152_v29  ;;  %v246_v28 = vrot.slane %v244_v21, 7  ;;  %v5008_v29 = vld [vmem:[%s5397_s0 + $0x30] ss:$8 sps:$4 sm:$0xff]   ;;  %113 = vst [vmem:[#allocation2 + $0x30] sm:$0xff] %v5001_v27  ;;  %v4207_v7 = vcombine.high %v525_v56, %v529_v57  ;;  %v538_v19 = vld [vmem:[#allocation3 + $0x428] sm:$0xff]  ;;  %v4206_v20 = vcombine.low %v525_v56, %v529_v57  ;;  %v5058_v56 = vrot.slane %v88_v63, 1 }
  0x4b   :  { %2769 = vmatprep.subr.bf16.mxu0 %v4159_v30  ;;  %2988 = vmatprep.subr.bf16.mxu1 %v4161_v32  ;;  %v4191_v30 = vcombine.high %v4971_v12, %v513_v15  ;;  %v269_v32 = vshll.u32 %v4993_v25, 16  ;;  %311 = vst [vmem:[#allocation2 + $0xa0] sm:$0xff] %v5008_v29  ;;  %v268_v41 = vrot.slane %v266_v17, 7  ;;  %v261_v43 = vshll.u32 %v5008_v29, 16  ;;  %v537_v12 = vld [vmem:[#allocation3 + $0x420] sm:$0xff]  ;;  %v534_v15 = vld [vmem:[#allocation3 + $0x408] sm:$0xff] }
  0x4c   :  { %v562_v57 = vld [vmem:[#allocation3 + $0x4e8] sm:$0xff] }
  0x4e   :  { %2770 = vmatpush1.bf16.msra.mxu0 %v4158_v38  ;;  %2989 = vmatpush1.bf16.msra.mxu1 %v4160_v39  ;;  %v522_v38 = vld [vmem:[#allocation3 + $0x3a8] sm:$0xff] }
  0x4f   :  { %2771 = vmatprep.subr.bf16.mxu0 %v4167_v40  ;;  %2990 = vmatprep.subr.bf16.mxu1 %v4169_v42  ;;  %v280_v39 = vld [vmem:[#allocation2 + $0x68] sm:$0xff]  ;;  %v249_v40 = vor.u32 %v247_v9, %v246_v28  ;;  %v258_v42 = vshrl.u32 %v5008_v29, 16  ;;  %v4201_v55 = vcombine.high %v518_v37, %v522_v38  ;;  %v4200_v6 = vcombine.low %v518_v37, %v522_v38  ;;  %v549_v37 = vld [vmem:[#allocation3 + $0x480] sm:$0xff] }
  0x50   :  { %v5027_v46 = vsel %vm4911_vm5, %v256_v31, %v280_v39  ;;  %v553_v38 = vld [vmem:[#allocation3 + $0x4a0] sm:$0xff]  ;;  %v550_v39 = vld [vmem:[#allocation3 + $0x488] sm:$0xff] }
  0x51   :  { %282 = vst [vmem:[#allocation2 + $0x68] sm:$0xff] %v5027_v46 }
  0x52   :  { %2772 = vmatpush1.bf16.msra.mxu0 %v4166_v47  ;;  %2991 = vmatpush1.bf16.msra.mxu1 %v4168_v53  ;;  %v4192_v47 = vcombine.low %v510_v22, %v514_v23  ;;  %v271_v53 = vor.u32 %v269_v32, %v268_v41  ;;  %v4208_v22 = vcombine.low %v526_v60, %v530_v61 }
  0x53   :  { %2773 = vmatprep.subr.bf16.mxu0 %v4175_v54  ;;  %2992 = vmatprep.subr.bf16.mxu1 %v4177_v58  ;;  %v260_v54 = vrot.slane %v258_v42, 7  ;;  %v277_v58 = vld [vmem:[#allocation2 + $0x60] sm:$0xff] }
  0x54   :  { %v5036_v0 = vsel %vm4911_vm5, %v249_v40, %v277_v58  ;;  %v554_v40 = vld [vmem:[#allocation3 + $0x4a8] sm:$0xff]  ;;  %v4230_v58 = vcombine.low %v549_v37, %v553_v38 }
  0x55   :  { %279 = vst [vmem:[#allocation2 + $0x60] sm:$0xff] %v5036_v0 }
  0x56   :  { %2774 = vmatpush1.bf16.msra.mxu0 %v4174_v3  ;;  %2993 = vmatpush1.bf16.msra.mxu1 %v4176_v4  ;;  %v5039_v3 = vsel %vm42_vm1, %v253_v24, %v271_v53  ;;  %v263_v4 = vor.u32 %v261_v43, %v260_v54  ;;  %v4217_v24 = vcombine.high %v534_v15, %v538_v19  ;;  %v557_v53 = vld [vmem:[#allocation3 + $0x4c0] sm:$0xff] }
  0x57   :  { %2775 = vmatprep.subr.bf16.mxu0 %v4183_v10  ;;  %2994 = vmatprep.subr.bf16.mxu1 %v4185_v11  ;;  %284 = vst [vmem:[#allocation2 + $0x98] sm:$0xff] %v5039_v3  ;;  %v4209_v10 = vcombine.high %v526_v60, %v530_v61  ;;  %v533_v11 = vld [vmem:[#allocation3 + $0x400] sm:$0xff]  ;;  %v4232_v60 = vcombine.low %v550_v39, %v554_v40 }
  0x58   :  { %v5046_v16 = vsel %vm42_vm1, %v246_v28, %v263_v4  ;;  %v4215_v23 = vcombine.high %v533_v11, %v537_v12  ;;  %v542_v28 = vld [vmem:[#allocation3 + $0x448] sm:$0xff]  ;;  %v4214_v31 = vcombine.low %v533_v11, %v537_v12  ;;  %v561_v54 = vld [vmem:[#allocation3 + $0x4e0] sm:$0xff] }
  0x59   :  { %283 = vst [vmem:[#allocation2 + $0x90] sm:$0xff] %v5046_v16  ;;  %v4239_v61 = vcombine.high %v557_v53, %v561_v54  ;;  %v4758_v4 = vld [vmem:[%s5397_s0] ss:$8 sps:$4 sm:$0xff]  }
  0x5a   :  { %2776 = vmatpush1.bf16.msra.mxu0 %v4182_v50  ;;  %2995 = vmatpush1.bf16.msra.mxu1 %v4184_v26  ;;  %v541_v50 = vld [vmem:[#allocation3 + $0x440] sm:$0xff]  ;;  %v5079_v11 = vld [vmem:[#allocation3 + $0x528] sm:$0xff] }
  0x5b   :  { %2777 = vmatprep.subr.bf16.mxu0 %v4191_v30  ;;  %2996 = vmatprep.subr.bf16.mxu1 %v4193_v33  ;;  %v545_v26 = vld [vmem:[#allocation3 + $0x460] sm:$0xff]  ;;  %v546_v30 = vld [vmem:[#allocation3 + $0x468] sm:$0xff]  ;;  %v4216_v33 = vcombine.low %v534_v15, %v538_v19  ;;  %v165_v19 = vshrl.u32 %v4758_v4, 16 }
  0x5c   :  { %v4223_v34 = vcombine.high %v541_v50, %v545_v26  ;;  %v4225_v36 = vcombine.high %v542_v28, %v546_v30  ;;  %v4222_v41 = vcombine.low %v541_v50, %v545_v26  ;;  %v5093_v26 = vld [vmem:[#allocation3 + $0x540] sm:$0xff] }
  0x5e   :  { %2778 = vmatpush1.bf16.msra.mxu0 %v4190_v45  ;;  %2997 = vmatpush1.bf16.msra.mxu1 %v4192_v47  ;;  %v4224_v45 = vcombine.low %v542_v28, %v546_v30  ;;  %v4231_v47 = vcombine.high %v549_v37, %v553_v38  ;;  %v5095_v28 = vld [vmem:[#allocation3 + $0x560] sm:$0xff]  ;;  %v5106_v37 = vld [vmem:[#allocation3 + $0x568] sm:$0xff] }
  0x5f   :  { %2779 = vmatprep.subr.bf16.mxu0 %v4199_v48  ;;  %2998 = vmatprep.subr.bf16.mxu1 %v4201_v55  ;;  %v4233_v48 = vcombine.high %v550_v39, %v554_v40  ;;  %v5054_v55 = vrot.slane %v96_v51, 1  ;;  %v4760_v51 = vld [vmem:[%s5397_s0 + $0x4] ss:$8 sps:$4 sm:$0xff]  }
  0x60   :  { %v177_v12 = vshrl.u32 %v4760_v51, 16  ;;  %v179_v15 = vshll.u32 %v4760_v51, 16 }
  0x62   :  { %2780 = vmatpush1.bf16.msra.mxu0 %v4198_v5  ;;  %2999 = vmatpush1.bf16.msra.mxu1 %v4200_v6  ;;  %v5067_v5 = vld [vmem:[#allocation3 + $0x500] sm:$0xff]  ;;  %v193_v6 = vor.u32 %v5054_v55, %v93_v49 }
  0x63   :  { %2781 = vmatprep.subr.bf16.mxu0 %v4207_v7  ;;  %3000 = vmatprep.subr.bf16.mxu1 %v4209_v10  ;;  %v190_v7 = vor.u32 %v5058_v56, %v85_v62  ;;  %v5077_v10 = vld [vmem:[#allocation3 + $0x508] sm:$0xff]  ;;  %v204_v62 = vld [vmem:[#allocation2 + $0x58] sm:$0xff] }
  0x66   :  { %2782 = vmatpush1.bf16.msra.mxu0 %v4206_v20  ;;  %3001 = vmatpush1.bf16.msra.mxu1 %v4208_v22  ;;  %v167_v20 = vshll.u32 %v4758_v4, 16  ;;  %v4238_v22 = vcombine.low %v557_v53, %v561_v54  ;;  %v338_v53 = vrot.slane %v247_v9, 1  ;;  %v372_v54 = vld [vmem:[#allocation2 + $0xb8] sm:$0xff]  ;;  %v369_v9 = vld [vmem:[#allocation2 + $0xb0] sm:$0xff] }
  0x67   :  { %2824 = vmatprep.subr.bf16.mxu0 %v4215_v23  ;;  %3043 = vmatprep.subr.bf16.mxu1 %v4217_v24  ;;  %v355_v24 = vrot.slane %v269_v32, 1  ;;  %v350_v32 = vrot.slane %v254_v14, 1  ;;  %v4248_v14 = vcombine.low %v5077_v10, %v5079_v11 }
  0x68   :  { %v169_v30 = vrot.slane %v167_v20, 1 }
  0x69   :  { %2784 = vmatmul.mubr.bf16.vlgmr.msra.gmra.mrb[0].mxu0 %v4922_v35  ;;  %3003 = vmatmul.mubr.bf16.vlgmr.msra.gmra.mrb[0].mxu1 %v4922_v35  ;;  %v558_v35 = vld [vmem:[#allocation3 + $0x4c8] sm:$0xff] }
  0x6a   :  { %2825 = vmatpush1.bf16.msra.mxu0 %v4214_v31  ;;  %3044 = vmatpush1.bf16.msra.mxu1 %v4216_v33  ;;  %v4241_v63 = vcombine.high %v558_v35, %v562_v57  ;;  %v4240_v23 = vcombine.low %v558_v35, %v562_v57  ;;  %v201_v31 = vld [vmem:[#allocation2 + $0x50] sm:$0xff]  ;;  %v343_v33 = vrot.slane %v261_v43, 1  ;;  %v170_v39 = vor.u32 %v169_v30, %v165_v19  ;;  %v581_v57 = vld [vmem:[#allocation3 + $0x580] sm:$0xff] }
  0x6b   :  { %2826 = vmatprep.subr.bf16.mxu0 %v4223_v34  ;;  %3045 = vmatprep.subr.bf16.mxu1 %v4225_v36  ;;  %v4249_v34 = vcombine.high %v5077_v10, %v5079_v11  ;;  %v5104_v36 = vld [vmem:[#allocation3 + $0x548] sm:$0xff]  ;;  %v205_v43 = vsel %vm5085_vm7, %v193_v6, %v204_v62  ;;  %v202_v40 = vsel %vm5085_vm7, %v190_v7, %v201_v31  ;;  %v589_v6 = vld [vmem:[#allocation3 + $0x5c0] sm:$0xff] }
  0x6c   :  { %2793 = vmatprep.mubr.bf16.mxu0 %v4978_v18  ;;  %3012 = vmatprep.mubr.bf16.mxu1 %v4978_v18  ;;  %v5069_v18 = vld [vmem:[#allocation3 + $0x520] sm:$0xff]  ;;  %206 = vst [vmem:[#allocation2 + $0x58] sm:$0xff] %v205_v43  ;;  %203 = vst [vmem:[#allocation2 + $0x50] sm:$0xff] %v202_v40  ;;  %v359_v35 = vor.u32 %v343_v33, %v258_v42  ;;  %v582_v42 = vld [vmem:[#allocation3 + $0x588] sm:$0xff]  ;;  %v4256_v4 = vcombine.low %v5104_v36, %v5106_v37 }
  0x6d   :  { %v4247_v50 = vcombine.high %v5067_v5, %v5069_v18  ;;  %v593_v7 = vld [vmem:[#allocation3 + $0x5e0] sm:$0xff]  ;;  %v590_v10 = vld [vmem:[#allocation3 + $0x5c8] sm:$0xff] }
  0x6e   :  { %2827 = vmatpush1.bf16.msra.mxu0 %v4222_v41  ;;  %3046 = vmatpush1.bf16.msra.mxu1 %v4224_v45  ;;  %v4246_v41 = vcombine.low %v5067_v5, %v5069_v18  ;;  %v4255_v45 = vcombine.high %v5093_v26, %v5095_v28  ;;  %v594_v11 = vld [vmem:[#allocation3 + $0x5e8] sm:$0xff]  ;;  %v4271_v49 = vcombine.high %v589_v6, %v593_v7 }
  0x6f   :  { %2828 = vmatprep.subr.bf16.mxu0 %v4231_v47  ;;  %3047 = vmatprep.subr.bf16.mxu1 %v4233_v48  ;;  %v5127_v48 = vsel %vm163_vm6, %v170_v39, %v5058_v56  ;;  %v4254_v56 = vcombine.low %v5093_v26, %v5095_v28  ;;  %v4273_v62 = vcombine.high %v590_v10, %v594_v11  ;;  %v602_v26 = vld [vmem:[#allocation3 + $0x628] sm:$0xff] }
  0x70   :  { %198 = vst [vmem:[#allocation2 + $0x20] sm:$0xff] %v5127_v48  ;;  %v4270_v28 = vcombine.low %v589_v6, %v593_v7  ;;  %v4272_v30 = vcombine.low %v590_v10, %v594_v11  ;;  %v610_v39 = vld [vmem:[#allocation3 + $0x668] sm:$0xff]  ;;  %v637_v11 = vld [vmem:[#allocation3 + $0x740] sm:$0xff] }
  0x71   :  { %2794 = vmatmul.mubr.bf16.gmra.mrb[4].mxu0 %v5001_v27  ;;  %3013 = vmatmul.mubr.bf16.gmra.mrb[4].mxu1 %v5001_v27  ;;  %v181_v27 = vrot.slane %v179_v15, 1  ;;  %v630_v5 = vld [vmem:[#allocation3 + $0x708] sm:$0xff] }
  0x72   :  { %2829 = vmatpush1.bf16.msra.mxu0 %v4230_v58  ;;  %3048 = vmatpush1.bf16.msra.mxu1 %v4232_v60  ;;  %v585_v58 = vld [vmem:[#allocation3 + $0x5a0] sm:$0xff]  ;;  %v586_v60 = vld [vmem:[#allocation3 + $0x5a8] sm:$0xff] }
  0x73   :  { %2830 = vmatprep.subr.bf16.mxu0 %v4239_v61  ;;  %3049 = vmatprep.subr.bf16.mxu1 %v4241_v63  ;;  %v182_v38 = vor.u32 %v181_v27, %v177_v12  ;;  %v339_v61 = vor.u32 %v338_v53, %v244_v21  ;;  %v4263_v63 = vcombine.high %v581_v57, %v585_v58  ;;  %v213_v12 = vld [vmem:[#allocation2 + $0x58] sm:$0x80]  ;;  %v210_v15 = vld [vmem:[#allocation2 + $0x50] sm:$0x80]  ;;  %v614_v53 = vld [vmem:[#allocation3 + $0x688] sm:$0xff] }
  0x74   :  { %2803 = vmatprep.mubr.bf16.mxu0 %v5027_v46  ;;  %3022 = vmatprep.mubr.bf16.mxu1 %v5027_v46  ;;  %v362_v46 = vor.u32 %v355_v24, %v266_v17  ;;  %v4257_v17 = vcombine.high %v5104_v36, %v5106_v37  ;;  %v4265_v18 = vcombine.high %v582_v42, %v586_v60  ;;  %v214_v20 = vsel %vm5154_vm10, 0, %v213_v12  ;;  %v605_v36 = vld [vmem:[#allocation3 + $0x640] sm:$0xff] }
  0x75   :  { %v5123_v47 = vsel %vm163_vm6, %v182_v38, %v5054_v55  ;;  %v351_v55 = vor.u32 %v350_v32, %v251_v13  ;;  %v5160_v21 = vsel %vm163_vm6, %v339_v61, %v343_v33  ;;  %v4262_v19 = vcombine.low %v581_v57, %v585_v58  ;;  %215 = vst [vmem:[#allocation2 + $0x58] sm:$0x80] %v214_v20  ;;  %v609_v37 = vld [vmem:[#allocation3 + $0x660] sm:$0xff] }
  0x76   :  { %2831 = vmatpush1.bf16.msra.mxu0 %v4238_v22  ;;  %3050 = vmatpush1.bf16.msra.mxu1 %v4240_v23  ;;  %199 = vst [vmem:[#allocation2 + $0x28] sm:$0xff] %v5123_v47  ;;  %v373_v13 = vsel %vm5085_vm7, %v362_v46, %v372_v54  ;;  %367 = vst [vmem:[#allocation2 + $0x80] sm:$0xff] %v5160_v21  ;;  %v211_v22 = vsel %vm5154_vm10, 0, %v210_v15  ;;  %v4264_v23 = vcombine.low %v582_v42, %v586_v60  ;;  %v617_v46 = vld [vmem:[#allocation3 + $0x6a0] sm:$0xff]  ;;  %v618_v54 = vld [vmem:[#allocation3 + $0x6a8] sm:$0xff] }
  0x77   :  { %2832 = vmatprep.subr.bf16.mxu0 %v4247_v50  ;;  %3051 = vmatprep.subr.bf16.mxu1 %v4249_v34  ;;  %v5148_v51 = vsel %vm163_vm6, %v351_v55, %v355_v24  ;;  %374 = vst [vmem:[#allocation2 + $0xb8] sm:$0xff] %v373_v13  ;;  %212 = vst [vmem:[#allocation2 + $0x50] sm:$0x80] %v211_v22  ;;  %v597_v24 = vld [vmem:[#allocation3 + $0x600] sm:$0xff]  ;;  %v598_v50 = vld [vmem:[#allocation3 + $0x608] sm:$0xff]  ;;  %v4296_v60 = vcombine.low %v614_v53, %v618_v54 }
  0x78   :  { %368 = vst [vmem:[#allocation2 + $0x88] sm:$0xff] %v5148_v51  ;;  %v4281_v32 = vcombine.high %v598_v50, %v602_v26  ;;  %v4280_v40 = vcombine.low %v598_v50, %v602_v26  ;;  %v621_v58 = vld [vmem:[#allocation3 + $0x6c0] sm:$0xff]  ;;  %v638_v15 = vld [vmem:[#allocation3 + $0x748] sm:$0xff] }
  0x79   :  { %2804 = vmatmul.mubr.bf16.gmra.mrb[8].mxu0 %v5036_v0  ;;  %3023 = vmatmul.mubr.bf16.gmra.mrb[8].mxu1 %v5036_v0  ;;  %v370_v0 = vsel %vm5085_vm7, %v359_v35, %v369_v9  ;;  %v4286_v35 = vcombine.low %v605_v36, %v609_v37  ;;  %v625_v55 = vld [vmem:[#allocation3 + $0x6e0] sm:$0xff]  ;;  %v622_v9 = vld [vmem:[#allocation3 + $0x6c8] sm:$0xff] }
  0x7a   :  { %2833 = vmatpush1.bf16.msra.mxu0 %v4246_v41  ;;  %3052 = vmatpush1.bf16.msra.mxu1 %v4248_v14  ;;  %371 = vst [vmem:[#allocation2 + $0xb0] sm:$0xff] %v370_v0  ;;  %v4287_v41 = vcombine.high %v605_v36, %v609_v37  ;;  %v4303_v61 = vcombine.high %v621_v58, %v625_v55  ;;  %v629_v13 = vld [vmem:[#allocation3 + $0x700] sm:$0xff]  ;;  %v634_v0 = vld [vmem:[#allocation3 + $0x728] sm:$0xff] }
  0x7b   :  { %2834 = vmatprep.subr.bf16.mxu0 %v4255_v45  ;;  %3053 = vmatprep.subr.bf16.mxu1 %v4257_v17  ;;  %v613_v45 = vld [vmem:[#allocation3 + $0x680] sm:$0xff]  ;;  %v4313_v10 = vcombine.high %v630_v5, %v634_v0  ;;  %v4312_v22 = vcombine.low %v630_v5, %v634_v0  ;;  %v650_v50 = vld [vmem:[#allocation3 + $0x7a8] sm:$0xff] }
  0x7c   :  { %2813 = vmatprep.mubr.bf16.mxu0 %v5039_v3  ;;  %3032 = vmatprep.mubr.bf16.mxu1 %v5039_v3  ;;  %v601_v3 = vld [vmem:[#allocation3 + $0x620] sm:$0xff]  ;;  %v4295_v57 = vcombine.high %v613_v45, %v617_v46  ;;  %v4294_v42 = vcombine.low %v613_v45, %v617_v46 }
  0x7d   :  { %v4279_v31 = vcombine.high %v597_v24, %v601_v3  ;;  %v4278_v43 = vcombine.low %v597_v24, %v601_v3  ;;  %v641_v12 = vld [vmem:[#allocation3 + $0x760] sm:$0xff]  ;;  %v646_v3 = vld [vmem:[#allocation3 + $0x788] sm:$0xff] }
  0x7e   :  { %2835 = vmatpush1.bf16.msra.mxu0 %v4254_v56  ;;  %3054 = vmatpush1.bf16.msra.mxu1 %v4256_v4  ;;  %v378_v27 = vld [vmem:[#allocation2 + $0xb8] sm:$0x80]  ;;  %v626_v56 = vld [vmem:[#allocation3 + $0x6e8] sm:$0xff]  ;;  %v649_v24 = vld [vmem:[#allocation3 + $0x7a0] sm:$0xff]  ;;  %v4318_v26 = vcombine.low %v637_v11, %v641_v12  ;;  %v4328_v37 = vcombine.low %v646_v3, %v650_v50 }
  0x7f   :  { %2836 = vmatprep.subr.bf16.mxu0 %v4263_v63  ;;  %3055 = vmatprep.subr.bf16.mxu1 %v4265_v18  ;;  %v379_v33 = vsel %vm5154_vm10, 0, %v378_v27  ;;  %v4305_v4 = vcombine.high %v622_v9, %v626_v56  ;;  %v633_v63 = vld [vmem:[#allocation3 + $0x720] sm:$0xff]  ;;  %v4302_v18 = vcombine.low %v621_v58, %v625_v55  ;;  %v4304_v6 = vcombine.low %v622_v9, %v626_v56 }
  0x80   :  { %380 = vst [vmem:[#allocation2 + $0xb8] sm:$0x80] %v379_v33  ;;  %v4311_v7 = vcombine.high %v629_v13, %v633_v63  ;;  %v4310_v20 = vcombine.low %v629_v13, %v633_v63  ;;  %v657_v33 = vld [vmem:[#allocation3 + $0x7e0] sm:$0xff] }
  0x81   :  { %2814 = vmatmul.mubr.bf16.gmra.mrb[12].mxu0 %v5046_v16  ;;  %3033 = vmatmul.mubr.bf16.gmra.mrb[12].mxu1 %v5046_v16  ;;  %v375_v34 = vld [vmem:[#allocation2 + $0xb0] sm:$0x80]  ;;  %v606_v16 = vld [vmem:[#allocation3 + $0x648] sm:$0xff]  ;;  %v677_v56 = vld [vmem:[#allocation3 + $0x880] sm:$0xff] }
  0x82   :  { %2837 = vmatpush1.bf16.msra.mxu0 %v4262_v19  ;;  %3056 = vmatpush1.bf16.msra.mxu1 %v4264_v23  ;;  %v376_v38 = vsel %vm5154_vm10, 0, %v375_v34  ;;  %v4289_v14 = vcombine.high %v606_v16, %v610_v39  ;;  %v4288_v17 = vcombine.low %v606_v16, %v610_v39  ;;  %v642_v19 = vld [vmem:[#allocation3 + $0x768] sm:$0xff]  ;;  %v4319_v23 = vcombine.high %v637_v11, %v641_v12  ;;  %v661_v39 = vld [vmem:[#allocation3 + $0x800] sm:$0xff] }
  0x83   :  { %2838 = vmatprep.subr.bf16.mxu0 %v4271_v49  ;;  %3057 = vmatprep.subr.bf16.mxu1 %v4273_v62  ;;  %377 = vst [vmem:[#allocation2 + $0xb0] sm:$0x80] %v376_v38  ;;  %v4321_v49 = vcombine.high %v638_v15, %v642_v19  ;;  %v645_v62 = vld [vmem:[#allocation3 + $0x780] sm:$0xff]  ;;  %v654_v34 = vld [vmem:[#allocation3 + $0x7c8] sm:$0xff] }
  0x84   :  { %2856 = vmatprep.mubr.bf16.mxu0 %v4891_v59  ;;  %3075 = vmatprep.mubr.bf16.mxu1 %v4891_v59  ;;  %v4297_v59 = vcombine.high %v614_v53, %v618_v54  ;;  %v4327_v27 = vcombine.high %v645_v62, %v649_v24  ;;  %v4326_v36 = vcombine.low %v645_v62, %v649_v24  ;;  %v669_v54 = vld [vmem:[#allocation3 + $0x840] sm:$0xff] }
  0x85   :  { %v685_v0 = vld [vmem:[#allocation3 + $0x8c0] sm:$0xff] }
  0x86   :  { %2839 = vmatpush1.bf16.msra.mxu0 %v4270_v28  ;;  %3058 = vmatpush1.bf16.msra.mxu1 %v4272_v30  ;;  %v4320_v28 = vcombine.low %v638_v15, %v642_v19  ;;  %v4329_v30 = vcombine.high %v646_v3, %v650_v50  ;;  %v693_v15 = vld [vmem:[#allocation3 + $0x900] sm:$0xff]  ;;  %v702_v50 = vld [vmem:[#allocation3 + $0x948] sm:$0xff] }
  0x87   :  { %2840 = vmatprep.subr.bf16.mxu0 %v4279_v31  ;;  %3059 = vmatprep.subr.bf16.mxu1 %v4281_v32  ;;  %v653_v31 = vld [vmem:[#allocation3 + $0x7c0] sm:$0xff]  ;;  %v658_v32 = vld [vmem:[#allocation3 + $0x7e8] sm:$0xff] }
  0x88   :  { %v4335_v38 = vcombine.high %v653_v31, %v657_v33  ;;  %v4337_v16 = vcombine.high %v654_v34, %v658_v32  ;;  %v4336_v45 = vcombine.low %v654_v34, %v658_v32  ;;  %v697_v19 = vld [vmem:[#allocation3 + $0x920] sm:$0xff]  ;;  %v710_v34 = vld [vmem:[#allocation3 + $0x988] sm:$0xff] }
  0x89   :  { %v701_v24 = vld [vmem:[#allocation3 + $0x940] sm:$0xff]  ;;  %v714_v32 = vld [vmem:[#allocation3 + $0x9a8] sm:$0xff] }
  0x8a   :  { %2841 = vmatpush1.bf16.msra.mxu0 %v4278_v43  ;;  %3060 = vmatpush1.bf16.msra.mxu1 %v4280_v40  ;;  %v665_v43 = vld [vmem:[#allocation3 + $0x820] sm:$0xff]  ;;  %v662_v40 = vld [vmem:[#allocation3 + $0x808] sm:$0xff] }
  0x8b   :  { %2842 = vmatprep.subr.bf16.mxu0 %v4287_v41  ;;  %3061 = vmatprep.subr.bf16.mxu1 %v4289_v14  ;;  %v666_v41 = vld [vmem:[#allocation3 + $0x828] sm:$0xff]  ;;  %v4334_v14 = vcombine.low %v653_v31, %v657_v33  ;;  %v4343_v46 = vcombine.high %v661_v39, %v665_v43  ;;  %v705_v3 = vld [vmem:[#allocation3 + $0x960] sm:$0xff] }
  0x8c   :  { %v4345_v53 = vcombine.high %v662_v40, %v666_v41  ;;  %v4344_v58 = vcombine.low %v662_v40, %v666_v41  ;;  %v709_v31 = vld [vmem:[#allocation3 + $0x980] sm:$0xff]  ;;  %v722_v40 = vld [vmem:[#allocation3 + $0x9e8] sm:$0xff] }
  0x8d   :  { %v713_v33 = vld [vmem:[#allocation3 + $0x9a0] sm:$0xff] }
  0x8e   :  { %2843 = vmatpush1.bf16.msra.mxu0 %v4286_v35  ;;  %3062 = vmatpush1.bf16.msra.mxu1 %v4288_v17  ;;  %v673_v35 = vld [vmem:[#allocation3 + $0x860] sm:$0xff]  ;;  %v670_v17 = vld [vmem:[#allocation3 + $0x848] sm:$0xff]  ;;  %v4390_v41 = vcombine.low %v709_v31, %v713_v33 }
  0x8f   :  { %2844 = vmatprep.subr.bf16.mxu0 %v4295_v57  ;;  %3063 = vmatprep.subr.bf16.mxu1 %v4297_v59  ;;  %v674_v57 = vld [vmem:[#allocation3 + $0x868] sm:$0xff]  ;;  %v4342_v59 = vcombine.low %v661_v39, %v665_v43  ;;  %v4351_v55 = vcombine.high %v669_v54, %v673_v35  ;;  %v721_v39 = vld [vmem:[#allocation3 + $0x9e0] sm:$0xff] }
  0x90   :  { %v4353_v9 = vcombine.high %v670_v17, %v674_v57  ;;  %v4352_v13 = vcombine.low %v670_v17, %v674_v57  ;;  %v718_v43 = vld [vmem:[#allocation3 + $0x9c8] sm:$0xff] }
  0x92   :  { %2845 = vmatpush1.bf16.msra.mxu0 %v4294_v42  ;;  %3064 = vmatpush1.bf16.msra.mxu1 %v4296_v60  ;;  %v681_v42 = vld [vmem:[#allocation3 + $0x8a0] sm:$0xff]  ;;  %v678_v60 = vld [vmem:[#allocation3 + $0x888] sm:$0xff] }
  0x93   :  { %2846 = vmatprep.subr.bf16.mxu0 %v4303_v61  ;;  %3065 = vmatprep.subr.bf16.mxu1 %v4305_v4  ;;  %v682_v61 = vld [vmem:[#allocation3 + $0x8a8] sm:$0xff]  ;;  %v4350_v4 = vcombine.low %v669_v54, %v673_v35  ;;  %v4359_v63 = vcombine.high %v677_v56, %v681_v42 }
  0x94   :  { %v4361_v5 = vcombine.high %v678_v60, %v682_v61  ;;  %v726_v54 = vld [vmem:[#allocation3 + $0xa08] sm:$0xff] }
  0x95   :  { %v730_v35 = vld [vmem:[#allocation3 + $0xa28] sm:$0xff] }
  0x96   :  { %2847 = vmatpush1.bf16.msra.mxu0 %v4302_v18  ;;  %3066 = vmatpush1.bf16.msra.mxu1 %v4304_v6  ;;  %v689_v18 = vld [vmem:[#allocation3 + $0x8e0] sm:$0xff]  ;;  %v686_v6 = vld [vmem:[#allocation3 + $0x8c8] sm:$0xff] }
  0x97   :  { %2848 = vmatprep.subr.bf16.mxu0 %v4311_v7  ;;  %3067 = vmatprep.subr.bf16.mxu1 %v4313_v10  ;;  %v690_v7 = vld [vmem:[#allocation3 + $0x8e8] sm:$0xff]  ;;  %v4358_v10 = vcombine.low %v677_v56, %v681_v42  ;;  %v4367_v11 = vcombine.high %v685_v0, %v689_v18 }
  0x98   :  { %v4369_v12 = vcombine.high %v686_v6, %v690_v7  ;;  %v738_v56 = vld [vmem:[#allocation3 + $0xa68] sm:$0xff] }
  0x9a   :  { %2849 = vmatpush1.bf16.msra.mxu0 %v4310_v20  ;;  %3068 = vmatpush1.bf16.msra.mxu1 %v4312_v22  ;;  %v694_v20 = vld [vmem:[#allocation3 + $0x908] sm:$0xff] }
  0x9b   :  { %2850 = vmatprep.subr.bf16.mxu0 %v4319_v23  ;;  %3069 = vmatprep.subr.bf16.mxu1 %v4321_v49  ;;  %v698_v22 = vld [vmem:[#allocation3 + $0x928] sm:$0xff]  ;;  %v4366_v23 = vcombine.low %v685_v0, %v689_v18  ;;  %v4375_v49 = vcombine.high %v693_v15, %v697_v19 }
  0x9c   :  { %v4377_v62 = vcombine.high %v694_v20, %v698_v22 }
  0x9e   :  { %2851 = vmatpush1.bf16.msra.mxu0 %v4318_v26  ;;  %3070 = vmatpush1.bf16.msra.mxu1 %v4320_v28  ;;  %v706_v26 = vld [vmem:[#allocation3 + $0x968] sm:$0xff]  ;;  %v4374_v28 = vcombine.low %v693_v15, %v697_v19 }
  0x9f   :  { %2852 = vmatprep.subr.bf16.mxu0 %v4327_v27  ;;  %3071 = vmatprep.subr.bf16.mxu1 %v4329_v30  ;;  %v4376_v27 = vcombine.low %v694_v20, %v698_v22  ;;  %v4385_v30 = vcombine.high %v702_v50, %v706_v26  ;;  %v757_v22 = vld [vmem:[#allocation3 + $0xb00] sm:$0xff] }
  0xa2   :  { %2853 = vmatpush1.bf16.msra.mxu0 %v4326_v36  ;;  %3072 = vmatpush1.bf16.msra.mxu1 %v4328_v37  ;;  %v4382_v36 = vcombine.low %v701_v24, %v705_v3  ;;  %v4391_v37 = vcombine.high %v709_v31, %v713_v33 }
  0xa3   :  { %2854 = vmatprep.subr.bf16.mxu0 %v4335_v38  ;;  %3073 = vmatprep.subr.bf16.mxu1 %v4337_v16  ;;  %v4393_v38 = vcombine.high %v710_v34, %v714_v32  ;;  %v717_v16 = vld [vmem:[#allocation3 + $0x9c0] sm:$0xff] }
  0xa4   :  { %v4398_v17 = vcombine.low %v717_v16, %v721_v39 }
  0xa6   :  { %2855 = vmatpush1.bf16.msra.mxu0 %v4334_v14  ;;  %3074 = vmatpush1.bf16.msra.mxu1 %v4336_v45  ;;  %v4392_v14 = vcombine.low %v710_v34, %v714_v32  ;;  %v4401_v45 = vcombine.high %v718_v43, %v722_v40  ;;  %v773_v32 = vld [vmem:[#allocation3 + $0xb80] sm:$0xff] }
  0xa7   :  { %2897 = vmatprep.subr.bf16.mxu0 %v4343_v46  ;;  %3116 = vmatprep.subr.bf16.mxu1 %v4345_v53  ;;  %v725_v46 = vld [vmem:[#allocation3 + $0xa00] sm:$0xff] }
  0xa8   :  { %v729_v53 = vld [vmem:[#allocation3 + $0xa20] sm:$0xff] }
  0xa9   :  { %2857 = vmatmul.mubr.bf16.vlgmr.msra.gmra.mrb[0].mxu0 %v4898_v2  ;;  %3076 = vmatmul.mubr.bf16.vlgmr.msra.gmra.mrb[0].mxu1 %v4898_v2  ;;  %v4360_v2 = vcombine.low %v678_v60, %v682_v61  ;;  %v4407_v57 = vcombine.high %v725_v46, %v729_v53  ;;  %v4406_v42 = vcombine.low %v725_v46, %v729_v53 }
  0xaa   :  { %2898 = vmatpush1.bf16.msra.mxu0 %v4342_v59  ;;  %3117 = vmatpush1.bf16.msra.mxu1 %v4344_v58  ;;  %v4409_v59 = vcombine.high %v726_v54, %v730_v35  ;;  %v733_v58 = vld [vmem:[#allocation3 + $0xa40] sm:$0xff]  ;;  %v4408_v60 = vcombine.low %v726_v54, %v730_v35  ;;  %v407_v35 = vld [vmem:[#allocation3 + $0x10] sm:$0xff] }
  0xab   :  { %2899 = vmatprep.subr.bf16.mxu0 %v4351_v55  ;;  %3118 = vmatprep.subr.bf16.mxu1 %v4353_v9  ;;  %v737_v55 = vld [vmem:[#allocation3 + $0xa60] sm:$0xff]  ;;  %v734_v9 = vld [vmem:[#allocation3 + $0xa48] sm:$0xff] }
  0xac   :  { %2866 = vmatprep.mubr.bf16.mxu0 %v4928_v44  ;;  %3085 = vmatprep.mubr.bf16.mxu1 %v4928_v44  ;;  %v4368_v44 = vcombine.low %v686_v6, %v690_v7  ;;  %v4417_v61 = vcombine.high %v734_v9, %v738_v56  ;;  %v4414_v0 = vcombine.low %v733_v58, %v737_v55  ;;  %v749_v7 = vld [vmem:[#allocation3 + $0xac0] sm:$0xff] }
  0xad   :  { %v4416_v18 = vcombine.low %v734_v9, %v738_v56  ;;  %v415_v56 = vld [vmem:[#allocation3 + $0x50] sm:$0xff] }
  0xae   :  { %2900 = vmatpush1.bf16.msra.mxu0 %v4350_v4  ;;  %3119 = vmatpush1.bf16.msra.mxu1 %v4352_v13  ;;  %v741_v4 = vld [vmem:[#allocation3 + $0xa80] sm:$0xff] }
  0xaf   :  { %2901 = vmatprep.subr.bf16.mxu0 %v4359_v63  ;;  %3120 = vmatprep.subr.bf16.mxu1 %v4361_v5  ;;  %v745_v13 = vld [vmem:[#allocation3 + $0xaa0] sm:$0xff]  ;;  %v742_v63 = vld [vmem:[#allocation3 + $0xa88] sm:$0xff] }
  0xb0   :  { %v746_v5 = vld [vmem:[#allocation3 + $0xaa8] sm:$0xff]  ;;  %v4423_v6 = vcombine.high %v741_v4, %v745_v13 }
  0xb1   :  { %2867 = vmatmul.mubr.bf16.gmra.mrb[4].mxu0 %v4937_v52  ;;  %3086 = vmatmul.mubr.bf16.gmra.mrb[4].mxu1 %v4937_v52  ;;  %v4383_v52 = vcombine.high %v701_v24, %v705_v3  ;;  %v4424_v15 = vcombine.low %v742_v63, %v746_v5 }
  0xb2   :  { %2902 = vmatpush1.bf16.msra.mxu0 %v4358_v10  ;;  %3121 = vmatpush1.bf16.msra.mxu1 %v4360_v2  ;;  %v753_v10 = vld [vmem:[#allocation3 + $0xae0] sm:$0xff]  ;;  %v750_v2 = vld [vmem:[#allocation3 + $0xac8] sm:$0xff] }
  0xb3   :  { %2903 = vmatprep.subr.bf16.mxu0 %v4367_v11  ;;  %3122 = vmatprep.subr.bf16.mxu1 %v4369_v12  ;;  %v754_v11 = vld [vmem:[#allocation3 + $0xae8] sm:$0xff]  ;;  %v4422_v12 = vcombine.low %v741_v4, %v745_v13  ;;  %v4431_v19 = vcombine.high %v749_v7, %v753_v10 }
  0xb4   :  { %2876 = vmatprep.mubr.bf16.mxu0 %v4956_v1  ;;  %3095 = vmatprep.mubr.bf16.mxu1 %v4956_v1  ;;  %v4384_v1 = vcombine.low %v702_v50, %v706_v26  ;;  %v4433_v20 = vcombine.high %v750_v2, %v754_v11  ;;  %v4432_v24 = vcombine.low %v750_v2, %v754_v11  ;;  %v765_v26 = vld [vmem:[#allocation3 + $0xb40] sm:$0xff] }
  0xb6   :  { %2904 = vmatpush1.bf16.msra.mxu0 %v4366_v23  ;;  %3123 = vmatpush1.bf16.msra.mxu1 %v4368_v44  ;;  %v761_v23 = vld [vmem:[#allocation3 + $0xb20] sm:$0xff]  ;;  %v758_v44 = vld [vmem:[#allocation3 + $0xb08] sm:$0xff] }
  0xb7   :  { %2905 = vmatprep.subr.bf16.mxu0 %v4375_v49  ;;  %3124 = vmatprep.subr.bf16.mxu1 %v4377_v62  ;;  %v762_v49 = vld [vmem:[#allocation3 + $0xb28] sm:$0xff]  ;;  %v4430_v62 = vcombine.low %v749_v7, %v753_v10  ;;  %v4439_v3 = vcombine.high %v757_v22, %v761_v23 }
  0xb8   :  { %v4441_v50 = vcombine.high %v758_v44, %v762_v49  ;;  %v4440_v31 = vcombine.low %v758_v44, %v762_v49 }
  0xb9   :  { %2877 = vmatmul.mubr.bf16.gmra.mrb[8].mxu0 %v4965_v8  ;;  %3096 = vmatmul.mubr.bf16.gmra.mrb[8].mxu1 %v4965_v8  ;;  %v4399_v8 = vcombine.high %v717_v16, %v721_v39 }
  0xba   :  { %2906 = vmatpush1.bf16.msra.mxu0 %v4374_v28  ;;  %3125 = vmatpush1.bf16.msra.mxu1 %v4376_v27  ;;  %v769_v28 = vld [vmem:[#allocation3 + $0xb60] sm:$0xff]  ;;  %v766_v27 = vld [vmem:[#allocation3 + $0xb48] sm:$0xff] }
  0xbb   :  { %2907 = vmatprep.subr.bf16.mxu0 %v4383_v52  ;;  %3126 = vmatprep.subr.bf16.mxu1 %v4385_v30  ;;  %v770_v52 = vld [vmem:[#allocation3 + $0xb68] sm:$0xff]  ;;  %v4438_v30 = vcombine.low %v757_v22, %v761_v23  ;;  %v4447_v33 = vcombine.high %v765_v26, %v769_v28  ;;  %v391_v22 = vld [vmem:[#allocation2 + $0x50] sm:$0xff] }
  0xbc   :  { %2886 = vmatprep.mubr.bf16.mxu0 %v4993_v25  ;;  %3105 = vmatprep.mubr.bf16.mxu1 %v4993_v25  ;;  %v4400_v25 = vcombine.low %v718_v43, %v722_v40  ;;  %v4449_v34 = vcombine.high %v766_v27, %v770_v52  ;;  %v4448_v16 = vcombine.low %v766_v27, %v770_v52  ;;  %v781_v40 = vld [vmem:[#allocation3 + $0xbc0] sm:$0xff] }
  0xbe   :  { %2908 = vmatpush1.bf16.msra.mxu0 %v4382_v36  ;;  %3127 = vmatpush1.bf16.msra.mxu1 %v4384_v1  ;;  %v777_v36 = vld [vmem:[#allocation3 + $0xba0] sm:$0xff]  ;;  %v774_v1 = vld [vmem:[#allocation3 + $0xb88] sm:$0xff] }
  0xbf   :  { %2909 = vmatprep.subr.bf16.mxu0 %v4391_v37  ;;  %3128 = vmatprep.subr.bf16.mxu1 %v4393_v38  ;;  %v778_v37 = vld [vmem:[#allocation3 + $0xba8] sm:$0xff]  ;;  %v4446_v38 = vcombine.low %v765_v26, %v769_v28  ;;  %v4455_v39 = vcombine.high %v773_v32, %v777_v36 }
  0xc0   :  { %v4457_v43 = vcombine.high %v774_v1, %v778_v37  ;;  %v4456_v46 = vcombine.low %v774_v1, %v778_v37 }
  0xc1   :  { %2887 = vmatmul.mubr.bf16.gmra.mrb[12].mxu0 %v5008_v29  ;;  %3106 = vmatmul.mubr.bf16.gmra.mrb[12].mxu1 %v5008_v29  ;;  %v4415_v29 = vcombine.high %v733_v58, %v737_v55 }
  0xc2   :  { %2910 = vmatpush1.bf16.msra.mxu0 %v4390_v41  ;;  %3129 = vmatpush1.bf16.msra.mxu1 %v4392_v14  ;;  %v785_v41 = vld [vmem:[#allocation3 + $0xbe0] sm:$0xff]  ;;  %v782_v14 = vld [vmem:[#allocation3 + $0xbc8] sm:$0xff] }
  0xc3   :  { %2911 = vmatprep.subr.bf16.mxu0 %v4399_v8  ;;  %3130 = vmatprep.subr.bf16.mxu1 %v4401_v45  ;;  %v786_v8 = vld [vmem:[#allocation3 + $0xbe8] sm:$0xff]  ;;  %v4454_v45 = vcombine.low %v773_v32, %v777_v36  ;;  %v4463_v53 = vcombine.high %v781_v40, %v785_v41 }
  0xc4   :  { %2929 = vmatprep.mubr.bf16.mxu0 %v5123_v47  ;;  %3148 = vmatprep.mubr.bf16.mxu1 %v5123_v47  ;;  %v4425_v47 = vcombine.high %v742_v63, %v746_v5  ;;  %v4465_v54 = vcombine.high %v782_v14, %v786_v8  ;;  %v4464_v58 = vcombine.low %v782_v14, %v786_v8  ;;  %v423_v5 = vld [vmem:[#allocation3 + $0x90] sm:$0xff] }
  0xc6   :  { %2912 = vmatpush1.bf16.msra.mxu0 %v4398_v17  ;;  %3131 = vmatpush1.bf16.msra.mxu1 %v4400_v25  ;;  %v411_v17 = vld [vmem:[#allocation3 + $0x30] sm:$0xff]  ;;  %v408_v25 = vld [vmem:[#allocation3 + $0x18] sm:$0xff] }
  0xc7   :  { %2913 = vmatprep.subr.bf16.mxu0 %v4407_v57  ;;  %3132 = vmatprep.subr.bf16.mxu1 %v4409_v59  ;;  %v412_v57 = vld [vmem:[#allocation3 + $0x38] sm:$0xff]  ;;  %v4462_v59 = vcombine.low %v781_v40, %v785_v41  ;;  %v4091_v55 = vcombine.high %v407_v35, %v411_v17 }
  0xc8   :  { %v4093_v9 = vcombine.high %v408_v25, %v412_v57  ;;  %v4092_v4 = vcombine.low %v408_v25, %v412_v57  ;;  %v460_v40 = vld [vmem:[#allocation3 + $0x1b8] sm:$0xff] }
  0xca   :  { %2914 = vmatpush1.bf16.msra.mxu0 %v4406_v42  ;;  %3133 = vmatpush1.bf16.msra.mxu1 %v4408_v60  ;;  %v419_v42 = vld [vmem:[#allocation3 + $0x70] sm:$0xff]  ;;  %v416_v60 = vld [vmem:[#allocation3 + $0x58] sm:$0xff] }
  0xcb   :  { %2915 = vmatprep.subr.bf16.mxu0 %v4415_v29  ;;  %3134 = vmatprep.subr.bf16.mxu1 %v4417_v61  ;;  %v420_v29 = vld [vmem:[#allocation3 + $0x78] sm:$0xff]  ;;  %v4090_v61 = vcombine.low %v407_v35, %v411_v17  ;;  %v4099_v13 = vcombine.high %v415_v56, %v419_v42  ;;  %v4098_v7 = vcombine.low %v415_v56, %v419_v42  ;;  %v403_v35 = vld [vmem:[#allocation2 + $0xb0] sm:$0xff] }
  0xcc   :  { %v4101_v63 = vcombine.high %v416_v60, %v420_v29  ;;  %v4100_v10 = vcombine.low %v416_v60, %v420_v29 }
  0xce   :  { %2916 = vmatpush1.bf16.msra.mxu0 %v4414_v0  ;;  %3135 = vmatpush1.bf16.msra.mxu1 %v4416_v18  ;;  %v427_v0 = vld [vmem:[#allocation3 + $0xb0] sm:$0xff]  ;;  %v392_v18 = vld [vmem:[#allocation2 + $0x58] sm:$0xff] }
  0xcf   :  { %2917 = vmatprep.subr.bf16.mxu0 %v4423_v6  ;;  %3136 = vmatprep.subr.bf16.mxu1 %v4425_v47  ;;  %v424_v6 = vld [vmem:[#allocation3 + $0x98] sm:$0xff]  ;;  %v4107_v2 = vcombine.high %v423_v5, %v427_v0  ;;  %v4106_v23 = vcombine.low %v423_v5, %v427_v0 }
  0xd0   :  { %v428_v47 = vld [vmem:[#allocation3 + $0xb8] sm:$0xff] }
  0xd1   :  { %v4109_v11 = vcombine.high %v424_v6, %v428_v47  ;;  %v484_v5 = vld [vmem:[#allocation3 + $0x278] sm:$0xff] }
  0xd2   :  { %2918 = vmatpush1.bf16.msra.mxu0 %v4422_v12  ;;  %3137 = vmatpush1.bf16.msra.mxu1 %v4424_v15  ;;  %v431_v12 = vld [vmem:[#allocation3 + $0xd0] sm:$0xff] }
  0xd3   :  { %2919 = vmatprep.subr.bf16.mxu0 %v4431_v19  ;;  %3138 = vmatprep.subr.bf16.mxu1 %v4433_v20  ;;  %v435_v15 = vld [vmem:[#allocation3 + $0xf0] sm:$0xff]  ;;  %v432_v19 = vld [vmem:[#allocation3 + $0xd8] sm:$0xff] }
  0xd4   :  { %v436_v20 = vld [vmem:[#allocation3 + $0xf8] sm:$0xff]  ;;  %v4115_v44 = vcombine.high %v431_v12, %v435_v15  ;;  %v4114_v26 = vcombine.low %v431_v12, %v435_v15 }
  0xd5   :  { %v4117_v49 = vcombine.high %v432_v19, %v436_v20  ;;  %v4116_v28 = vcombine.low %v432_v19, %v436_v20 }
  0xd6   :  { %2920 = vmatpush1.bf16.msra.mxu0 %v4430_v62  ;;  %3139 = vmatpush1.bf16.msra.mxu1 %v4432_v24  ;;  %v439_v62 = vld [vmem:[#allocation3 + $0x110] sm:$0xff] }
  0xd7   :  { %2921 = vmatprep.subr.bf16.mxu0 %v4439_v3  ;;  %3140 = vmatprep.subr.bf16.mxu1 %v4441_v50  ;;  %v443_v24 = vld [vmem:[#allocation3 + $0x130] sm:$0xff]  ;;  %v440_v3 = vld [vmem:[#allocation3 + $0x118] sm:$0xff] }
  0xd8   :  { %v444_v50 = vld [vmem:[#allocation3 + $0x138] sm:$0xff]  ;;  %v4123_v27 = vcombine.high %v439_v62, %v443_v24  ;;  %v4122_v32 = vcombine.low %v439_v62, %v443_v24 }
  0xd9   :  { %v4125_v52 = vcombine.high %v440_v3, %v444_v50  ;;  %v4124_v36 = vcombine.low %v440_v3, %v444_v50  ;;  %v503_v50 = vld [vmem:[#allocation3 + $0x310] sm:$0xff] }
  0xda   :  { %2922 = vmatpush1.bf16.msra.mxu0 %v4438_v30  ;;  %3141 = vmatpush1.bf16.msra.mxu1 %v4440_v31  ;;  %v447_v30 = vld [vmem:[#allocation3 + $0x150] sm:$0xff] }
  0xdb   :  { %2923 = vmatprep.subr.bf16.mxu0 %v4447_v33  ;;  %3142 = vmatprep.subr.bf16.mxu1 %v4449_v34  ;;  %v451_v31 = vld [vmem:[#allocation3 + $0x170] sm:$0xff]  ;;  %v448_v33 = vld [vmem:[#allocation3 + $0x158] sm:$0xff] }
  0xdc   :  { %v452_v34 = vld [vmem:[#allocation3 + $0x178] sm:$0xff]  ;;  %v4131_v1 = vcombine.high %v447_v30, %v451_v31 }
  0xdd   :  { %v4133_v37 = vcombine.high %v448_v33, %v452_v34  ;;  %v4132_v41 = vcombine.low %v448_v33, %v452_v34  ;;  %v511_v34 = vld [vmem:[#allocation3 + $0x350] sm:$0xff] }
  0xde   :  { %2924 = vmatpush1.bf16.msra.mxu0 %v4446_v38  ;;  %3143 = vmatpush1.bf16.msra.mxu1 %v4448_v16  ;;  %v455_v38 = vld [vmem:[#allocation3 + $0x190] sm:$0xff] }
  0xdf   :  { %2925 = vmatprep.subr.bf16.mxu0 %v4455_v39  ;;  %3144 = vmatprep.subr.bf16.mxu1 %v4457_v43  ;;  %v459_v16 = vld [vmem:[#allocation3 + $0x1b0] sm:$0xff]  ;;  %v404_v39 = vld [vmem:[#allocation2 + $0xb8] sm:$0xff] }
  0xe0   :  { %v456_v43 = vld [vmem:[#allocation3 + $0x198] sm:$0xff]  ;;  %v4139_v14 = vcombine.high %v455_v38, %v459_v16  ;;  %v4138_v17 = vcombine.low %v455_v38, %v459_v16 }
  0xe1   :  { %v4141_v8 = vcombine.high %v456_v43, %v460_v40 }
  0xe2   :  { %2926 = vmatpush1.bf16.msra.mxu0 %v4454_v45  ;;  %3145 = vmatpush1.bf16.msra.mxu1 %v4456_v46  ;;  %v463_v45 = vld [vmem:[#allocation3 + $0x1d0] sm:$0xff] }
  0xe3   :  { %2927 = vmatprep.subr.bf16.mxu0 %v4463_v53  ;;  %3146 = vmatprep.subr.bf16.mxu1 %v4465_v54  ;;  %v467_v46 = vld [vmem:[#allocation3 + $0x1f0] sm:$0xff]  ;;  %v464_v53 = vld [vmem:[#allocation3 + $0x1d8] sm:$0xff] }
  0xe4   :  { %v468_v54 = vld [vmem:[#allocation3 + $0x1f8] sm:$0xff]  ;;  %v4147_v25 = vcombine.high %v463_v45, %v467_v46  ;;  %v4146_v56 = vcombine.low %v463_v45, %v467_v46 }
  0xe5   :  { %v4149_v57 = vcombine.high %v464_v53, %v468_v54  ;;  %v4148_v42 = vcombine.low %v464_v53, %v468_v54  ;;  %v527_v53 = vld [vmem:[#allocation3 + $0x3d0] sm:$0xff] }
  0xe6   :  { %2928 = vmatpush1.bf16.msra.mxu0 %v4462_v59  ;;  %3147 = vmatpush1.bf16.msra.mxu1 %v4464_v58  ;;  %v471_v59 = vld [vmem:[#allocation3 + $0x210] sm:$0xff] }
  0xe7   :  { %3189 = vmatprep.subr.bf16.mxu0 %v4091_v55  ;;  %3408 = vmatprep.subr.bf16.mxu1 %v4093_v9  ;;  %v475_v58 = vld [vmem:[#allocation3 + $0x230] sm:$0xff]  ;;  %v472_v55 = vld [vmem:[#allocation3 + $0x218] sm:$0xff] }
  0xe8   :  { %v476_v9 = vld [vmem:[#allocation3 + $0x238] sm:$0xff]  ;;  %v4155_v60 = vcombine.high %v471_v59, %v475_v58  ;;  %v4154_v0 = vcombine.low %v471_v59, %v475_v58  ;;  %v531_v54 = vld [vmem:[#allocation3 + $0x3f0] sm:$0xff] }
  0xe9   :  { %2930 = vmatmul.mubr.bf16.vlgmr.msra.gmra.mrb[0].mxu0 %v5127_v48  ;;  %3149 = vmatmul.mubr.bf16.vlgmr.msra.gmra.mrb[0].mxu1 %v5127_v48  ;;  %v4108_v48 = vcombine.low %v424_v6, %v428_v47  ;;  %v4157_v29 = vcombine.high %v472_v55, %v476_v9  ;;  %v535_v58 = vld [vmem:[#allocation3 + $0x410] sm:$0xff] }
  0xea   :  { %3190 = vmatpush1.bf16.msra.mxu0 %v4090_v61  ;;  %3409 = vmatpush1.bf16.msra.mxu1 %v4092_v4  ;;  %v479_v61 = vld [vmem:[#allocation3 + $0x250] sm:$0xff] }
  0xeb   :  { %3191 = vmatprep.subr.bf16.mxu0 %v4099_v13  ;;  %3410 = vmatprep.subr.bf16.mxu1 %v4101_v63  ;;  %v483_v4 = vld [vmem:[#allocation3 + $0x270] sm:$0xff]  ;;  %v4761_v13 = vld [vmem:[#allocation2 + $0x8] sm:$0xff]  ;;  %v480_v63 = vld [vmem:[#allocation3 + $0x258] sm:$0xff] }
  0xec   :  { %2939 = vmatprep.mubr.bf16.mxu0 %v392_v18  ;;  %3158 = vmatprep.mubr.bf16.mxu1 %v392_v18  ;;  %v4156_v18 = vcombine.low %v472_v55, %v476_v9  ;;  %v4163_v6 = vcombine.high %v479_v61, %v483_v4  ;;  %v4165_v47 = vcombine.high %v480_v63, %v484_v5  ;;  %v539_v55 = vld [vmem:[#allocation3 + $0x430] sm:$0xff]  ;;  %v536_v9 = vld [vmem:[#allocation3 + $0x418] sm:$0xff] }
  0xed   :  { %v4162_v12 = vcombine.low %v479_v61, %v483_v4  ;;  %v4164_v15 = vcombine.low %v480_v63, %v484_v5  ;;  %v543_v4 = vld [vmem:[#allocation3 + $0x450] sm:$0xff]  ;;  %v544_v63 = vld [vmem:[#allocation3 + $0x458] sm:$0xff] }
  0xee   :  { %3192 = vmatpush1.bf16.msra.mxu0 %v4098_v7  ;;  %3411 = vmatpush1.bf16.msra.mxu1 %v4100_v10  ;;  %v487_v7 = vld [vmem:[#allocation3 + $0x290] sm:$0xff]  ;;  %v548_v5 = vld [vmem:[#allocation3 + $0x478] sm:$0xff] }
  0xef   :  { %3193 = vmatprep.subr.bf16.mxu0 %v4107_v2  ;;  %3412 = vmatprep.subr.bf16.mxu1 %v4109_v11  ;;  %v491_v10 = vld [vmem:[#allocation3 + $0x2b0] sm:$0xff]  ;;  %v488_v2 = vld [vmem:[#allocation3 + $0x298] sm:$0xff] }
  0xf0   :  { %v492_v11 = vld [vmem:[#allocation3 + $0x2b8] sm:$0xff]  ;;  %v4171_v19 = vcombine.high %v487_v7, %v491_v10 }
  0xf1   :  { %2940 = vmatmul.mubr.bf16.gmra.mrb[4].mxu0 %v391_v22  ;;  %3159 = vmatmul.mubr.bf16.gmra.mrb[4].mxu1 %v391_v22  ;;  %v4173_v20 = vcombine.high %v488_v2, %v492_v11  ;;  %v495_v22 = vld [vmem:[#allocation3 + $0x2d0] sm:$0xff]  ;;  %v4172_v62 = vcombine.low %v488_v2, %v492_v11  ;;  %v4762_v2 = vld [vmem:[#allocation2] sm:$0xff]  ;;  %v552_v11 = vld [vmem:[#allocation3 + $0x498] sm:$0xff] }
  0xf2   :  { %3194 = vmatpush1.bf16.msra.mxu0 %v4106_v23  ;;  %3413 = vmatpush1.bf16.msra.mxu1 %v4108_v48  ;;  %v499_v23 = vld [vmem:[#allocation3 + $0x2f0] sm:$0xff]  ;;  %v496_v48 = vld [vmem:[#allocation3 + $0x2d8] sm:$0xff] }
  0xf3   :  { %3195 = vmatprep.subr.bf16.mxu0 %v4115_v44  ;;  %3414 = vmatprep.subr.bf16.mxu1 %v4117_v49  ;;  %v500_v44 = vld [vmem:[#allocation3 + $0x2f8] sm:$0xff]  ;;  %v4170_v49 = vcombine.low %v487_v7, %v491_v10  ;;  %v4179_v24 = vcombine.high %v495_v22, %v499_v23  ;;  %v551_v7 = vld [vmem:[#allocation3 + $0x490] sm:$0xff] }
  0xf4   :  { %2949 = vmatprep.mubr.bf16.mxu0 %v5148_v51  ;;  %3168 = vmatprep.mubr.bf16.mxu1 %v5148_v51  ;;  %v4130_v51 = vcombine.low %v447_v30, %v451_v31  ;;  %v4181_v3 = vcombine.high %v496_v48, %v500_v44  ;;  %v4180_v30 = vcombine.low %v496_v48, %v500_v44  ;;  %v555_v10 = vld [vmem:[#allocation3 + $0x4b0] sm:$0xff]  ;;  %v4763_v44 = vld [vmem:[#allocation2 + $0x38] sm:$0xff] }
  0xf5   :  { %v563_v48 = vld [vmem:[#allocation3 + $0x4f0] sm:$0xff] }
  0xf6   :  { %3196 = vmatpush1.bf16.msra.mxu0 %v4114_v26  ;;  %3415 = vmatpush1.bf16.msra.mxu1 %v4116_v28  ;;  %v507_v26 = vld [vmem:[#allocation3 + $0x330] sm:$0xff]  ;;  %v504_v28 = vld [vmem:[#allocation3 + $0x318] sm:$0xff] }
  0xf7   :  { %3197 = vmatprep.subr.bf16.mxu0 %v4123_v27  ;;  %3416 = vmatprep.subr.bf16.mxu1 %v4125_v52  ;;  %v508_v27 = vld [vmem:[#allocation3 + $0x338] sm:$0xff]  ;;  %v4178_v52 = vcombine.low %v495_v22, %v499_v23  ;;  %v4187_v31 = vcombine.high %v503_v50, %v507_v26  ;;  %v559_v23 = vld [vmem:[#allocation3 + $0x4d0] sm:$0xff] }
  0xf8   :  { %v4189_v33 = vcombine.high %v504_v28, %v508_v27  ;;  %v4188_v38 = vcombine.low %v504_v28, %v508_v27  ;;  %v567_v28 = vld [vmem:[#allocation3 + $0x510] sm:$0xff] }
  0xf9   :  { %2950 = vmatmul.mubr.bf16.gmra.mrb[8].mxu0 %v5160_v21  ;;  %3169 = vmatmul.mubr.bf16.gmra.mrb[8].mxu1 %v5160_v21  ;;  %v4140_v21 = vcombine.low %v456_v43, %v460_v40  ;;  %v519_v43 = vld [vmem:[#allocation3 + $0x390] sm:$0xff] }
  0xfa   :  { %3198 = vmatpush1.bf16.msra.mxu0 %v4122_v32  ;;  %3417 = vmatpush1.bf16.msra.mxu1 %v4124_v36  ;;  %v515_v32 = vld [vmem:[#allocation3 + $0x370] sm:$0xff]  ;;  %v512_v36 = vld [vmem:[#allocation3 + $0x358] sm:$0xff] }
  0xfb   :  { %3199 = vmatprep.subr.bf16.mxu0 %v4131_v1  ;;  %3418 = vmatprep.subr.bf16.mxu1 %v4133_v37  ;;  %v516_v1 = vld [vmem:[#allocation3 + $0x378] sm:$0xff]  ;;  %v4186_v37 = vcombine.low %v503_v50, %v507_v26  ;;  %v4195_v16 = vcombine.high %v511_v34, %v515_v32  ;;  %v523_v40 = vld [vmem:[#allocation3 + $0x3b0] sm:$0xff]  ;;  %v4243_v50 = vcombine.high %v559_v23, %v563_v48 }
  0xfc   :  { %2959 = vmatprep.mubr.bf16.mxu0 %v404_v39  ;;  %3178 = vmatprep.mubr.bf16.mxu1 %v404_v39  ;;  %v4197_v39 = vcombine.high %v512_v36, %v516_v1  ;;  %v4203_v45 = vcombine.high %v519_v43, %v523_v40  ;;  %v571_v27 = vld [vmem:[#allocation3 + $0x530] sm:$0xff] }
  0xfe   :  { %3200 = vmatpush1.bf16.msra.mxu0 %v4130_v51  ;;  %3419 = vmatpush1.bf16.msra.mxu1 %v4132_v41  ;;  %v520_v51 = vld [vmem:[#allocation3 + $0x398] sm:$0xff] }
  0xff   :  { %3201 = vmatprep.subr.bf16.mxu0 %v4139_v14  ;;  %3420 = vmatprep.subr.bf16.mxu1 %v4141_v8  ;;  %v524_v41 = vld [vmem:[#allocation3 + $0x3b8] sm:$0xff]  ;;  %v4194_v14 = vcombine.low %v511_v34, %v515_v32  ;;  %v4196_v8 = vcombine.low %v512_v36, %v516_v1  ;;  %v4251_v32 = vcombine.high %v567_v28, %v571_v27  ;;  %v575_v1 = vld [vmem:[#allocation3 + $0x550] sm:$0xff] }
 0x100   :  { %v4205_v46 = vcombine.high %v520_v51, %v524_v41 }
 0x101   :  { %2960 = vmatmul.mubr.bf16.gmra.mrb[12].mxu0 %v403_v35  ;;  %3179 = vmatmul.mubr.bf16.gmra.mrb[12].mxu1 %v403_v35  ;;  %v528_v35 = vld [vmem:[#allocation3 + $0x3d8] sm:$0xff] }
 0x102   :  { %3202 = vmatpush1.bf16.msra.mxu0 %v4138_v17  ;;  %3421 = vmatpush1.bf16.msra.mxu1 %v4140_v21  ;;  %v532_v17 = vld [vmem:[#allocation3 + $0x3f8] sm:$0xff]  ;;  %v4202_v21 = vcombine.low %v519_v43, %v523_v40  ;;  %v4250_v43 = vcombine.low %v567_v28, %v571_v27 }
 0x103   :  { %3203 = vmatprep.subr.bf16.mxu0 %v4147_v25  ;;  %3422 = vmatprep.subr.bf16.mxu1 %v4149_v57  ;;  %v4204_v25 = vcombine.low %v520_v51, %v524_v41  ;;  %v4211_v57 = vcombine.high %v527_v53, %v531_v54  ;;  %v4213_v59 = vcombine.high %v528_v35, %v532_v17  ;;  %v624_v28 = vld [vmem:[#allocation3 + $0x6d8] sm:$0xff] }
 0x104   :  { %3221 = vmatprep.mubr.bf16.mxu0 %v4761_v13  ;;  %3440 = vmatprep.mubr.bf16.mxu1 %v4761_v13  ;;  %v547_v13 = vld [vmem:[#allocation3 + $0x470] sm:$0xff]  ;;  %v628_v27 = vld [vmem:[#allocation3 + $0x6f8] sm:$0xff] }
 0x106   :  { %3204 = vmatpush1.bf16.msra.mxu0 %v4146_v56  ;;  %3423 = vmatpush1.bf16.msra.mxu1 %v4148_v42  ;;  %v540_v56 = vld [vmem:[#allocation3 + $0x438] sm:$0xff]  ;;  %v4210_v42 = vcombine.low %v527_v53, %v531_v54  ;;  %v4766_v53 = vld [vmem:[#allocation2 + $0x60] sm:$0xff] }
 0x107   :  { %3205 = vmatprep.subr.bf16.mxu0 %v4155_v60  ;;  %3424 = vmatprep.subr.bf16.mxu1 %v4157_v29  ;;  %v4212_v60 = vcombine.low %v528_v35, %v532_v17  ;;  %v4219_v29 = vcombine.high %v535_v58, %v539_v55  ;;  %v4221_v61 = vcombine.high %v536_v9, %v540_v56 }
 0x10a   :  { %3206 = vmatpush1.bf16.msra.mxu0 %v4154_v0  ;;  %3425 = vmatpush1.bf16.msra.mxu1 %v4156_v18  ;;  %v4218_v0 = vcombine.low %v535_v58, %v539_v55  ;;  %v4220_v18 = vcombine.low %v536_v9, %v540_v56  ;;  %v592_v58 = vld [vmem:[#allocation3 + $0x5d8] sm:$0xff] }
 0x10b   :  { %3207 = vmatprep.subr.bf16.mxu0 %v4163_v6  ;;  %3426 = vmatprep.subr.bf16.mxu1 %v4165_v47  ;;  %v4227_v6 = vcombine.high %v543_v4, %v547_v13  ;;  %v4229_v47 = vcombine.high %v544_v63, %v548_v5  ;;  %v596_v55 = vld [vmem:[#allocation3 + $0x5f8] sm:$0xff] }
 0x10e   :  { %3208 = vmatpush1.bf16.msra.mxu0 %v4162_v12  ;;  %3427 = vmatpush1.bf16.msra.mxu1 %v4164_v15  ;;  %v556_v12 = vld [vmem:[#allocation3 + $0x4b8] sm:$0xff]  ;;  %v4226_v15 = vcombine.low %v543_v4, %v547_v13 }
 0x10f   :  { %3209 = vmatprep.subr.bf16.mxu0 %v4171_v19  ;;  %3428 = vmatprep.subr.bf16.mxu1 %v4173_v20  ;;  %v4228_v19 = vcombine.low %v544_v63, %v548_v5  ;;  %v4235_v20 = vcombine.high %v551_v7, %v555_v10  ;;  %v4237_v22 = vcombine.high %v552_v11, %v556_v12  ;;  %v600_v4 = vld [vmem:[#allocation3 + $0x618] sm:$0xff]  ;;  %v4768_v63 = vld [vmem:[#allocation2 + $0x90] sm:$0xff] }
 0x110   :  { %v604_v13 = vld [vmem:[#allocation3 + $0x638] sm:$0xff] }
 0x112   :  { %3210 = vmatpush1.bf16.msra.mxu0 %v4170_v49  ;;  %3429 = vmatpush1.bf16.msra.mxu1 %v4172_v62  ;;  %v560_v49 = vld [vmem:[#allocation3 + $0x4d8] sm:$0xff] }
 0x113   :  { %3211 = vmatprep.subr.bf16.mxu0 %v4179_v24  ;;  %3430 = vmatprep.subr.bf16.mxu1 %v4181_v3  ;;  %v564_v62 = vld [vmem:[#allocation3 + $0x4f8] sm:$0xff]  ;;  %v4234_v24 = vcombine.low %v551_v7, %v555_v10  ;;  %v4236_v3 = vcombine.low %v552_v11, %v556_v12  ;;  %v611_v7 = vld [vmem:[#allocation3 + $0x670] sm:$0xff] }
 0x114   :  { %v4245_v26 = vcombine.high %v560_v49, %v564_v62  ;;  %v4244_v34 = vcombine.low %v560_v49, %v564_v62  ;;  %v4769_v10 = vld [vmem:[#allocation2 + $0x18] sm:$0xff] }
 0x115   :  { %v612_v11 = vld [vmem:[#allocation3 + $0x678] sm:$0xff] }
 0x116   :  { %3212 = vmatpush1.bf16.msra.mxu0 %v4178_v52  ;;  %3431 = vmatpush1.bf16.msra.mxu1 %v4180_v30  ;;  %v568_v52 = vld [vmem:[#allocation3 + $0x518] sm:$0xff] }
 0x117   :  { %3213 = vmatprep.subr.bf16.mxu0 %v4187_v31  ;;  %3432 = vmatprep.subr.bf16.mxu1 %v4189_v33  ;;  %v572_v30 = vld [vmem:[#allocation3 + $0x538] sm:$0xff]  ;;  %v4764_v31 = vld [vmem:[#allocation2 + $0x30] sm:$0xff]  ;;  %v4242_v33 = vcombine.low %v559_v23, %v563_v48 }
 0x118   :  { %v4253_v36 = vcombine.high %v568_v52, %v572_v30  ;;  %v4252_v40 = vcombine.low %v568_v52, %v572_v30  ;;  %v619_v23 = vld [vmem:[#allocation3 + $0x6b0] sm:$0xff]  ;;  %v616_v48 = vld [vmem:[#allocation3 + $0x698] sm:$0xff] }
 0x11a   :  { %3214 = vmatpush1.bf16.msra.mxu0 %v4186_v37  ;;  %3433 = vmatpush1.bf16.msra.mxu1 %v4188_v38  ;;  %v579_v37 = vld [vmem:[#allocation3 + $0x570] sm:$0xff]  ;;  %v4765_v38 = vld [vmem:[#allocation2 + $0x68] sm:$0xff] }
 0x11b   :  { %3215 = vmatprep.subr.bf16.mxu0 %v4195_v16  ;;  %3434 = vmatprep.subr.bf16.mxu1 %v4197_v39  ;;  %v576_v16 = vld [vmem:[#allocation3 + $0x558] sm:$0xff]  ;;  %v4259_v51 = vcombine.high %v575_v1, %v579_v37  ;;  %v4258_v54 = vcombine.low %v575_v1, %v579_v37 }
 0x11c   :  { %v580_v39 = vld [vmem:[#allocation3 + $0x578] sm:$0xff] }
 0x11d   :  { %v4261_v41 = vcombine.high %v576_v16, %v580_v39  ;;  %v4260_v35 = vcombine.low %v576_v16, %v580_v39  ;;  %v636_v1 = vld [vmem:[#allocation3 + $0x738] sm:$0xff] }
 0x11e   :  { %3216 = vmatpush1.bf16.msra.mxu0 %v4194_v14  ;;  %3435 = vmatpush1.bf16.msra.mxu1 %v4196_v8  ;;  %v583_v14 = vld [vmem:[#allocation3 + $0x590] sm:$0xff] }
 0x11f   :  { %3217 = vmatprep.subr.bf16.mxu0 %v4203_v45  ;;  %3436 = vmatprep.subr.bf16.mxu1 %v4205_v46  ;;  %v587_v8 = vld [vmem:[#allocation3 + $0x5b0] sm:$0xff]  ;;  %v584_v45 = vld [vmem:[#allocation3 + $0x598] sm:$0xff] }
 0x120   :  { %v588_v46 = vld [vmem:[#allocation3 + $0x5b8] sm:$0xff]  ;;  %v4267_v17 = vcombine.high %v583_v14, %v587_v8  ;;  %v4266_v9 = vcombine.low %v583_v14, %v587_v8 }
 0x121   :  { %v4268_v56 = vcombine.low %v584_v45, %v588_v46 }
 0x122   :  { %3218 = vmatpush1.bf16.msra.mxu0 %v4202_v21  ;;  %3437 = vmatpush1.bf16.msra.mxu1 %v4204_v25  ;;  %v4269_v21 = vcombine.high %v584_v45, %v588_v46  ;;  %v591_v25 = vld [vmem:[#allocation3 + $0x5d0] sm:$0xff] }
 0x123   :  { %3219 = vmatprep.subr.bf16.mxu0 %v4211_v57  ;;  %3438 = vmatprep.subr.bf16.mxu1 %v4213_v59  ;;  %v595_v57 = vld [vmem:[#allocation3 + $0x5f0] sm:$0xff]  ;;  %v4767_v59 = vld [vmem:[#allocation2 + $0x98] sm:$0xff] }
 0x124   :  { %v4274_v5 = vcombine.low %v591_v25, %v595_v57 }
 0x126   :  { %3220 = vmatpush1.bf16.msra.mxu0 %v4210_v42  ;;  %3439 = vmatpush1.bf16.msra.mxu1 %v4212_v60  ;;  %v4275_v42 = vcombine.high %v591_v25, %v595_v57  ;;  %v4277_v60 = vcombine.high %v592_v58, %v596_v55 }
 0x127   :  { %3262 = vmatprep.subr.bf16.mxu0 %v4219_v29  ;;  %3481 = vmatprep.subr.bf16.mxu1 %v4221_v61  ;;  %v599_v29 = vld [vmem:[#allocation3 + $0x610] sm:$0xff] }
 0x128   :  { %v603_v61 = vld [vmem:[#allocation3 + $0x630] sm:$0xff] }
 0x129   :  { %3222 = vmatmul.mubr.bf16.vlgmr.msra.gmra.mrb[16].mxu0 %v4762_v2  ;;  %3441 = vmatmul.mubr.bf16.vlgmr.msra.gmra.mrb[16].mxu1 %v4762_v2  ;;  %v608_v2 = vld [vmem:[#allocation3 + $0x658] sm:$0xff]  ;;  %v4282_v12 = vcombine.low %v599_v29, %v603_v61 }
 0x12a   :  { %3263 = vmatpush1.bf16.msra.mxu0 %v4218_v0  ;;  %3482 = vmatpush1.bf16.msra.mxu1 %v4220_v18  ;;  %v4276_v0 = vcombine.low %v592_v58, %v596_v55  ;;  %v4283_v18 = vcombine.high %v599_v29, %v603_v61  ;;  %v4292_v62 = vcombine.low %v608_v2, %v612_v11  ;;  %v655_v58 = vld [vmem:[#allocation3 + $0x7d0] sm:$0xff] }
 0x12b   :  { %3264 = vmatprep.subr.bf16.mxu0 %v4227_v6  ;;  %3483 = vmatprep.subr.bf16.mxu1 %v4229_v47  ;;  %v4285_v6 = vcombine.high %v600_v4, %v604_v13  ;;  %v607_v47 = vld [vmem:[#allocation3 + $0x650] sm:$0xff] }
 0x12c   :  { %3231 = vmatprep.mubr.bf16.mxu0 %v4763_v44  ;;  %3450 = vmatprep.mubr.bf16.mxu1 %v4763_v44  ;;  %v620_v44 = vld [vmem:[#allocation3 + $0x6b8] sm:$0xff]  ;;  %v4290_v49 = vcombine.low %v607_v47, %v611_v7  ;;  %v659_v55 = vld [vmem:[#allocation3 + $0x7f0] sm:$0xff] }
 0x12d   :  { %v4300_v30 = vcombine.low %v616_v48, %v620_v44  ;;  %v4339_v29 = vcombine.high %v655_v58, %v659_v55 }
 0x12e   :  { %3265 = vmatpush1.bf16.msra.mxu0 %v4226_v15  ;;  %3484 = vmatpush1.bf16.msra.mxu1 %v4228_v19  ;;  %v4284_v15 = vcombine.low %v600_v4, %v604_v13  ;;  %v4291_v19 = vcombine.high %v607_v47, %v611_v7  ;;  %v663_v4 = vld [vmem:[#allocation3 + $0x810] sm:$0xff] }
 0x12f   :  { %3266 = vmatprep.subr.bf16.mxu0 %v4235_v20  ;;  %3485 = vmatprep.subr.bf16.mxu1 %v4237_v22  ;;  %v4293_v20 = vcombine.high %v608_v2, %v612_v11  ;;  %v615_v22 = vld [vmem:[#allocation3 + $0x690] sm:$0xff]  ;;  %v672_v2 = vld [vmem:[#allocation3 + $0x858] sm:$0xff] }
 0x130   :  { %v4298_v52 = vcombine.low %v615_v22, %v619_v23  ;;  %v667_v13 = vld [vmem:[#allocation3 + $0x830] sm:$0xff]  ;;  %v676_v11 = vld [vmem:[#allocation3 + $0x878] sm:$0xff] }
 0x131   :  { %3232 = vmatmul.mubr.bf16.gmra.mrb[20].mxu0 %v4764_v31  ;;  %3451 = vmatmul.mubr.bf16.gmra.mrb[20].mxu1 %v4764_v31  ;;  %v671_v7 = vld [vmem:[#allocation3 + $0x850] sm:$0xff] }
 0x132   :  { %3267 = vmatpush1.bf16.msra.mxu0 %v4234_v24  ;;  %3486 = vmatpush1.bf16.msra.mxu1 %v4236_v3  ;;  %v4299_v24 = vcombine.high %v615_v22, %v619_v23  ;;  %v4301_v3 = vcombine.high %v616_v48, %v620_v44  ;;  %v679_v22 = vld [vmem:[#allocation3 + $0x890] sm:$0xff]  ;;  %v680_v44 = vld [vmem:[#allocation3 + $0x898] sm:$0xff] }
 0x133   :  { %3268 = vmatprep.subr.bf16.mxu0 %v4243_v50  ;;  %3487 = vmatprep.subr.bf16.mxu1 %v4245_v26  ;;  %v623_v50 = vld [vmem:[#allocation3 + $0x6d0] sm:$0xff] }
 0x134   :  { %3241 = vmatprep.mubr.bf16.mxu0 %v4765_v38  ;;  %3460 = vmatprep.mubr.bf16.mxu1 %v4765_v38  ;;  %v627_v26 = vld [vmem:[#allocation3 + $0x6f0] sm:$0xff]  ;;  %v4308_v38 = vcombine.low %v624_v28, %v628_v27 }
 0x135   :  { %v4307_v31 = vcombine.high %v623_v50, %v627_v26  ;;  %v4306_v37 = vcombine.low %v623_v50, %v627_v26  ;;  %v683_v23 = vld [vmem:[#allocation3 + $0x8b0] sm:$0xff] }
 0x136   :  { %3269 = vmatpush1.bf16.msra.mxu0 %v4242_v33  ;;  %3488 = vmatpush1.bf16.msra.mxu1 %v4244_v34  ;;  %v4309_v33 = vcombine.high %v624_v28, %v628_v27  ;;  %v631_v34 = vld [vmem:[#allocation3 + $0x710] sm:$0xff]  ;;  %v4771_v27 = vld [vmem:[#allocation2 + $0x48] sm:$0xff] }
 0x137   :  { %3270 = vmatprep.subr.bf16.mxu0 %v4251_v32  ;;  %3489 = vmatprep.subr.bf16.mxu1 %v4253_v36  ;;  %v635_v32 = vld [vmem:[#allocation3 + $0x730] sm:$0xff]  ;;  %v632_v36 = vld [vmem:[#allocation3 + $0x718] sm:$0xff] }
 0x138   :  { %v4315_v16 = vcombine.high %v631_v34, %v635_v32  ;;  %v4317_v39 = vcombine.high %v632_v36, %v636_v1  ;;  %v4314_v14 = vcombine.low %v631_v34, %v635_v32  ;;  %v4316_v8 = vcombine.low %v632_v36, %v636_v1  ;;  %v4770_v48 = vld [vmem:[#allocation2 + $0x10] sm:$0xff] }
 0x139   :  { %3242 = vmatmul.mubr.bf16.gmra.mrb[24].mxu0 %v4766_v53  ;;  %3461 = vmatmul.mubr.bf16.gmra.mrb[24].mxu1 %v4766_v53  ;;  %v647_v53 = vld [vmem:[#allocation3 + $0x790] sm:$0xff] }
 0x13a   :  { %3271 = vmatpush1.bf16.msra.mxu0 %v4250_v43  ;;  %3490 = vmatpush1.bf16.msra.mxu1 %v4252_v40  ;;  %v639_v43 = vld [vmem:[#allocation3 + $0x750] sm:$0xff] }
 0x13b   :  { %3272 = vmatprep.subr.bf16.mxu0 %v4259_v51  ;;  %3491 = vmatprep.subr.bf16.mxu1 %v4261_v41  ;;  %v643_v40 = vld [vmem:[#allocation3 + $0x770] sm:$0xff]  ;;  %v640_v51 = vld [vmem:[#allocation3 + $0x758] sm:$0xff] }
 0x13c   :  { %3251 = vmatprep.mubr.bf16.mxu0 %v4767_v59  ;;  %3470 = vmatprep.mubr.bf16.mxu1 %v4767_v59  ;;  %v644_v41 = vld [vmem:[#allocation3 + $0x778] sm:$0xff]  ;;  %v4323_v45 = vcombine.high %v639_v43, %v643_v40  ;;  %v687_v26 = vld [vmem:[#allocation3 + $0x8d0] sm:$0xff] }
 0x13d   :  { %v4325_v46 = vcombine.high %v640_v51, %v644_v41  ;;  %v4324_v25 = vcombine.low %v640_v51, %v644_v41  ;;  %v691_v28 = vld [vmem:[#allocation3 + $0x8f0] sm:$0xff] }
 0x13e   :  { %3273 = vmatpush1.bf16.msra.mxu0 %v4258_v54  ;;  %3492 = vmatpush1.bf16.msra.mxu1 %v4260_v35  ;;  %v651_v54 = vld [vmem:[#allocation3 + $0x7b0] sm:$0xff]  ;;  %v648_v35 = vld [vmem:[#allocation3 + $0x798] sm:$0xff]  ;;  %v4371_v34 = vcombine.high %v687_v26, %v691_v28 }
 0x13f   :  { %3274 = vmatprep.subr.bf16.mxu0 %v4267_v17  ;;  %3493 = vmatprep.subr.bf16.mxu1 %v4269_v21  ;;  %v652_v17 = vld [vmem:[#allocation3 + $0x7b8] sm:$0xff]  ;;  %v4322_v21 = vcombine.low %v639_v43, %v643_v40  ;;  %v4331_v57 = vcombine.high %v647_v53, %v651_v54  ;;  %v695_v36 = vld [vmem:[#allocation3 + $0x910] sm:$0xff] }
 0x140   :  { %v4333_v59 = vcombine.high %v648_v35, %v652_v17  ;;  %v699_v1 = vld [vmem:[#allocation3 + $0x930] sm:$0xff] }
 0x141   :  { %3252 = vmatmul.mubr.bf16.gmra.mrb[28].mxu0 %v4768_v63  ;;  %3471 = vmatmul.mubr.bf16.gmra.mrb[28].mxu1 %v4768_v63  ;;  %v664_v63 = vld [vmem:[#allocation3 + $0x818] sm:$0xff]  ;;  %v4379_v40 = vcombine.high %v695_v36, %v699_v1  ;;  %v703_v41 = vld [vmem:[#allocation3 + $0x950] sm:$0xff] }
 0x142   :  { %3275 = vmatpush1.bf16.msra.mxu0 %v4266_v9  ;;  %3494 = vmatpush1.bf16.msra.mxu1 %v4268_v56  ;;  %v656_v9 = vld [vmem:[#allocation3 + $0x7d8] sm:$0xff] }
 0x143   :  { %3276 = vmatprep.subr.bf16.mxu0 %v4275_v42  ;;  %3495 = vmatprep.subr.bf16.mxu1 %v4277_v60  ;;  %v660_v56 = vld [vmem:[#allocation3 + $0x7f8] sm:$0xff]  ;;  %v4330_v42 = vcombine.low %v647_v53, %v651_v54  ;;  %v4332_v60 = vcombine.low %v648_v35, %v652_v17  ;;  %v4378_v53 = vcombine.low %v695_v36, %v699_v1 }
 0x144   :  { %3294 = vmatprep.mubr.bf16.mxu0 %v4769_v10  ;;  %3513 = vmatprep.mubr.bf16.mxu1 %v4769_v10  ;;  %v4341_v61 = vcombine.high %v656_v9, %v660_v56  ;;  %v675_v10 = vld [vmem:[#allocation3 + $0x870] sm:$0xff]  ;;  %v752_v36 = vld [vmem:[#allocation3 + $0xad8] sm:$0xff] }
 0x145   :  { %v756_v1 = vld [vmem:[#allocation3 + $0xaf8] sm:$0xff] }
 0x146   :  { %3277 = vmatpush1.bf16.msra.mxu0 %v4274_v5  ;;  %3496 = vmatpush1.bf16.msra.mxu1 %v4276_v0  ;;  %v668_v5 = vld [vmem:[#allocation3 + $0x838] sm:$0xff]  ;;  %v4338_v0 = vcombine.low %v655_v58, %v659_v55  ;;  %v4774_v58 = vld [vmem:[#allocation2 + $0x70] sm:$0xff] }
 0x147   :  { %3278 = vmatprep.subr.bf16.mxu0 %v4283_v18  ;;  %3497 = vmatprep.subr.bf16.mxu1 %v4285_v6  ;;  %v4340_v18 = vcombine.low %v656_v9, %v660_v56  ;;  %v4347_v6 = vcombine.high %v663_v4, %v667_v13  ;;  %v4349_v47 = vcombine.high %v664_v63, %v668_v5 }
 0x14a   :  { %3279 = vmatpush1.bf16.msra.mxu0 %v4282_v12  ;;  %3498 = vmatpush1.bf16.msra.mxu1 %v4284_v15  ;;  %v4346_v12 = vcombine.low %v663_v4, %v667_v13  ;;  %v4348_v15 = vcombine.low %v664_v63, %v668_v5  ;;  %v720_v4 = vld [vmem:[#allocation3 + $0x9d8] sm:$0xff] }
 0x14b   :  { %3280 = vmatprep.subr.bf16.mxu0 %v4291_v19  ;;  %3499 = vmatprep.subr.bf16.mxu1 %v4293_v20  ;;  %v4355_v19 = vcombine.high %v671_v7, %v675_v10  ;;  %v4357_v20 = vcombine.high %v672_v2, %v676_v11  ;;  %v724_v13 = vld [vmem:[#allocation3 + $0x9f8] sm:$0xff] }
 0x14e   :  { %3281 = vmatpush1.bf16.msra.mxu0 %v4290_v49  ;;  %3500 = vmatpush1.bf16.msra.mxu1 %v4292_v62  ;;  %v684_v49 = vld [vmem:[#allocation3 + $0x8b8] sm:$0xff]  ;;  %v4354_v62 = vcombine.low %v671_v7, %v675_v10 }
 0x14f   :  { %3282 = vmatprep.subr.bf16.mxu0 %v4299_v24  ;;  %3501 = vmatprep.subr.bf16.mxu1 %v4301_v3  ;;  %v4356_v24 = vcombine.low %v672_v2, %v676_v11  ;;  %v4363_v3 = vcombine.high %v679_v22, %v683_v23  ;;  %v4365_v50 = vcombine.high %v680_v44, %v684_v49  ;;  %v728_v7 = vld [vmem:[#allocation3 + $0xa18] sm:$0xff]  ;;  %v4776_v2 = vld [vmem:[#allocation2 + $0xa0] sm:$0xff] }
 0x150   :  { %v732_v10 = vld [vmem:[#allocation3 + $0xa38] sm:$0xff] }
 0x152   :  { %3283 = vmatpush1.bf16.msra.mxu0 %v4298_v52  ;;  %3502 = vmatpush1.bf16.msra.mxu1 %v4300_v30  ;;  %v688_v52 = vld [vmem:[#allocation3 + $0x8d8] sm:$0xff] }
 0x153   :  { %3284 = vmatprep.subr.bf16.mxu0 %v4307_v31  ;;  %3503 = vmatprep.subr.bf16.mxu1 %v4309_v33  ;;  %v692_v30 = vld [vmem:[#allocation3 + $0x8f8] sm:$0xff]  ;;  %v4362_v31 = vcombine.low %v679_v22, %v683_v23  ;;  %v4364_v33 = vcombine.low %v680_v44, %v684_v49  ;;  %v739_v22 = vld [vmem:[#allocation3 + $0xa70] sm:$0xff]  ;;  %v4777_v23 = vld [vmem:[#allocation2 + $0x28] sm:$0xff] }
 0x154   :  { %v4373_v32 = vcombine.high %v688_v52, %v692_v30  ;;  %v4372_v43 = vcombine.low %v688_v52, %v692_v30  ;;  %v740_v44 = vld [vmem:[#allocation3 + $0xa78] sm:$0xff] }
 0x156   :  { %3285 = vmatpush1.bf16.msra.mxu0 %v4306_v37  ;;  %3504 = vmatpush1.bf16.msra.mxu1 %v4308_v38  ;;  %v696_v37 = vld [vmem:[#allocation3 + $0x918] sm:$0xff] }
 0x157   :  { %3286 = vmatprep.subr.bf16.mxu0 %v4315_v16  ;;  %3505 = vmatprep.subr.bf16.mxu1 %v4317_v39  ;;  %v700_v38 = vld [vmem:[#allocation3 + $0x938] sm:$0xff]  ;;  %v4772_v16 = vld [vmem:[#allocation2 + $0x40] sm:$0xff]  ;;  %v4370_v39 = vcombine.low %v687_v26, %v691_v28  ;;  %v747_v26 = vld [vmem:[#allocation3 + $0xab0] sm:$0xff] }
 0x158   :  { %v4381_v51 = vcombine.high %v696_v37, %v700_v38  ;;  %v4380_v54 = vcombine.low %v696_v37, %v700_v38  ;;  %v744_v28 = vld [vmem:[#allocation3 + $0xa98] sm:$0xff] }
 0x15a   :  { %3287 = vmatpush1.bf16.msra.mxu0 %v4314_v14  ;;  %3506 = vmatpush1.bf16.msra.mxu1 %v4316_v8  ;;  %v707_v14 = vld [vmem:[#allocation3 + $0x970] sm:$0xff]  ;;  %v4773_v8 = vld [vmem:[#allocation2 + $0x78] sm:$0xff] }
 0x15b   :  { %3288 = vmatprep.subr.bf16.mxu0 %v4323_v45  ;;  %3507 = vmatprep.subr.bf16.mxu1 %v4325_v46  ;;  %v704_v45 = vld [vmem:[#allocation3 + $0x958] sm:$0xff]  ;;  %v4387_v35 = vcombine.high %v703_v41, %v707_v14  ;;  %v4386_v55 = vcombine.low %v703_v41, %v707_v14 }
 0x15c   :  { %v708_v46 = vld [vmem:[#allocation3 + $0x978] sm:$0xff] }
 0x15d   :  { %v4389_v17 = vcombine.high %v704_v45, %v708_v46  ;;  %v4388_v9 = vcombine.low %v704_v45, %v708_v46  ;;  %v764_v41 = vld [vmem:[#allocation3 + $0xb38] sm:$0xff] }
 0x15e   :  { %3289 = vmatpush1.bf16.msra.mxu0 %v4322_v21  ;;  %3508 = vmatpush1.bf16.msra.mxu1 %v4324_v25  ;;  %v711_v21 = vld [vmem:[#allocation3 + $0x990] sm:$0xff] }
 0x15f   :  { %3290 = vmatprep.subr.bf16.mxu0 %v4331_v57  ;;  %3509 = vmatprep.subr.bf16.mxu1 %v4333_v59  ;;  %v715_v25 = vld [vmem:[#allocation3 + $0x9b0] sm:$0xff]  ;;  %v712_v57 = vld [vmem:[#allocation3 + $0x998] sm:$0xff] }
 0x160   :  { %v716_v59 = vld [vmem:[#allocation3 + $0x9b8] sm:$0xff]  ;;  %v4395_v56 = vcombine.high %v711_v21, %v715_v25  ;;  %v4394_v63 = vcombine.low %v711_v21, %v715_v25 }
 0x161   :  { %v4396_v5 = vcombine.low %v712_v57, %v716_v59 }
 0x162   :  { %3291 = vmatpush1.bf16.msra.mxu0 %v4330_v42  ;;  %3510 = vmatpush1.bf16.msra.mxu1 %v4332_v60  ;;  %v4397_v42 = vcombine.high %v712_v57, %v716_v59  ;;  %v719_v60 = vld [vmem:[#allocation3 + $0x9d0] sm:$0xff] }
 0x163   :  { %3292 = vmatprep.subr.bf16.mxu0 %v4339_v29  ;;  %3511 = vmatprep.subr.bf16.mxu1 %v4341_v61  ;;  %v723_v29 = vld [vmem:[#allocation3 + $0x9f0] sm:$0xff]  ;;  %v4775_v61 = vld [vmem:[#allocation2 + $0xa8] sm:$0xff] }
 0x164   :  { %v4402_v11 = vcombine.low %v719_v60, %v723_v29 }
 0x166   :  { %3293 = vmatpush1.bf16.msra.mxu0 %v4338_v0  ;;  %3512 = vmatpush1.bf16.msra.mxu1 %v4340_v18  ;;  %v4403_v0 = vcombine.high %v719_v60, %v723_v29  ;;  %v4405_v18 = vcombine.high %v720_v4, %v724_v13 }
 0x167   :  { %3335 = vmatprep.subr.bf16.mxu0 %v4347_v6  ;;  %3554 = vmatprep.subr.bf16.mxu1 %v4349_v47  ;;  %v727_v6 = vld [vmem:[#allocation3 + $0xa10] sm:$0xff] }
 0x168   :  { %v731_v47 = vld [vmem:[#allocation3 + $0xa30] sm:$0xff] }
 0x169   :  { %3295 = vmatmul.mubr.bf16.vlgmr.msra.gmra.mrb[16].mxu0 %v4770_v48  ;;  %3514 = vmatmul.mubr.bf16.vlgmr.msra.gmra.mrb[16].mxu1 %v4770_v48  ;;  %v736_v48 = vld [vmem:[#allocation3 + $0xa58] sm:$0xff]  ;;  %v4410_v49 = vcombine.low %v727_v6, %v731_v47 }
 0x16a   :  { %3336 = vmatpush1.bf16.msra.mxu0 %v4346_v12  ;;  %3555 = vmatpush1.bf16.msra.mxu1 %v4348_v15  ;;  %v4404_v12 = vcombine.low %v720_v4, %v724_v13  ;;  %v4411_v15 = vcombine.high %v727_v6, %v731_v47  ;;  %v4420_v30 = vcombine.low %v736_v48, %v740_v44  ;;  %v783_v4 = vld [vmem:[#allocation3 + $0xbd0] sm:$0xff] }
 0x16b   :  { %3337 = vmatprep.subr.bf16.mxu0 %v4355_v19  ;;  %3556 = vmatprep.subr.bf16.mxu1 %v4357_v20  ;;  %v4413_v19 = vcombine.high %v728_v7, %v732_v10  ;;  %v735_v20 = vld [vmem:[#allocation3 + $0xa50] sm:$0xff] }
 0x16c   :  { %3304 = vmatprep.mubr.bf16.mxu0 %v4771_v27  ;;  %3523 = vmatprep.mubr.bf16.mxu1 %v4771_v27  ;;  %v748_v27 = vld [vmem:[#allocation3 + $0xab8] sm:$0xff]  ;;  %v4418_v52 = vcombine.low %v735_v20, %v739_v22  ;;  %v787_v13 = vld [vmem:[#allocation3 + $0xbf0] sm:$0xff] }
 0x16d   :  { %v4428_v38 = vcombine.low %v744_v28, %v748_v27  ;;  %v4467_v6 = vcombine.high %v783_v4, %v787_v13 }
 0x16e   :  { %3338 = vmatpush1.bf16.msra.mxu0 %v4354_v62  ;;  %3557 = vmatpush1.bf16.msra.mxu1 %v4356_v24  ;;  %v4412_v62 = vcombine.low %v728_v7, %v732_v10  ;;  %v4419_v24 = vcombine.high %v735_v20, %v739_v22  ;;  %v4466_v7 = vcombine.low %v783_v4, %v787_v13  ;;  %v4781_v20 = vld [vmem:[#allocation2 + $0x88] sm:$0xff] }
 0x16f   :  { %3339 = vmatprep.subr.bf16.mxu0 %v4363_v3  ;;  %3558 = vmatprep.subr.bf16.mxu1 %v4365_v50  ;;  %v4421_v3 = vcombine.high %v736_v48, %v740_v44  ;;  %v743_v50 = vld [vmem:[#allocation3 + $0xa90] sm:$0xff] }
 0x170   :  { %v4426_v37 = vcombine.low %v743_v50, %v747_v26 }
 0x171   :  { %3305 = vmatmul.mubr.bf16.gmra.mrb[20].mxu0 %v4772_v16  ;;  %3524 = vmatmul.mubr.bf16.gmra.mrb[20].mxu1 %v4772_v16 }
 0x172   :  { %3340 = vmatpush1.bf16.msra.mxu0 %v4362_v31  ;;  %3559 = vmatpush1.bf16.msra.mxu1 %v4364_v33  ;;  %v4427_v31 = vcombine.high %v743_v50, %v747_v26  ;;  %v4429_v33 = vcombine.high %v744_v28, %v748_v27  ;;  %v4783_v26 = vld [vmem:[#allocation2 + $0xb8] sm:$0xff] }
 0x173   :  { %3341 = vmatprep.subr.bf16.mxu0 %v4371_v34  ;;  %3560 = vmatprep.subr.bf16.mxu1 %v4373_v32  ;;  %v751_v34 = vld [vmem:[#allocation3 + $0xad0] sm:$0xff] }
 0x174   :  { %3314 = vmatprep.mubr.bf16.mxu0 %v4773_v8  ;;  %3533 = vmatprep.mubr.bf16.mxu1 %v4773_v8  ;;  %v755_v32 = vld [vmem:[#allocation3 + $0xaf0] sm:$0xff]  ;;  %v4436_v8 = vcombine.low %v752_v36, %v756_v1 }
 0x175   :  { %v4435_v16 = vcombine.high %v751_v34, %v755_v32  ;;  %v4434_v14 = vcombine.low %v751_v34, %v755_v32 }
 0x176   :  { %3342 = vmatpush1.bf16.msra.mxu0 %v4370_v39  ;;  %3561 = vmatpush1.bf16.msra.mxu1 %v4372_v43  ;;  %v4437_v39 = vcombine.high %v752_v36, %v756_v1  ;;  %v759_v43 = vld [vmem:[#allocation3 + $0xb10] sm:$0xff] }
 0x177   :  { %3343 = vmatprep.subr.bf16.mxu0 %v4379_v40  ;;  %3562 = vmatprep.subr.bf16.mxu1 %v4381_v51  ;;  %v763_v40 = vld [vmem:[#allocation3 + $0xb30] sm:$0xff]  ;;  %v760_v51 = vld [vmem:[#allocation3 + $0xb18] sm:$0xff] }
 0x178   :  { %v4443_v45 = vcombine.high %v759_v43, %v763_v40  ;;  %v4445_v46 = vcombine.high %v760_v51, %v764_v41  ;;  %v4442_v21 = vcombine.low %v759_v43, %v763_v40  ;;  %v4444_v25 = vcombine.low %v760_v51, %v764_v41 }
 0x179   :  { %3315 = vmatmul.mubr.bf16.gmra.mrb[24].mxu0 %v4774_v58  ;;  %3534 = vmatmul.mubr.bf16.gmra.mrb[24].mxu1 %v4774_v58  ;;  %v775_v58 = vld [vmem:[#allocation3 + $0xb90] sm:$0xff] }
 0x17a   :  { %3344 = vmatpush1.bf16.msra.mxu0 %v4378_v53  ;;  %3563 = vmatpush1.bf16.msra.mxu1 %v4380_v54  ;;  %v767_v53 = vld [vmem:[#allocation3 + $0xb50] sm:$0xff] }
 0x17b   :  { %3345 = vmatprep.subr.bf16.mxu0 %v4387_v35  ;;  %3564 = vmatprep.subr.bf16.mxu1 %v4389_v17  ;;  %v771_v54 = vld [vmem:[#allocation3 + $0xb70] sm:$0xff]  ;;  %v768_v35 = vld [vmem:[#allocation3 + $0xb58] sm:$0xff] }
 0x17c   :  { %3324 = vmatprep.mubr.bf16.mxu0 %v4775_v61  ;;  %3543 = vmatprep.mubr.bf16.mxu1 %v4775_v61  ;;  %v772_v17 = vld [vmem:[#allocation3 + $0xb78] sm:$0xff]  ;;  %v4451_v57 = vcombine.high %v767_v53, %v771_v54 }
 0x17d   :  { %v4453_v59 = vcombine.high %v768_v35, %v772_v17  ;;  %v4452_v60 = vcombine.low %v768_v35, %v772_v17 }
 0x17e   :  { %3346 = vmatpush1.bf16.msra.mxu0 %v4386_v55  ;;  %3565 = vmatpush1.bf16.msra.mxu1 %v4388_v9  ;;  %v779_v55 = vld [vmem:[#allocation3 + $0xbb0] sm:$0xff]  ;;  %v776_v9 = vld [vmem:[#allocation3 + $0xb98] sm:$0xff] }
 0x17f   :  { %3347 = vmatprep.subr.bf16.mxu0 %v4395_v56  ;;  %3566 = vmatprep.subr.bf16.mxu1 %v4397_v42  ;;  %v780_v56 = vld [vmem:[#allocation3 + $0xbb8] sm:$0xff]  ;;  %v4450_v42 = vcombine.low %v767_v53, %v771_v54  ;;  %v4459_v29 = vcombine.high %v775_v58, %v779_v55 }
 0x180   :  { %v4461_v61 = vcombine.high %v776_v9, %v780_v56 }
 0x181   :  { %3325 = vmatmul.mubr.bf16.gmra.mrb[28].mxu0 %v4776_v2  ;;  %3544 = vmatmul.mubr.bf16.gmra.mrb[28].mxu1 %v4776_v2  ;;  %v4778_v2 = vld [vmem:[#allocation2 + $0x20] sm:$0xff] }
 0x182   :  { %3348 = vmatpush1.bf16.msra.mxu0 %v4394_v63  ;;  %3567 = vmatpush1.bf16.msra.mxu1 %v4396_v5  ;;  %v784_v63 = vld [vmem:[#allocation3 + $0xbd8] sm:$0xff] }
 0x183   :  { %3349 = vmatprep.subr.bf16.mxu0 %v4403_v0  ;;  %3568 = vmatprep.subr.bf16.mxu1 %v4405_v18  ;;  %v788_v5 = vld [vmem:[#allocation3 + $0xbf8] sm:$0xff]  ;;  %v4458_v0 = vcombine.low %v775_v58, %v779_v55  ;;  %v4460_v18 = vcombine.low %v776_v9, %v780_v56 }
 0x184   :  { %3367 = vmatprep.mubr.bf16.mxu0 %v4777_v23  ;;  %3586 = vmatprep.mubr.bf16.mxu1 %v4777_v23  ;;  %v4469_v47 = vcombine.high %v784_v63, %v788_v5  ;;  %v4468_v10 = vcombine.low %v784_v63, %v788_v5  ;;  %v5204_v23 = vld [vmem:[#allocation5] sm:$0xff] }
 0x186   :  { %3350 = vmatpush1.bf16.msra.mxu0 %v4402_v11  ;;  %3569 = vmatpush1.bf16.msra.mxu1 %v4404_v12  ;;  %v4779_v11 = vld [vmem:[#allocation2 + $0x58] sm:$0xff]  ;;  %v791_v12 = vlaneseq }
 0x187   :  { %3351 = vmatprep.subr.bf16.mxu0 %v4411_v15  ;;  %3570 = vmatprep.subr.bf16.mxu1 %v4413_v19  ;;  %v4780_v15 = vld [vmem:[#allocation2 + $0x50] sm:$0xff] }
 0x188   :  { %v5201_v19 = vshrl.u32 %v791_v12, 7 }
 0x18a   :  { %3352 = vmatpush1.bf16.msra.mxu0 %v4410_v49  ;;  %3571 = vmatpush1.bf16.msra.mxu1 %v4412_v62  ;;  %v793_v22 = vsub.s32 0, %v5201_v19  ;;  %v801_v48 = vsub.s32 2, %v5201_v19  ;;  %v797_v44 = vsub.s32 1, %v5201_v19  ;;  %v805_v49 = vsub.s32 3, %v5201_v19  ;;  %v4782_v62 = vld [vmem:[#allocation2 + $0x80] sm:$0xff] }
 0x18b   :  { %3353 = vmatprep.subr.bf16.mxu0 %v4419_v24  ;;  %3572 = vmatprep.subr.bf16.mxu1 %v4421_v3 }
 0x18c   :  { %v5210_v24 = vrot.slane %v5204_v23, %v793_v22  ;;  %v5213_v3 = vrot.slane %v5204_v23, %v801_v48  ;;  %v5216_v50 = vrot.slane %v5204_v23, %v797_v44  ;;  %v5219_v28 = vrot.slane %v5204_v23, %v805_v49 }
 0x18e   :  { %3354 = vmatpush1.bf16.msra.mxu0 %v4418_v52  ;;  %3573 = vmatpush1.bf16.msra.mxu1 %v4420_v30 }
 0x18f   :  { %3355 = vmatprep.subr.bf16.mxu0 %v4427_v31  ;;  %3574 = vmatprep.subr.bf16.mxu1 %v4429_v33 }
 0x192   :  { %3356 = vmatpush1.bf16.msra.mxu0 %v4426_v37  ;;  %3575 = vmatpush1.bf16.msra.mxu1 %v4428_v38 }
 0x193   :  { %3357 = vmatprep.subr.bf16.mxu0 %v4435_v16  ;;  %3576 = vmatprep.subr.bf16.mxu1 %v4437_v39 }
 0x196   :  { %3358 = vmatpush1.bf16.msra.mxu0 %v4434_v14  ;;  %3577 = vmatpush1.bf16.msra.mxu1 %v4436_v8  ;;  %v4784_v8 = vld [vmem:[#allocation2 + $0xb0] sm:$0xff] }
 0x197   :  { %3359 = vmatprep.subr.bf16.mxu0 %v4443_v45  ;;  %3578 = vmatprep.subr.bf16.mxu1 %v4445_v46 }
 0x19a   :  { %3360 = vmatpush1.bf16.msra.mxu0 %v4442_v21  ;;  %3579 = vmatpush1.bf16.msra.mxu1 %v4444_v25 }
 0x19b   :  { %3361 = vmatprep.subr.bf16.mxu0 %v4451_v57  ;;  %3580 = vmatprep.subr.bf16.mxu1 %v4453_v59 }
 0x19e   :  { %3362 = vmatpush1.bf16.msra.mxu0 %v4450_v42  ;;  %3581 = vmatpush1.bf16.msra.mxu1 %v4452_v60 }
 0x19f   :  { %3363 = vmatprep.subr.bf16.mxu0 %v4459_v29  ;;  %3582 = vmatprep.subr.bf16.mxu1 %v4461_v61 }
 0x1a2   :  { %3364 = vmatpush1.bf16.msra.mxu0 %v4458_v0  ;;  %3583 = vmatpush1.bf16.msra.mxu1 %v4460_v18 }
 0x1a3   :  { %3365 = vmatprep.subr.bf16.mxu0 %v4467_v6  ;;  %3584 = vmatprep.subr.bf16.mxu1 %v4469_v47 }
 0x1a6   :  { %3366 = vmatpush1.bf16.msra.mxu0 %v4466_v7  ;;  %3585 = vmatpush1.bf16.msra.mxu1 %v4468_v10 }
 0x1a9   :  { %3368 = vmatmul.mubr.bf16.vlgmr.msra.gmra.mrb[16].mxu0 %v4778_v2  ;;  %3587 = vmatmul.mubr.bf16.vlgmr.msra.gmra.mrb[16].mxu1 %v4778_v2 }
 0x1aa   :  { %3377 = vmatprep.mubr.bf16.mxu0 %v4779_v11  ;;  %3596 = vmatprep.mubr.bf16.mxu1 %v4779_v11 }
 0x1b1   :  { %3378 = vmatmul.mubr.bf16.gmra.mrb[20].mxu0 %v4780_v15  ;;  %3597 = vmatmul.mubr.bf16.gmra.mrb[20].mxu1 %v4780_v15 }
 0x1b2   :  { %3387 = vmatprep.mubr.bf16.mxu0 %v4781_v20  ;;  %3606 = vmatprep.mubr.bf16.mxu1 %v4781_v20 }
 0x1b9   :  { %3388 = vmatmul.mubr.bf16.gmra.mrb[24].mxu0 %v4782_v62  ;;  %3607 = vmatmul.mubr.bf16.gmra.mrb[24].mxu1 %v4782_v62 }
 0x1ba   :  { %3397 = vmatprep.mubr.bf16.mxu0 %v4783_v26  ;;  %3616 = vmatprep.mubr.bf16.mxu1 %v4783_v26 }
 0x1bc   :  { %v2931_v27 = vpop.f32.mrb[0].mxu0  ;;  %v3150_v30 = vpop.f32.mrb[0].mxu1 }
 0x1bd   :  { %v4550_v52 = vadd.f32 %v2931_v27, %v5210_v24  ;;  %v2933_v31 = vpop.f32.mrb[1].mxu0  ;;  %v4566_v33 = vadd.f32 %v3150_v30, %v5213_v3  ;;  %v3152_v32 = vpop.f32.mrb[1].mxu1 }
 0x1be   :  { %v4551_v34 = vadd.f32 %v2933_v31, %v5216_v50  ;;  %v2935_v36 = vpop.f32.mrb[2].mxu0  ;;  %v4567_v37 = vadd.f32 %v3152_v32, %v5219_v28  ;;  %v3154_v16 = vpop.f32.mrb[2].mxu1 }
 0x1bf   :  { %vm3627_vm11 = vcmp.ge.f32.partialorder %v4550_v52, 0.0  ;;  %v3691_v1 = vmul.f32 0.01, %v4550_v52  ;;  %v4552_v38 = vadd.f32 %v2935_v36, %v5210_v24  ;;  %v2937_v39 = vpop.f32.mrb[3].mxu0  ;;  %vm3629_vm12 = vcmp.ge.f32.partialorder %v4566_v33, 0.0  ;;  %v3156_v14 = vpop.f32.mrb[3].mxu1 }
 0x1c0   :  { %v3693_v43 = vmul.f32 0.01, %v4566_v33  ;;  %vm3628_vm13 = vcmp.ge.f32.partialorder %v4551_v34, 0.0  ;;  %v3692_v40 = vmul.f32 0.01, %v4551_v34  ;;  %vm3630_vm14 = vcmp.ge.f32.partialorder %v4567_v37, 0.0 }
 0x1c1   :  { %v3755_v51 = vsel %vm3627_vm11, %v4550_v52, %v3691_v1  ;;  %v3694_v41 = vmul.f32 0.01, %v4567_v37  ;;  %vm3635_vm15 = vcmp.ge.f32.partialorder %v4552_v38, 0.0  ;;  %3398 = vmatmul.mubr.bf16.gmra.mrb[28].mxu0 %v4784_v8  ;;  %v3699_v53 = vmul.f32 0.01, %v4552_v38  ;;  %3617 = vmatmul.mubr.bf16.gmra.mrb[28].mxu1 %v4784_v8 }
 0x1c2   :  { %v3757_v45 = vsel %vm3629_vm12, %v4566_v33, %v3693_v43  ;;  %v3756_v46 = vsel %vm3628_vm13, %v4551_v34, %v3692_v40  ;;  %v4568_v54 = vadd.f32 %v3154_v16, %v5213_v3  ;;  %v4553_v21 = vadd.f32 %v2937_v39, %v5216_v50 }
 0x1c3   :  { %v4518_v35 = vpack.c.bf16 %v3756_v46, %v3755_v51  ;;  %v3758_v17 = vsel %vm3630_vm14, %v4567_v37, %v3694_v41  ;;  %v4569_v25 = vadd.f32 %v3156_v14, %v5219_v28  ;;  %v3763_v59 = vsel %vm3635_vm15, %v4552_v38, %v3699_v53 }
 0x1c4   :  { %v4519_v57 = vpack.c.bf16 %v3758_v17, %v3757_v45  ;;  %vm3637_vm0 = vcmp.ge.f32.partialorder %v4568_v54, 0.0  ;;  %v3701_v58 = vmul.f32 0.01, %v4568_v54  ;;  %v2941_v55 = vpop.f32.mrb[4].mxu0  ;;  %vm3636_vm1 = vcmp.ge.f32.partialorder %v4553_v21, 0.0  ;;  %v3160_v29 = vpop.f32.mrb[4].mxu1 }
 0x1c5   :  { %3931 = vst [vmem:[%s5400_s3] sm:$0xff] %v4518_v35  ;;  %v3700_v9 = vmul.f32 0.01, %v4553_v21  ;;  %vm3638_vm2 = vcmp.ge.f32.partialorder %v4569_v25, 0.0  ;;  %v3702_v56 = vmul.f32 0.01, %v4569_v25  ;;  %v4554_v60 = vadd.f32 %v2941_v55, %v5210_v24  ;;  %v2943_v61 = vpop.f32.mrb[5].mxu0 }
 0x1c6   :  { %3932 = vst [vmem:[%s5400_s3 + $0x8] sm:$0xff] %v4519_v57  ;;  %v3765_v42 = vsel %vm3637_vm0, %v4568_v54, %v3701_v58  ;;  %v4570_v63 = vadd.f32 %v3160_v29, %v5213_v3  ;;  %v4555_v5 = vadd.f32 %v2943_v61, %v5216_v50  ;;  %v3162_v0 = vpop.f32.mrb[5].mxu1  ;;  %v2945_v18 = vpop.f32.mrb[6].mxu0 }
 0x1c7   :  { %v3764_v4 = vsel %vm3636_vm1, %v4553_v21, %v3700_v9  ;;  %v3766_v13 = vsel %vm3638_vm2, %v4569_v25, %v3702_v56  ;;  %vm3643_vm3 = vcmp.ge.f32.partialorder %v4554_v60, 0.0  ;;  %v3707_v7 = vmul.f32 0.01, %v4554_v60  ;;  %v3164_v10 = vpop.f32.mrb[6].mxu1  ;;  %v2947_v2 = vpop.f32.mrb[7].mxu0 }
 0x1c8   :  { %v4522_v6 = vpack.c.bf16 %v3764_v4, %v3763_v59  ;;  %v4523_v47 = vpack.c.bf16 %v3766_v13, %v3765_v42  ;;  %vm3645_vm4 = vcmp.ge.f32.partialorder %v4570_v63, 0.0  ;;  %v3709_v11 = vmul.f32 0.01, %v4570_v63  ;;  %v3166_v44 = vpop.f32.mrb[7].mxu1 }
 0x1c9   :  { %vm3644_vm5 = vcmp.ge.f32.partialorder %v4555_v5, 0.0  ;;  %v3708_v12 = vmul.f32 0.01, %v4555_v5  ;;  %v3771_v15 = vsel %vm3643_vm3, %v4554_v60, %v3707_v7  ;;  %v4571_v20 = vadd.f32 %v3162_v0, %v5219_v28 }
 0x1ca   :  { %3935 = vst [vmem:[%s5400_s3 + $0x20] sm:$0xff] %v4522_v6  ;;  %3936 = vst [vmem:[%s5400_s3 + $0x28] sm:$0xff] %v4523_v47  ;;  %v4556_v22 = vadd.f32 %v2945_v18, %v5210_v24  ;;  %v4572_v48 = vadd.f32 %v3164_v10, %v5213_v3  ;;  %v3773_v49 = vsel %vm3645_vm4, %v4570_v63, %v3709_v11 }
 0x1cb   :  { %v3772_v62 = vsel %vm3644_vm5, %v4555_v5, %v3708_v12  ;;  %v4557_v26 = vadd.f32 %v2947_v2, %v5216_v50  ;;  %v4573_v27 = vadd.f32 %v3166_v44, %v5219_v28  ;;  %vm3646_vm6 = vcmp.ge.f32.partialorder %v4571_v20, 0.0 }
 0x1cc   :  { %v4526_v52 = vpack.c.bf16 %v3772_v62, %v3771_v15  ;;  %v3710_v30 = vmul.f32 0.01, %v4571_v20  ;;  %vm3651_vm7 = vcmp.ge.f32.partialorder %v4556_v22, 0.0  ;;  %v2951_v31 = vpop.f32.mrb[8].mxu0  ;;  %v3715_v33 = vmul.f32 0.01, %v4556_v22 }
 0x1cd   :  { %vm3653_vm8 = vcmp.ge.f32.partialorder %v4572_v48, 0.0  ;;  %v3717_v34 = vmul.f32 0.01, %v4572_v48  ;;  %vm3652_vm9 = vcmp.ge.f32.partialorder %v4557_v26, 0.0  ;;  %v3716_v36 = vmul.f32 0.01, %v4557_v26 }
 0x1ce   :  { %3939 = vst [vmem:[%s5400_s3 + $0x40] sm:$0xff] %v4526_v52  ;;  %v3774_v32 = vsel %vm3646_vm6, %v4571_v20, %v3710_v30  ;;  %vm3654_vm10 = vcmp.ge.f32.partialorder %v4573_v27, 0.0  ;;  %v3718_v1 = vmul.f32 0.01, %v4573_v27  ;;  %v3170_v37 = vpop.f32.mrb[8].mxu1  ;;  %v3779_v16 = vsel %vm3651_vm7, %v4556_v22, %v3715_v33  ;;  %v2953_v40 = vpop.f32.mrb[9].mxu0 }
 0x1cf   :  { %v4527_v38 = vpack.c.bf16 %v3774_v32, %v3773_v49  ;;  %v3781_v39 = vsel %vm3653_vm8, %v4572_v48, %v3717_v34  ;;  %v4558_v43 = vadd.f32 %v2951_v31, %v5210_v24  ;;  %v3172_v51 = vpop.f32.mrb[9].mxu1  ;;  %v3780_v41 = vsel %vm3652_vm9, %v4557_v26, %v3716_v36  ;;  %v2955_v46 = vpop.f32.mrb[10].mxu0 }
 0x1d0   :  { %v3782_v14 = vsel %vm3654_vm10, %v4573_v27, %v3718_v1  ;;  %v4574_v8 = vadd.f32 %v3170_v37, %v5213_v3  ;;  %v4559_v45 = vadd.f32 %v2953_v40, %v5216_v50  ;;  %v3174_v53 = vpop.f32.mrb[10].mxu1  ;;  %v4530_v54 = vpack.c.bf16 %v3780_v41, %v3779_v16  ;;  %v2957_v21 = vpop.f32.mrb[11].mxu0 }
 0x1d1   :  { %3940 = vst [vmem:[%s5400_s3 + $0x48] sm:$0xff] %v4527_v38  ;;  %v4531_v35 = vpack.c.bf16 %v3782_v14, %v3781_v39  ;;  %vm3659_vm11 = vcmp.ge.f32.partialorder %v4558_v43, 0.0  ;;  %v3723_v17 = vmul.f32 0.01, %v4558_v43  ;;  %v3176_v25 = vpop.f32.mrb[11].mxu1  ;;  %v4575_v55 = vadd.f32 %v3172_v51, %v5219_v28 }
 0x1d2   :  { %vm3661_vm12 = vcmp.ge.f32.partialorder %v4574_v8, 0.0  ;;  %v3725_v57 = vmul.f32 0.01, %v4574_v8  ;;  %vm3660_vm13 = vcmp.ge.f32.partialorder %v4559_v45, 0.0  ;;  %v3724_v59 = vmul.f32 0.01, %v4559_v45 }
 0x1d3   :  { %3943 = vst [vmem:[%s5400_s3 + $0x60] sm:$0xff] %v4530_v54  ;;  %3944 = vst [vmem:[%s5400_s3 + $0x68] sm:$0xff] %v4531_v35  ;;  %v3787_v58 = vsel %vm3659_vm11, %v4558_v43, %v3723_v17  ;;  %v4560_v9 = vadd.f32 %v2955_v46, %v5210_v24  ;;  %v4576_v56 = vadd.f32 %v3174_v53, %v5213_v3  ;;  %vm3662_vm14 = vcmp.ge.f32.partialorder %v4575_v55, 0.0 }
 0x1d4   :  { %v3789_v42 = vsel %vm3661_vm12, %v4574_v8, %v3725_v57  ;;  %v3788_v60 = vsel %vm3660_vm13, %v4559_v45, %v3724_v59  ;;  %v4561_v29 = vadd.f32 %v2957_v21, %v5216_v50  ;;  %v4577_v61 = vadd.f32 %v3176_v25, %v5219_v28  ;;  %v2961_v4 = vpop.f32.mrb[12].mxu0  ;;  %v3180_v5 = vpop.f32.mrb[12].mxu1 }
 0x1d5   :  { %v4534_v13 = vpack.c.bf16 %v3788_v60, %v3787_v58  ;;  %v3726_v63 = vmul.f32 0.01, %v4575_v55  ;;  %vm3667_vm15 = vcmp.ge.f32.partialorder %v4560_v9, 0.0  ;;  %v2963_v0 = vpop.f32.mrb[13].mxu0  ;;  %v3731_v18 = vmul.f32 0.01, %v4560_v9 }
 0x1d6   :  { %vm3669_vm0 = vcmp.ge.f32.partialorder %v4576_v56, 0.0  ;;  %v3733_v6 = vmul.f32 0.01, %v4576_v56  ;;  %vm3668_vm1 = vcmp.ge.f32.partialorder %v4561_v29, 0.0  ;;  %v3732_v7 = vmul.f32 0.01, %v4561_v29 }
 0x1d7   :  { %4502 = vst [vmem:[%s5400_s3 + $0x80] sm:$0xff] %v4534_v13  ;;  %v3790_v47 = vsel %vm3662_vm14, %v4575_v55, %v3726_v63  ;;  %vm3670_vm2 = vcmp.ge.f32.partialorder %v4577_v61, 0.0  ;;  %v3734_v10 = vmul.f32 0.01, %v4577_v61  ;;  %v3182_v2 = vpop.f32.mrb[13].mxu1  ;;  %v3795_v12 = vsel %vm3667_vm15, %v4560_v9, %v3731_v18  ;;  %v2965_v22 = vpop.f32.mrb[14].mxu0 }
 0x1d8   :  { %v4535_v11 = vpack.c.bf16 %v3790_v47, %v3789_v42  ;;  %v3797_v15 = vsel %vm3669_vm0, %v4576_v56, %v3733_v6  ;;  %v4562_v20 = vadd.f32 %v2961_v4, %v5210_v24  ;;  %v3184_v48 = vpop.f32.mrb[14].mxu1  ;;  %v3796_v44 = vsel %vm3668_vm1, %v4561_v29, %v3732_v7  ;;  %v2967_v27 = vpop.f32.mrb[15].mxu0 }
 0x1d9   :  { %v3798_v49 = vsel %vm3670_vm2, %v4577_v61, %v3734_v10  ;;  %v4578_v62 = vadd.f32 %v3180_v5, %v5213_v3  ;;  %v4563_v26 = vadd.f32 %v2963_v0, %v5216_v50  ;;  %v3186_v52 = vpop.f32.mrb[15].mxu1  ;;  %v4538_v30 = vpack.c.bf16 %v3796_v44, %v3795_v12 }
 0x1da   :  { %4503 = vst [vmem:[%s5400_s3 + $0x88] sm:$0xff] %v4535_v11  ;;  %v4539_v31 = vpack.c.bf16 %v3798_v49, %v3797_v15  ;;  %vm3675_vm3 = vcmp.ge.f32.partialorder %v4562_v20, 0.0  ;;  %v3739_v33 = vmul.f32 0.01, %v4562_v20  ;;  %v4579_v1 = vadd.f32 %v3182_v2, %v5219_v28 }
 0x1db   :  { %vm3677_vm4 = vcmp.ge.f32.partialorder %v4578_v62, 0.0  ;;  %v3741_v34 = vmul.f32 0.01, %v4578_v62  ;;  %vm3676_vm5 = vcmp.ge.f32.partialorder %v4563_v26, 0.0  ;;  %v3740_v32 = vmul.f32 0.01, %v4563_v26 }
 0x1dc   :  { %4506 = vst [vmem:[%s5400_s3 + $0xa0] sm:$0xff] %v4538_v30  ;;  %4507 = vst [vmem:[%s5400_s3 + $0xa8] sm:$0xff] %v4539_v31  ;;  %v3803_v36 = vsel %vm3675_vm3, %v4562_v20, %v3739_v33  ;;  %v4564_v37 = vadd.f32 %v2965_v22, %v5210_v24  ;;  %v4580_v38 = vadd.f32 %v3184_v48, %v5213_v3  ;;  %vm3678_vm6 = vcmp.ge.f32.partialorder %v4579_v1, 0.0 }
 0x1dd   :  { %v3805_v16 = vsel %vm3677_vm4, %v4578_v62, %v3741_v34  ;;  %v3804_v39 = vsel %vm3676_vm5, %v4563_v26, %v3740_v32  ;;  %v4565_v43 = vadd.f32 %v2967_v27, %v5216_v50  ;;  %v4581_v40 = vadd.f32 %v3186_v52, %v5219_v28 }
 0x1de   :  { %v4542_v51 = vpack.c.bf16 %v3804_v39, %v3803_v36  ;;  %v3742_v41 = vmul.f32 0.01, %v4579_v1  ;;  %vm3683_vm7 = vcmp.ge.f32.partialorder %v4564_v37, 0.0  ;;  %v3747_v14 = vmul.f32 0.01, %v4564_v37 }
 0x1df   :  { %vm3685_vm8 = vcmp.ge.f32.partialorder %v4580_v38, 0.0  ;;  %v3749_v8 = vmul.f32 0.01, %v4580_v38  ;;  %vm3684_vm9 = vcmp.ge.f32.partialorder %v4565_v43, 0.0  ;;  %v3748_v3 = vmul.f32 0.01, %v4565_v43 }
 0x1e0   :  { %4510 = vst [vmem:[%s5400_s3 + $0xc0] sm:$0xff] %v4542_v51  ;;  %v3806_v24 = vsel %vm3678_vm6, %v4579_v1, %v3742_v41  ;;  %vm3686_vm10 = vcmp.ge.f32.partialorder %v4581_v40, 0.0  ;;  %v3750_v45 = vmul.f32 0.01, %v4581_v40  ;;  %v3811_v50 = vsel %vm3683_vm7, %v4564_v37, %v3747_v14 }
 0x1e1   :  { %v4543_v46 = vpack.c.bf16 %v3806_v24, %v3805_v16  ;;  %v3813_v53 = vsel %vm3685_vm8, %v4580_v38, %v3749_v8  ;;  %v3812_v28 = vsel %vm3684_vm9, %v4565_v43, %v3748_v3  ;;  %v809_v21 = vsub.s32 4, %v5201_v19 }
 0x1e2   :  { %v3814_v54 = vsel %vm3686_vm10, %v4581_v40, %v3750_v45  ;;  %v4546_v35 = vpack.c.bf16 %v3812_v28, %v3811_v50  ;;  %v817_v25 = vsub.s32 6, %v5201_v19  ;;  %v813_v57 = vsub.s32 5, %v5201_v19 }
 0x1e3   :  { %4511 = vst [vmem:[%s5400_s3 + $0xc8] sm:$0xff] %v4543_v46  ;;  %v4547_v17 = vpack.c.bf16 %v3814_v54, %v3813_v53  ;;  %v821_v59 = vsub.s32 7, %v5201_v19  ;;  %v5306_v58 = vrot.slane %v5204_v23, %v809_v21 }
 0x1e4   :  { %4514 = vst [vmem:[%s5400_s3 + $0xe0] sm:$0xff] %v4546_v35  ;;  %v5309_v55 = vrot.slane %v5204_v23, %v817_v25  ;;  %v5312_v9 = vrot.slane %v5204_v23, %v813_v57 }
 0x1e5   :  { %4515 = vst [vmem:[%s5400_s3 + $0xe8] sm:$0xff] %v4547_v17  ;;  %v5315_v56 = vrot.slane %v5204_v23, %v821_v59 }
 0x27c   :  { %v3369_v42 = vpop.f32.mrb[16].mxu0  ;;  %v3588_v29 = vpop.f32.mrb[16].mxu1 }
 0x27d   :  { %v4582_v60 = vadd.f32 %v3369_v42, %v5306_v58  ;;  %v3371_v61 = vpop.f32.mrb[17].mxu0  ;;  %v4598_v4 = vadd.f32 %v3588_v29, %v5309_v55  ;;  %v3590_v13 = vpop.f32.mrb[17].mxu1 }
 0x27e   :  { %v4583_v19 = vadd.f32 %v3371_v61, %v5312_v9  ;;  %v3373_v63 = vpop.f32.mrb[18].mxu0  ;;  %v4599_v0 = vadd.f32 %v3590_v13, %v5315_v56  ;;  %v3592_v6 = vpop.f32.mrb[18].mxu1 }
 0x27f   :  { %vm3631_vm11 = vcmp.ge.f32.partialorder %v4582_v60, 0.0  ;;  %v3695_v5 = vmul.f32 0.01, %v4582_v60  ;;  %v4584_v18 = vadd.f32 %v3373_v63, %v5306_v58  ;;  %v3375_v23 = vpop.f32.mrb[19].mxu0  ;;  %vm3633_vm12 = vcmp.ge.f32.partialorder %v4598_v4, 0.0  ;;  %v3594_v11 = vpop.f32.mrb[19].mxu1 }
 0x280   :  { %v3697_v47 = vmul.f32 0.01, %v4598_v4  ;;  %vm3632_vm13 = vcmp.ge.f32.partialorder %v4583_v19, 0.0  ;;  %v3696_v7 = vmul.f32 0.01, %v4583_v19  ;;  %vm3634_vm14 = vcmp.ge.f32.partialorder %v4599_v0, 0.0 }
 0x281   :  { %v3759_v10 = vsel %vm3631_vm11, %v4582_v60, %v3695_v5  ;;  %v3698_v2 = vmul.f32 0.01, %v4599_v0  ;;  %vm3639_vm15 = vcmp.ge.f32.partialorder %v4584_v18, 0.0  ;;  %v3703_v20 = vmul.f32 0.01, %v4584_v18 }
 0x282   :  { %v3761_v12 = vsel %vm3633_vm12, %v4598_v4, %v3697_v47  ;;  %v3760_v15 = vsel %vm3632_vm13, %v4583_v19, %v3696_v7  ;;  %v4600_v22 = vadd.f32 %v3592_v6, %v5309_v55  ;;  %v4585_v49 = vadd.f32 %v3375_v23, %v5312_v9 }
 0x283   :  { %v4520_v48 = vpack.c.bf16 %v3760_v15, %v3759_v10  ;;  %v3762_v44 = vsel %vm3634_vm14, %v4599_v0, %v3698_v2  ;;  %v4601_v62 = vadd.f32 %v3594_v11, %v5315_v56  ;;  %v3767_v27 = vsel %vm3639_vm15, %v4584_v18, %v3703_v20 }
 0x284   :  { %v4521_v26 = vpack.c.bf16 %v3762_v44, %v3761_v12  ;;  %vm3641_vm0 = vcmp.ge.f32.partialorder %v4600_v22, 0.0  ;;  %v3705_v52 = vmul.f32 0.01, %v4600_v22  ;;  %v3379_v30 = vpop.f32.mrb[20].mxu0  ;;  %vm3640_vm1 = vcmp.ge.f32.partialorder %v4585_v49, 0.0  ;;  %v3598_v36 = vpop.f32.mrb[20].mxu1 }
 0x285   :  { %3933 = vst [vmem:[%s5400_s3 + $0x10] sm:$0xff] %v4520_v48  ;;  %v3704_v31 = vmul.f32 0.01, %v4585_v49  ;;  %vm3642_vm2 = vcmp.ge.f32.partialorder %v4601_v62, 0.0  ;;  %v3706_v33 = vmul.f32 0.01, %v4601_v62  ;;  %v4586_v32 = vadd.f32 %v3379_v30, %v5306_v58 }
 0x286   :  { %3934 = vst [vmem:[%s5400_s3 + $0x18] sm:$0xff] %v4521_v26  ;;  %v3769_v34 = vsel %vm3641_vm0, %v4600_v22, %v3705_v52  ;;  %v3381_v1 = vpop.f32.mrb[21].mxu0  ;;  %v4602_v16 = vadd.f32 %v3598_v36, %v5309_v55  ;;  %v3600_v43 = vpop.f32.mrb[21].mxu1 }
 0x287   :  { %v3768_v37 = vsel %vm3640_vm1, %v4585_v49, %v3704_v31  ;;  %v3770_v38 = vsel %vm3642_vm2, %v4601_v62, %v3706_v33  ;;  %v4587_v39 = vadd.f32 %v3381_v1, %v5312_v9  ;;  %v3383_v40 = vpop.f32.mrb[22].mxu0  ;;  %vm3647_vm3 = vcmp.ge.f32.partialorder %v4586_v32, 0.0  ;;  %v3602_v8 = vpop.f32.mrb[22].mxu1 }
 0x288   :  { %v4524_v51 = vpack.c.bf16 %v3768_v37, %v3767_v27  ;;  %v4525_v41 = vpack.c.bf16 %v3770_v38, %v3769_v34  ;;  %v3711_v14 = vmul.f32 0.01, %v4586_v32  ;;  %v3385_v24 = vpop.f32.mrb[23].mxu0  ;;  %vm3649_vm4 = vcmp.ge.f32.partialorder %v4602_v16, 0.0  ;;  %v3604_v54 = vpop.f32.mrb[23].mxu1 }
 0x289   :  { %v3713_v3 = vmul.f32 0.01, %v4602_v16  ;;  %vm3648_vm5 = vcmp.ge.f32.partialorder %v4587_v39, 0.0  ;;  %v3712_v45 = vmul.f32 0.01, %v4587_v39  ;;  %v4603_v50 = vadd.f32 %v3600_v43, %v5315_v56 }
 0x28a   :  { %3937 = vst [vmem:[%s5400_s3 + $0x30] sm:$0xff] %v4524_v51  ;;  %3938 = vst [vmem:[%s5400_s3 + $0x38] sm:$0xff] %v4525_v41  ;;  %v3775_v46 = vsel %vm3647_vm3, %v4586_v32, %v3711_v14  ;;  %v4588_v53 = vadd.f32 %v3383_v40, %v5306_v58  ;;  %v4604_v28 = vadd.f32 %v3602_v8, %v5309_v55 }
 0x28b   :  { %v3777_v35 = vsel %vm3649_vm4, %v4602_v16, %v3713_v3  ;;  %v3776_v17 = vsel %vm3648_vm5, %v4587_v39, %v3712_v45  ;;  %v4589_v21 = vadd.f32 %v3385_v24, %v5312_v9  ;;  %v4605_v25 = vadd.f32 %v3604_v54, %v5315_v56 }
 0x28c   :  { %v4528_v57 = vpack.c.bf16 %v3776_v17, %v3775_v46  ;;  %vm3650_vm6 = vcmp.ge.f32.partialorder %v4603_v50, 0.0  ;;  %v3714_v59 = vmul.f32 0.01, %v4603_v50  ;;  %vm3655_vm7 = vcmp.ge.f32.partialorder %v4588_v53, 0.0  ;;  %v3389_v42 = vpop.f32.mrb[24].mxu0  ;;  %v3608_v13 = vpop.f32.mrb[24].mxu1 }
 0x28d   :  { %v3719_v60 = vmul.f32 0.01, %v4588_v53  ;;  %vm3657_vm8 = vcmp.ge.f32.partialorder %v4604_v28, 0.0  ;;  %v3721_v29 = vmul.f32 0.01, %v4604_v28  ;;  %vm3656_vm9 = vcmp.ge.f32.partialorder %v4589_v21, 0.0 }
 0x28e   :  { %3941 = vst [vmem:[%s5400_s3 + $0x50] sm:$0xff] %v4528_v57  ;;  %v3778_v61 = vsel %vm3650_vm6, %v4603_v50, %v3714_v59  ;;  %v3720_v4 = vmul.f32 0.01, %v4589_v21  ;;  %vm3658_vm10 = vcmp.ge.f32.partialorder %v4605_v25, 0.0  ;;  %v3722_v19 = vmul.f32 0.01, %v4605_v25 }
 0x28f   :  { %v4529_v63 = vpack.c.bf16 %v3778_v61, %v3777_v35  ;;  %v3783_v5 = vsel %vm3655_vm7, %v4588_v53, %v3719_v60  ;;  %v3785_v0 = vsel %vm3657_vm8, %v4604_v28, %v3721_v29  ;;  %v4590_v18 = vadd.f32 %v3389_v42, %v5306_v58  ;;  %v3391_v6 = vpop.f32.mrb[25].mxu0  ;;  %v3610_v23 = vpop.f32.mrb[25].mxu1 }
 0x290   :  { %v3784_v47 = vsel %vm3656_vm9, %v4589_v21, %v3720_v4  ;;  %v3786_v7 = vsel %vm3658_vm10, %v4605_v25, %v3722_v19  ;;  %v4606_v10 = vadd.f32 %v3608_v13, %v5309_v55  ;;  %v4591_v2 = vadd.f32 %v3391_v6, %v5312_v9  ;;  %v3393_v11 = vpop.f32.mrb[26].mxu0  ;;  %v3612_v12 = vpop.f32.mrb[26].mxu1 }
 0x291   :  { %3942 = vst [vmem:[%s5400_s3 + $0x58] sm:$0xff] %v4529_v63  ;;  %v4532_v15 = vpack.c.bf16 %v3784_v47, %v3783_v5  ;;  %v4533_v20 = vpack.c.bf16 %v3786_v7, %v3785_v0  ;;  %vm3663_vm11 = vcmp.ge.f32.partialorder %v4590_v18, 0.0  ;;  %v3727_v22 = vmul.f32 0.01, %v4590_v18  ;;  %v3395_v48 = vpop.f32.mrb[27].mxu0  ;;  %v3614_v44 = vpop.f32.mrb[27].mxu1 }
 0x292   :  { %vm3665_vm12 = vcmp.ge.f32.partialorder %v4606_v10, 0.0  ;;  %v3729_v49 = vmul.f32 0.01, %v4606_v10  ;;  %vm3664_vm13 = vcmp.ge.f32.partialorder %v4591_v2, 0.0  ;;  %v3728_v62 = vmul.f32 0.01, %v4591_v2 }
 0x293   :  { %3945 = vst [vmem:[%s5400_s3 + $0x70] sm:$0xff] %v4532_v15  ;;  %3946 = vst [vmem:[%s5400_s3 + $0x78] sm:$0xff] %v4533_v20  ;;  %v3791_v26 = vsel %vm3663_vm11, %v4590_v18, %v3727_v22  ;;  %v4607_v27 = vadd.f32 %v3610_v23, %v5315_v56  ;;  %v4592_v52 = vadd.f32 %v3393_v11, %v5306_v58 }
 0x294   :  { %v4608_v30 = vadd.f32 %v3612_v12, %v5309_v55  ;;  %v3793_v31 = vsel %vm3665_vm12, %v4606_v10, %v3729_v49  ;;  %v3792_v33 = vsel %vm3664_vm13, %v4591_v2, %v3728_v62  ;;  %v4593_v34 = vadd.f32 %v3395_v48, %v5312_v9  ;;  %v3399_v36 = vpop.f32.mrb[28].mxu0  ;;  %v3618_v38 = vpop.f32.mrb[28].mxu1 }
 0x295   :  { %v4609_v32 = vadd.f32 %v3614_v44, %v5315_v56  ;;  %v4536_v1 = vpack.c.bf16 %v3792_v33, %v3791_v26  ;;  %vm3666_vm14 = vcmp.ge.f32.partialorder %v4607_v27, 0.0  ;;  %v3730_v37 = vmul.f32 0.01, %v4607_v27  ;;  %v3401_v16 = vpop.f32.mrb[29].mxu0  ;;  %v3620_v14 = vpop.f32.mrb[29].mxu1 }
 0x296   :  { %vm3671_vm15 = vcmp.ge.f32.partialorder %v4592_v52, 0.0  ;;  %v3735_v39 = vmul.f32 0.01, %v4592_v52  ;;  %vm3673_vm0 = vcmp.ge.f32.partialorder %v4608_v30, 0.0  ;;  %v3737_v43 = vmul.f32 0.01, %v4608_v30 }
 0x297   :  { %vm3672_vm1 = vcmp.ge.f32.partialorder %v4593_v34, 0.0  ;;  %4504 = vst [vmem:[%s5400_s3 + $0x90] sm:$0xff] %v4536_v1  ;;  %v3794_v40 = vsel %vm3666_vm14, %v4607_v27, %v3730_v37  ;;  %v3736_v51 = vmul.f32 0.01, %v4593_v34  ;;  %vm3674_vm2 = vcmp.ge.f32.partialorder %v4609_v32, 0.0  ;;  %v3403_v46 = vpop.f32.mrb[30].mxu0 }
 0x298   :  { %v3738_v41 = vmul.f32 0.01, %v4609_v32  ;;  %v4537_v8 = vpack.c.bf16 %v3794_v40, %v3793_v31  ;;  %v3799_v24 = vsel %vm3671_vm15, %v4592_v52, %v3735_v39  ;;  %v3801_v3 = vsel %vm3673_vm0, %v4608_v30, %v3737_v43  ;;  %v3622_v50 = vpop.f32.mrb[30].mxu1  ;;  %v3405_v17 = vpop.f32.mrb[31].mxu0 }
 0x299   :  { %v4594_v45 = vadd.f32 %v3399_v36, %v5306_v58  ;;  %v3800_v53 = vsel %vm3672_vm1, %v4593_v34, %v3736_v51  ;;  %v4610_v54 = vadd.f32 %v3618_v38, %v5309_v55  ;;  %v4595_v35 = vadd.f32 %v3401_v16, %v5312_v9  ;;  %v3624_v21 = vpop.f32.mrb[31].mxu1 }
 0x29a   :  { %v3802_v28 = vsel %vm3674_vm2, %v4609_v32, %v3738_v41  ;;  %4505 = vst [vmem:[%s5400_s3 + $0x98] sm:$0xff] %v4537_v8  ;;  %v4540_v25 = vpack.c.bf16 %v3800_v53, %v3799_v24  ;;  %v4611_v61 = vadd.f32 %v3620_v14, %v5315_v56  ;;  %v4596_v4 = vadd.f32 %v3403_v46, %v5306_v58 }
 0x29b   :  { %v4541_v57 = vpack.c.bf16 %v3802_v28, %v3801_v3  ;;  %vm3679_vm3 = vcmp.ge.f32.partialorder %v4594_v45, 0.0  ;;  %v3743_v59 = vmul.f32 0.01, %v4594_v45  ;;  %vm3681_vm4 = vcmp.ge.f32.partialorder %v4610_v54, 0.0 }
 0x29c   :  { %v3745_v42 = vmul.f32 0.01, %v4610_v54  ;;  %vm3680_vm5 = vcmp.ge.f32.partialorder %v4595_v35, 0.0  ;;  %v3744_v60 = vmul.f32 0.01, %v4595_v35  ;;  %4508 = vst [vmem:[%s5400_s3 + $0xb0] sm:$0xff] %v4540_v25  ;;  %v4612_v19 = vadd.f32 %v3622_v50, %v5309_v55 }
 0x29d   :  { %4509 = vst [vmem:[%s5400_s3 + $0xb8] sm:$0xff] %v4541_v57  ;;  %v3807_v29 = vsel %vm3679_vm3, %v4594_v45, %v3743_v59  ;;  %v4597_v5 = vadd.f32 %v3405_v17, %v5312_v9  ;;  %v4613_v0 = vadd.f32 %v3624_v21, %v5315_v56  ;;  %vm3682_vm6 = vcmp.ge.f32.partialorder %v4611_v61, 0.0 }
 0x29e   :  { %v3809_v13 = vsel %vm3681_vm4, %v4610_v54, %v3745_v42  ;;  %v3808_v63 = vsel %vm3680_vm5, %v4595_v35, %v3744_v60  ;;  %v3746_v6 = vmul.f32 0.01, %v4611_v61  ;;  %vm3687_vm7 = vcmp.ge.f32.partialorder %v4596_v4, 0.0 }
 0x29f   :  { %v4544_v18 = vpack.c.bf16 %v3808_v63, %v3807_v29  ;;  %v3751_v23 = vmul.f32 0.01, %v4596_v4  ;;  %vm3689_vm8 = vcmp.ge.f32.partialorder %v4612_v19, 0.0  ;;  %v3753_v47 = vmul.f32 0.01, %v4612_v19 }
 0x2a0   :  { %vm3688_vm9 = vcmp.ge.f32.partialorder %v4597_v5, 0.0  ;;  %v3810_v58 = vsel %vm3682_vm6, %v4611_v61, %v3746_v6  ;;  %v3752_v55 = vmul.f32 0.01, %v4597_v5  ;;  %vm3690_vm10 = vcmp.ge.f32.partialorder %v4613_v0, 0.0 }
 0x2a1   :  { %4512 = vst [vmem:[%s5400_s3 + $0xd0] sm:$0xff] %v4544_v18  ;;  %v3754_v7 = vmul.f32 0.01, %v4613_v0  ;;  %v4545_v10 = vpack.c.bf16 %v3810_v58, %v3809_v13  ;;  %v3815_v9 = vsel %vm3687_vm7, %v4596_v4, %v3751_v23  ;;  %v3817_v2 = vsel %vm3689_vm8, %v4612_v19, %v3753_v47 }
 0x2a2   :  { %v3816_v56 = vsel %vm3688_vm9, %v4597_v5, %v3752_v55 }
 0x2a3   :  { %v3818_v11 = vsel %vm3690_vm10, %v4613_v0, %v3754_v7  ;;  %4513 = vst [vmem:[%s5400_s3 + $0xd8] sm:$0xff] %v4545_v10  ;;  %v4548_v12 = vpack.c.bf16 %v3816_v56, %v3815_v9 }
 0x2a4   :  { %v4549_v15 = vpack.c.bf16 %v3818_v11, %v3817_v2 }
 0x2a5   :  { %4516 = vst [vmem:[%s5400_s3 + $0xf0] sm:$0xff] %v4548_v12 }
 0x2a6   :  { %4517 = vst [vmem:[%s5400_s3 + $0xf8] sm:$0xff] %v4549_v15 }
 0x2a7   :  { %4048 = vsyncpa [#allocation4], 1 }
 0x2a8   :  { %4049 = vsyncpa [#allocation6], 1 }

// kernel: prior_decoder_forward.5
= control target key start
LH: loop header
LB: loop body
LE: loop exit
PB: predicated region body
PF: predicated region fallthrough
CT: control target
= control target key end

     0   :  { %vm15_vm0 = vcmask 1040384   ;;  %vm16_vm1 = vsmask.f32 256  ;;  %v21_v44 = vld [vmem:[#allocation2 + $0x8] sm:$0x1]  ;;  %vm250_vm3 = vcmask 1047552   ;;  %s8954_s1 = inlined_call_operand.vmem [shape: bf16[1536,512], index: 1, kind: input, shape index: {}]   ;;  %s8955_s0 = inlined_call_operand.vmem [shape: bf16[2,64,512], index: 0, kind: input, shape index: {}]   ;;  %s8956_s2 = inlined_call_operand.vmem [shape: f32[1,512], index: 2, kind: input, shape index: {}]   ;;  %s8957_s3 = inlined_call_operand.vmem [shape: f32[2,64,512], index: 3, kind: output, shape index: {}]  }
   0x1   :  { %v6066_v0 = vld [vmem:[%s8954_s1 + $0x4] ss:$16 sps:$4 sm:$0xff]   ;;  %v6068_v1 = vld [vmem:[%s8954_s1 + $0xc] ss:$16 sps:$4 sm:$0xff]   ;;  %v6070_v2 = vld [vmem:[%s8954_s1] ss:$16 sps:$4 sm:$0xff]  }
   0x2   :  { %3697 = vmatprep.subr.bf16.mxu0 %v6066_v0  ;;  %v6071_v3 = vld [vmem:[%s8954_s1 + $0x8] ss:$16 sps:$4 sm:$0xff]   ;;  %4375 = vmatprep.subr.bf16.mxu1 %v6068_v1  ;;  %v6072_v4 = vld [vmem:[%s8954_s1 + $0x24] ss:$16 sps:$4 sm:$0xff]   ;;  %v6074_v5 = vld [vmem:[%s8954_s1 + $0x2c] ss:$16 sps:$4 sm:$0xff]  }
   0x3   :  { %3698 = vmatpush1.bf16.msra.mxu0 %v6070_v2  ;;  %4376 = vmatpush1.bf16.msra.mxu1 %v6071_v3  ;;  %v6076_v6 = vld [vmem:[%s8954_s1 + $0x20] ss:$16 sps:$4 sm:$0xff]   ;;  %v6077_v7 = vld [vmem:[%s8954_s1 + $0x28] ss:$16 sps:$4 sm:$0xff]   ;;  %v6078_v8 = vld [vmem:[%s8954_s1 + $0x44] ss:$16 sps:$4 sm:$0xff]  }
   0x4   :  { %3699 = vmatprep.subr.bf16.mxu0 %v6072_v4  ;;  %4377 = vmatprep.subr.bf16.mxu1 %v6074_v5  ;;  %v6080_v9 = vld [vmem:[%s8954_s1 + $0x4c] ss:$16 sps:$4 sm:$0xff]   ;;  %v6082_v10 = vld [vmem:[%s8954_s1 + $0x40] ss:$16 sps:$4 sm:$0xff]   ;;  %v6083_v11 = vld [vmem:[%s8954_s1 + $0x48] ss:$16 sps:$4 sm:$0xff]  }
   0x5   :  { %v6084_v12 = vld [vmem:[%s8954_s1 + $0x64] ss:$16 sps:$4 sm:$0xff]   ;;  %v6086_v13 = vld [vmem:[%s8954_s1 + $0x6c] ss:$16 sps:$4 sm:$0xff]   ;;  %v6088_v14 = vld [vmem:[%s8954_s1 + $0x60] ss:$16 sps:$4 sm:$0xff]  }
   0x6   :  { %v6089_v15 = vld [vmem:[%s8954_s1 + $0x68] ss:$16 sps:$4 sm:$0xff]   ;;  %v6090_v16 = vld [vmem:[%s8954_s1 + $0x84] ss:$16 sps:$4 sm:$0xff]   ;;  %v6092_v17 = vld [vmem:[%s8954_s1 + $0x8c] ss:$16 sps:$4 sm:$0xff]  }
   0x7   :  { %3700 = vmatpush1.bf16.msra.mxu0 %v6076_v6  ;;  %4378 = vmatpush1.bf16.msra.mxu1 %v6077_v7  ;;  %v6094_v18 = vld [vmem:[%s8954_s1 + $0x80] ss:$16 sps:$4 sm:$0xff]   ;;  %v6095_v19 = vld [vmem:[%s8954_s1 + $0x88] ss:$16 sps:$4 sm:$0xff]   ;;  %v6096_v20 = vld [vmem:[%s8954_s1 + $0xa4] ss:$16 sps:$4 sm:$0xff]  }
   0x8   :  { %3701 = vmatprep.subr.bf16.mxu0 %v6078_v8  ;;  %4379 = vmatprep.subr.bf16.mxu1 %v6080_v9  ;;  %v6098_v21 = vld [vmem:[%s8954_s1 + $0xac] ss:$16 sps:$4 sm:$0xff]   ;;  %v6100_v22 = vld [vmem:[%s8954_s1 + $0xa0] ss:$16 sps:$4 sm:$0xff]   ;;  %v6101_v23 = vld [vmem:[%s8954_s1 + $0xa8] ss:$16 sps:$4 sm:$0xff]  }
   0x9   :  { %v6102_v24 = vld [vmem:[%s8954_s1 + $0xc4] ss:$16 sps:$4 sm:$0xff]   ;;  %v6104_v25 = vld [vmem:[%s8954_s1 + $0xcc] ss:$16 sps:$4 sm:$0xff]   ;;  %v6106_v26 = vld [vmem:[%s8954_s1 + $0xc0] ss:$16 sps:$4 sm:$0xff]  }
   0xa   :  { %v6107_v27 = vld [vmem:[%s8954_s1 + $0xc8] ss:$16 sps:$4 sm:$0xff]   ;;  %v6108_v28 = vld [vmem:[%s8954_s1 + $0xe4] ss:$16 sps:$4 sm:$0xff]   ;;  %v6110_v29 = vld [vmem:[%s8954_s1 + $0xec] ss:$16 sps:$4 sm:$0xff]  }
   0xb   :  { %3702 = vmatpush1.bf16.msra.mxu0 %v6082_v10  ;;  %4380 = vmatpush1.bf16.msra.mxu1 %v6083_v11  ;;  %v6112_v30 = vld [vmem:[%s8954_s1 + $0xe0] ss:$16 sps:$4 sm:$0xff]   ;;  %v6113_v31 = vld [vmem:[%s8954_s1 + $0xe8] ss:$16 sps:$4 sm:$0xff]   ;;  %v6114_v32 = vld [vmem:[%s8954_s1 + $0x104] ss:$16 sps:$4 sm:$0xff]  }
   0xc   :  { %3703 = vmatprep.subr.bf16.mxu0 %v6084_v12  ;;  %4381 = vmatprep.subr.bf16.mxu1 %v6086_v13  ;;  %v6116_v33 = vld [vmem:[%s8954_s1 + $0x10c] ss:$16 sps:$4 sm:$0xff]   ;;  %v6118_v34 = vld [vmem:[%s8954_s1 + $0x100] ss:$16 sps:$4 sm:$0xff]   ;;  %v6119_v35 = vld [vmem:[%s8954_s1 + $0x108] ss:$16 sps:$4 sm:$0xff]  }
   0xd   :  { %v6120_v36 = vld [vmem:[%s8954_s1 + $0x124] ss:$16 sps:$4 sm:$0xff]   ;;  %v6122_v37 = vld [vmem:[%s8954_s1 + $0x12c] ss:$16 sps:$4 sm:$0xff]   ;;  %v6124_v38 = vld [vmem:[%s8954_s1 + $0x120] ss:$16 sps:$4 sm:$0xff]  }
   0xe   :  { %v6125_v39 = vld [vmem:[%s8954_s1 + $0x128] ss:$16 sps:$4 sm:$0xff]   ;;  %v6126_v40 = vld [vmem:[%s8954_s1 + $0x144] ss:$16 sps:$4 sm:$0xff]   ;;  %v6128_v41 = vld [vmem:[%s8954_s1 + $0x14c] ss:$16 sps:$4 sm:$0xff]  }
   0xf   :  { %3704 = vmatpush1.bf16.msra.mxu0 %v6088_v14  ;;  %4382 = vmatpush1.bf16.msra.mxu1 %v6089_v15  ;;  %v6130_v42 = vld [vmem:[%s8954_s1 + $0x140] ss:$16 sps:$4 sm:$0xff]   ;;  %v6131_v43 = vld [vmem:[%s8954_s1 + $0x148] ss:$16 sps:$4 sm:$0xff]   ;;  %v6132_v45 = vld [vmem:[%s8954_s1 + $0x164] ss:$16 sps:$4 sm:$0xff]  }
  0x10   :  { %3705 = vmatprep.subr.bf16.mxu0 %v6090_v16  ;;  %4383 = vmatprep.subr.bf16.mxu1 %v6092_v17  ;;  %v6134_v46 = vld [vmem:[%s8954_s1 + $0x16c] ss:$16 sps:$4 sm:$0xff]   ;;  %v6136_v47 = vld [vmem:[%s8954_s1 + $0x160] ss:$16 sps:$4 sm:$0xff]   ;;  %v6137_v48 = vld [vmem:[%s8954_s1 + $0x168] ss:$16 sps:$4 sm:$0xff]  }
  0x11   :  { %vm6951_vm2 = vmand %vm15_vm0, %vm16_vm1  ;;  %v6138_v50 = vld [vmem:[%s8954_s1 + $0x184] ss:$16 sps:$4 sm:$0xff]   ;;  %v6140_v53 = vld [vmem:[%s8954_s1 + $0x18c] ss:$16 sps:$4 sm:$0xff]   ;;  %vm251_vm4 = vsmask.f32 7938 }
  0x12   :  { %v22_v51 = vsel %vm6951_vm2, 0, %v21_v44  ;;  %v6162_v52 = vld [vmem:[%s8955_s0 + $0x4] ss:$16 sps:$4 sm:$0xff]   ;;  %v18_v54 = vld [vmem:[#allocation2] sm:$0x1]  ;;  %vm6984_vm5 = vmand %vm250_vm3, %vm251_vm4  ;;  %vm635_vm9 = vcmask 1047559  }
  0x13   :  { %3706 = vmatpush1.bf16.msra.mxu0 %v6094_v18  ;;  %4384 = vmatpush1.bf16.msra.mxu1 %v6095_v19  ;;  %23 = vst [vmem:[#allocation2 + $0x8] sm:$0x1] %v22_v51  ;;  %v6164_v55 = vld [vmem:[%s8955_s0] ss:$16 sps:$4 sm:$0xff]   ;;  %v118_v56 = vshrl.u32 %v6162_v52, 16  ;;  %v121_v57 = vshll.u32 %v6162_v52, 16 }
  0x14   :  { %3707 = vmatprep.subr.bf16.mxu0 %v6096_v20  ;;  %4385 = vmatprep.subr.bf16.mxu1 %v6098_v21  ;;  %v19_v58 = vsel %vm6951_vm2, 0, %v18_v54  ;;  %v6142_v59 = vld [vmem:[%s8954_s1 + $0x180] ss:$16 sps:$4 sm:$0xff]   ;;  %v111_v60 = vshrl.u32 %v6164_v55, 16  ;;  %v114_v61 = vshll.u32 %v6164_v55, 16 }
  0x15   :  { %20 = vst [vmem:[#allocation2] sm:$0x1] %v19_v58  ;;  %v6143_v62 = vld [vmem:[%s8954_s1 + $0x188] ss:$16 sps:$4 sm:$0xff]   ;;  %v6144_v63 = vld [vmem:[%s8954_s1 + $0x1a4] ss:$16 sps:$4 sm:$0xff]  }
  0x16   :  { %v120_v0 = vrot.slane %v118_v56, 7  ;;  %v6146_v1 = vld [vmem:[%s8954_s1 + $0x1ac] ss:$16 sps:$4 sm:$0xff]   ;;  %v113_v2 = vrot.slane %v111_v60, 7  ;;  %v6148_v5 = vld [vmem:[%s8954_s1 + $0x1a0] ss:$16 sps:$4 sm:$0xff]  }
  0x17   :  { %3708 = vmatpush1.bf16.msra.mxu0 %v6100_v22  ;;  %4386 = vmatpush1.bf16.msra.mxu1 %v6101_v23  ;;  %v6149_v6 = vld [vmem:[%s8954_s1 + $0x1a8] ss:$16 sps:$4 sm:$0xff]   ;;  %v6150_v8 = vld [vmem:[%s8954_s1 + $0x1c4] ss:$16 sps:$4 sm:$0xff]   ;;  %v6179_v12 = vld [vmem:[%s8955_s0 + $0x20] ss:$16 sps:$4 sm:$0xff]  }
  0x18   :  { %3709 = vmatprep.subr.bf16.mxu0 %v6102_v24  ;;  %4387 = vmatprep.subr.bf16.mxu1 %v6104_v25  ;;  %v123_v3 = vor.u32 %v121_v57, %v120_v0  ;;  %v116_v7 = vor.u32 %v114_v61, %v113_v2  ;;  %v6177_v10 = vld [vmem:[%s8955_s0 + $0x24] ss:$16 sps:$4 sm:$0xff]   ;;  %v6152_v13 = vld [vmem:[%s8954_s1 + $0x1cc] ss:$16 sps:$4 sm:$0xff]   ;;  %v139_v18 = vshrl.u32 %v6179_v12, 16  ;;  %v142_v19 = vshll.u32 %v6179_v12, 16 }
  0x19   :  { %v147_v15 = vshrl.u32 %v6177_v10, 16  ;;  %v150_v16 = vshll.u32 %v6177_v10, 16  ;;  %v6154_v21 = vld [vmem:[%s8954_s1 + $0x1c0] ss:$16 sps:$4 sm:$0xff]   ;;  %v6155_v22 = vld [vmem:[%s8954_s1 + $0x1c8] ss:$16 sps:$4 sm:$0xff]  }
  0x1a   :  { %v256_v9 = vld [vmem:[#allocation2 + $0x8] sm:$0xff]  ;;  %v141_v23 = vrot.slane %v139_v18, 7  ;;  %v6156_v24 = vld [vmem:[%s8954_s1 + $0x1e4] ss:$16 sps:$4 sm:$0xff]   ;;  %v6209_v51 = vld [vmem:[%s8955_s0 + $0x60] ss:$16 sps:$4 sm:$0xff]  }
  0x1b   :  { %3710 = vmatpush1.bf16.msra.mxu0 %v6106_v26  ;;  %4388 = vmatpush1.bf16.msra.mxu1 %v6107_v27  ;;  %v257_v11 = vsel %vm6984_vm5, %v123_v3, %v256_v9  ;;  %v149_v20 = vrot.slane %v147_v15, 7  ;;  %v6158_v25 = vld [vmem:[%s8954_s1 + $0x1ec] ss:$16 sps:$4 sm:$0xff]   ;;  %v6160_v27 = vld [vmem:[%s8954_s1 + $0x1e0] ss:$16 sps:$4 sm:$0xff]   ;;  %v203_v58 = vshrl.u32 %v6209_v51, 16 }
  0x1c   :  { %3711 = vmatprep.subr.bf16.mxu0 %v6108_v28  ;;  %4389 = vmatprep.subr.bf16.mxu1 %v6110_v29  ;;  %258 = vst [vmem:[#allocation2 + $0x8] sm:$0xff] %v257_v11  ;;  %v253_v14 = vld [vmem:[#allocation2] sm:$0xff]  ;;  %v144_v28 = vor.u32 %v142_v19, %v141_v23  ;;  %v6185_v60 = vld [vmem:[%s8954_s1 + $0x24c] ss:$16 sps:$4 sm:$0xff]   ;;  %v6303_v49 = vld [vmem:[%s8954_s1 + $0x448] ss:$16 sps:$4 sm:$0xff]  }
  0x1d   :  { %3729 = vmatprep.mubr.bf16.mxu0 %v257_v11  ;;  %4407 = vmatprep.mubr.bf16.mxu1 %v257_v11  ;;  %v254_v17 = vsel %vm6984_vm5, %v116_v7, %v253_v14  ;;  %v152_v26 = vor.u32 %v150_v16, %v149_v20  ;;  %v6192_v29 = vld [vmem:[%s8955_s0 + $0x44] ss:$16 sps:$4 sm:$0xff]   ;;  %v6171_v52 = vld [vmem:[%s8954_s1 + $0x220] ss:$16 sps:$4 sm:$0xff]   ;;  %vm469_vm6 = vsmask.f32 7424 }
  0x1e   :  { %255 = vst [vmem:[#allocation2] sm:$0xff] %v254_v17  ;;  %v6173_v44 = vld [vmem:[%s8954_s1 + $0x224] ss:$16 sps:$4 sm:$0xff]   ;;  %v650_v10 = vld [vmem:[#allocation2 + $0x180] sm:$0x1]  ;;  %vm8179_vm7 = vmand %vm250_vm3, %vm469_vm6 }
  0x1f   :  { %3712 = vmatpush1.bf16.msra.mxu0 %v6112_v30  ;;  %4390 = vmatpush1.bf16.msra.mxu1 %v6113_v31  ;;  %v153_v30 = vsel %vm16_vm1, %v120_v0, %v152_v26  ;;  %v6194_v31 = vld [vmem:[%s8955_s0 + $0x40] ss:$16 sps:$4 sm:$0xff]   ;;  %v6182_v57 = vld [vmem:[%s8954_s1 + $0x244] ss:$16 sps:$4 sm:$0xff]   ;;  %v205_v0 = vrot.slane %v203_v58, 7  ;;  %v651_v12 = vsel %vm6951_vm2, 0, %v650_v10 }
  0x20   :  { %3713 = vmatprep.subr.bf16.mxu0 %v6114_v32  ;;  %4391 = vmatprep.subr.bf16.mxu1 %v6116_v33  ;;  %v6161_v32 = vld [vmem:[%s8954_s1 + $0x1e8] ss:$16 sps:$4 sm:$0xff]   ;;  %v6167_v33 = vld [vmem:[%s8954_s1 + $0x204] ss:$16 sps:$4 sm:$0xff]   ;;  %v6186_v14 = vld [vmem:[%s8954_s1 + $0x260] ss:$16 sps:$4 sm:$0xff]  }
  0x21   :  { %v6222_v9 = vld [vmem:[%s8955_s0 + $0x84] ss:$16 sps:$4 sm:$0xff]   ;;  %652 = vst [vmem:[#allocation2 + $0x180] sm:$0x1] %v651_v12  ;;  %vm636_vm8 = vsmask.f32 7966 }
  0x22   :  { %v751_v15 = vshrl.u32 %v6222_v9, 16  ;;  %v754_v16 = vshll.u32 %v6222_v9, 16  ;;  %v6197_v18 = vld [vmem:[%s8954_s1 + $0x284] ss:$16 sps:$4 sm:$0xff]   ;;  %vm8225_vm10 = vmand %vm635_vm9, %vm636_vm8 }
  0x23   :  { %3714 = vmatpush1.bf16.msra.mxu0 %v6118_v34  ;;  %4392 = vmatpush1.bf16.msra.mxu1 %v6119_v35  ;;  %v145_v34 = vsel %vm16_vm1, %v113_v2, %v144_v28  ;;  %v179_v35 = vshrl.u32 %v6192_v29, 16  ;;  %v6191_v2 = vld [vmem:[%s8954_s1 + $0x26c] ss:$16 sps:$4 sm:$0xff]   ;;  %v6203_v26 = vld [vmem:[%s8954_s1 + $0x2a4] ss:$16 sps:$4 sm:$0xff]  }
  0x24   :  { %3715 = vmatprep.subr.bf16.mxu0 %v6120_v36  ;;  %4393 = vmatprep.subr.bf16.mxu1 %v6122_v37  ;;  %v182_v36 = vshll.u32 %v6192_v29, 16  ;;  %v6170_v37 = vld [vmem:[%s8954_s1 + $0x20c] ss:$16 sps:$4 sm:$0xff]   ;;  %v6233_v12 = vld [vmem:[%s8954_s1 + $0x324] ss:$16 sps:$4 sm:$0xff]  }
  0x25   :  { %v6323_v4 = vld [vmem:[%s8954_s1 + $0x4a4] ss:$16 sps:$4 sm:$0xff]  }
  0x27   :  { %3716 = vmatpush1.bf16.msra.mxu0 %v6124_v38  ;;  %4394 = vmatpush1.bf16.msra.mxu1 %v6125_v39  ;;  %v171_v38 = vshrl.u32 %v6194_v31, 16  ;;  %v174_v39 = vshll.u32 %v6194_v31, 16  ;;  %v6239_v31 = vld [vmem:[%s8955_s0 + $0xa0] ss:$16 sps:$4 sm:$0xff]  }
  0x28   :  { %3717 = vmatprep.subr.bf16.mxu0 %v6126_v40  ;;  %4395 = vmatprep.subr.bf16.mxu1 %v6128_v41  ;;  %v181_v40 = vrot.slane %v179_v35, 7  ;;  %v6165_v41 = vld [vmem:[%s8954_s1 + $0x200] ss:$16 sps:$4 sm:$0xff]  }
  0x2b   :  { %3718 = vmatpush1.bf16.msra.mxu0 %v6130_v42  ;;  %4396 = vmatpush1.bf16.msra.mxu1 %v6131_v43  ;;  %v6168_v42 = vld [vmem:[%s8954_s1 + $0x208] ss:$16 sps:$4 sm:$0xff]   ;;  %v173_v43 = vrot.slane %v171_v38, 7  ;;  %v6201_v38 = vld [vmem:[%s8954_s1 + $0x2a0] ss:$16 sps:$4 sm:$0xff]  }
  0x2c   :  { %3719 = vmatprep.subr.bf16.mxu0 %v6132_v45  ;;  %4397 = vmatprep.subr.bf16.mxu1 %v6134_v46  ;;  %v6176_v45 = vld [vmem:[%s8954_s1 + $0x22c] ss:$16 sps:$4 sm:$0xff]   ;;  %v184_v46 = vor.u32 %v182_v36, %v181_v40 }
  0x2f   :  { %3720 = vmatpush1.bf16.msra.mxu0 %v6136_v47  ;;  %4398 = vmatpush1.bf16.msra.mxu1 %v6137_v48  ;;  %v176_v47 = vor.u32 %v174_v39, %v173_v43  ;;  %v6207_v48 = vld [vmem:[%s8955_s0 + $0x64] ss:$16 sps:$4 sm:$0xff]  }
  0x30   :  { %3721 = vmatprep.subr.bf16.mxu0 %v6138_v50  ;;  %4399 = vmatprep.subr.bf16.mxu1 %v6140_v53  ;;  %v185_v50 = vsel %vm16_vm1, %v149_v20, %v184_v46  ;;  %v6174_v53 = vld [vmem:[%s8954_s1 + $0x228] ss:$16 sps:$4 sm:$0xff]   ;;  %v211_v55 = vshrl.u32 %v6207_v48, 16  ;;  %v214_v56 = vshll.u32 %v6207_v48, 16  ;;  %v6210_v46 = vld [vmem:[%s8954_s1 + $0x2c0] ss:$16 sps:$4 sm:$0xff]  }
  0x31   :  { %v7068_v54 = vsel %vm16_vm1, %v141_v23, %v176_v47  ;;  %v6195_v23 = vld [vmem:[%s8954_s1 + $0x280] ss:$16 sps:$4 sm:$0xff]  }
  0x32   :  { %v213_v61 = vrot.slane %v211_v55, 7  ;;  %v6254_v55 = vld [vmem:[%s8955_s0 + $0xc0] ss:$16 sps:$4 sm:$0xff]  }
  0x33   :  { %3722 = vmatpush1.bf16.msra.mxu0 %v6142_v59  ;;  %4400 = vmatpush1.bf16.msra.mxu1 %v6143_v62  ;;  %v206_v59 = vshll.u32 %v6209_v51, 16  ;;  %v6180_v62 = vld [vmem:[%s8954_s1 + $0x240] ss:$16 sps:$4 sm:$0xff]   ;;  %v6218_v51 = vld [vmem:[%s8954_s1 + $0x2e4] ss:$16 sps:$4 sm:$0xff]  }
  0x34   :  { %3723 = vmatprep.subr.bf16.mxu0 %v6144_v63  ;;  %4401 = vmatprep.subr.bf16.mxu1 %v6146_v1  ;;  %v6183_v63 = vld [vmem:[%s8954_s1 + $0x248] ss:$16 sps:$4 sm:$0xff]   ;;  %v6188_v1 = vld [vmem:[%s8954_s1 + $0x264] ss:$16 sps:$4 sm:$0xff]   ;;  %v216_v3 = vor.u32 %v214_v56, %v213_v61  ;;  %v6221_v56 = vld [vmem:[%s8954_s1 + $0x2ec] ss:$16 sps:$4 sm:$0xff]  }
  0x35   :  { %v6216_v61 = vld [vmem:[%s8954_s1 + $0x2e0] ss:$16 sps:$4 sm:$0xff]  }
  0x36   :  { %v217_v7 = vsel %vm16_vm1, %v181_v40, %v216_v3  ;;  %v775_v40 = vshll.u32 %v6239_v31, 16  ;;  %v6225_v3 = vld [vmem:[%s8954_s1 + $0x300] ss:$16 sps:$4 sm:$0xff]  }
  0x37   :  { %3724 = vmatpush1.bf16.msra.mxu0 %v6148_v5  ;;  %4402 = vmatpush1.bf16.msra.mxu1 %v6149_v6  ;;  %v208_v5 = vor.u32 %v206_v59, %v205_v0  ;;  %v653_v6 = vld [vmem:[#allocation2 + $0x188] sm:$0x1]  ;;  %v804_v59 = vshrl.u32 %v6254_v55, 16 }
  0x38   :  { %3725 = vmatprep.subr.bf16.mxu0 %v6150_v8  ;;  %4403 = vmatprep.subr.bf16.mxu1 %v6152_v13  ;;  %v654_v8 = vsel %vm6951_vm2, 0, %v653_v6  ;;  %v6224_v13 = vld [vmem:[%s8955_s0 + $0x80] ss:$16 sps:$4 sm:$0xff]  }
  0x39   :  { %v7095_v11 = vsel %vm16_vm1, %v173_v43, %v208_v5  ;;  %655 = vst [vmem:[#allocation2 + $0x188] sm:$0x1] %v654_v8  ;;  %v744_v19 = vshrl.u32 %v6224_v13, 16  ;;  %v747_v20 = vshll.u32 %v6224_v13, 16  ;;  %v806_v0 = vrot.slane %v804_v59, 7 }
  0x3a   :  { %v6228_v5 = vld [vmem:[%s8954_s1 + $0x308] ss:$16 sps:$4 sm:$0xff]   ;;  %v6267_v8 = vld [vmem:[%s8955_s0 + $0xe4] ss:$16 sps:$4 sm:$0xff]   ;;  %v6236_v13 = vld [vmem:[%s8954_s1 + $0x32c] ss:$16 sps:$4 sm:$0xff]  }
  0x3b   :  { %3726 = vmatpush1.bf16.msra.mxu0 %v6154_v21  ;;  %4404 = vmatpush1.bf16.msra.mxu1 %v6155_v22  ;;  %v6200_v21 = vld [vmem:[%s8954_s1 + $0x28c] ss:$16 sps:$4 sm:$0xff]   ;;  %v753_v22 = vrot.slane %v751_v15, 7  ;;  %v847_v15 = vshll.u32 %v6267_v8, 16 }
  0x3c   :  { %3727 = vmatprep.subr.bf16.mxu0 %v6156_v24  ;;  %4405 = vmatprep.subr.bf16.mxu1 %v6158_v25  ;;  %v6198_v24 = vld [vmem:[%s8954_s1 + $0x288] ss:$16 sps:$4 sm:$0xff]   ;;  %v746_v25 = vrot.slane %v744_v19, 7  ;;  %v6231_v19 = vld [vmem:[%s8954_s1 + $0x320] ss:$16 sps:$4 sm:$0xff]  }
  0x3d   :  { %v756_v28 = vor.u32 %v754_v16, %v753_v22 }
  0x3e   :  { %v749_v29 = vor.u32 %v747_v20, %v746_v25  ;;  %v6234_v20 = vld [vmem:[%s8954_s1 + $0x328] ss:$16 sps:$4 sm:$0xff]  }
  0x3f   :  { %3728 = vmatpush1.bf16.msra.mxu0 %v6160_v27  ;;  %4406 = vmatpush1.bf16.msra.mxu1 %v6161_v32  ;;  %v6206_v27 = vld [vmem:[%s8954_s1 + $0x2ac] ss:$16 sps:$4 sm:$0xff]  }
  0x40   :  { %3810 = vmatprep.subr.bf16.mxu0 %v6167_v33  ;;  %4488 = vmatprep.subr.bf16.mxu1 %v6170_v37  ;;  %v886_v32 = vld [vmem:[#allocation2 + $0x188] sm:$0xff]  ;;  %v772_v37 = vshrl.u32 %v6239_v31, 16 }
  0x41   :  { %v887_v33 = vsel %vm6984_vm5, %v756_v28, %v886_v32  ;;  %v27_v28 = vld [vmem:[#allocation2 + $0x18] sm:$0x1]  ;;  %v6284_v32 = vld [vmem:[%s8955_s0 + $0xc] ss:$16 sps:$4 sm:$0xff]  }
  0x42   :  { %3730 = vmatmul.mubr.bf16.vlgmr.msra.gmra.mrb[0].mxu0 %v254_v17  ;;  %4408 = vmatmul.mubr.bf16.vlgmr.msra.gmra.mrb[0].mxu1 %v254_v17  ;;  %v6189_v17 = vld [vmem:[%s8954_s1 + $0x268] ss:$16 sps:$4 sm:$0xff]   ;;  %888 = vst [vmem:[#allocation2 + $0x188] sm:$0xff] %v887_v33 }
  0x43   :  { %3811 = vmatpush1.bf16.msra.mxu0 %v6165_v41  ;;  %4489 = vmatpush1.bf16.msra.mxu1 %v6168_v42  ;;  %v6204_v41 = vld [vmem:[%s8954_s1 + $0x2a8] ss:$16 sps:$4 sm:$0xff]   ;;  %v6212_v42 = vld [vmem:[%s8954_s1 + $0x2c4] ss:$16 sps:$4 sm:$0xff]  }
  0x44   :  { %3812 = vmatprep.subr.bf16.mxu0 %v6173_v44  ;;  %4490 = vmatprep.subr.bf16.mxu1 %v6176_v45  ;;  %v774_v44 = vrot.slane %v772_v37, 7  ;;  %v6215_v45 = vld [vmem:[%s8954_s1 + $0x2cc] ss:$16 sps:$4 sm:$0xff]   ;;  %v6282_v31 = vld [vmem:[%s8955_s0 + $0x8] ss:$16 sps:$4 sm:$0xff]   ;;  %v132_v37 = vshrl.u32 %v6284_v32, 16 }
  0x45   :  { %3739 = vmatprep.mubr.bf16.mxu0 %v153_v30  ;;  %4417 = vmatprep.mubr.bf16.mxu1 %v153_v30  ;;  %v6237_v30 = vld [vmem:[%s8955_s0 + $0xa4] ss:$16 sps:$4 sm:$0xff]  }
  0x46   :  { %v780_v35 = vshrl.u32 %v6237_v30, 16  ;;  %v783_v36 = vshll.u32 %v6237_v30, 16  ;;  %v777_v48 = vor.u32 %v775_v40, %v774_v44  ;;  %v28_v30 = vsel %vm6951_vm2, 0, %v27_v28 }
  0x47   :  { %3813 = vmatpush1.bf16.msra.mxu0 %v6171_v52  ;;  %4491 = vmatpush1.bf16.msra.mxu1 %v6174_v53  ;;  %29 = vst [vmem:[#allocation2 + $0x18] sm:$0x1] %v28_v30  ;;  %v125_v40 = vshrl.u32 %v6282_v31, 16  ;;  %v6327_v30 = vld [vmem:[%s8955_s0 + $0x6c] ss:$16 sps:$4 sm:$0xff]  }
  0x48   :  { %3814 = vmatprep.subr.bf16.mxu0 %v6182_v57  ;;  %4492 = vmatprep.subr.bf16.mxu1 %v6185_v60  ;;  %v782_v43 = vrot.slane %v780_v35, 7  ;;  %v7164_v53 = vsel %vm16_vm1, %v746_v25, %v777_v48  ;;  %v807_v60 = vshll.u32 %v6254_v55, 16  ;;  %v6240_v25 = vld [vmem:[%s8954_s1 + $0x340] ss:$16 sps:$4 sm:$0xff]   ;;  %v6299_v55 = vld [vmem:[%s8955_s0 + $0x28] ss:$16 sps:$4 sm:$0xff]  }
  0x49   :  { %v24_v35 = vld [vmem:[#allocation2 + $0x10] sm:$0x1] }
  0x4a   :  { %3740 = vmatmul.mubr.bf16.gmra.mrb[4].mxu0 %v145_v34  ;;  %4418 = vmatmul.mubr.bf16.gmra.mrb[4].mxu1 %v145_v34  ;;  %v883_v34 = vld [vmem:[#allocation2 + $0x180] sm:$0xff]  ;;  %v785_v47 = vor.u32 %v783_v36, %v782_v43  ;;  %v6251_v36 = vld [vmem:[%s8954_s1 + $0x36c] ss:$16 sps:$4 sm:$0xff]  }
  0x4b   :  { %3815 = vmatpush1.bf16.msra.mxu0 %v6180_v62  ;;  %4493 = vmatpush1.bf16.msra.mxu1 %v6183_v63  ;;  %v7141_v39 = vsel %vm6984_vm5, %v749_v29, %v883_v34  ;;  %v6219_v62 = vld [vmem:[%s8954_s1 + $0x2e8] ss:$16 sps:$4 sm:$0xff]  }
  0x4c   :  { %3816 = vmatprep.subr.bf16.mxu0 %v6188_v1  ;;  %4494 = vmatprep.subr.bf16.mxu1 %v6191_v2  ;;  %885 = vst [vmem:[#allocation2 + $0x180] sm:$0xff] %v7141_v39  ;;  %v786_v52 = vsel %vm16_vm1, %v753_v22, %v785_v47  ;;  %v6227_v1 = vld [vmem:[%s8954_s1 + $0x304] ss:$16 sps:$4 sm:$0xff]   ;;  %v6230_v2 = vld [vmem:[%s8954_s1 + $0x30c] ss:$16 sps:$4 sm:$0xff]  }
  0x4d   :  { %3749 = vmatprep.mubr.bf16.mxu0 %v185_v50  ;;  %4427 = vmatprep.mubr.bf16.mxu1 %v185_v50  ;;  %v6213_v50 = vld [vmem:[%s8954_s1 + $0x2c8] ss:$16 sps:$4 sm:$0xff]   ;;  %v6242_v22 = vld [vmem:[%s8954_s1 + $0x344] ss:$16 sps:$4 sm:$0xff]   ;;  %v6260_v47 = vld [vmem:[%s8954_s1 + $0x38c] ss:$16 sps:$4 sm:$0xff]  }
  0x4f   :  { %3817 = vmatpush1.bf16.msra.mxu0 %v6186_v14  ;;  %4495 = vmatpush1.bf16.msra.mxu1 %v6189_v17  ;;  %v844_v14 = vshrl.u32 %v6267_v8, 16  ;;  %v6275_v8 = vld [vmem:[%s8954_s1 + $0x3cc] ss:$16 sps:$4 sm:$0xff]  }
  0x50   :  { %3818 = vmatprep.subr.bf16.mxu0 %v6197_v18  ;;  %4496 = vmatprep.subr.bf16.mxu1 %v6200_v21 }
  0x51   :  { %v846_v18 = vrot.slane %v844_v14, 7  ;;  %v6273_v14 = vld [vmem:[%s8954_s1 + $0x3c8] ss:$16 sps:$4 sm:$0xff]  }
  0x52   :  { %3750 = vmatmul.mubr.bf16.gmra.mrb[8].mxu0 %v7068_v54  ;;  %4428 = vmatmul.mubr.bf16.gmra.mrb[8].mxu1 %v7068_v54  ;;  %v6252_v54 = vld [vmem:[%s8955_s0 + $0xc4] ss:$16 sps:$4 sm:$0xff]  }
  0x53   :  { %3819 = vmatpush1.bf16.msra.mxu0 %v6195_v23  ;;  %4497 = vmatpush1.bf16.msra.mxu1 %v6198_v24  ;;  %v812_v57 = vshrl.u32 %v6252_v54, 16  ;;  %v815_v58 = vshll.u32 %v6252_v54, 16  ;;  %v6245_v23 = vld [vmem:[%s8954_s1 + $0x34c] ss:$16 sps:$4 sm:$0xff]   ;;  %v849_v24 = vor.u32 %v847_v15, %v846_v18 }
  0x54   :  { %3820 = vmatprep.subr.bf16.mxu0 %v6203_v26  ;;  %4498 = vmatprep.subr.bf16.mxu1 %v6206_v27  ;;  %v6243_v26 = vld [vmem:[%s8954_s1 + $0x348] ss:$16 sps:$4 sm:$0xff]  }
  0x55   :  { %3759 = vmatprep.mubr.bf16.mxu0 %v217_v7  ;;  %4437 = vmatprep.mubr.bf16.mxu1 %v217_v7  ;;  %v814_v63 = vrot.slane %v812_v57, 7  ;;  %v809_v7 = vor.u32 %v807_v60, %v806_v0  ;;  %v262_v54 = vld [vmem:[#allocation2 + $0x18] sm:$0xff] }
  0x56   :  { %v6266_v60 = vld [vmem:[%s8954_s1 + $0x3ac] ss:$16 sps:$4 sm:$0xff]  }
  0x57   :  { %3821 = vmatpush1.bf16.msra.mxu0 %v6201_v38  ;;  %4499 = vmatpush1.bf16.msra.mxu1 %v6204_v41  ;;  %v817_v6 = vor.u32 %v815_v58, %v814_v63  ;;  %v7200_v10 = vsel %vm16_vm1, %v774_v44, %v809_v7  ;;  %v7232_v29 = vsel %vm16_vm1, %v814_v63, %v849_v24  ;;  %v135_v38 = vshll.u32 %v6284_v32, 16  ;;  %v6246_v44 = vld [vmem:[%s8954_s1 + $0x360] ss:$16 sps:$4 sm:$0xff]  }
  0x58   :  { %3822 = vmatprep.subr.bf16.mxu0 %v6212_v42  ;;  %4500 = vmatprep.subr.bf16.mxu1 %v6215_v45  ;;  %v128_v41 = vshll.u32 %v6282_v31, 16  ;;  %v134_v42 = vrot.slane %v132_v37, 7  ;;  %v6249_v45 = vld [vmem:[%s8954_s1 + $0x368] ss:$16 sps:$4 sm:$0xff]   ;;  %v158_v63 = vshll.u32 %v6299_v55, 16 }
  0x59   :  { %v818_v9 = vsel %vm16_vm1, %v782_v43, %v817_v6  ;;  %v127_v43 = vrot.slane %v125_v40, 7  ;;  %v6272_v6 = vld [vmem:[%s8954_s1 + $0x3c4] ss:$16 sps:$4 sm:$0xff]   ;;  %v6329_v31 = vld [vmem:[%s8955_s0 + $0x68] ss:$16 sps:$4 sm:$0xff]  }
  0x5a   :  { %3760 = vmatmul.mubr.bf16.gmra.mrb[12].mxu0 %v7095_v11  ;;  %4438 = vmatmul.mubr.bf16.gmra.mrb[12].mxu1 %v7095_v11  ;;  %v6269_v11 = vld [vmem:[%s8955_s0 + $0xe0] ss:$16 sps:$4 sm:$0xff]   ;;  %v137_v48 = vor.u32 %v135_v38, %v134_v42  ;;  %v219_v37 = vshrl.u32 %v6329_v31, 16  ;;  %v222_v38 = vshll.u32 %v6329_v31, 16  ;;  %v6293_v40 = vld [vmem:[%s8954_s1 + $0x424] ss:$16 sps:$4 sm:$0xff]  }
  0x5b   :  { %3823 = vmatpush1.bf16.msra.mxu0 %v6210_v46  ;;  %4501 = vmatpush1.bf16.msra.mxu1 %v6213_v50  ;;  %v836_v16 = vshrl.u32 %v6269_v11, 16  ;;  %v839_v17 = vshll.u32 %v6269_v11, 16  ;;  %v6257_v46 = vld [vmem:[%s8954_s1 + $0x384] ss:$16 sps:$4 sm:$0xff]   ;;  %v6255_v50 = vld [vmem:[%s8954_s1 + $0x380] ss:$16 sps:$4 sm:$0xff]  }
  0x5c   :  { %3824 = vmatprep.subr.bf16.mxu0 %v6218_v51  ;;  %4502 = vmatprep.subr.bf16.mxu1 %v6221_v56  ;;  %v6258_v51 = vld [vmem:[%s8954_s1 + $0x388] ss:$16 sps:$4 sm:$0xff]   ;;  %v6263_v56 = vld [vmem:[%s8954_s1 + $0x3a4] ss:$16 sps:$4 sm:$0xff]   ;;  %v263_v57 = vsel %vm6984_vm5, %v137_v48, %v262_v54  ;;  %v6312_v11 = vld [vmem:[%s8955_s0 + $0x4c] ss:$16 sps:$4 sm:$0xff]  }
  0x5d   :  { %3769 = vmatprep.mubr.bf16.mxu0 %v887_v33  ;;  %4447 = vmatprep.mubr.bf16.mxu1 %v887_v33  ;;  %v838_v21 = vrot.slane %v836_v16, 7  ;;  %v6248_v33 = vld [vmem:[%s8954_s1 + $0x364] ss:$16 sps:$4 sm:$0xff]   ;;  %264 = vst [vmem:[#allocation2 + $0x18] sm:$0xff] %v263_v57  ;;  %v195_v16 = vshrl.u32 %v6312_v11, 16 }
  0x5e   :  { %v6285_v32 = vld [vmem:[%s8954_s1 + $0x400] ss:$16 sps:$4 sm:$0xff]   ;;  %v6372_v31 = vld [vmem:[%s8955_s0 + $0xcc] ss:$16 sps:$4 sm:$0xff]  }
  0x5f   :  { %3825 = vmatpush1.bf16.msra.mxu0 %v6216_v61  ;;  %4503 = vmatpush1.bf16.msra.mxu1 %v6219_v62  ;;  %v841_v27 = vor.u32 %v839_v17, %v838_v21  ;;  %v155_v62 = vshrl.u32 %v6299_v55, 16  ;;  %v198_v17 = vshll.u32 %v6312_v11, 16  ;;  %v6281_v21 = vld [vmem:[%s8954_s1 + $0x3ec] ss:$16 sps:$4 sm:$0xff]   ;;  %v656_v54 = vld [vmem:[#allocation2 + $0x190] sm:$0x1] }
  0x60   :  { %3826 = vmatprep.subr.bf16.mxu0 %v6227_v1  ;;  %4504 = vmatprep.subr.bf16.mxu1 %v6230_v2  ;;  %v6261_v2 = vld [vmem:[%s8954_s1 + $0x3a0] ss:$16 sps:$4 sm:$0xff]  }
  0x61   :  { %v7246_v34 = vsel %vm16_vm1, %v806_v0, %v841_v27  ;;  %v6290_v27 = vld [vmem:[%s8954_s1 + $0x40c] ss:$16 sps:$4 sm:$0xff]  }
  0x62   :  { %3770 = vmatmul.mubr.bf16.gmra.mrb[16].mxu0 %v7141_v39  ;;  %4448 = vmatmul.mubr.bf16.gmra.mrb[16].mxu1 %v7141_v39  ;;  %v25_v39 = vsel %vm6951_vm2, 0, %v24_v35  ;;  %v227_v35 = vshrl.u32 %v6327_v30, 16 }
  0x63   :  { %3827 = vmatpush1.bf16.msra.mxu0 %v6225_v3  ;;  %4505 = vmatpush1.bf16.msra.mxu1 %v6228_v5  ;;  %26 = vst [vmem:[#allocation2 + $0x10] sm:$0x1] %v25_v39  ;;  %v6264_v3 = vld [vmem:[%s8954_s1 + $0x3a8] ss:$16 sps:$4 sm:$0xff]   ;;  %v157_v5 = vrot.slane %v155_v62, 7 }
  0x64   :  { %3828 = vmatprep.subr.bf16.mxu0 %v6233_v12  ;;  %4506 = vmatprep.subr.bf16.mxu1 %v6236_v13  ;;  %v6314_v12 = vld [vmem:[%s8955_s0 + $0x48] ss:$16 sps:$4 sm:$0xff]   ;;  %v6270_v13 = vld [vmem:[%s8954_s1 + $0x3c0] ss:$16 sps:$4 sm:$0xff]  }
  0x65   :  { %3779 = vmatprep.mubr.bf16.mxu0 %v786_v52  ;;  %4457 = vmatprep.mubr.bf16.mxu1 %v786_v52  ;;  %v130_v52 = vor.u32 %v128_v41, %v127_v43  ;;  %v187_v18 = vshrl.u32 %v6314_v12, 16  ;;  %v6288_v39 = vld [vmem:[%s8954_s1 + $0x408] ss:$16 sps:$4 sm:$0xff]   ;;  %v6296_v41 = vld [vmem:[%s8954_s1 + $0x42c] ss:$16 sps:$4 sm:$0xff]  }
  0x67   :  { %3829 = vmatpush1.bf16.msra.mxu0 %v6231_v19  ;;  %4507 = vmatpush1.bf16.msra.mxu1 %v6234_v20  ;;  %v190_v19 = vshll.u32 %v6314_v12, 16  ;;  %v6278_v20 = vld [vmem:[%s8954_s1 + $0x3e4] ss:$16 sps:$4 sm:$0xff]   ;;  %v189_v24 = vrot.slane %v187_v18, 7  ;;  %v6359_v12 = vld [vmem:[%s8955_s0 + $0xa8] ss:$16 sps:$4 sm:$0xff]  }
  0x68   :  { %3830 = vmatprep.subr.bf16.mxu0 %v6242_v22  ;;  %4508 = vmatprep.subr.bf16.mxu1 %v6245_v23  ;;  %v6276_v22 = vld [vmem:[%s8954_s1 + $0x3e0] ss:$16 sps:$4 sm:$0xff]   ;;  %v197_v23 = vrot.slane %v195_v16, 7 }
  0x6a   :  { %3780 = vmatmul.mubr.bf16.gmra.mrb[20].mxu0 %v7164_v53  ;;  %4458 = vmatmul.mubr.bf16.gmra.mrb[20].mxu1 %v7164_v53  ;;  %v6297_v53 = vld [vmem:[%s8955_s0 + $0x2c] ss:$16 sps:$4 sm:$0xff]   ;;  %v259_v61 = vld [vmem:[#allocation2 + $0x10] sm:$0xff]  ;;  %v200_v28 = vor.u32 %v198_v17, %v197_v23 }
  0x6b   :  { %3831 = vmatpush1.bf16.msra.mxu0 %v6240_v25  ;;  %4509 = vmatpush1.bf16.msra.mxu1 %v6243_v26  ;;  %v163_v58 = vshrl.u32 %v6297_v53, 16  ;;  %v166_v59 = vshll.u32 %v6297_v53, 16  ;;  %v7289_v0 = vsel %vm6984_vm5, %v130_v52, %v259_v61  ;;  %v6279_v25 = vld [vmem:[%s8954_s1 + $0x3e8] ss:$16 sps:$4 sm:$0xff]   ;;  %v6287_v26 = vld [vmem:[%s8954_s1 + $0x404] ss:$16 sps:$4 sm:$0xff]  }
  0x6c   :  { %3832 = vmatprep.subr.bf16.mxu0 %v6248_v33  ;;  %4510 = vmatprep.subr.bf16.mxu1 %v6251_v36  ;;  %261 = vst [vmem:[#allocation2 + $0x10] sm:$0xff] %v7289_v0  ;;  %v230_v36 = vshll.u32 %v6327_v30, 16  ;;  %v6342_v53 = vld [vmem:[%s8955_s0 + $0x8c] ss:$16 sps:$4 sm:$0xff]   ;;  %v6300_v61 = vld [vmem:[%s8954_s1 + $0x440] ss:$16 sps:$4 sm:$0xff]  }
  0x6d   :  { %3789 = vmatprep.mubr.bf16.mxu0 %v818_v9  ;;  %4467 = vmatprep.mubr.bf16.mxu1 %v818_v9  ;;  %v165_v1 = vrot.slane %v163_v58, 7  ;;  %v160_v9 = vor.u32 %v158_v63, %v157_v5  ;;  %v6344_v58 = vld [vmem:[%s8955_s0 + $0x88] ss:$16 sps:$4 sm:$0xff]  }
  0x6e   :  { %v758_v62 = vshrl.u32 %v6344_v58, 16  ;;  %v761_v63 = vshll.u32 %v6344_v58, 16 }
  0x6f   :  { %3833 = vmatpush1.bf16.msra.mxu0 %v6246_v44  ;;  %4511 = vmatpush1.bf16.msra.mxu1 %v6249_v45  ;;  %v168_v7 = vor.u32 %v166_v59, %v165_v1  ;;  %v7324_v15 = vsel %vm16_vm1, %v127_v43, %v160_v9  ;;  %v7356_v33 = vsel %vm16_vm1, %v165_v1, %v200_v28  ;;  %v221_v43 = vrot.slane %v219_v37, 7  ;;  %v6291_v44 = vld [vmem:[%s8954_s1 + $0x420] ss:$16 sps:$4 sm:$0xff]   ;;  %v6294_v45 = vld [vmem:[%s8954_s1 + $0x428] ss:$16 sps:$4 sm:$0xff]  }
  0x70   :  { %3834 = vmatprep.subr.bf16.mxu0 %v6257_v46  ;;  %4512 = vmatprep.subr.bf16.mxu1 %v6260_v47  ;;  %v6302_v46 = vld [vmem:[%s8954_s1 + $0x444] ss:$16 sps:$4 sm:$0xff]   ;;  %v6305_v47 = vld [vmem:[%s8954_s1 + $0x44c] ss:$16 sps:$4 sm:$0xff]   ;;  %v765_v59 = vshrl.u32 %v6342_v53, 16  ;;  %v831_v37 = vshll.u32 %v6372_v31, 16 }
  0x71   :  { %v6308_v1 = vld [vmem:[%s8954_s1 + $0x464] ss:$16 sps:$4 sm:$0xff]   ;;  %v6324_v28 = vld [vmem:[%s8954_s1 + $0x4a8] ss:$16 sps:$4 sm:$0xff]  }
  0x72   :  { %3790 = vmatmul.mubr.bf16.gmra.mrb[24].mxu0 %v7200_v10  ;;  %4468 = vmatmul.mubr.bf16.gmra.mrb[24].mxu1 %v7200_v10  ;;  %v7309_v10 = vsel %vm16_vm1, %v134_v42, %v168_v7  ;;  %v229_v42 = vrot.slane %v227_v35, 7 }
  0x73   :  { %3835 = vmatpush1.bf16.msra.mxu0 %v6255_v50  ;;  %4513 = vmatpush1.bf16.msra.mxu1 %v6258_v51  ;;  %v224_v50 = vor.u32 %v222_v38, %v221_v43  ;;  %v659_v51 = vld [vmem:[#allocation2 + $0x198] sm:$0x1] }
  0x74   :  { %3836 = vmatprep.subr.bf16.mxu0 %v6263_v56  ;;  %4514 = vmatprep.subr.bf16.mxu1 %v6266_v60  ;;  %v232_v48 = vor.u32 %v230_v36, %v229_v42  ;;  %v660_v52 = vsel %vm6951_vm2, 0, %v659_v51  ;;  %v768_v60 = vshll.u32 %v6342_v53, 16  ;;  %v828_v36 = vshrl.u32 %v6372_v31, 16  ;;  %v6333_v43 = vld [vmem:[%s8954_s1 + $0x4c8] ss:$16 sps:$4 sm:$0xff]  }
  0x75   :  { %3799 = vmatprep.mubr.bf16.mxu0 %v7232_v29  ;;  %4477 = vmatprep.mubr.bf16.mxu1 %v7232_v29  ;;  %v192_v29 = vor.u32 %v190_v19, %v189_v24  ;;  %v7393_v56 = vsel %vm16_vm1, %v189_v24, %v224_v50  ;;  %661 = vst [vmem:[#allocation2 + $0x198] sm:$0x1] %v660_v52  ;;  %v788_v19 = vshrl.u32 %v6359_v12, 16  ;;  %v6389_v50 = vld [vmem:[%s8955_s0 + $0xe8] ss:$16 sps:$4 sm:$0xff]  }
  0x76   :  { %v7390_v55 = vsel %vm16_vm1, %v197_v23, %v232_v48  ;;  %v6318_v23 = vld [vmem:[%s8954_s1 + $0x488] ss:$16 sps:$4 sm:$0xff]   ;;  %v6387_v48 = vld [vmem:[%s8955_s0 + $0xec] ss:$16 sps:$4 sm:$0xff]   ;;  %v6336_v51 = vld [vmem:[%s8954_s1 + $0x4e0] ss:$16 sps:$4 sm:$0xff]  }
  0x77   :  { %3837 = vmatpush1.bf16.msra.mxu0 %v6261_v2  ;;  %4515 = vmatpush1.bf16.msra.mxu1 %v6264_v3  ;;  %v6311_v2 = vld [vmem:[%s8954_s1 + $0x46c] ss:$16 sps:$4 sm:$0xff]   ;;  %v760_v3 = vrot.slane %v758_v62, 7  ;;  %v790_v24 = vrot.slane %v788_v19, 7  ;;  %v6339_v52 = vld [vmem:[%s8954_s1 + $0x4e8] ss:$16 sps:$4 sm:$0xff]  }
  0x78   :  { %3838 = vmatprep.subr.bf16.mxu0 %v6272_v6  ;;  %4516 = vmatprep.subr.bf16.mxu1 %v6275_v8  ;;  %v6309_v6 = vld [vmem:[%s8954_s1 + $0x468] ss:$16 sps:$4 sm:$0xff]   ;;  %v6317_v8 = vld [vmem:[%s8954_s1 + $0x484] ss:$16 sps:$4 sm:$0xff]   ;;  %v852_v58 = vshrl.u32 %v6389_v50, 16 }
  0x79   :  { %v763_v9 = vor.u32 %v761_v63, %v760_v3  ;;  %v6366_v19 = vld [vmem:[%s8954_s1 + $0x560] ss:$16 sps:$4 sm:$0xff]   ;;  %v6395_v31 = vld [vmem:[%s8954_s1 + $0x5cc] ss:$16 sps:$4 sm:$0xff]  }
  0x7a   :  { %3800 = vmatmul.mubr.bf16.gmra.mrb[28].mxu0 %v7246_v34  ;;  %4478 = vmatmul.mubr.bf16.gmra.mrb[28].mxu1 %v7246_v34  ;;  %v7359_v34 = vsel %vm16_vm1, %v157_v5, %v192_v29  ;;  %v6306_v5 = vld [vmem:[%s8954_s1 + $0x460] ss:$16 sps:$4 sm:$0xff]   ;;  %v854_v63 = vrot.slane %v852_v58, 7  ;;  %v6428_v58 = vld [vmem:[%s8954_s1 + $0x664] ss:$16 sps:$4 sm:$0xff]  }
  0x7b   :  { %3839 = vmatpush1.bf16.msra.mxu0 %v6270_v13  ;;  %4517 = vmatpush1.bf16.msra.mxu1 %v6273_v14  ;;  %v6320_v13 = vld [vmem:[%s8954_s1 + $0x48c] ss:$16 sps:$4 sm:$0xff]  }
  0x7c   :  { %3840 = vmatprep.subr.bf16.mxu0 %v6278_v20  ;;  %4518 = vmatprep.subr.bf16.mxu1 %v6281_v21  ;;  %v892_v11 = vld [vmem:[#allocation2 + $0x198] sm:$0xff]  ;;  %v791_v20 = vshll.u32 %v6359_v12, 16  ;;  %v6315_v21 = vld [vmem:[%s8954_s1 + $0x480] ss:$16 sps:$4 sm:$0xff]  }
  0x7d   :  { %3842 = vmatprep.mubr.bf16.mxu0 %v263_v57  ;;  %4520 = vmatprep.mubr.bf16.mxu1 %v263_v57  ;;  %v657_v57 = vsel %vm6951_vm2, 0, %v656_v54  ;;  %v6365_v12 = vld [vmem:[%s8954_s1 + $0x54c] ss:$16 sps:$4 sm:$0xff]  }
  0x7e   :  { %658 = vst [vmem:[#allocation2 + $0x190] sm:$0x1] %v657_v57  ;;  %v793_v29 = vor.u32 %v791_v20, %v790_v24  ;;  %v863_v57 = vshll.u32 %v6387_v48, 16  ;;  %v6369_v20 = vld [vmem:[%s8954_s1 + $0x568] ss:$16 sps:$4 sm:$0xff]  }
  0x7f   :  { %3841 = vmatpush1.bf16.msra.mxu0 %v6276_v22  ;;  %4519 = vmatpush1.bf16.msra.mxu1 %v6279_v25  ;;  %v6326_v25 = vld [vmem:[%s8954_s1 + $0x4ac] ss:$16 sps:$4 sm:$0xff]  }
  0x80   :  { %3923 = vmatprep.subr.bf16.mxu0 %v6287_v26  ;;  %4601 = vmatprep.subr.bf16.mxu1 %v6290_v27  ;;  %v6321_v27 = vld [vmem:[%s8954_s1 + $0x4a0] ss:$16 sps:$4 sm:$0xff]   ;;  %v7482_v35 = vsel %vm16_vm1, %v760_v3, %v793_v29  ;;  %v6384_v29 = vld [vmem:[%s8954_s1 + $0x5a8] ss:$16 sps:$4 sm:$0xff]  }
  0x82   :  { %3843 = vmatmul.mubr.bf16.vlgmr.msra.gmra.mrb[0].mxu0 %v7289_v0  ;;  %4521 = vmatmul.mubr.bf16.vlgmr.msra.gmra.mrb[0].mxu1 %v7289_v0  ;;  %v767_v0 = vrot.slane %v765_v59, 7  ;;  %v855_v59 = vshll.u32 %v6389_v50, 16  ;;  %v7706_v50 = vld [vmem:[%s8955_s0 + $0xa0] ss:$16 sps:$4 sm:$0xff]  }
  0x83   :  { %3924 = vmatpush1.bf16.msra.mxu0 %v6285_v32  ;;  %4602 = vmatpush1.bf16.msra.mxu1 %v6288_v39  ;;  %v6374_v32 = vld [vmem:[%s8955_s0 + $0xc8] ss:$16 sps:$4 sm:$0xff]  }
  0x84   :  { %3925 = vmatprep.subr.bf16.mxu0 %v6293_v40  ;;  %4603 = vmatprep.subr.bf16.mxu1 %v6296_v41  ;;  %v770_v7 = vor.u32 %v768_v60, %v767_v0  ;;  %v820_v38 = vshrl.u32 %v6374_v32, 16  ;;  %v823_v39 = vshll.u32 %v6374_v32, 16  ;;  %v6330_v40 = vld [vmem:[%s8954_s1 + $0x4c0] ss:$16 sps:$4 sm:$0xff]   ;;  %v830_v41 = vrot.slane %v828_v36, 7 }
  0x85   :  { %3852 = vmatprep.mubr.bf16.mxu0 %v7309_v10  ;;  %4530 = vmatprep.mubr.bf16.mxu1 %v7309_v10  ;;  %v6357_v10 = vld [vmem:[%s8955_s0 + $0xac] ss:$16 sps:$4 sm:$0xff]   ;;  %v857_v3 = vor.u32 %v855_v59, %v854_v63  ;;  %v7641_v32 = vld [vmem:[%s8955_s0 + $0x64] ss:$16 sps:$4 sm:$0xff]  }
  0x86   :  { %v7436_v14 = vsel %vm6984_vm5, %v770_v7, %v892_v11  ;;  %v796_v16 = vshrl.u32 %v6357_v10, 16  ;;  %v799_v17 = vshll.u32 %v6357_v10, 16  ;;  %v822_v42 = vrot.slane %v820_v38, 7  ;;  %v6350_v60 = vld [vmem:[%s8954_s1 + $0x50c] ss:$16 sps:$4 sm:$0xff]  }
  0x87   :  { %3926 = vmatpush1.bf16.msra.mxu0 %v6291_v44  ;;  %4604 = vmatpush1.bf16.msra.mxu1 %v6294_v45  ;;  %894 = vst [vmem:[#allocation2 + $0x198] sm:$0xff] %v7436_v14  ;;  %v6338_v44 = vld [vmem:[%s8954_s1 + $0x4e4] ss:$16 sps:$4 sm:$0xff]   ;;  %v6341_v45 = vld [vmem:[%s8954_s1 + $0x4ec] ss:$16 sps:$4 sm:$0xff]  }
  0x88   :  { %3927 = vmatprep.subr.bf16.mxu0 %v6302_v46  ;;  %4605 = vmatprep.subr.bf16.mxu1 %v6305_v47  ;;  %v798_v22 = vrot.slane %v796_v16, 7  ;;  %v833_v46 = vor.u32 %v831_v37, %v830_v41  ;;  %v825_v47 = vor.u32 %v823_v39, %v822_v42  ;;  %v6354_v10 = vld [vmem:[%s8954_s1 + $0x528] ss:$16 sps:$4 sm:$0xff]   ;;  %v6362_v11 = vld [vmem:[%s8954_s1 + $0x544] ss:$16 sps:$4 sm:$0xff]  }
  0x89   :  { %v7580_v16 = vld [vmem:[%s8955_s0 + $0x20] ss:$16 sps:$4 sm:$0xff]   ;;  %v6398_v36 = vld [vmem:[%s8954_s1 + $0x5e4] ss:$16 sps:$4 sm:$0xff]   ;;  %v6401_v37 = vld [vmem:[%s8954_s1 + $0x5ec] ss:$16 sps:$4 sm:$0xff]  }
  0x8a   :  { %3853 = vmatmul.mubr.bf16.gmra.mrb[4].mxu0 %v7324_v15  ;;  %4531 = vmatmul.mubr.bf16.gmra.mrb[4].mxu1 %v7324_v15  ;;  %v889_v15 = vld [vmem:[#allocation2 + $0x190] sm:$0xff]  ;;  %v801_v26 = vor.u32 %v799_v17, %v798_v22  ;;  %v834_v53 = vsel %vm16_vm1, %v798_v22, %v833_v46  ;;  %v7514_v54 = vsel %vm16_vm1, %v790_v24, %v825_v47  ;;  %v6380_v22 = vld [vmem:[%s8954_s1 + $0x58c] ss:$16 sps:$4 sm:$0xff]   ;;  %v6399_v39 = vld [vmem:[%s8954_s1 + $0x5e8] ss:$16 sps:$4 sm:$0xff]  }
  0x8b   :  { %3928 = vmatpush1.bf16.msra.mxu0 %v6300_v61  ;;  %4606 = vmatpush1.bf16.msra.mxu1 %v6303_v49  ;;  %v7443_v18 = vsel %vm6984_vm5, %v763_v9, %v889_v15  ;;  %v6345_v61 = vld [vmem:[%s8954_s1 + $0x500] ss:$16 sps:$4 sm:$0xff]   ;;  %v6348_v49 = vld [vmem:[%s8954_s1 + $0x508] ss:$16 sps:$4 sm:$0xff]   ;;  %v7575_v15 = vld [vmem:[%s8955_s0 + $0x24] ss:$16 sps:$4 sm:$0xff]  }
  0x8c   :  { %3929 = vmatprep.subr.bf16.mxu0 %v6308_v1  ;;  %4607 = vmatprep.subr.bf16.mxu1 %v6311_v2  ;;  %891 = vst [vmem:[#allocation2 + $0x190] sm:$0xff] %v7443_v18  ;;  %v7467_v30 = vsel %vm16_vm1, %v767_v0, %v801_v26  ;;  %v6353_v0 = vld [vmem:[%s8954_s1 + $0x524] ss:$16 sps:$4 sm:$0xff]   ;;  %v6356_v1 = vld [vmem:[%s8954_s1 + $0x52c] ss:$16 sps:$4 sm:$0xff]  }
  0x8d   :  { %3862 = vmatprep.mubr.bf16.mxu0 %v7356_v33  ;;  %4540 = vmatprep.mubr.bf16.mxu1 %v7356_v33  ;;  %v6332_v33 = vld [vmem:[%s8954_s1 + $0x4c4] ss:$16 sps:$4 sm:$0xff]   ;;  %v6351_v9 = vld [vmem:[%s8954_s1 + $0x520] ss:$16 sps:$4 sm:$0xff]   ;;  %v6416_v47 = vld [vmem:[%s8954_s1 + $0x62c] ss:$16 sps:$4 sm:$0xff]  }
  0x8e   :  { %v6368_v17 = vld [vmem:[%s8954_s1 + $0x564] ss:$16 sps:$4 sm:$0xff]   ;;  %v6375_v24 = vld [vmem:[%s8954_s1 + $0x580] ss:$16 sps:$4 sm:$0xff]   ;;  %v6431_v59 = vld [vmem:[%s8954_s1 + $0x66c] ss:$16 sps:$4 sm:$0xff]  }
  0x8f   :  { %3930 = vmatpush1.bf16.msra.mxu0 %v6306_v5  ;;  %4608 = vmatpush1.bf16.msra.mxu1 %v6309_v6  ;;  %v7539_v5 = vld [vmem:[%s8955_s0] ss:$16 sps:$4 sm:$0xff]   ;;  %v7544_v6 = vld [vmem:[%s8955_s0 + $0x4] ss:$16 sps:$4 sm:$0xff]  }
  0x90   :  { %3931 = vmatprep.subr.bf16.mxu0 %v6317_v8  ;;  %4609 = vmatprep.subr.bf16.mxu1 %v6320_v13  ;;  %v7548_v8 = vsel %vm16_vm1, %v822_v42, %v857_v3  ;;  %v6360_v13 = vld [vmem:[%s8954_s1 + $0x540] ss:$16 sps:$4 sm:$0xff]   ;;  %v6383_v26 = vld [vmem:[%s8954_s1 + $0x5a4] ss:$16 sps:$4 sm:$0xff]  }
  0x91   :  { %v6396_v38 = vld [vmem:[%s8954_s1 + $0x5e0] ss:$16 sps:$4 sm:$0xff]   ;;  %v6407_v42 = vld [vmem:[%s8954_s1 + $0x604] ss:$16 sps:$4 sm:$0xff]  }
  0x92   :  { %3863 = vmatmul.mubr.bf16.gmra.mrb[8].mxu0 %v7359_v34  ;;  %4541 = vmatmul.mubr.bf16.gmra.mrb[8].mxu1 %v7359_v34  ;;  %v6335_v34 = vld [vmem:[%s8954_s1 + $0x4cc] ss:$16 sps:$4 sm:$0xff]   ;;  %v6413_v46 = vld [vmem:[%s8954_s1 + $0x624] ss:$16 sps:$4 sm:$0xff]   ;;  %v7776_v3 = vld [vmem:[%s8955_s0 + $0xe0] ss:$16 sps:$4 sm:$0xff]  }
  0x93   :  { %3932 = vmatpush1.bf16.msra.mxu0 %v6315_v21  ;;  %4610 = vmatpush1.bf16.msra.mxu1 %v6318_v23  ;;  %v6377_v21 = vld [vmem:[%s8954_s1 + $0x584] ss:$16 sps:$4 sm:$0xff]  }
  0x94   :  { %3933 = vmatprep.subr.bf16.mxu0 %v6323_v4  ;;  %4611 = vmatprep.subr.bf16.mxu1 %v6326_v25  ;;  %v7605_v23 = vld [vmem:[%s8955_s0 + $0x44] ss:$16 sps:$4 sm:$0xff]   ;;  %v7610_v4 = vld [vmem:[%s8955_s0 + $0x40] ss:$16 sps:$4 sm:$0xff]   ;;  %v6378_v25 = vld [vmem:[%s8954_s1 + $0x588] ss:$16 sps:$4 sm:$0xff]  }
  0x95   :  { %3872 = vmatprep.mubr.bf16.mxu0 %v7390_v55  ;;  %4550 = vmatprep.mubr.bf16.mxu1 %v7390_v55  ;;  %v860_v55 = vshrl.u32 %v6387_v48, 16  ;;  %v7701_v48 = vld [vmem:[%s8955_s0 + $0xa4] ss:$16 sps:$4 sm:$0xff]  }
  0x96   :  { %v6437_v63 = vld [vmem:[%s8954_s1 + $0x684] ss:$16 sps:$4 sm:$0xff]  }
  0x97   :  { %3934 = vmatpush1.bf16.msra.mxu0 %v6321_v27  ;;  %4612 = vmatpush1.bf16.msra.mxu1 %v6324_v28  ;;  %v862_v62 = vrot.slane %v860_v55, 7  ;;  %v6386_v27 = vld [vmem:[%s8954_s1 + $0x5ac] ss:$16 sps:$4 sm:$0xff]   ;;  %v6381_v28 = vld [vmem:[%s8954_s1 + $0x5a0] ss:$16 sps:$4 sm:$0xff]  }
  0x98   :  { %3935 = vmatprep.subr.bf16.mxu0 %v6332_v33  ;;  %4613 = vmatprep.subr.bf16.mxu1 %v6335_v34  ;;  %v7646_v33 = vld [vmem:[%s8955_s0 + $0x60] ss:$16 sps:$4 sm:$0xff]  }
  0x99   :  { %v865_v2 = vor.u32 %v863_v57, %v862_v62  ;;  %v6390_v34 = vld [vmem:[%s8954_s1 + $0x5c0] ss:$16 sps:$4 sm:$0xff]   ;;  %v6423_v57 = vld [vmem:[%s8954_s1 + $0x648] ss:$16 sps:$4 sm:$0xff]  }
  0x9a   :  { %3873 = vmatmul.mubr.bf16.gmra.mrb[12].mxu0 %v7393_v56  ;;  %4551 = vmatmul.mubr.bf16.gmra.mrb[12].mxu1 %v7393_v56  ;;  %v6347_v56 = vld [vmem:[%s8954_s1 + $0x504] ss:$16 sps:$4 sm:$0xff]   ;;  %v6420_v55 = vld [vmem:[%s8954_s1 + $0x640] ss:$16 sps:$4 sm:$0xff]   ;;  %v6429_v62 = vld [vmem:[%s8954_s1 + $0x668] ss:$16 sps:$4 sm:$0xff]  }
  0x9b   :  { %3936 = vmatpush1.bf16.msra.mxu0 %v6330_v40  ;;  %4614 = vmatpush1.bf16.msra.mxu1 %v6333_v43  ;;  %v866_v7 = vsel %vm16_vm1, %v830_v41, %v865_v2  ;;  %v7671_v40 = vld [vmem:[%s8955_s0 + $0x84] ss:$16 sps:$4 sm:$0xff]   ;;  %v7676_v41 = vld [vmem:[%s8955_s0 + $0x80] ss:$16 sps:$4 sm:$0xff]   ;;  %v6410_v43 = vld [vmem:[%s8954_s1 + $0x60c] ss:$16 sps:$4 sm:$0xff]  }
  0x9c   :  { %3937 = vmatprep.subr.bf16.mxu0 %v6338_v44  ;;  %4615 = vmatprep.subr.bf16.mxu1 %v6341_v45  ;;  %v6405_v44 = vld [vmem:[%s8954_s1 + $0x600] ss:$16 sps:$4 sm:$0xff]   ;;  %v6408_v45 = vld [vmem:[%s8954_s1 + $0x608] ss:$16 sps:$4 sm:$0xff]   ;;  %v7771_v2 = vld [vmem:[%s8955_s0 + $0xe4] ss:$16 sps:$4 sm:$0xff]  }
  0x9d   :  { %3882 = vmatprep.mubr.bf16.mxu0 %v7436_v14  ;;  %4560 = vmatprep.mubr.bf16.mxu1 %v7436_v14  ;;  %v6363_v14 = vld [vmem:[%s8954_s1 + $0x548] ss:$16 sps:$4 sm:$0xff]  }
  0x9f   :  { %3938 = vmatpush1.bf16.msra.mxu0 %v6336_v51  ;;  %4616 = vmatpush1.bf16.msra.mxu1 %v6339_v52  ;;  %v6411_v51 = vld [vmem:[%s8954_s1 + $0x620] ss:$16 sps:$4 sm:$0xff]   ;;  %v6414_v52 = vld [vmem:[%s8954_s1 + $0x628] ss:$16 sps:$4 sm:$0xff]  }
  0xa0   :  { %3939 = vmatprep.subr.bf16.mxu0 %v6347_v56  ;;  %4617 = vmatprep.subr.bf16.mxu1 %v6350_v60  ;;  %v7739_v56 = vld [vmem:[%s8955_s0 + $0xc4] ss:$16 sps:$4 sm:$0xff]   ;;  %v7744_v60 = vld [vmem:[%s8955_s0 + $0xc0] ss:$16 sps:$4 sm:$0xff]  }
  0xa2   :  { %3883 = vmatmul.mubr.bf16.gmra.mrb[16].mxu0 %v7443_v18  ;;  %4561 = vmatmul.mubr.bf16.gmra.mrb[16].mxu1 %v7443_v18  ;;  %v6371_v18 = vld [vmem:[%s8954_s1 + $0x56c] ss:$16 sps:$4 sm:$0xff]  }
  0xa3   :  { %3940 = vmatpush1.bf16.msra.mxu0 %v6345_v61  ;;  %4618 = vmatpush1.bf16.msra.mxu1 %v6348_v49  ;;  %v6426_v61 = vld [vmem:[%s8954_s1 + $0x660] ss:$16 sps:$4 sm:$0xff]   ;;  %v6440_v49 = vld [vmem:[%s8954_s1 + $0x68c] ss:$16 sps:$4 sm:$0xff]  }
  0xa4   :  { %3941 = vmatprep.subr.bf16.mxu0 %v6353_v0  ;;  %4619 = vmatprep.subr.bf16.mxu1 %v6356_v1  ;;  %v6435_v0 = vld [vmem:[%s8954_s1 + $0x680] ss:$16 sps:$4 sm:$0xff]   ;;  %v6438_v1 = vld [vmem:[%s8954_s1 + $0x688] ss:$16 sps:$4 sm:$0xff]  }
  0xa5   :  { %3892 = vmatprep.mubr.bf16.mxu0 %v7467_v30  ;;  %4570 = vmatprep.mubr.bf16.mxu1 %v7467_v30  ;;  %v6392_v30 = vld [vmem:[%s8954_s1 + $0x5c4] ss:$16 sps:$4 sm:$0xff]  }
  0xa7   :  { %3942 = vmatpush1.bf16.msra.mxu0 %v6351_v9  ;;  %4620 = vmatpush1.bf16.msra.mxu1 %v6354_v10  ;;  %v6452_v9 = vld [vmem:[%s8954_s1 + $0x6c4] ss:$16 sps:$4 sm:$0xff]   ;;  %v6455_v10 = vld [vmem:[%s8954_s1 + $0x6cc] ss:$16 sps:$4 sm:$0xff]  }
  0xa8   :  { %3943 = vmatprep.subr.bf16.mxu0 %v6362_v11  ;;  %4621 = vmatprep.subr.bf16.mxu1 %v6365_v12  ;;  %v7803_v11 = vld [vmem:[%s8955_s0 + $0x8] ss:$16 sps:$4 sm:$0xff]   ;;  %v7808_v12 = vld [vmem:[%s8955_s0 + $0xc] ss:$16 sps:$4 sm:$0xff]  }
  0xaa   :  { %3893 = vmatmul.mubr.bf16.gmra.mrb[20].mxu0 %v7482_v35  ;;  %4571 = vmatmul.mubr.bf16.gmra.mrb[20].mxu1 %v7482_v35  ;;  %v6393_v35 = vld [vmem:[%s8954_s1 + $0x5c8] ss:$16 sps:$4 sm:$0xff]  }
  0xab   :  { %3944 = vmatpush1.bf16.msra.mxu0 %v6360_v13  ;;  %4622 = vmatpush1.bf16.msra.mxu1 %v6363_v14  ;;  %v6450_v13 = vld [vmem:[%s8954_s1 + $0x6c0] ss:$16 sps:$4 sm:$0xff]   ;;  %v6453_v14 = vld [vmem:[%s8954_s1 + $0x6c8] ss:$16 sps:$4 sm:$0xff]  }
  0xac   :  { %3945 = vmatprep.subr.bf16.mxu0 %v6368_v17  ;;  %4623 = vmatprep.subr.bf16.mxu1 %v6371_v18  ;;  %v6456_v17 = vld [vmem:[%s8954_s1 + $0x6e0] ss:$16 sps:$4 sm:$0xff]   ;;  %v6459_v18 = vld [vmem:[%s8954_s1 + $0x6e8] ss:$16 sps:$4 sm:$0xff]  }
  0xad   :  { %3902 = vmatprep.mubr.bf16.mxu0 %v834_v53  ;;  %4580 = vmatprep.mubr.bf16.mxu1 %v834_v53  ;;  %v6422_v53 = vld [vmem:[%s8954_s1 + $0x644] ss:$16 sps:$4 sm:$0xff]  }
  0xaf   :  { %3946 = vmatpush1.bf16.msra.mxu0 %v6366_v19  ;;  %4624 = vmatpush1.bf16.msra.mxu1 %v6369_v20  ;;  %v6467_v19 = vld [vmem:[%s8954_s1 + $0x704] ss:$16 sps:$4 sm:$0xff]   ;;  %v6470_v20 = vld [vmem:[%s8954_s1 + $0x70c] ss:$16 sps:$4 sm:$0xff]  }
  0xb0   :  { %3947 = vmatprep.subr.bf16.mxu0 %v6377_v21  ;;  %4625 = vmatprep.subr.bf16.mxu1 %v6380_v22  ;;  %v7839_v21 = vld [vmem:[%s8955_s0 + $0x2c] ss:$16 sps:$4 sm:$0xff]   ;;  %v7844_v22 = vld [vmem:[%s8955_s0 + $0x28] ss:$16 sps:$4 sm:$0xff]  }
  0xb2   :  { %3903 = vmatmul.mubr.bf16.gmra.mrb[24].mxu0 %v7514_v54  ;;  %4581 = vmatmul.mubr.bf16.gmra.mrb[24].mxu1 %v7514_v54  ;;  %v6425_v54 = vld [vmem:[%s8954_s1 + $0x64c] ss:$16 sps:$4 sm:$0xff]  }
  0xb3   :  { %3948 = vmatpush1.bf16.msra.mxu0 %v6375_v24  ;;  %4626 = vmatpush1.bf16.msra.mxu1 %v6378_v25  ;;  %v6473_v24 = vld [vmem:[%s8954_s1 + $0x724] ss:$16 sps:$4 sm:$0xff]   ;;  %v6476_v25 = vld [vmem:[%s8954_s1 + $0x72c] ss:$16 sps:$4 sm:$0xff]  }
  0xb4   :  { %3949 = vmatprep.subr.bf16.mxu0 %v6383_v26  ;;  %4627 = vmatprep.subr.bf16.mxu1 %v6386_v27  ;;  %v6471_v26 = vld [vmem:[%s8954_s1 + $0x720] ss:$16 sps:$4 sm:$0xff]   ;;  %v6474_v27 = vld [vmem:[%s8954_s1 + $0x728] ss:$16 sps:$4 sm:$0xff]  }
  0xb5   :  { %3912 = vmatprep.mubr.bf16.mxu0 %v866_v7  ;;  %4590 = vmatprep.mubr.bf16.mxu1 %v866_v7  ;;  %v6441_v7 = vld [vmem:[%s8954_s1 + $0x6a0] ss:$16 sps:$4 sm:$0xff]  }
  0xb7   :  { %3950 = vmatpush1.bf16.msra.mxu0 %v6381_v28  ;;  %4628 = vmatpush1.bf16.msra.mxu1 %v6384_v29  ;;  %v7871_v28 = vld [vmem:[%s8955_s0 + $0x4c] ss:$16 sps:$4 sm:$0xff]   ;;  %v7876_v29 = vld [vmem:[%s8955_s0 + $0x48] ss:$16 sps:$4 sm:$0xff]  }
  0xb8   :  { %3951 = vmatprep.subr.bf16.mxu0 %v6392_v30  ;;  %4629 = vmatprep.subr.bf16.mxu1 %v6395_v31  ;;  %v6482_v30 = vld [vmem:[%s8954_s1 + $0x744] ss:$16 sps:$4 sm:$0xff]   ;;  %v6485_v31 = vld [vmem:[%s8954_s1 + $0x74c] ss:$16 sps:$4 sm:$0xff]  }
  0xba   :  { %3913 = vmatmul.mubr.bf16.gmra.mrb[28].mxu0 %v7548_v8  ;;  %4591 = vmatmul.mubr.bf16.gmra.mrb[28].mxu1 %v7548_v8  ;;  %v6444_v8 = vld [vmem:[%s8954_s1 + $0x6a8] ss:$16 sps:$4 sm:$0xff]  }
  0xbb   :  { %3952 = vmatpush1.bf16.msra.mxu0 %v6390_v34  ;;  %4630 = vmatpush1.bf16.msra.mxu1 %v6393_v35  ;;  %v6488_v34 = vld [vmem:[%s8954_s1 + $0x764] ss:$16 sps:$4 sm:$0xff]   ;;  %v6491_v35 = vld [vmem:[%s8954_s1 + $0x76c] ss:$16 sps:$4 sm:$0xff]  }
  0xbc   :  { %3953 = vmatprep.subr.bf16.mxu0 %v6398_v36  ;;  %4631 = vmatprep.subr.bf16.mxu1 %v6401_v37  ;;  %v7901_v36 = vld [vmem:[%s8955_s0 + $0x6c] ss:$16 sps:$4 sm:$0xff]   ;;  %v7906_v37 = vld [vmem:[%s8955_s0 + $0x68] ss:$16 sps:$4 sm:$0xff]  }
  0xbd   :  { %3955 = vmatprep.mubr.bf16.mxu0 %v7544_v6  ;;  %4633 = vmatprep.mubr.bf16.mxu1 %v7544_v6  ;;  %v6446_v6 = vld [vmem:[%s8954_s1 + $0x6ac] ss:$16 sps:$4 sm:$0xff]  }
  0xbf   :  { %3954 = vmatpush1.bf16.msra.mxu0 %v6396_v38  ;;  %4632 = vmatpush1.bf16.msra.mxu1 %v6399_v39  ;;  %v6486_v38 = vld [vmem:[%s8954_s1 + $0x760] ss:$16 sps:$4 sm:$0xff]   ;;  %v6489_v39 = vld [vmem:[%s8954_s1 + $0x768] ss:$16 sps:$4 sm:$0xff]  }
  0xc0   :  { %4036 = vmatprep.subr.bf16.mxu0 %v6407_v42  ;;  %4714 = vmatprep.subr.bf16.mxu1 %v6410_v43  ;;  %v6495_v42 = vld [vmem:[%s8954_s1 + $0x780] ss:$16 sps:$4 sm:$0xff]   ;;  %v6498_v43 = vld [vmem:[%s8954_s1 + $0x788] ss:$16 sps:$4 sm:$0xff]  }
  0xc2   :  { %3956 = vmatmul.mubr.bf16.vlgmr.msra.gmra.mrb[0].mxu0 %v7539_v5  ;;  %4634 = vmatmul.mubr.bf16.vlgmr.msra.gmra.mrb[0].mxu1 %v7539_v5  ;;  %v6443_v5 = vld [vmem:[%s8954_s1 + $0x6a4] ss:$16 sps:$4 sm:$0xff]  }
  0xc3   :  { %4037 = vmatpush1.bf16.msra.mxu0 %v6405_v44  ;;  %4715 = vmatpush1.bf16.msra.mxu1 %v6408_v45  ;;  %v6503_v44 = vld [vmem:[%s8954_s1 + $0x7a4] ss:$16 sps:$4 sm:$0xff]   ;;  %v6506_v45 = vld [vmem:[%s8954_s1 + $0x7ac] ss:$16 sps:$4 sm:$0xff]  }
  0xc4   :  { %4038 = vmatprep.subr.bf16.mxu0 %v6413_v46  ;;  %4716 = vmatprep.subr.bf16.mxu1 %v6416_v47  ;;  %v7939_v46 = vld [vmem:[%s8955_s0 + $0x8c] ss:$16 sps:$4 sm:$0xff]   ;;  %v7944_v47 = vld [vmem:[%s8955_s0 + $0x88] ss:$16 sps:$4 sm:$0xff]  }
  0xc5   :  { %3965 = vmatprep.mubr.bf16.mxu0 %v7575_v15  ;;  %4643 = vmatprep.mubr.bf16.mxu1 %v7575_v15  ;;  %v6458_v15 = vld [vmem:[%s8954_s1 + $0x6e4] ss:$16 sps:$4 sm:$0xff]  }
  0xc7   :  { %4039 = vmatpush1.bf16.msra.mxu0 %v6411_v51  ;;  %4717 = vmatpush1.bf16.msra.mxu1 %v6414_v52  ;;  %v6512_v51 = vld [vmem:[%s8954_s1 + $0x7c4] ss:$16 sps:$4 sm:$0xff]   ;;  %v6515_v52 = vld [vmem:[%s8954_s1 + $0x7cc] ss:$16 sps:$4 sm:$0xff]  }
  0xc8   :  { %4040 = vmatprep.subr.bf16.mxu0 %v6422_v53  ;;  %4718 = vmatprep.subr.bf16.mxu1 %v6425_v54  ;;  %v6510_v53 = vld [vmem:[%s8954_s1 + $0x7c0] ss:$16 sps:$4 sm:$0xff]   ;;  %v6513_v54 = vld [vmem:[%s8954_s1 + $0x7c8] ss:$16 sps:$4 sm:$0xff]  }
  0xca   :  { %3966 = vmatmul.mubr.bf16.gmra.mrb[4].mxu0 %v7580_v16  ;;  %4644 = vmatmul.mubr.bf16.gmra.mrb[4].mxu1 %v7580_v16  ;;  %v6461_v16 = vld [vmem:[%s8954_s1 + $0x6ec] ss:$16 sps:$4 sm:$0xff]  }
  0xcb   :  { %4041 = vmatpush1.bf16.msra.mxu0 %v6420_v55  ;;  %4719 = vmatpush1.bf16.msra.mxu1 %v6423_v57  ;;  %v7971_v55 = vld [vmem:[%s8955_s0 + $0xac] ss:$16 sps:$4 sm:$0xff]   ;;  %v7976_v57 = vld [vmem:[%s8955_s0 + $0xa8] ss:$16 sps:$4 sm:$0xff]  }
  0xcc   :  { %4042 = vmatprep.subr.bf16.mxu0 %v6428_v58  ;;  %4720 = vmatprep.subr.bf16.mxu1 %v6431_v59  ;;  %v6518_v58 = vld [vmem:[%s8954_s1 + $0x7e4] ss:$16 sps:$4 sm:$0xff]   ;;  %v6521_v59 = vld [vmem:[%s8954_s1 + $0x7ec] ss:$16 sps:$4 sm:$0xff]  }
  0xcd   :  { %3975 = vmatprep.mubr.bf16.mxu0 %v7605_v23  ;;  %4653 = vmatprep.mubr.bf16.mxu1 %v7605_v23  ;;  %v6465_v23 = vld [vmem:[%s8954_s1 + $0x700] ss:$16 sps:$4 sm:$0xff]  }
  0xcf   :  { %4043 = vmatpush1.bf16.msra.mxu0 %v6426_v61  ;;  %4721 = vmatpush1.bf16.msra.mxu1 %v6429_v62  ;;  %v6527_v61 = vld [vmem:[%s8954_s1 + $0x804] ss:$16 sps:$4 sm:$0xff]   ;;  %v6530_v62 = vld [vmem:[%s8954_s1 + $0x80c] ss:$16 sps:$4 sm:$0xff]  }
  0xd0   :  { %4044 = vmatprep.subr.bf16.mxu0 %v6437_v63  ;;  %4722 = vmatprep.subr.bf16.mxu1 %v6440_v49  ;;  %v8003_v63 = vld [vmem:[%s8955_s0 + $0xcc] ss:$16 sps:$4 sm:$0xff]   ;;  %v8008_v49 = vld [vmem:[%s8955_s0 + $0xc8] ss:$16 sps:$4 sm:$0xff]  }
  0xd2   :  { %3976 = vmatmul.mubr.bf16.gmra.mrb[8].mxu0 %v7610_v4  ;;  %4654 = vmatmul.mubr.bf16.gmra.mrb[8].mxu1 %v7610_v4  ;;  %v6468_v4 = vld [vmem:[%s8954_s1 + $0x708] ss:$16 sps:$4 sm:$0xff]  }
  0xd3   :  { %4045 = vmatpush1.bf16.msra.mxu0 %v6435_v0  ;;  %4723 = vmatpush1.bf16.msra.mxu1 %v6438_v1  ;;  %v6525_v0 = vld [vmem:[%s8954_s1 + $0x800] ss:$16 sps:$4 sm:$0xff]   ;;  %v6528_v1 = vld [vmem:[%s8954_s1 + $0x808] ss:$16 sps:$4 sm:$0xff]  }
  0xd4   :  { %4046 = vmatprep.subr.bf16.mxu0 %v6443_v5  ;;  %4724 = vmatprep.subr.bf16.mxu1 %v6446_v6  ;;  %v6531_v5 = vld [vmem:[%s8954_s1 + $0x820] ss:$16 sps:$4 sm:$0xff]   ;;  %v6534_v6 = vld [vmem:[%s8954_s1 + $0x828] ss:$16 sps:$4 sm:$0xff]  }
  0xd5   :  { %3985 = vmatprep.mubr.bf16.mxu0 %v7641_v32  ;;  %4663 = vmatprep.mubr.bf16.mxu1 %v7641_v32  ;;  %v6480_v32 = vld [vmem:[%s8954_s1 + $0x740] ss:$16 sps:$4 sm:$0xff]  }
  0xd7   :  { %4047 = vmatpush1.bf16.msra.mxu0 %v6441_v7  ;;  %4725 = vmatpush1.bf16.msra.mxu1 %v6444_v8  ;;  %v6542_v7 = vld [vmem:[%s8954_s1 + $0x844] ss:$16 sps:$4 sm:$0xff]   ;;  %v6545_v8 = vld [vmem:[%s8954_s1 + $0x84c] ss:$16 sps:$4 sm:$0xff]  }
  0xd8   :  { %4048 = vmatprep.subr.bf16.mxu0 %v6452_v9  ;;  %4726 = vmatprep.subr.bf16.mxu1 %v6455_v10  ;;  %v8039_v9 = vld [vmem:[%s8955_s0 + $0xec] ss:$16 sps:$4 sm:$0xff]   ;;  %v8044_v10 = vld [vmem:[%s8955_s0 + $0xe8] ss:$16 sps:$4 sm:$0xff]  }
  0xda   :  { %3986 = vmatmul.mubr.bf16.gmra.mrb[12].mxu0 %v7646_v33  ;;  %4664 = vmatmul.mubr.bf16.gmra.mrb[12].mxu1 %v7646_v33  ;;  %v6483_v33 = vld [vmem:[%s8954_s1 + $0x748] ss:$16 sps:$4 sm:$0xff]  }
  0xdb   :  { %4049 = vmatpush1.bf16.msra.mxu0 %v6450_v13  ;;  %4727 = vmatpush1.bf16.msra.mxu1 %v6453_v14  ;;  %v6548_v13 = vld [vmem:[%s8954_s1 + $0x864] ss:$16 sps:$4 sm:$0xff]   ;;  %v6551_v14 = vld [vmem:[%s8954_s1 + $0x86c] ss:$16 sps:$4 sm:$0xff]  }
  0xdc   :  { %4050 = vmatprep.subr.bf16.mxu0 %v6458_v15  ;;  %4728 = vmatprep.subr.bf16.mxu1 %v6461_v16  ;;  %v6546_v15 = vld [vmem:[%s8954_s1 + $0x860] ss:$16 sps:$4 sm:$0xff]   ;;  %v6549_v16 = vld [vmem:[%s8954_s1 + $0x868] ss:$16 sps:$4 sm:$0xff]  }
  0xdd   :  { %3995 = vmatprep.mubr.bf16.mxu0 %v7671_v40  ;;  %4673 = vmatprep.mubr.bf16.mxu1 %v7671_v40  ;;  %v6497_v40 = vld [vmem:[%s8954_s1 + $0x784] ss:$16 sps:$4 sm:$0xff]  }
  0xdf   :  { %4051 = vmatpush1.bf16.msra.mxu0 %v6456_v17  ;;  %4729 = vmatpush1.bf16.msra.mxu1 %v6459_v18  ;;  %v6557_v17 = vld [vmem:[%s8954_s1 + $0x884] ss:$16 sps:$4 sm:$0xff]   ;;  %v6560_v18 = vld [vmem:[%s8954_s1 + $0x88c] ss:$16 sps:$4 sm:$0xff]  }
  0xe0   :  { %4052 = vmatprep.subr.bf16.mxu0 %v6467_v19  ;;  %4730 = vmatprep.subr.bf16.mxu1 %v6470_v20  ;;  %v6642_v19 = vld [vmem:[%s8955_s0] ss:$16 sps:$4 sm:$0xff]   ;;  %v6644_v20 = vld [vmem:[%s8955_s0 + $0x4] ss:$16 sps:$4 sm:$0xff]  }
  0xe2   :  { %3996 = vmatmul.mubr.bf16.gmra.mrb[16].mxu0 %v7676_v41  ;;  %4674 = vmatmul.mubr.bf16.gmra.mrb[16].mxu1 %v7676_v41  ;;  %v6500_v41 = vld [vmem:[%s8954_s1 + $0x78c] ss:$16 sps:$4 sm:$0xff]  }
  0xe3   :  { %4053 = vmatpush1.bf16.msra.mxu0 %v6465_v23  ;;  %4731 = vmatpush1.bf16.msra.mxu1 %v6468_v4  ;;  %v483_v23 = vshrl.u32 %v6644_v20, 16  ;;  %v485_v4 = vshll.u32 %v6644_v20, 16  ;;  %v6588_v20 = vld [vmem:[%s8954_s1 + $0x908] ss:$16 sps:$4 sm:$0xff]  }
  0xe4   :  { %4054 = vmatprep.subr.bf16.mxu0 %v6473_v24  ;;  %4732 = vmatprep.subr.bf16.mxu1 %v6476_v25  ;;  %v471_v24 = vshrl.u32 %v6642_v19, 16  ;;  %v473_v25 = vshll.u32 %v6642_v19, 16 }
  0xe5   :  { %4005 = vmatprep.mubr.bf16.mxu0 %v7701_v48  ;;  %4683 = vmatprep.mubr.bf16.mxu1 %v7701_v48  ;;  %v6501_v48 = vld [vmem:[%s8954_s1 + $0x7a0] ss:$16 sps:$4 sm:$0xff]  }
  0xe7   :  { %4055 = vmatpush1.bf16.msra.mxu0 %v6471_v26  ;;  %4733 = vmatpush1.bf16.msra.mxu1 %v6474_v27  ;;  %v6555_v26 = vld [vmem:[%s8954_s1 + $0x880] ss:$16 sps:$4 sm:$0xff]   ;;  %v6558_v27 = vld [vmem:[%s8954_s1 + $0x888] ss:$16 sps:$4 sm:$0xff]  }
  0xe8   :  { %4056 = vmatprep.subr.bf16.mxu0 %v6482_v30  ;;  %4734 = vmatprep.subr.bf16.mxu1 %v6485_v31 }
  0xea   :  { %4006 = vmatmul.mubr.bf16.gmra.mrb[20].mxu0 %v7706_v50  ;;  %4684 = vmatmul.mubr.bf16.gmra.mrb[20].mxu1 %v7706_v50  ;;  %v6504_v50 = vld [vmem:[%s8954_s1 + $0x7a8] ss:$16 sps:$4 sm:$0xff]  }
  0xeb   :  { %4057 = vmatpush1.bf16.msra.mxu0 %v6480_v32  ;;  %4735 = vmatpush1.bf16.msra.mxu1 %v6483_v33  ;;  %v487_v32 = vrot.slane %v485_v4, 1  ;;  %v475_v33 = vrot.slane %v473_v25, 1  ;;  %v6596_v4 = vld [vmem:[%s8954_s1 + $0x92c] ss:$16 sps:$4 sm:$0xff]  }
  0xec   :  { %4058 = vmatprep.subr.bf16.mxu0 %v6488_v34  ;;  %4736 = vmatprep.subr.bf16.mxu1 %v6491_v35  ;;  %v6566_v34 = vld [vmem:[%s8954_s1 + $0x8ac] ss:$16 sps:$4 sm:$0xff]  }
  0xed   :  { %4015 = vmatprep.mubr.bf16.mxu0 %v7739_v56  ;;  %4693 = vmatprep.mubr.bf16.mxu1 %v7739_v56  ;;  %v6516_v56 = vld [vmem:[%s8954_s1 + $0x7e0] ss:$16 sps:$4 sm:$0xff]  }
  0xef   :  { %4059 = vmatpush1.bf16.msra.mxu0 %v6486_v38  ;;  %4737 = vmatpush1.bf16.msra.mxu1 %v6489_v39  ;;  %v6561_v39 = vld [vmem:[%s8954_s1 + $0x8a0] ss:$16 sps:$4 sm:$0xff]  }
  0xf0   :  { %4060 = vmatprep.subr.bf16.mxu0 %v6497_v40  ;;  %4738 = vmatprep.subr.bf16.mxu1 %v6500_v41  ;;  %v488_v40 = vor.u32 %v487_v32, %v483_v23  ;;  %v476_v41 = vor.u32 %v475_v33, %v471_v24  ;;  %v6591_v32 = vld [vmem:[%s8954_s1 + $0x920] ss:$16 sps:$4 sm:$0xff]   ;;  %v6594_v33 = vld [vmem:[%s8954_s1 + $0x928] ss:$16 sps:$4 sm:$0xff]  }
  0xf2   :  { %4016 = vmatmul.mubr.bf16.gmra.mrb[24].mxu0 %v7744_v60  ;;  %4694 = vmatmul.mubr.bf16.gmra.mrb[24].mxu1 %v7744_v60  ;;  %v6519_v60 = vld [vmem:[%s8954_s1 + $0x7e8] ss:$16 sps:$4 sm:$0xff]  }
  0xf3   :  { %4061 = vmatpush1.bf16.msra.mxu0 %v6495_v42  ;;  %4739 = vmatpush1.bf16.msra.mxu1 %v6498_v43  ;;  %v6564_v43 = vld [vmem:[%s8954_s1 + $0x8a8] ss:$16 sps:$4 sm:$0xff]  }
  0xf4   :  { %4062 = vmatprep.subr.bf16.mxu0 %v6503_v44  ;;  %4740 = vmatprep.subr.bf16.mxu1 %v6506_v45  ;;  %v6572_v44 = vld [vmem:[%s8954_s1 + $0x8c4] ss:$16 sps:$4 sm:$0xff]  }
  0xf5   :  { %4025 = vmatprep.mubr.bf16.mxu0 %v7771_v2  ;;  %4703 = vmatprep.mubr.bf16.mxu1 %v7771_v2  ;;  %v6533_v2 = vld [vmem:[%s8954_s1 + $0x824] ss:$16 sps:$4 sm:$0xff]  }
  0xf7   :  { %4063 = vmatpush1.bf16.msra.mxu0 %v6501_v48  ;;  %4741 = vmatpush1.bf16.msra.mxu1 %v6504_v50 }
  0xf8   :  { %4064 = vmatprep.subr.bf16.mxu0 %v6512_v51  ;;  %4742 = vmatprep.subr.bf16.mxu1 %v6515_v52  ;;  %v6662_v51 = vld [vmem:[%s8955_s0 + $0x40] ss:$16 sps:$4 sm:$0xff]   ;;  %v6575_v52 = vld [vmem:[%s8954_s1 + $0x8cc] ss:$16 sps:$4 sm:$0xff]  }
  0xfa   :  { %4026 = vmatmul.mubr.bf16.gmra.mrb[28].mxu0 %v7776_v3  ;;  %4704 = vmatmul.mubr.bf16.gmra.mrb[28].mxu1 %v7776_v3  ;;  %v6536_v3 = vld [vmem:[%s8954_s1 + $0x82c] ss:$16 sps:$4 sm:$0xff]  }
  0xfb   :  { %4065 = vmatpush1.bf16.msra.mxu0 %v6510_v53  ;;  %4743 = vmatpush1.bf16.msra.mxu1 %v6513_v54 }
  0xfc   :  { %4066 = vmatprep.subr.bf16.mxu0 %v6518_v58  ;;  %4744 = vmatprep.subr.bf16.mxu1 %v6521_v59  ;;  %v522_v59 = vshll.u32 %v6662_v51, 16 }
  0xfd   :  { %4068 = vmatprep.mubr.bf16.mxu0 %v7808_v12  ;;  %4746 = vmatprep.mubr.bf16.mxu1 %v7808_v12  ;;  %v6543_v12 = vld [vmem:[%s8954_s1 + $0x848] ss:$16 sps:$4 sm:$0xff]  }
  0xff   :  { %4067 = vmatpush1.bf16.msra.mxu0 %v6516_v56  ;;  %4745 = vmatpush1.bf16.msra.mxu1 %v6519_v60  ;;  %v6570_v56 = vld [vmem:[%s8954_s1 + $0x8c0] ss:$16 sps:$4 sm:$0xff]   ;;  %v6573_v60 = vld [vmem:[%s8954_s1 + $0x8c8] ss:$16 sps:$4 sm:$0xff]  }
 0x100   :  { %4149 = vmatprep.subr.bf16.mxu0 %v6527_v61  ;;  %4827 = vmatprep.subr.bf16.mxu1 %v6530_v62  ;;  %v6578_v61 = vld [vmem:[%s8954_s1 + $0x8e4] ss:$16 sps:$4 sm:$0xff]  }
 0x102   :  { %4069 = vmatmul.mubr.bf16.vlgmr.msra.gmra.mrb[0].mxu0 %v7803_v11  ;;  %4747 = vmatmul.mubr.bf16.vlgmr.msra.gmra.mrb[0].mxu1 %v7803_v11  ;;  %v6540_v11 = vld [vmem:[%s8954_s1 + $0x840] ss:$16 sps:$4 sm:$0xff]  }
 0x103   :  { %4150 = vmatpush1.bf16.msra.mxu0 %v6525_v0  ;;  %4828 = vmatpush1.bf16.msra.mxu1 %v6528_v1  ;;  %v6581_v0 = vld [vmem:[%s8954_s1 + $0x8ec] ss:$16 sps:$4 sm:$0xff]  }
 0x104   :  { %4151 = vmatprep.subr.bf16.mxu0 %v6533_v2  ;;  %4829 = vmatprep.subr.bf16.mxu1 %v6536_v3  ;;  %v550_v2 = vshrl.u32 %v6662_v51, 16  ;;  %v6576_v3 = vld [vmem:[%s8954_s1 + $0x8e0] ss:$16 sps:$4 sm:$0xff]   ;;  %v6609_v51 = vld [vmem:[%s8954_s1 + $0x968] ss:$16 sps:$4 sm:$0xff]  }
 0x105   :  { %4078 = vmatprep.mubr.bf16.mxu0 %v7839_v21  ;;  %4756 = vmatprep.mubr.bf16.mxu1 %v7839_v21  ;;  %v6645_v21 = vld [vmem:[%s8955_s0 + $0x20] ss:$16 sps:$4 sm:$0xff]  }
 0x106   :  { %v478_v31 = vshll.u32 %v6645_v21, 16  ;;  %v518_v45 = vshrl.u32 %v6645_v21, 16  ;;  %v6593_v21 = vld [vmem:[%s8954_s1 + $0x924] ss:$16 sps:$4 sm:$0xff]  }
 0x107   :  { %4152 = vmatpush1.bf16.msra.mxu0 %v6531_v5  ;;  %4830 = vmatpush1.bf16.msra.mxu1 %v6534_v6 }
 0x108   :  { %4153 = vmatprep.subr.bf16.mxu0 %v6542_v7  ;;  %4831 = vmatprep.subr.bf16.mxu1 %v6545_v8  ;;  %v480_v38 = vrot.slane %v478_v31, 1  ;;  %v6675_v7 = vld [vmem:[%s8955_s0 + $0x64] ss:$16 sps:$4 sm:$0xff]   ;;  %v6677_v8 = vld [vmem:[%s8955_s0 + $0x60] ss:$16 sps:$4 sm:$0xff]  }
 0x109   :  { %v582_v19 = vshrl.u32 %v6677_v8, 16 }
 0x10a   :  { %4079 = vmatmul.mubr.bf16.gmra.mrb[4].mxu0 %v7844_v22  ;;  %4757 = vmatmul.mubr.bf16.gmra.mrb[4].mxu1 %v7844_v22  ;;  %v6647_v22 = vld [vmem:[%s8955_s0 + $0x24] ss:$16 sps:$4 sm:$0xff]   ;;  %v8115_v50 = vsel %vm469_vm6, %v476_v41, %v480_v38  ;;  %v520_v58 = vor.u32 %v518_v45, %v480_v38  ;;  %v6600_v38 = vld [vmem:[%s8954_s1 + $0x940] ss:$16 sps:$4 sm:$0xff]   ;;  %v6611_v41 = vld [vmem:[%s8954_s1 + $0x96c] ss:$16 sps:$4 sm:$0xff]  }
 0x10b   :  { %4154 = vmatpush1.bf16.msra.mxu0 %v6540_v11  ;;  %4832 = vmatpush1.bf16.msra.mxu1 %v6543_v12  ;;  %v490_v30 = vshll.u32 %v6647_v22, 16  ;;  %v526_v42 = vshrl.u32 %v6647_v22, 16  ;;  %v6579_v11 = vld [vmem:[%s8954_s1 + $0x8e8] ss:$16 sps:$4 sm:$0xff]   ;;  %v6587_v12 = vld [vmem:[%s8954_s1 + $0x904] ss:$16 sps:$4 sm:$0xff]  }
 0x10c   :  { %4155 = vmatprep.subr.bf16.mxu0 %v6548_v13  ;;  %4833 = vmatprep.subr.bf16.mxu1 %v6551_v14  ;;  %v562_v14 = vshll.u32 %v6675_v7, 16  ;;  %v6707_v45 = vld [vmem:[%s8955_s0 + $0xa0] ss:$16 sps:$4 sm:$0xff]  }
 0x10d   :  { %4088 = vmatprep.mubr.bf16.mxu0 %v7871_v28  ;;  %4766 = vmatprep.mubr.bf16.mxu1 %v7871_v28  ;;  %v6563_v28 = vld [vmem:[%s8954_s1 + $0x8a4] ss:$16 sps:$4 sm:$0xff]   ;;  %v492_v35 = vrot.slane %v490_v30, 1 }
 0x10e   :  { %v564_v22 = vrot.slane %v562_v14, 1  ;;  %v623_v30 = vld [vmem:[#allocation2 + $0x160] sm:$0xff] }
 0x10f   :  { %4156 = vmatpush1.bf16.msra.mxu0 %v6546_v15  ;;  %4834 = vmatpush1.bf16.msra.mxu1 %v6549_v16  ;;  %v8112_v48 = vsel %vm469_vm6, %v488_v40, %v492_v35  ;;  %v528_v53 = vor.u32 %v526_v42, %v492_v35  ;;  %v554_v16 = vshll.u32 %v6677_v8, 16  ;;  %v6605_v35 = vld [vmem:[%s8954_s1 + $0x94c] ss:$16 sps:$4 sm:$0xff]   ;;  %v6608_v40 = vld [vmem:[%s8954_s1 + $0x964] ss:$16 sps:$4 sm:$0xff]  }
 0x110   :  { %4157 = vmatprep.subr.bf16.mxu0 %v6557_v17  ;;  %4835 = vmatprep.subr.bf16.mxu1 %v6560_v18  ;;  %v6585_v17 = vld [vmem:[%s8954_s1 + $0x900] ss:$16 sps:$4 sm:$0xff]   ;;  %v585_v18 = vshrl.u32 %v6675_v7, 16 }
 0x111   :  { %v556_v23 = vrot.slane %v554_v16, 1  ;;  %v6626_v16 = vld [vmem:[%s8954_s1 + $0x9ac] ss:$16 sps:$4 sm:$0xff]   ;;  %v6729_v42 = vld [vmem:[%s8954_s1 + $0xb60] ss:$16 sps:$4 sm:$0xff]  }
 0x112   :  { %4089 = vmatmul.mubr.bf16.gmra.mrb[8].mxu0 %v7876_v29  ;;  %4767 = vmatmul.mubr.bf16.gmra.mrb[8].mxu1 %v7876_v29  ;;  %v6660_v29 = vld [vmem:[%s8955_s0 + $0x44] ss:$16 sps:$4 sm:$0xff]  }
 0x113   :  { %4158 = vmatpush1.bf16.msra.mxu0 %v6555_v26  ;;  %4836 = vmatpush1.bf16.msra.mxu1 %v6558_v27  ;;  %v530_v54 = vshll.u32 %v6660_v29, 16  ;;  %v558_v1 = vshrl.u32 %v6660_v29, 16  ;;  %v587_v26 = vor.u32 %v585_v18, %v564_v22  ;;  %v626_v27 = vld [vmem:[#allocation2 + $0x168] sm:$0xff]  ;;  %v584_v31 = vor.u32 %v582_v19, %v556_v23  ;;  %v6606_v29 = vld [vmem:[%s8954_s1 + $0x960] ss:$16 sps:$4 sm:$0xff]  }
 0x114   :  { %4159 = vmatprep.subr.bf16.mxu0 %v6563_v28  ;;  %4837 = vmatprep.subr.bf16.mxu1 %v6566_v34  ;;  %v6720_v18 = vld [vmem:[%s8955_s0 + $0xc4] ss:$16 sps:$4 sm:$0xff]   ;;  %v6722_v19 = vld [vmem:[%s8955_s0 + $0xc0] ss:$16 sps:$4 sm:$0xff]  }
 0x115   :  { %4098 = vmatprep.mubr.bf16.mxu0 %v7901_v36  ;;  %4776 = vmatprep.mubr.bf16.mxu1 %v7901_v36  ;;  %v532_v62 = vrot.slane %v530_v54, 1  ;;  %v524_v36 = vrot.slane %v522_v59, 1  ;;  %v627_v28 = vsel %vm8179_vm7, %v587_v26, %v626_v27  ;;  %v624_v34 = vsel %vm8179_vm7, %v584_v31, %v623_v30  ;;  %v6617_v54 = vld [vmem:[%s8954_s1 + $0x984] ss:$16 sps:$4 sm:$0xff]   ;;  %v6635_v27 = vld [vmem:[%s8954_s1 + $0x9cc] ss:$16 sps:$4 sm:$0xff]  }
 0x116   :  { %628 = vst [vmem:[#allocation2 + $0x168] sm:$0xff] %v627_v28  ;;  %625 = vst [vmem:[#allocation2 + $0x160] sm:$0xff] %v624_v34  ;;  %v1151_v26 = vshll.u32 %v6722_v19, 16  ;;  %v6630_v30 = vld [vmem:[%s8954_s1 + $0x9c0] ss:$16 sps:$4 sm:$0xff]   ;;  %v1179_v34 = vshrl.u32 %v6722_v19, 16 }
 0x117   :  { %4160 = vmatpush1.bf16.msra.mxu0 %v6561_v39  ;;  %4838 = vmatpush1.bf16.msra.mxu1 %v6564_v43  ;;  %v8144_v5 = vsel %vm469_vm6, %v528_v53, %v532_v62  ;;  %v8147_v6 = vsel %vm469_vm6, %v520_v58, %v524_v36  ;;  %v560_v13 = vor.u32 %v558_v1, %v532_v62  ;;  %v6603_v39 = vld [vmem:[%s8954_s1 + $0x948] ss:$16 sps:$4 sm:$0xff]   ;;  %v6704_v43 = vld [vmem:[%s8955_s0 + $0xa4] ss:$16 sps:$4 sm:$0xff]   ;;  %v6620_v62 = vld [vmem:[%s8954_s1 + $0x98c] ss:$16 sps:$4 sm:$0xff]  }
 0x118   :  { %4161 = vmatprep.subr.bf16.mxu0 %v6572_v44  ;;  %4839 = vmatprep.subr.bf16.mxu1 %v6575_v52  ;;  %v552_v15 = vor.u32 %v550_v2, %v524_v36  ;;  %v6706_v44 = vld [vmem:[%s8955_s0 + $0x80] ss:$16 sps:$4 sm:$0xff]   ;;  %v1119_v59 = vshll.u32 %v6704_v43, 16  ;;  %v1153_v28 = vrot.slane %v1151_v26, 1 }
 0x119   :  { %v8187_v24 = vsel %vm469_vm6, %v560_v13, %v564_v22  ;;  %v6623_v13 = vld [vmem:[%s8954_s1 + $0x9a4] ss:$16 sps:$4 sm:$0xff]  }
 0x11a   :  { %4099 = vmatmul.mubr.bf16.gmra.mrb[12].mxu0 %v7906_v37  ;;  %4777 = vmatmul.mubr.bf16.gmra.mrb[12].mxu1 %v7906_v37  ;;  %v6590_v37 = vld [vmem:[%s8954_s1 + $0x90c] ss:$16 sps:$4 sm:$0xff]   ;;  %v8190_v25 = vsel %vm469_vm6, %v552_v15, %v556_v23  ;;  %v1121_v2 = vrot.slane %v1119_v59, 1  ;;  %v1147_v15 = vshrl.u32 %v6707_v45, 16  ;;  %v1159_v23 = vshll.u32 %v6720_v18, 16 }
 0x11b   :  { %4162 = vmatpush1.bf16.msra.mxu0 %v6570_v56  ;;  %4840 = vmatpush1.bf16.msra.mxu1 %v6573_v60  ;;  %v1100_v56 = vshrl.u32 %v6706_v44, 16  ;;  %v1102_v60 = vshll.u32 %v6706_v44, 16  ;;  %v1181_v44 = vor.u32 %v1179_v34, %v1153_v28 }
 0x11c   :  { %4163 = vmatprep.subr.bf16.mxu0 %v6578_v61  ;;  %4841 = vmatprep.subr.bf16.mxu1 %v6581_v0  ;;  %v1107_v61 = vshll.u32 %v6707_v45, 16  ;;  %v1161_v31 = vrot.slane %v1159_v23, 1 }
 0x11d   :  { %4108 = vmatprep.mubr.bf16.mxu0 %v7939_v46  ;;  %4786 = vmatprep.mubr.bf16.mxu1 %v7939_v46  ;;  %v641_v58 = vld [vmem:[#allocation2 + $0x168] sm:$0x80]  ;;  %v638_v0 = vld [vmem:[#allocation2 + $0x160] sm:$0x80] }
 0x11e   :  { %v642_v36 = vsel %vm8225_vm10, 0, %v641_v58  ;;  %v639_v1 = vsel %vm8225_vm10, 0, %v638_v0  ;;  %v1109_v7 = vrot.slane %v1107_v61, 1  ;;  %v6648_v58 = vld [vmem:[%s8954_s1 + $0xa00] ss:$16 sps:$4 sm:$0xff]  }
 0x11f   :  { %4164 = vmatpush1.bf16.msra.mxu0 %v6576_v3  ;;  %4842 = vmatpush1.bf16.msra.mxu1 %v6579_v11  ;;  %643 = vst [vmem:[#allocation2 + $0x168] sm:$0x80] %v642_v36  ;;  %v1104_v3 = vrot.slane %v1102_v60, 1  ;;  %640 = vst [vmem:[#allocation2 + $0x160] sm:$0x80] %v639_v1  ;;  %v1254_v36 = vld [vmem:[#allocation2 + $0x2e8] sm:$0xff] }
 0x120   :  { %4165 = vmatprep.subr.bf16.mxu0 %v6587_v12  ;;  %4843 = vmatprep.subr.bf16.mxu1 %v6590_v37  ;;  %v6615_v11 = vld [vmem:[%s8954_s1 + $0x980] ss:$16 sps:$4 sm:$0xff]   ;;  %v6618_v12 = vld [vmem:[%s8954_s1 + $0x988] ss:$16 sps:$4 sm:$0xff]   ;;  %v6659_v1 = vld [vmem:[%s8954_s1 + $0xa2c] ss:$16 sps:$4 sm:$0xff]  }
 0x121   :  { %v1105_v37 = vor.u32 %v1104_v3, %v1100_v56  ;;  %v6651_v56 = vld [vmem:[%s8954_s1 + $0xa08] ss:$16 sps:$4 sm:$0xff]   ;;  %v1251_v0 = vld [vmem:[#allocation2 + $0x2e0] sm:$0xff]  ;;  %v6719_v46 = vld [vmem:[%s8954_s1 + $0xb2c] ss:$16 sps:$4 sm:$0xff]  }
 0x122   :  { %4109 = vmatmul.mubr.bf16.gmra.mrb[16].mxu0 %v7944_v47  ;;  %4787 = vmatmul.mubr.bf16.gmra.mrb[16].mxu1 %v7944_v47  ;;  %v6602_v47 = vld [vmem:[%s8954_s1 + $0x944] ss:$16 sps:$4 sm:$0xff]  }
 0x123   :  { %4166 = vmatpush1.bf16.msra.mxu0 %v6585_v17  ;;  %4844 = vmatpush1.bf16.msra.mxu1 %v6588_v20  ;;  %v8277_v17 = vsel %vm469_vm6, %v1105_v37, %v1109_v7  ;;  %v6621_v20 = vld [vmem:[%s8954_s1 + $0x9a0] ss:$16 sps:$4 sm:$0xff]   ;;  %v6666_v37 = vld [vmem:[%s8954_s1 + $0xa48] ss:$16 sps:$4 sm:$0xff]  }
 0x124   :  { %4167 = vmatprep.subr.bf16.mxu0 %v6593_v21  ;;  %4845 = vmatprep.subr.bf16.mxu1 %v6596_v4  ;;  %v6624_v21 = vld [vmem:[%s8954_s1 + $0x9a8] ss:$16 sps:$4 sm:$0xff]   ;;  %v1149_v4 = vor.u32 %v1147_v15, %v1109_v7  ;;  %v6654_v7 = vld [vmem:[%s8954_s1 + $0xa20] ss:$16 sps:$4 sm:$0xff]   ;;  %v6764_v15 = vld [vmem:[%s8955_s0 + $0xc] ss:$16 sps:$4 sm:$0xff]  }
 0x125   :  { %4118 = vmatprep.mubr.bf16.mxu0 %v7971_v55  ;;  %4796 = vmatprep.mubr.bf16.mxu1 %v7971_v55  ;;  %v6702_v55 = vld [vmem:[%s8955_s0 + $0x84] ss:$16 sps:$4 sm:$0xff]   ;;  %v507_v23 = vshrl.u32 %v6764_v15, 16 }
 0x126   :  { %v1112_v52 = vshrl.u32 %v6702_v55, 16  ;;  %v1114_v53 = vshll.u32 %v6702_v55, 16 }
 0x127   :  { %4168 = vmatpush1.bf16.msra.mxu0 %v6591_v32  ;;  %4846 = vmatpush1.bf16.msra.mxu1 %v6594_v33  ;;  %v6633_v32 = vld [vmem:[%s8954_s1 + $0x9c8] ss:$16 sps:$4 sm:$0xff]   ;;  %v1187_v33 = vshrl.u32 %v6720_v18, 16  ;;  %v6767_v18 = vld [vmem:[%s8955_s0 + $0x2c] ss:$16 sps:$4 sm:$0xff]  }
 0x128   :  { %4169 = vmatprep.subr.bf16.mxu0 %v6602_v47  ;;  %4847 = vmatprep.subr.bf16.mxu1 %v6605_v35  ;;  %v6638_v47 = vld [vmem:[%s8954_s1 + $0x9e4] ss:$16 sps:$4 sm:$0xff]   ;;  %v514_v26 = vshll.u32 %v6767_v18, 16 }
 0x129   :  { %v1189_v55 = vor.u32 %v1187_v33, %v1161_v31  ;;  %v542_v33 = vshrl.u32 %v6767_v18, 16 }
 0x12a   :  { %4119 = vmatmul.mubr.bf16.gmra.mrb[20].mxu0 %v7976_v57  ;;  %4797 = vmatmul.mubr.bf16.gmra.mrb[20].mxu1 %v7976_v57  ;;  %v1116_v57 = vrot.slane %v1114_v53, 1 }
 0x12b   :  { %4170 = vmatpush1.bf16.msra.mxu0 %v6600_v38  ;;  %4848 = vmatpush1.bf16.msra.mxu1 %v6603_v39  ;;  %v8317_v38 = vsel %vm469_vm6, %v1149_v4, %v1153_v28  ;;  %v6735_v39 = vld [vmem:[%s8955_s0 + $0xe4] ss:$16 sps:$4 sm:$0xff]   ;;  %v509_v4 = vshll.u32 %v6764_v15, 16 }
 0x12c   :  { %4171 = vmatprep.subr.bf16.mxu0 %v6608_v40  ;;  %4849 = vmatprep.subr.bf16.mxu1 %v6611_v41  ;;  %v1117_v8 = vor.u32 %v1116_v57, %v1112_v52  ;;  %v6737_v40 = vld [vmem:[%s8955_s0 + $0xe0] ss:$16 sps:$4 sm:$0xff]   ;;  %v1214_v52 = vshrl.u32 %v6735_v39, 16 }
 0x12d   :  { %4128 = vmatprep.mubr.bf16.mxu0 %v8003_v63  ;;  %4806 = vmatprep.mubr.bf16.mxu1 %v8003_v63  ;;  %v1155_v63 = vshrl.u32 %v6704_v43, 16  ;;  %v6636_v41 = vld [vmem:[%s8954_s1 + $0x9e0] ss:$16 sps:$4 sm:$0xff]   ;;  %v1191_v43 = vshll.u32 %v6735_v39, 16  ;;  %v1183_v45 = vshll.u32 %v6737_v40, 16  ;;  %v1211_v59 = vshrl.u32 %v6737_v40, 16 }
 0x12e   :  { %v8271_v14 = vsel %vm469_vm6, %v1117_v8, %v1121_v2  ;;  %v6657_v8 = vld [vmem:[%s8954_s1 + $0xa28] ss:$16 sps:$4 sm:$0xff]   ;;  %v511_v39 = vrot.slane %v509_v4, 1  ;;  %v516_v40 = vrot.slane %v514_v26, 1 }
 0x12f   :  { %4172 = vmatpush1.bf16.msra.mxu0 %v6606_v29  ;;  %4850 = vmatpush1.bf16.msra.mxu1 %v6609_v51  ;;  %v1157_v22 = vor.u32 %v1155_v63, %v1121_v2  ;;  %v6639_v29 = vld [vmem:[%s8954_s1 + $0x9e8] ss:$16 sps:$4 sm:$0xff]   ;;  %v6650_v51 = vld [vmem:[%s8954_s1 + $0xa04] ss:$16 sps:$4 sm:$0xff]   ;;  %v1193_v53 = vrot.slane %v1191_v43, 1 }
 0x130   :  { %4173 = vmatprep.subr.bf16.mxu0 %v6617_v54  ;;  %4851 = vmatprep.subr.bf16.mxu1 %v6620_v62  ;;  %v1185_v54 = vrot.slane %v1183_v45, 1  ;;  %v6671_v63 = vld [vmem:[%s8954_s1 + $0xa64] ss:$16 sps:$4 sm:$0xff]   ;;  %v6771_v45 = vld [vmem:[%s8955_s0 + $0x6c] ss:$16 sps:$4 sm:$0xff]  }
 0x131   :  { %v8314_v35 = vsel %vm469_vm6, %v1157_v22, %v1161_v31  ;;  %v8348_v60 = vsel %vm469_vm6, %v1189_v55, %v1193_v53  ;;  %v1216_v62 = vor.u32 %v1214_v52, %v1193_v53  ;;  %v6770_v55 = vld [vmem:[%s8955_s0 + $0x48] ss:$16 sps:$4 sm:$0xff]   ;;  %v544_v52 = vor.u32 %v542_v33, %v516_v40 }
 0x132   :  { %4129 = vmatmul.mubr.bf16.gmra.mrb[24].mxu0 %v8008_v49  ;;  %4807 = vmatmul.mubr.bf16.gmra.mrb[24].mxu1 %v8008_v49  ;;  %v6632_v49 = vld [vmem:[%s8954_s1 + $0x9c4] ss:$16 sps:$4 sm:$0xff]   ;;  %v8351_v61 = vsel %vm469_vm6, %v1181_v44, %v1185_v54  ;;  %v1213_v57 = vor.u32 %v1211_v59, %v1185_v54  ;;  %v6773_v54 = vld [vmem:[%s8955_s0 + $0x68] ss:$16 sps:$4 sm:$0xff]  }
 0x133   :  { %4174 = vmatpush1.bf16.msra.mxu0 %v6615_v11  ;;  %4852 = vmatpush1.bf16.msra.mxu1 %v6618_v12  ;;  %v1255_v2 = vsel %vm8179_vm7, %v1216_v62, %v1254_v36  ;;  %v6665_v11 = vld [vmem:[%s8954_s1 + $0xa44] ss:$16 sps:$4 sm:$0xff]   ;;  %v6663_v12 = vld [vmem:[%s8954_s1 + $0xa40] ss:$16 sps:$4 sm:$0xff]   ;;  %v6681_v59 = vld [vmem:[%s8954_s1 + $0xa88] ss:$16 sps:$4 sm:$0xff]  }
 0x134   :  { %4175 = vmatprep.subr.bf16.mxu0 %v6623_v13  ;;  %4853 = vmatprep.subr.bf16.mxu1 %v6626_v16  ;;  %1256 = vst [vmem:[#allocation2 + $0x2e8] sm:$0xff] %v1255_v2  ;;  %v1252_v3 = vsel %vm8179_vm7, %v1213_v57, %v1251_v0  ;;  %v6762_v13 = vld [vmem:[%s8955_s0 + $0x8] ss:$16 sps:$4 sm:$0xff]   ;;  %v578_v36 = vshll.u32 %v6771_v45, 16  ;;  %v566_v0 = vshrl.u32 %v6770_v55, 16 }
 0x135   :  { %4138 = vmatprep.mubr.bf16.mxu0 %v8039_v9  ;;  %4816 = vmatprep.mubr.bf16.mxu1 %v8039_v9  ;;  %v6641_v9 = vld [vmem:[%s8954_s1 + $0x9ec] ss:$16 sps:$4 sm:$0xff]   ;;  %1253 = vst [vmem:[#allocation2 + $0x2e0] sm:$0xff] %v1252_v3  ;;  %v6765_v16 = vld [vmem:[%s8955_s0 + $0x28] ss:$16 sps:$4 sm:$0xff]   ;;  %v495_v19 = vshrl.u32 %v6762_v13, 16 }
 0x136   :  { %v534_v44 = vshrl.u32 %v6765_v16, 16 }
 0x137   :  { %4176 = vmatpush1.bf16.msra.mxu0 %v6621_v20  ;;  %4854 = vmatpush1.bf16.msra.mxu1 %v6624_v21  ;;  %v497_v20 = vshll.u32 %v6762_v13, 16  ;;  %v6768_v21 = vld [vmem:[%s8955_s0 + $0x4c] ss:$16 sps:$4 sm:$0xff]   ;;  %v588_v13 = vshrl.u32 %v6773_v54, 16 }
 0x138   :  { %4177 = vmatprep.subr.bf16.mxu0 %v6632_v49  ;;  %4855 = vmatprep.subr.bf16.mxu1 %v6635_v27  ;;  %v502_v49 = vshll.u32 %v6765_v16, 16  ;;  %v6669_v27 = vld [vmem:[%s8954_s1 + $0xa60] ss:$16 sps:$4 sm:$0xff]   ;;  %v546_v34 = vshll.u32 %v6768_v21, 16  ;;  %v574_v53 = vshrl.u32 %v6768_v21, 16 }
 0x139   :  { %v6687_v21 = vld [vmem:[%s8954_s1 + $0xaa8] ss:$16 sps:$4 sm:$0xff]  }
 0x13a   :  { %4139 = vmatmul.mubr.bf16.gmra.mrb[28].mxu0 %v8044_v10  ;;  %4817 = vmatmul.mubr.bf16.gmra.mrb[28].mxu1 %v8044_v10  ;;  %v6653_v10 = vld [vmem:[%s8954_s1 + $0xa0c] ss:$16 sps:$4 sm:$0xff]  }
 0x13b   :  { %4178 = vmatpush1.bf16.msra.mxu0 %v6630_v30  ;;  %4856 = vmatpush1.bf16.msra.mxu1 %v6633_v32  ;;  %v1266_v22 = vld [vmem:[#allocation2 + $0x2e8] sm:$0x80]  ;;  %v6672_v30 = vld [vmem:[%s8954_s1 + $0xa68] ss:$16 sps:$4 sm:$0xff]   ;;  %v499_v32 = vrot.slane %v497_v20, 1 }
 0x13c   :  { %4179 = vmatprep.subr.bf16.mxu0 %v6638_v47  ;;  %4857 = vmatprep.subr.bf16.mxu1 %v6641_v9  ;;  %v1267_v31 = vsel %vm8225_vm10, 0, %v1266_v22  ;;  %v1263_v28 = vld [vmem:[#allocation2 + $0x2e0] sm:$0x80]  ;;  %v6684_v20 = vld [vmem:[%s8954_s1 + $0xaa0] ss:$16 sps:$4 sm:$0xff]   ;;  %v1320_v22 = vld [vmem:[#allocation2 + $0x168] sm:$0xff] }
 0x13d   :  { %4181 = vmatprep.mubr.bf16.mxu0 %v8112_v48  ;;  %4859 = vmatprep.mubr.bf16.mxu1 %v8112_v48  ;;  %v6656_v48 = vld [vmem:[%s8954_s1 + $0xa24] ss:$16 sps:$4 sm:$0xff]   ;;  %1268 = vst [vmem:[#allocation2 + $0x2e8] sm:$0x80] %v1267_v31  ;;  %v1264_v9 = vsel %vm8225_vm10, 0, %v1263_v28  ;;  %v500_v43 = vor.u32 %v499_v32, %v495_v19 }
 0x13e   :  { %v6680_v47 = vld [vmem:[%s8954_s1 + $0xa84] ss:$16 sps:$4 sm:$0xff]   ;;  %1265 = vst [vmem:[#allocation2 + $0x2e0] sm:$0x80] %v1264_v9  ;;  %v6779_v19 = vld [vmem:[%s8955_s0 + $0xa8] ss:$16 sps:$4 sm:$0xff]  }
 0x13f   :  { %4180 = vmatpush1.bf16.msra.mxu0 %v6636_v41  ;;  %4858 = vmatpush1.bf16.msra.mxu1 %v6639_v29  ;;  %v504_v41 = vrot.slane %v502_v49, 1  ;;  %v6683_v29 = vld [vmem:[%s8954_s1 + $0xa8c] ss:$16 sps:$4 sm:$0xff]   ;;  %v629_v28 = vld [vmem:[#allocation2 + $0x170] sm:$0xff] }
 0x140   :  { %4262 = vmatprep.subr.bf16.mxu0 %v6650_v51  ;;  %4940 = vmatprep.subr.bf16.mxu1 %v6653_v10  ;;  %v512_v51 = vor.u32 %v511_v39, %v507_v23  ;;  %v538_v10 = vshll.u32 %v6770_v55, 16  ;;  %v6695_v31 = vld [vmem:[%s8954_s1 + $0xacc] ss:$16 sps:$4 sm:$0xff]  }
 0x141   :  { %v536_v62 = vor.u32 %v534_v44, %v504_v41  ;;  %v6783_v55 = vld [vmem:[%s8955_s0 + $0xec] ss:$16 sps:$4 sm:$0xff]  }
 0x142   :  { %4182 = vmatmul.mubr.bf16.vlgmr.msra.gmra.mrb[0].mxu0 %v8115_v50  ;;  %4860 = vmatmul.mubr.bf16.vlgmr.msra.gmra.mrb[0].mxu1 %v8115_v50  ;;  %v6668_v50 = vld [vmem:[%s8954_s1 + $0xa4c] ss:$16 sps:$4 sm:$0xff]   ;;  %v8451_v57 = vsel %vm469_vm6, %v512_v51, %v516_v40  ;;  %v540_v2 = vrot.slane %v538_v10, 1  ;;  %v1163_v10 = vshrl.u32 %v6779_v19, 16 }
 0x143   :  { %4263 = vmatpush1.bf16.msra.mxu0 %v6648_v58  ;;  %4941 = vmatpush1.bf16.msra.mxu1 %v6651_v56  ;;  %v6678_v58 = vld [vmem:[%s8954_s1 + $0xa80] ss:$16 sps:$4 sm:$0xff]   ;;  %v8442_v56 = vsel %vm469_vm6, %v500_v43, %v504_v41  ;;  %v6782_v41 = vld [vmem:[%s8955_s0 + $0xc8] ss:$16 sps:$4 sm:$0xff]  }
 0x144   :  { %4264 = vmatprep.subr.bf16.mxu0 %v6656_v48  ;;  %4942 = vmatprep.subr.bf16.mxu1 %v6659_v1  ;;  %v6686_v48 = vld [vmem:[%s8954_s1 + $0xaa4] ss:$16 sps:$4 sm:$0xff]   ;;  %v568_v15 = vor.u32 %v566_v0, %v540_v2 }
 0x145   :  { %4191 = vmatprep.mubr.bf16.mxu0 %v8144_v5  ;;  %4869 = vmatprep.mubr.bf16.mxu1 %v8144_v5  ;;  %v6674_v5 = vld [vmem:[%s8954_s1 + $0xa6c] ss:$16 sps:$4 sm:$0xff]  }
 0x147   :  { %4265 = vmatpush1.bf16.msra.mxu0 %v6654_v7  ;;  %4943 = vmatpush1.bf16.msra.mxu1 %v6657_v8  ;;  %v632_v7 = vld [vmem:[#allocation2 + $0x178] sm:$0xff] }
 0x148   :  { %4266 = vmatprep.subr.bf16.mxu0 %v6665_v11  ;;  %4944 = vmatprep.subr.bf16.mxu1 %v6668_v50  ;;  %v6774_v8 = vld [vmem:[%s8955_s0 + $0x8c] ss:$16 sps:$4 sm:$0xff]   ;;  %v580_v50 = vrot.slane %v578_v36, 1 }
 0x149   :  { %v6776_v11 = vld [vmem:[%s8955_s0 + $0xac] ss:$16 sps:$4 sm:$0xff]   ;;  %v1136_v16 = vshrl.u32 %v6774_v8, 16  ;;  %v1138_v18 = vshll.u32 %v6774_v8, 16  ;;  %v1207_v8 = vshll.u32 %v6783_v55, 16 }
 0x14a   :  { %4192 = vmatmul.mubr.bf16.gmra.mrb[4].mxu0 %v8147_v6  ;;  %4870 = vmatmul.mubr.bf16.gmra.mrb[4].mxu1 %v8147_v6  ;;  %v548_v6 = vrot.slane %v546_v34, 1  ;;  %v1143_v49 = vshll.u32 %v6776_v11, 16 }
 0x14b   :  { %4267 = vmatpush1.bf16.msra.mxu0 %v6663_v12  ;;  %4945 = vmatpush1.bf16.msra.mxu1 %v6666_v37  ;;  %v570_v12 = vshll.u32 %v6773_v54, 16  ;;  %v591_v37 = vshrl.u32 %v6771_v45, 16  ;;  %v1140_v32 = vrot.slane %v1138_v18, 1  ;;  %v1171_v45 = vshrl.u32 %v6776_v11, 16  ;;  %v6690_v54 = vld [vmem:[%s8954_s1 + $0xac0] ss:$16 sps:$4 sm:$0xff]  }
 0x14c   :  { %4268 = vmatprep.subr.bf16.mxu0 %v6671_v63  ;;  %4946 = vmatprep.subr.bf16.mxu1 %v6674_v5  ;;  %v8454_v1 = vsel %vm469_vm6, %v544_v52, %v548_v6  ;;  %v576_v3 = vor.u32 %v574_v53, %v548_v6  ;;  %v6778_v63 = vld [vmem:[%s8955_s0 + $0x88] ss:$16 sps:$4 sm:$0xff]   ;;  %v8466_v5 = vsel %vm469_vm6, %v536_v62, %v540_v2  ;;  %v1145_v40 = vrot.slane %v1143_v49, 1  ;;  %v6701_v11 = vld [vmem:[%s8954_s1 + $0xaec] ss:$16 sps:$4 sm:$0xff]  }
 0x14d   :  { %4201 = vmatprep.mubr.bf16.mxu0 %v8187_v24  ;;  %4879 = vmatprep.mubr.bf16.mxu1 %v8187_v24  ;;  %v6689_v24 = vld [vmem:[%s8954_s1 + $0xaac] ss:$16 sps:$4 sm:$0xff]   ;;  %v572_v4 = vrot.slane %v570_v12, 1  ;;  %v593_v26 = vor.u32 %v591_v37, %v580_v50  ;;  %v1124_v33 = vshrl.u32 %v6778_v63, 16  ;;  %v1126_v34 = vshll.u32 %v6778_v63, 16 }
 0x14e   :  { %v8478_v23 = vsel %vm469_vm6, %v576_v3, %v580_v50  ;;  %v1141_v43 = vor.u32 %v1140_v32, %v1136_v16  ;;  %v1167_v53 = vshll.u32 %v6782_v41, 16  ;;  %v1173_v36 = vor.u32 %v1171_v45, %v1145_v40  ;;  %v6713_v32 = vld [vmem:[%s8954_s1 + $0xb0c] ss:$16 sps:$4 sm:$0xff]   ;;  %v6725_v45 = vld [vmem:[%s8954_s1 + $0xb44] ss:$16 sps:$4 sm:$0xff]  }
 0x14f   :  { %4269 = vmatpush1.bf16.msra.mxu0 %v6669_v27  ;;  %4947 = vmatpush1.bf16.msra.mxu1 %v6672_v30  ;;  %v6780_v27 = vld [vmem:[%s8955_s0 + $0xcc] ss:$16 sps:$4 sm:$0xff]   ;;  %v6692_v30 = vld [vmem:[%s8954_s1 + $0xac4] ss:$16 sps:$4 sm:$0xff]   ;;  %v8492_v9 = vsel %vm469_vm6, %v568_v15, %v572_v4  ;;  %v590_v39 = vor.u32 %v588_v13, %v572_v4  ;;  %v1128_v6 = vrot.slane %v1126_v34, 1  ;;  %v1195_v12 = vshrl.u32 %v6782_v41, 16 }
 0x150   :  { %4270 = vmatprep.subr.bf16.mxu0 %v6680_v47  ;;  %4948 = vmatprep.subr.bf16.mxu1 %v6683_v29  ;;  %v1131_v47 = vshll.u32 %v6779_v19, 16  ;;  %v6785_v29 = vld [vmem:[%s8955_s0 + $0xe8] ss:$16 sps:$4 sm:$0xff]   ;;  %v1175_v52 = vshll.u32 %v6780_v27, 16  ;;  %v1203_v0 = vshrl.u32 %v6780_v27, 16  ;;  %v1220_v13 = vshrl.u32 %v6783_v55, 16 }
 0x151   :  { %v630_v51 = vsel %vm8179_vm7, %v590_v39, %v629_v28  ;;  %v1129_v62 = vor.u32 %v1128_v6, %v1124_v33  ;;  %v1199_v37 = vshll.u32 %v6785_v29, 16  ;;  %v1209_v18 = vrot.slane %v1207_v8, 1  ;;  %v6696_v19 = vld [vmem:[%s8954_s1 + $0xae0] ss:$16 sps:$4 sm:$0xff]   ;;  %v6710_v28 = vld [vmem:[%s8954_s1 + $0xb04] ss:$16 sps:$4 sm:$0xff]  }
 0x152   :  { %4202 = vmatmul.mubr.bf16.gmra.mrb[8].mxu0 %v8190_v25  ;;  %4880 = vmatmul.mubr.bf16.gmra.mrb[8].mxu1 %v8190_v25  ;;  %v633_v25 = vsel %vm8179_vm7, %v593_v26, %v632_v7  ;;  %v1133_v44 = vrot.slane %v1131_v47, 1  ;;  %631 = vst [vmem:[#allocation2 + $0x170] sm:$0xff] %v630_v51  ;;  %v1177_v2 = vrot.slane %v1175_v52, 1  ;;  %v1169_v7 = vrot.slane %v1167_v53, 1  ;;  %v6699_v26 = vld [vmem:[%s8954_s1 + $0xae8] ss:$16 sps:$4 sm:$0xff]  }
 0x153   :  { %4271 = vmatpush1.bf16.msra.mxu0 %v6678_v58  ;;  %4949 = vmatpush1.bf16.msra.mxu1 %v6681_v59  ;;  %634 = vst [vmem:[#allocation2 + $0x178] sm:$0xff] %v633_v25  ;;  %v6693_v58 = vld [vmem:[%s8954_s1 + $0xac8] ss:$16 sps:$4 sm:$0xff]   ;;  %v8514_v59 = vsel %vm469_vm6, %v1141_v43, %v1145_v40  ;;  %v1217_v4 = vshrl.u32 %v6785_v29, 16  ;;  %v6708_v55 = vld [vmem:[%s8954_s1 + $0xb00] ss:$16 sps:$4 sm:$0xff]  }
 0x154   :  { %4272 = vmatprep.subr.bf16.mxu0 %v6686_v48  ;;  %4950 = vmatprep.subr.bf16.mxu1 %v6689_v24  ;;  %v1319_v48 = vld [vmem:[#allocation2 + $0x160] sm:$0xff]  ;;  %v1165_v3 = vor.u32 %v1163_v10, %v1133_v44  ;;  %v8523_v50 = vsel %vm469_vm6, %v1129_v62, %v1133_v44  ;;  %v8526_v63 = vsel %vm469_vm6, %v1173_v36, %v1177_v2  ;;  %v6717_v44 = vld [vmem:[%s8954_s1 + $0xb28] ss:$16 sps:$4 sm:$0xff]  }
 0x155   :  { %4211 = vmatprep.mubr.bf16.mxu0 %v1320_v22  ;;  %4889 = vmatprep.mubr.bf16.mxu1 %v1320_v22  ;;  %v6698_v24 = vld [vmem:[%s8954_s1 + $0xae4] ss:$16 sps:$4 sm:$0xff]   ;;  %v1205_v16 = vor.u32 %v1203_v0, %v1177_v2  ;;  %v1260_v22 = vld [vmem:[#allocation2 + $0x2f8] sm:$0xff]  ;;  %v6714_v6 = vld [vmem:[%s8954_s1 + $0xb20] ss:$16 sps:$4 sm:$0xff]  }
 0x156   :  { %v8529_v15 = vsel %vm469_vm6, %v1165_v3, %v1169_v7  ;;  %v6716_v43 = vld [vmem:[%s8954_s1 + $0xb24] ss:$16 sps:$4 sm:$0xff]   ;;  %v6723_v10 = vld [vmem:[%s8954_s1 + $0xb40] ss:$16 sps:$4 sm:$0xff]   ;;  %v6726_v53 = vld [vmem:[%s8954_s1 + $0xb48] ss:$16 sps:$4 sm:$0xff]  }
 0x157   :  { %4273 = vmatpush1.bf16.msra.mxu0 %v6684_v20  ;;  %4951 = vmatpush1.bf16.msra.mxu1 %v6687_v21  ;;  %v1197_v20 = vor.u32 %v1195_v12, %v1169_v7  ;;  %v1201_v21 = vrot.slane %v1199_v37, 1  ;;  %v8538_v27 = vsel %vm469_vm6, %v1205_v16, %v1209_v18  ;;  %v6732_v62 = vld [vmem:[%s8954_s1 + $0xb68] ss:$16 sps:$4 sm:$0xff]   ;;  %v6740_v36 = vld [vmem:[%s8954_s1 + $0xb84] ss:$16 sps:$4 sm:$0xff]  }
 0x158   :  { %4274 = vmatprep.subr.bf16.mxu0 %v6692_v30  ;;  %4952 = vmatprep.subr.bf16.mxu1 %v6695_v31  ;;  %v1222_v30 = vor.u32 %v1220_v13, %v1209_v18  ;;  %v1257_v31 = vld [vmem:[#allocation2 + $0x2f0] sm:$0xff]  ;;  %v1368_v2 = vld [vmem:[#allocation2 + $0x2e8] sm:$0xff] }
 0x159   :  { %v8549_v34 = vsel %vm469_vm6, %v1197_v20, %v1201_v21  ;;  %v1219_v47 = vor.u32 %v1217_v4, %v1201_v21  ;;  %v644_v25 = vld [vmem:[#allocation2 + $0x170] sm:$0x80]  ;;  %v6738_v0 = vld [vmem:[%s8954_s1 + $0xb80] ss:$16 sps:$4 sm:$0xff]   ;;  %v6747_v7 = vld [vmem:[%s8954_s1 + $0xba8] ss:$16 sps:$4 sm:$0xff]  }
 0x15a   :  { %4212 = vmatmul.mubr.bf16.gmra.mrb[12].mxu0 %v1319_v48  ;;  %4890 = vmatmul.mubr.bf16.gmra.mrb[12].mxu1 %v1319_v48  ;;  %v647_v49 = vld [vmem:[#allocation2 + $0x178] sm:$0x80]  ;;  %v1261_v39 = vsel %vm8179_vm7, %v1222_v30, %v1260_v22  ;;  %v645_v40 = vsel %vm8225_vm10, 0, %v644_v25  ;;  %v6741_v48 = vld [vmem:[%s8954_s1 + $0xb88] ss:$16 sps:$4 sm:$0xff]  }
 0x15b   :  { %4275 = vmatpush1.bf16.msra.mxu0 %v6690_v54  ;;  %4953 = vmatpush1.bf16.msra.mxu1 %v6693_v58  ;;  %v648_v33 = vsel %vm8225_vm10, 0, %v647_v49  ;;  %1262 = vst [vmem:[#allocation2 + $0x2f8] sm:$0xff] %v1261_v39  ;;  %v1258_v41 = vsel %vm8179_vm7, %v1219_v47, %v1257_v31  ;;  %646 = vst [vmem:[#allocation2 + $0x170] sm:$0x80] %v645_v40  ;;  %v6734_v58 = vld [vmem:[%s8954_s1 + $0xb6c] ss:$16 sps:$4 sm:$0xff]  }
 0x15c   :  { %4276 = vmatprep.subr.bf16.mxu0 %v6698_v24  ;;  %4954 = vmatprep.subr.bf16.mxu1 %v6701_v11  ;;  %649 = vst [vmem:[#allocation2 + $0x178] sm:$0x80] %v648_v33  ;;  %1259 = vst [vmem:[#allocation2 + $0x2f0] sm:$0xff] %v1258_v41  ;;  %v6746_v24 = vld [vmem:[%s8954_s1 + $0xba4] ss:$16 sps:$4 sm:$0xff]  }
 0x15d   :  { %4221 = vmatprep.mubr.bf16.mxu0 %v8271_v14  ;;  %4899 = vmatprep.mubr.bf16.mxu1 %v8271_v14  ;;  %v6711_v14 = vld [vmem:[%s8954_s1 + $0xb08] ss:$16 sps:$4 sm:$0xff]   ;;  %v6744_v3 = vld [vmem:[%s8954_s1 + $0xba0] ss:$16 sps:$4 sm:$0xff]   ;;  %v6752_v8 = vld [vmem:[%s8954_s1 + $0xbc4] ss:$16 sps:$4 sm:$0xff]  }
 0x15e   :  { %v1367_v11 = vld [vmem:[#allocation2 + $0x2e0] sm:$0xff]  ;;  %v6753_v37 = vld [vmem:[%s8954_s1 + $0xbc8] ss:$16 sps:$4 sm:$0xff]   ;;  %v6761_v16 = vld [vmem:[%s8954_s1 + $0xbec] ss:$16 sps:$4 sm:$0xff]  }
 0x15f   :  { %4277 = vmatpush1.bf16.msra.mxu0 %v6696_v19  ;;  %4955 = vmatpush1.bf16.msra.mxu1 %v6699_v26  ;;  %v6750_v12 = vld [vmem:[%s8954_s1 + $0xbc0] ss:$16 sps:$4 sm:$0xff]   ;;  %v6758_v13 = vld [vmem:[%s8954_s1 + $0xbe4] ss:$16 sps:$4 sm:$0xff]   ;;  %v6759_v19 = vld [vmem:[%s8954_s1 + $0xbe8] ss:$16 sps:$4 sm:$0xff]  }
 0x160   :  { %4278 = vmatprep.subr.bf16.mxu0 %v6710_v28  ;;  %4956 = vmatprep.subr.bf16.mxu1 %v6713_v32  ;;  %v6756_v18 = vld [vmem:[%s8954_s1 + $0xbe0] ss:$16 sps:$4 sm:$0xff]  }
 0x162   :  { %4222 = vmatmul.mubr.bf16.gmra.mrb[16].mxu0 %v8277_v17  ;;  %4900 = vmatmul.mubr.bf16.gmra.mrb[16].mxu1 %v8277_v17  ;;  %v6728_v17 = vld [vmem:[%s8954_s1 + $0xb4c] ss:$16 sps:$4 sm:$0xff]  }
 0x163   :  { %4279 = vmatpush1.bf16.msra.mxu0 %v6708_v55  ;;  %4957 = vmatpush1.bf16.msra.mxu1 %v6711_v14  ;;  %v1272_v29 = vld [vmem:[#allocation2 + $0x2f8] sm:$0x80]  ;;  %v1269_v52 = vld [vmem:[#allocation2 + $0x2f0] sm:$0x80] }
 0x164   :  { %4280 = vmatprep.subr.bf16.mxu0 %v6716_v43  ;;  %4958 = vmatprep.subr.bf16.mxu1 %v6719_v46  ;;  %v1273_v51 = vsel %vm8225_vm10, 0, %v1272_v29  ;;  %v1270_v54 = vsel %vm8225_vm10, 0, %v1269_v52  ;;  %v1322_v20 = vld [vmem:[#allocation2 + $0x178] sm:$0xff] }
 0x165   :  { %4231 = vmatprep.mubr.bf16.mxu0 %v8314_v35  ;;  %4909 = vmatprep.mubr.bf16.mxu1 %v8314_v35  ;;  %1274 = vst [vmem:[#allocation2 + $0x2f8] sm:$0x80] %v1273_v51  ;;  %v6731_v35 = vld [vmem:[%s8954_s1 + $0xb64] ss:$16 sps:$4 sm:$0xff]   ;;  %1271 = vst [vmem:[#allocation2 + $0x2f0] sm:$0x80] %v1270_v54 }
 0x167   :  { %4281 = vmatpush1.bf16.msra.mxu0 %v6714_v6  ;;  %4959 = vmatpush1.bf16.msra.mxu1 %v6717_v44 }
 0x168   :  { %4282 = vmatprep.subr.bf16.mxu0 %v6725_v45  ;;  %4960 = vmatprep.subr.bf16.mxu1 %v6728_v17 }
 0x16a   :  { %4232 = vmatmul.mubr.bf16.gmra.mrb[20].mxu0 %v8317_v38  ;;  %4910 = vmatmul.mubr.bf16.gmra.mrb[20].mxu1 %v8317_v38  ;;  %v6743_v38 = vld [vmem:[%s8954_s1 + $0xb8c] ss:$16 sps:$4 sm:$0xff]  }
 0x16b   :  { %4283 = vmatpush1.bf16.msra.mxu0 %v6723_v10  ;;  %4961 = vmatpush1.bf16.msra.mxu1 %v6726_v53 }
 0x16c   :  { %4284 = vmatprep.subr.bf16.mxu0 %v6731_v35  ;;  %4962 = vmatprep.subr.bf16.mxu1 %v6734_v58 }
 0x16d   :  { %4241 = vmatprep.mubr.bf16.mxu0 %v8348_v60  ;;  %4919 = vmatprep.mubr.bf16.mxu1 %v8348_v60  ;;  %v6749_v60 = vld [vmem:[%s8954_s1 + $0xbac] ss:$16 sps:$4 sm:$0xff]  }
 0x16f   :  { %4285 = vmatpush1.bf16.msra.mxu0 %v6729_v42  ;;  %4963 = vmatpush1.bf16.msra.mxu1 %v6732_v62 }
 0x170   :  { %4286 = vmatprep.subr.bf16.mxu0 %v6740_v36  ;;  %4964 = vmatprep.subr.bf16.mxu1 %v6743_v38 }
 0x172   :  { %4242 = vmatmul.mubr.bf16.gmra.mrb[24].mxu0 %v8351_v61  ;;  %4920 = vmatmul.mubr.bf16.gmra.mrb[24].mxu1 %v8351_v61  ;;  %v6755_v61 = vld [vmem:[%s8954_s1 + $0xbcc] ss:$16 sps:$4 sm:$0xff]  }
 0x173   :  { %4287 = vmatpush1.bf16.msra.mxu0 %v6738_v0  ;;  %4965 = vmatpush1.bf16.msra.mxu1 %v6741_v48 }
 0x174   :  { %4288 = vmatprep.subr.bf16.mxu0 %v6746_v24  ;;  %4966 = vmatprep.subr.bf16.mxu1 %v6749_v60 }
 0x175   :  { %4251 = vmatprep.mubr.bf16.mxu0 %v1368_v2  ;;  %4929 = vmatprep.mubr.bf16.mxu1 %v1368_v2 }
 0x177   :  { %4289 = vmatpush1.bf16.msra.mxu0 %v6744_v3  ;;  %4967 = vmatpush1.bf16.msra.mxu1 %v6747_v7 }
 0x178   :  { %4290 = vmatprep.subr.bf16.mxu0 %v6752_v8  ;;  %4968 = vmatprep.subr.bf16.mxu1 %v6755_v61 }
 0x17a   :  { %4252 = vmatmul.mubr.bf16.gmra.mrb[28].mxu0 %v1367_v11  ;;  %4930 = vmatmul.mubr.bf16.gmra.mrb[28].mxu1 %v1367_v11 }
 0x17b   :  { %4291 = vmatpush1.bf16.msra.mxu0 %v6750_v12  ;;  %4969 = vmatpush1.bf16.msra.mxu1 %v6753_v37 }
 0x17c   :  { %4292 = vmatprep.subr.bf16.mxu0 %v6758_v13  ;;  %4970 = vmatprep.subr.bf16.mxu1 %v6761_v16 }
 0x17d   :  { %4294 = vmatprep.mubr.bf16.mxu0 %v8451_v57  ;;  %4972 = vmatprep.mubr.bf16.mxu1 %v8451_v57  ;;  %v1370_v57 = vld [vmem:[#allocation2 + $0x2f8] sm:$0xff] }
 0x17f   :  { %4293 = vmatpush1.bf16.msra.mxu0 %v6756_v18  ;;  %4971 = vmatpush1.bf16.msra.mxu1 %v6759_v19 }
 0x182   :  { %4295 = vmatmul.mubr.bf16.vlgmr.msra.gmra.mrb[0].mxu0 %v8442_v56  ;;  %4973 = vmatmul.mubr.bf16.vlgmr.msra.gmra.mrb[0].mxu1 %v8442_v56  ;;  %v1321_v56 = vld [vmem:[#allocation2 + $0x170] sm:$0xff] }
 0x183   :  { %4304 = vmatprep.mubr.bf16.mxu0 %v8454_v1  ;;  %4982 = vmatprep.mubr.bf16.mxu1 %v8454_v1  ;;  %v1369_v1 = vld [vmem:[#allocation2 + $0x2f0] sm:$0xff] }
 0x18a   :  { %4305 = vmatmul.mubr.bf16.gmra.mrb[4].mxu0 %v8466_v5  ;;  %4983 = vmatmul.mubr.bf16.gmra.mrb[4].mxu1 %v8466_v5  ;;  %v1757_v5 = vlaneseq }
 0x18b   :  { %4314 = vmatprep.mubr.bf16.mxu0 %v8478_v23  ;;  %4992 = vmatprep.mubr.bf16.mxu1 %v8478_v23 }
 0x18c   :  { %v1758_v23 = vshrl.u32 %v1757_v5, 7 }
 0x192   :  { %4315 = vmatmul.mubr.bf16.gmra.mrb[8].mxu0 %v8492_v9  ;;  %4993 = vmatmul.mubr.bf16.gmra.mrb[8].mxu1 %v8492_v9  ;;  %v1759_v9 = vsub.s32 0, %v1758_v23 }
 0x193   :  { %4324 = vmatprep.mubr.bf16.mxu0 %v1322_v20  ;;  %5002 = vmatprep.mubr.bf16.mxu1 %v1322_v20 }
 0x19a   :  { %4325 = vmatmul.mubr.bf16.gmra.mrb[12].mxu0 %v1321_v56  ;;  %5003 = vmatmul.mubr.bf16.gmra.mrb[12].mxu1 %v1321_v56 }
 0x19b   :  { %4334 = vmatprep.mubr.bf16.mxu0 %v8514_v59  ;;  %5012 = vmatprep.mubr.bf16.mxu1 %v8514_v59  ;;  %v1767_v59 = vsub.s32 2, %v1758_v23 }
 0x1a2   :  { %4335 = vmatmul.mubr.bf16.gmra.mrb[16].mxu0 %v8523_v50  ;;  %5013 = vmatmul.mubr.bf16.gmra.mrb[16].mxu1 %v8523_v50  ;;  %v1755_v50 = vld [vmem:[%s8956_s2] sm:$0xf] }
 0x1a3   :  { %4344 = vmatprep.mubr.bf16.mxu0 %v8526_v63  ;;  %5022 = vmatprep.mubr.bf16.mxu1 %v8526_v63  ;;  %v1763_v63 = vsub.s32 1, %v1758_v23  ;;  %v8690_v21 = vrot.slane %v1755_v50, %v1759_v9  ;;  %v8692_v22 = vrot.slane %v1755_v50, %v1767_v59 }
 0x1a5   :  { %v8694_v4 = vrot.slane %v1755_v50, %v1763_v63 }
 0x1aa   :  { %4345 = vmatmul.mubr.bf16.gmra.mrb[20].mxu0 %v8529_v15  ;;  %5023 = vmatmul.mubr.bf16.gmra.mrb[20].mxu1 %v8529_v15  ;;  %v1771_v15 = vsub.s32 3, %v1758_v23 }
 0x1ab   :  { %4354 = vmatprep.mubr.bf16.mxu0 %v8538_v27  ;;  %5032 = vmatprep.mubr.bf16.mxu1 %v8538_v27 }
 0x1ac   :  { %v8696_v26 = vrot.slane %v1755_v50, %v1771_v15 }
 0x1b2   :  { %4355 = vmatmul.mubr.bf16.gmra.mrb[24].mxu0 %v8549_v34  ;;  %5033 = vmatmul.mubr.bf16.gmra.mrb[24].mxu1 %v8549_v34 }
 0x1b3   :  { %4364 = vmatprep.mubr.bf16.mxu0 %v1370_v57  ;;  %5042 = vmatprep.mubr.bf16.mxu1 %v1370_v57 }
 0x1ba   :  { %4365 = vmatmul.mubr.bf16.gmra.mrb[28].mxu0 %v1369_v1  ;;  %5043 = vmatmul.mubr.bf16.gmra.mrb[28].mxu1 %v1369_v1 }
 0x255   :  { %v4296_v49 = vpop.f32.mrb[0].mxu0  ;;  %v4974_v27 = vpop.f32.mrb[0].mxu1 }
 0x256   :  { %v5682_v30 = vadd.f32 %v4296_v49, %v8690_v21  ;;  %v5714_v31 = vadd.f32 %v4974_v27, %v8692_v22  ;;  %v4298_v28 = vpop.f32.mrb[1].mxu0  ;;  %v4976_v32 = vpop.f32.mrb[1].mxu1 }
 0x257   :  { %v5683_v33 = vadd.f32 %v4298_v28, %v8694_v4  ;;  %v5715_v34 = vadd.f32 %v4976_v32, %v8696_v26  ;;  %v4300_v47 = vpop.f32.mrb[2].mxu0  ;;  %v4978_v25 = vpop.f32.mrb[2].mxu1 }
 0x258   :  { %5053 = vst [vmem:[%s8957_s3] sm:$0xff] %v5682_v30  ;;  %5055 = vst [vmem:[%s8957_s3 + $0x10] sm:$0xff] %v5714_v31  ;;  %v5684_v39 = vadd.f32 %v4300_v47, %v8690_v21  ;;  %v5716_v40 = vadd.f32 %v4978_v25, %v8692_v22  ;;  %v4302_v41 = vpop.f32.mrb[3].mxu0  ;;  %v4980_v55 = vpop.f32.mrb[3].mxu1 }
 0x259   :  { %5054 = vst [vmem:[%s8957_s3 + $0x8] sm:$0xff] %v5683_v33  ;;  %5056 = vst [vmem:[%s8957_s3 + $0x18] sm:$0xff] %v5715_v34  ;;  %v5685_v14 = vadd.f32 %v4302_v41, %v8694_v4  ;;  %v5717_v43 = vadd.f32 %v4980_v55, %v8696_v26 }
 0x25a   :  { %5057 = vst [vmem:[%s8957_s3 + $0x20] sm:$0xff] %v5684_v39  ;;  %5059 = vst [vmem:[%s8957_s3 + $0x30] sm:$0xff] %v5716_v40 }
 0x25b   :  { %5058 = vst [vmem:[%s8957_s3 + $0x28] sm:$0xff] %v5685_v14  ;;  %5060 = vst [vmem:[%s8957_s3 + $0x38] sm:$0xff] %v5717_v43 }
 0x25d   :  { %v4306_v46 = vpop.f32.mrb[4].mxu0  ;;  %v4984_v6 = vpop.f32.mrb[4].mxu1 }
 0x25e   :  { %v5686_v44 = vadd.f32 %v4306_v46, %v8690_v21  ;;  %v5718_v45 = vadd.f32 %v4984_v6, %v8692_v22  ;;  %v4308_v17 = vpop.f32.mrb[5].mxu0  ;;  %v4986_v29 = vpop.f32.mrb[5].mxu1 }
 0x25f   :  { %v5687_v51 = vadd.f32 %v4308_v17, %v8694_v4  ;;  %v5719_v52 = vadd.f32 %v4986_v29, %v8696_v26  ;;  %v4310_v10 = vpop.f32.mrb[6].mxu0  ;;  %v4988_v53 = vpop.f32.mrb[6].mxu1 }
 0x260   :  { %5061 = vst [vmem:[%s8957_s3 + $0x40] sm:$0xff] %v5686_v44  ;;  %5063 = vst [vmem:[%s8957_s3 + $0x50] sm:$0xff] %v5718_v45  ;;  %v5688_v54 = vadd.f32 %v4310_v10, %v8690_v21  ;;  %v5720_v35 = vadd.f32 %v4988_v53, %v8692_v22  ;;  %v4312_v58 = vpop.f32.mrb[7].mxu0  ;;  %v4990_v42 = vpop.f32.mrb[7].mxu1 }
 0x261   :  { %5062 = vst [vmem:[%s8957_s3 + $0x48] sm:$0xff] %v5687_v51  ;;  %5064 = vst [vmem:[%s8957_s3 + $0x58] sm:$0xff] %v5719_v52  ;;  %v5689_v62 = vadd.f32 %v4312_v58, %v8694_v4  ;;  %v5721_v36 = vadd.f32 %v4990_v42, %v8696_v26 }
 0x262   :  { %5065 = vst [vmem:[%s8957_s3 + $0x60] sm:$0xff] %v5688_v54  ;;  %5067 = vst [vmem:[%s8957_s3 + $0x70] sm:$0xff] %v5720_v35 }
 0x263   :  { %5066 = vst [vmem:[%s8957_s3 + $0x68] sm:$0xff] %v5689_v62  ;;  %5068 = vst [vmem:[%s8957_s3 + $0x78] sm:$0xff] %v5721_v36 }
 0x265   :  { %v4316_v38 = vpop.f32.mrb[8].mxu0  ;;  %v4994_v0 = vpop.f32.mrb[8].mxu1 }
 0x266   :  { %v5690_v48 = vadd.f32 %v4316_v38, %v8690_v21  ;;  %v5722_v24 = vadd.f32 %v4994_v0, %v8692_v22  ;;  %v4318_v60 = vpop.f32.mrb[9].mxu0  ;;  %v4996_v2 = vpop.f32.mrb[9].mxu1 }
 0x267   :  { %v5691_v3 = vadd.f32 %v4318_v60, %v8694_v4  ;;  %v5723_v7 = vadd.f32 %v4996_v2, %v8696_v26  ;;  %v4320_v8 = vpop.f32.mrb[10].mxu0  ;;  %v4998_v61 = vpop.f32.mrb[10].mxu1 }
 0x268   :  { %5069 = vst [vmem:[%s8957_s3 + $0x80] sm:$0xff] %v5690_v48  ;;  %5071 = vst [vmem:[%s8957_s3 + $0x90] sm:$0xff] %v5722_v24  ;;  %v5692_v11 = vadd.f32 %v4320_v8, %v8690_v21  ;;  %v5724_v12 = vadd.f32 %v4998_v61, %v8692_v22  ;;  %v4322_v37 = vpop.f32.mrb[11].mxu0  ;;  %v5000_v13 = vpop.f32.mrb[11].mxu1 }
 0x269   :  { %5070 = vst [vmem:[%s8957_s3 + $0x88] sm:$0xff] %v5691_v3  ;;  %5072 = vst [vmem:[%s8957_s3 + $0x98] sm:$0xff] %v5723_v7  ;;  %v5693_v16 = vadd.f32 %v4322_v37, %v8694_v4  ;;  %v5725_v18 = vadd.f32 %v5000_v13, %v8696_v26 }
 0x26a   :  { %5073 = vst [vmem:[%s8957_s3 + $0xa0] sm:$0xff] %v5692_v11  ;;  %5075 = vst [vmem:[%s8957_s3 + $0xb0] sm:$0xff] %v5724_v12 }
 0x26b   :  { %5074 = vst [vmem:[%s8957_s3 + $0xa8] sm:$0xff] %v5693_v16  ;;  %5076 = vst [vmem:[%s8957_s3 + $0xb8] sm:$0xff] %v5725_v18 }
 0x26d   :  { %v4326_v19 = vpop.f32.mrb[12].mxu0  ;;  %v5004_v20 = vpop.f32.mrb[12].mxu1 }
 0x26e   :  { %v5694_v56 = vadd.f32 %v4326_v19, %v8690_v21  ;;  %v5726_v57 = vadd.f32 %v5004_v20, %v8692_v22  ;;  %v4328_v1 = vpop.f32.mrb[13].mxu0  ;;  %v5006_v5 = vpop.f32.mrb[13].mxu1 }
 0x26f   :  { %v5695_v23 = vadd.f32 %v4328_v1, %v8694_v4  ;;  %v5727_v9 = vadd.f32 %v5006_v5, %v8696_v26  ;;  %v4330_v59 = vpop.f32.mrb[14].mxu0  ;;  %v5008_v50 = vpop.f32.mrb[14].mxu1 }
 0x270   :  { %5077 = vst [vmem:[%s8957_s3 + $0xc0] sm:$0xff] %v5694_v56  ;;  %5079 = vst [vmem:[%s8957_s3 + $0xd0] sm:$0xff] %v5726_v57  ;;  %v5696_v63 = vadd.f32 %v4330_v59, %v8690_v21  ;;  %v5728_v15 = vadd.f32 %v5008_v50, %v8692_v22  ;;  %v4332_v49 = vpop.f32.mrb[15].mxu0  ;;  %v5010_v27 = vpop.f32.mrb[15].mxu1 }
 0x271   :  { %5078 = vst [vmem:[%s8957_s3 + $0xc8] sm:$0xff] %v5695_v23  ;;  %5080 = vst [vmem:[%s8957_s3 + $0xd8] sm:$0xff] %v5727_v9  ;;  %v5697_v30 = vadd.f32 %v4332_v49, %v8694_v4  ;;  %v5729_v31 = vadd.f32 %v5010_v27, %v8696_v26 }
 0x272   :  { %5081 = vst [vmem:[%s8957_s3 + $0xe0] sm:$0xff] %v5696_v63  ;;  %5083 = vst [vmem:[%s8957_s3 + $0xf0] sm:$0xff] %v5728_v15 }
 0x273   :  { %5082 = vst [vmem:[%s8957_s3 + $0xe8] sm:$0xff] %v5697_v30  ;;  %5084 = vst [vmem:[%s8957_s3 + $0xf8] sm:$0xff] %v5729_v31 }
 0x275   :  { %v4336_v28 = vpop.f32.mrb[16].mxu0  ;;  %v5014_v32 = vpop.f32.mrb[16].mxu1 }
 0x276   :  { %v5698_v33 = vadd.f32 %v4336_v28, %v8690_v21  ;;  %v5730_v34 = vadd.f32 %v5014_v32, %v8692_v22  ;;  %v4338_v47 = vpop.f32.mrb[17].mxu0  ;;  %v5016_v25 = vpop.f32.mrb[17].mxu1 }
 0x277   :  { %v5699_v39 = vadd.f32 %v4338_v47, %v8694_v4  ;;  %v5731_v40 = vadd.f32 %v5016_v25, %v8696_v26  ;;  %v4340_v41 = vpop.f32.mrb[18].mxu0  ;;  %v5018_v55 = vpop.f32.mrb[18].mxu1 }
 0x278   :  { %5650 = vst [vmem:[%s8957_s3 + $0x100] sm:$0xff] %v5698_v33  ;;  %5652 = vst [vmem:[%s8957_s3 + $0x110] sm:$0xff] %v5730_v34  ;;  %v5700_v14 = vadd.f32 %v4340_v41, %v8690_v21  ;;  %v5732_v43 = vadd.f32 %v5018_v55, %v8692_v22  ;;  %v4342_v46 = vpop.f32.mrb[19].mxu0  ;;  %v5020_v6 = vpop.f32.mrb[19].mxu1 }
 0x279   :  { %5651 = vst [vmem:[%s8957_s3 + $0x108] sm:$0xff] %v5699_v39  ;;  %5653 = vst [vmem:[%s8957_s3 + $0x118] sm:$0xff] %v5731_v40  ;;  %v5701_v44 = vadd.f32 %v4342_v46, %v8694_v4  ;;  %v5733_v45 = vadd.f32 %v5020_v6, %v8696_v26 }
 0x27a   :  { %5654 = vst [vmem:[%s8957_s3 + $0x120] sm:$0xff] %v5700_v14  ;;  %5656 = vst [vmem:[%s8957_s3 + $0x130] sm:$0xff] %v5732_v43 }
 0x27b   :  { %5655 = vst [vmem:[%s8957_s3 + $0x128] sm:$0xff] %v5701_v44  ;;  %5657 = vst [vmem:[%s8957_s3 + $0x138] sm:$0xff] %v5733_v45 }
 0x27d   :  { %v4346_v17 = vpop.f32.mrb[20].mxu0  ;;  %v5024_v29 = vpop.f32.mrb[20].mxu1 }
 0x27e   :  { %v5702_v51 = vadd.f32 %v4346_v17, %v8690_v21  ;;  %v5734_v52 = vadd.f32 %v5024_v29, %v8692_v22  ;;  %v4348_v10 = vpop.f32.mrb[21].mxu0  ;;  %v5026_v53 = vpop.f32.mrb[21].mxu1 }
 0x27f   :  { %v5703_v54 = vadd.f32 %v4348_v10, %v8694_v4  ;;  %v5735_v35 = vadd.f32 %v5026_v53, %v8696_v26  ;;  %v4350_v58 = vpop.f32.mrb[22].mxu0  ;;  %v5028_v42 = vpop.f32.mrb[22].mxu1 }
 0x280   :  { %5658 = vst [vmem:[%s8957_s3 + $0x140] sm:$0xff] %v5702_v51  ;;  %5660 = vst [vmem:[%s8957_s3 + $0x150] sm:$0xff] %v5734_v52  ;;  %v5704_v62 = vadd.f32 %v4350_v58, %v8690_v21  ;;  %v5736_v36 = vadd.f32 %v5028_v42, %v8692_v22  ;;  %v4352_v38 = vpop.f32.mrb[23].mxu0  ;;  %v5030_v0 = vpop.f32.mrb[23].mxu1 }
 0x281   :  { %5659 = vst [vmem:[%s8957_s3 + $0x148] sm:$0xff] %v5703_v54  ;;  %5661 = vst [vmem:[%s8957_s3 + $0x158] sm:$0xff] %v5735_v35  ;;  %v5705_v48 = vadd.f32 %v4352_v38, %v8694_v4  ;;  %v5737_v24 = vadd.f32 %v5030_v0, %v8696_v26 }
 0x282   :  { %5662 = vst [vmem:[%s8957_s3 + $0x160] sm:$0xff] %v5704_v62  ;;  %5664 = vst [vmem:[%s8957_s3 + $0x170] sm:$0xff] %v5736_v36 }
 0x283   :  { %5663 = vst [vmem:[%s8957_s3 + $0x168] sm:$0xff] %v5705_v48  ;;  %5665 = vst [vmem:[%s8957_s3 + $0x178] sm:$0xff] %v5737_v24 }
 0x285   :  { %v4356_v60 = vpop.f32.mrb[24].mxu0  ;;  %v5034_v2 = vpop.f32.mrb[24].mxu1 }
 0x286   :  { %v5706_v3 = vadd.f32 %v4356_v60, %v8690_v21  ;;  %v5738_v7 = vadd.f32 %v5034_v2, %v8692_v22  ;;  %v4358_v8 = vpop.f32.mrb[25].mxu0  ;;  %v5036_v61 = vpop.f32.mrb[25].mxu1 }
 0x287   :  { %v5707_v11 = vadd.f32 %v4358_v8, %v8694_v4  ;;  %v5739_v12 = vadd.f32 %v5036_v61, %v8696_v26  ;;  %v4360_v37 = vpop.f32.mrb[26].mxu0  ;;  %v5038_v13 = vpop.f32.mrb[26].mxu1 }
 0x288   :  { %5666 = vst [vmem:[%s8957_s3 + $0x180] sm:$0xff] %v5706_v3  ;;  %5668 = vst [vmem:[%s8957_s3 + $0x190] sm:$0xff] %v5738_v7  ;;  %v5708_v16 = vadd.f32 %v4360_v37, %v8690_v21  ;;  %v5740_v18 = vadd.f32 %v5038_v13, %v8692_v22  ;;  %v4362_v19 = vpop.f32.mrb[27].mxu0  ;;  %v5040_v20 = vpop.f32.mrb[27].mxu1 }
 0x289   :  { %5667 = vst [vmem:[%s8957_s3 + $0x188] sm:$0xff] %v5707_v11  ;;  %5669 = vst [vmem:[%s8957_s3 + $0x198] sm:$0xff] %v5739_v12  ;;  %v5709_v56 = vadd.f32 %v4362_v19, %v8694_v4  ;;  %v5741_v57 = vadd.f32 %v5040_v20, %v8696_v26 }
 0x28a   :  { %5670 = vst [vmem:[%s8957_s3 + $0x1a0] sm:$0xff] %v5708_v16  ;;  %5672 = vst [vmem:[%s8957_s3 + $0x1b0] sm:$0xff] %v5740_v18 }
 0x28b   :  { %5671 = vst [vmem:[%s8957_s3 + $0x1a8] sm:$0xff] %v5709_v56  ;;  %5673 = vst [vmem:[%s8957_s3 + $0x1b8] sm:$0xff] %v5741_v57 }
 0x28d   :  { %v4366_v1 = vpop.f32.mrb[28].mxu0  ;;  %v5044_v5 = vpop.f32.mrb[28].mxu1 }
 0x28e   :  { %v5710_v23 = vadd.f32 %v4366_v1, %v8690_v21  ;;  %v5742_v9 = vadd.f32 %v5044_v5, %v8692_v22  ;;  %v4368_v59 = vpop.f32.mrb[29].mxu0  ;;  %v5046_v50 = vpop.f32.mrb[29].mxu1 }
 0x28f   :  { %v5711_v63 = vadd.f32 %v4368_v59, %v8694_v4  ;;  %v5743_v15 = vadd.f32 %v5046_v50, %v8696_v26  ;;  %v4370_v49 = vpop.f32.mrb[30].mxu0  ;;  %v5048_v27 = vpop.f32.mrb[30].mxu1 }
 0x290   :  { %5674 = vst [vmem:[%s8957_s3 + $0x1c0] sm:$0xff] %v5710_v23  ;;  %5676 = vst [vmem:[%s8957_s3 + $0x1d0] sm:$0xff] %v5742_v9  ;;  %v5712_v30 = vadd.f32 %v4370_v49, %v8690_v21  ;;  %v5744_v31 = vadd.f32 %v5048_v27, %v8692_v22  ;;  %v4372_v28 = vpop.f32.mrb[31].mxu0  ;;  %v5050_v32 = vpop.f32.mrb[31].mxu1 }
 0x291   :  { %5675 = vst [vmem:[%s8957_s3 + $0x1c8] sm:$0xff] %v5711_v63  ;;  %5677 = vst [vmem:[%s8957_s3 + $0x1d8] sm:$0xff] %v5743_v15  ;;  %v5713_v33 = vadd.f32 %v4372_v28, %v8694_v4  ;;  %v5745_v34 = vadd.f32 %v5050_v32, %v8696_v26 }
 0x292   :  { %5678 = vst [vmem:[%s8957_s3 + $0x1e0] sm:$0xff] %v5712_v30  ;;  %5680 = vst [vmem:[%s8957_s3 + $0x1f0] sm:$0xff] %v5744_v31 }
 0x293   :  { %5679 = vst [vmem:[%s8957_s3 + $0x1e8] sm:$0xff] %v5713_v33  ;;  %5681 = vst [vmem:[%s8957_s3 + $0x1f8] sm:$0xff] %v5745_v34 }

</bundles_post_ra>
